<compile_context>
chip_gen: v7x
topology: tpu7x:2x2x1
jax: 0.10.0
libtpu: 0.0.40
codegen_flags: <defaults>
</compile_context>

<pallas_src>
import jax
import jax.numpy as jnp
import numpy as np
from jax.experimental import pallas as pl
from jax.experimental.pallas import tpu as pltpu


# ----------------------------------------------------------------------------
# Kernel 1: fused conv tower (per batch element).
#   conv1(3->16) + bias + ReLU + 2x2 maxpool + conv2(16->32) + bias + ReLU +
#   2x2 maxpool, output stored as (64, 32) rows=(h*8+w), cols=channel.
# ----------------------------------------------------------------------------
def _conv_tower_kernel(x_ref, w1_ref, b1_ref, w2_ref, b2_ref, o_ref,
                       xp1_ref, xp2_ref, ph1_ref, ph2_ref):
    # x_ref : (1, 32, 32, 3)   one NHWC sample
    # w1_ref: (9, 3, 16)       conv1 taps, t = dy*3 + dx, each (Cin, Cout)
    # b1_ref: (1, 16)
    # w2_ref: (9, 16, 32)      conv2 taps
    # b2_ref: (1, 32)
    # o_ref : (1, 64, 32)      pooled conv2 output, rows = h*8+w, cols = c
    # xp1_ref: (34, 48, 3)     zero-padded conv1 input, image at [1:33, 8:40]
    # xp2_ref: (18, 32, 16)    zero-padded conv2 input, image at [1:17, 8:24]
    # ph1_ref: (16, 32, 16)    conv1 activation after H-pool (h2, x, c)
    # ph2_ref: (8, 16, 32)     conv2 activation after H-pool (h2, x, c)

    # ---------------- conv1 (3 -> 16) + bias + ReLU ---------------------
    xp1_ref[...] = jnp.zeros_like(xp1_ref)          # zero incl. the pad ring
    xp1_ref[1:33, 8:40, :] = x_ref[0]               # sublane-aligned interior
    acc1 = jnp.zeros((1024, 16), jnp.float32)
    for dy in range(3):                             # 9 shifted-window taps
        for dx in range(3):
            patch = xp1_ref[dy:dy + 32, 7 + dx:39 + dx, :].reshape(1024, 3)
            acc1 = acc1 + jnp.dot(patch, w1_ref[dy * 3 + dx],
                                  preferred_element_type=jnp.float32)
    y1 = jnp.maximum(acc1 + b1_ref[...], 0.0)       # (1024, 16), row = y*32+x

    # ---------------- 2x2 max-pool #1 -> (16, 16, 16) -------------------
    y1 = y1.reshape(16, 2, 32, 16)                  # (h2, pair, x, c)
    ph1_ref[...] = jnp.maximum(y1[:, 0], y1[:, 1])  # H-pool  (16, 32, 16)
    a1 = jnp.maximum(ph1_ref[:, pl.ds(0, 16, stride=2), :],
                     ph1_ref[:, pl.ds(1, 16, stride=2), :])   # (16, 16, 16)

    # ---------------- conv2 (16 -> 32) + bias + ReLU --------------------
    xp2_ref[...] = jnp.zeros_like(xp2_ref)
    xp2_ref[1:17, 8:24, :] = a1
    acc2 = jnp.zeros((256, 32), jnp.float32)
    for dy in range(3):
        for dx in range(3):
            patch = xp2_ref[dy:dy + 16, 7 + dx:23 + dx, :].reshape(256, 16)
            acc2 = acc2 + jnp.dot(patch, w2_ref[dy * 3 + dx],
                                  preferred_element_type=jnp.float32)
    y2 = jnp.maximum(acc2 + b2_ref[...], 0.0)       # (256, 32), row = h*16+x

    # ---------------- 2x2 max-pool #2 -> (8, 8, 32) ---------------------
    y2 = y2.reshape(8, 2, 16, 32)
    ph2_ref[...] = jnp.maximum(y2[:, 0], y2[:, 1])  # (8, 16, 32)
    a2 = jnp.maximum(ph2_ref[:, pl.ds(0, 8, stride=2), :],
                     ph2_ref[:, pl.ds(1, 8, stride=2), :])    # (8, 8, 32)
    o_ref[0] = a2.reshape(64, 32)                   # single dense store


def conv_tower(x_nhwc, w1, b1, w2, b2):
    B = x_nhwc.shape[0]
    return pl.pallas_call(
        _conv_tower_kernel,
        out_shape=jax.ShapeDtypeStruct((B, 64, 32), jnp.float32),
        grid=(B,),
        in_specs=[
            pl.BlockSpec((1, 32, 32, 3), lambda b: (b, 0, 0, 0)),
            pl.BlockSpec((9, 3, 16), lambda b: (0, 0, 0)),
            pl.BlockSpec((1, 16), lambda b: (0, 0)),
            pl.BlockSpec((9, 16, 32), lambda b: (0, 0, 0)),
            pl.BlockSpec((1, 32), lambda b: (0, 0)),
        ],
        out_specs=pl.BlockSpec((1, 64, 32), lambda b: (b, 0, 0)),
        scratch_shapes=[
            pltpu.VMEM((34, 48, 3), jnp.float32),    # padded conv1 input
            pltpu.VMEM((18, 32, 16), jnp.float32),   # padded conv2 input
            pltpu.VMEM((16, 32, 16), jnp.float32),   # conv1 H-pooled
            pltpu.VMEM((8, 16, 32), jnp.float32),    # conv2 H-pooled
        ],
        compiler_params=pltpu.CompilerParams(
            dimension_semantics=("parallel",)),
    )(x_nhwc, w1, b1, w2, b2)


# ----------------------------------------------------------------------------
# Kernel 2: fused FC head, whole batch in ONE invocation.
#   fc1(2048->256)+ReLU -> fc2(256->50); weights loaded into VMEM exactly once.
# ----------------------------------------------------------------------------
def _fc_head_kernel(x_ref, wf1_ref, bf1_ref, wf2_ref, bf2_ref, o_ref):
    # x_ref: (B, 2048)   o_ref: (B, 50)
    h = jnp.dot(x_ref[...], wf1_ref[...], preferred_element_type=jnp.float32)
    h = jnp.maximum(h + bf1_ref[...], 0.0)                       # (B, 256)
    o_ref[...] = (jnp.dot(h, wf2_ref[...], preferred_element_type=jnp.float32)
                  + bf2_ref[...])                                # (B, 50)


def fc_head(x_flat, wf1, bf1, wf2, bf2):
    B = x_flat.shape[0]
    # No grid: one kernel invocation over the full batch; every operand is a
    # whole-array VMEM block (fc1 weight = 2 MB f32, well under the limit).
    return pl.pallas_call(
        _fc_head_kernel,
        out_shape=jax.ShapeDtypeStruct((B, 50), jnp.float32),
    )(x_flat, wf1, bf1, wf2, bf2)


# ----------------------------------------------------------------------------
# Parameters (deterministic, synthetic) and forward pass
# ----------------------------------------------------------------------------
def init_params():
    ks = jax.random.split(jax.random.PRNGKey(42), 8)
    # torch layouts
    w1_t = jax.random.normal(ks[0], (16, 3, 3, 3), jnp.float32) * 0.10   # (O,I,kH,kW)
    b1 = jax.random.normal(ks[1], (1, 16), jnp.float32) * 0.10
    w2_t = jax.random.normal(ks[2], (32, 16, 3, 3), jnp.float32) * 0.05
    b2 = jax.random.normal(ks[3], (1, 32), jnp.float32) * 0.05
    wf1_t = jax.random.normal(ks[4], (256, 32 * 8 * 8), jnp.float32) * 0.02  # in = c*64+h*8+w
    bf1 = jax.random.normal(ks[5], (1, 256), jnp.float32) * 0.02
    wf2_t = jax.random.normal(ks[6], (50, 256), jnp.float32) * 0.05
    bf2 = jax.random.normal(ks[7], (1, 50), jnp.float32) * 0.05

    # kernel layouts
    w1 = jnp.transpose(w1_t, (2, 3, 1, 0)).reshape(9, 3, 16)      # taps (dy,dx) -> (Cin,Cout)
    w2 = jnp.transpose(w2_t, (2, 3, 1, 0)).reshape(9, 16, 32)
    # fc1 rows permuted so it consumes the kernel's (h, w, c)-ordered flatten
    # directly; this absorbs torch's NCHW flatten + any device-side transpose.
    wf1 = jnp.transpose(wf1_t.reshape(256, 32, 64), (2, 1, 0)).reshape(2048, 256)
    wf2 = wf2_t.T

    kernel_params = dict(w1=w1, b1=b1, w2=w2, b2=b2,
                         wf1=wf1, bf1=bf1, wf2=wf2, bf2=bf2)
    ref_params = dict(w1_t=w1_t, b1=b1, w2_t=w2_t, b2=b2,
                      wf1_t=wf1_t, bf1=bf1, wf2_t=wf2_t, bf2=bf2)
    return kernel_params, ref_params


@jax.jit
def custom_model_forward(x_nchw, kp):
    B = x_nchw.shape[0]
    x = jnp.transpose(x_nchw, (0, 2, 3, 1)).astype(jnp.float32)     # (B,32,32,3)
    a = conv_tower(x, kp["w1"], kp["b1"], kp["w2"], kp["b2"])       # (B,64,32)
    a = a.reshape(B, 64 * 32)        # free row-major flatten in (h,w,c) order
    return fc_head(a, kp["wf1"], kp["bf1"], kp["wf2"], kp["bf2"])   # (B,50)


def reference_forward(x_nchw, rp):
    """Pure-JAX reference (lax conv / reduce_window) with torch semantics."""
    dn = jax.lax.conv_dimension_numbers(x_nchw.shape, rp["w1_t"].shape,
                                        ("NCHW", "OIHW", "NCHW"))

    def block(x, w_t, b):
        y = jax.lax.conv_general_dilated(x, w_t, (1, 1), ((1, 1), (1, 1)),
                                         dimension_numbers=dn)
        y = jnp.maximum(y + b.reshape(1, -1, 1, 1), 0.0)
        return jax.lax.reduce_window(y, -jnp.inf, jax.lax.max,
                                     (1, 1, 2, 2), (1, 1, 2, 2), "VALID")

    x = block(x_nchw.astype(jnp.float32), rp["w1_t"], rp["b1"])
    x = block(x, rp["w2_t"], rp["b2"])
    x = x.reshape(x.shape[0], -1)                     # torch NCHW flatten
    x = jnp.maximum(x @ rp["wf1_t"].T + rp["bf1"], 0.0)
    return x @ rp["wf2_t"].T + rp["bf2"]


if __name__ == "__main__":
    kernel_params, ref_params = init_params()
    x = jax.random.normal(jax.random.PRNGKey(0), (2, 3, 32, 32), jnp.float32)

    out = jax.block_until_ready(custom_model_forward(x, kernel_params))
    assert out.shape == (2, 50) and out.dtype == jnp.float32

    ref = jax.block_until_ready(reference_forward(x, ref_params))
    np.testing.assert_allclose(np.asarray(out), np.asarray(ref),
                               rtol=2e-2, atol=2e-2)
    print("KERNEL_OK")
</pallas_src>

<mosaic_0001>
module attributes {stable_mosaic.version = 11 : i64} {
  func.func @_conv_tower_kernel(%arg0: i32, %arg1: memref<1x32x32x3xf32, #tpu.memory_space<vmem>>, %arg2: memref<9x3x16xf32, #tpu.memory_space<vmem>>, %arg3: memref<1x16xf32, #tpu.memory_space<vmem>>, %arg4: memref<9x16x32xf32, #tpu.memory_space<vmem>>, %arg5: memref<1x32xf32, #tpu.memory_space<vmem>>, %arg6: memref<1x64x32xf32, #tpu.memory_space<vmem>>, %arg7: memref<34x48x3xf32, #tpu.memory_space<vmem>>, %arg8: memref<18x32x16xf32, #tpu.memory_space<vmem>>, %arg9: memref<16x32x16xf32, #tpu.memory_space<vmem>>, %arg10: memref<8x16x32xf32, #tpu.memory_space<vmem>>) attributes {dimension_semantics = [#tpu.dimension_semantics<parallel>], iteration_bounds = array<i64: 2>, scalar_prefetch = 0 : i64, scratch_operands = 4 : i64, tpu.core_type = #tpu.core_type<tc>, window_params = [{transform_indices = @transform_0, window_bounds = array<i64: 1, 32, 32, 3>}, {pipeline_mode = #tpu.pipeline_mode<synchronous>, transform_indices = @transform_1, window_bounds = array<i64: 9, 3, 16>}, {pipeline_mode = #tpu.pipeline_mode<synchronous>, transform_indices = @transform_2, window_bounds = array<i64: 1, 16>}, {pipeline_mode = #tpu.pipeline_mode<synchronous>, transform_indices = @transform_3, window_bounds = array<i64: 9, 16, 32>}, {pipeline_mode = #tpu.pipeline_mode<synchronous>, transform_indices = @transform_4, window_bounds = array<i64: 1, 32>}, {transform_indices = @transform_5, window_bounds = array<i64: 1, 64, 32>}]} {
    %cst = arith.constant 0.000000e+00 : f32
    %0 = vector.broadcast %cst : f32 to vector<34x48x3xf32>
    %c0 = arith.constant 0 : index
    %c0_0 = arith.constant 0 : index
    %c0_1 = arith.constant 0 : index
    %1 = vector.load %arg7[%c0, %c0_0, %c0_1] : memref<34x48x3xf32, #tpu.memory_space<vmem>>, vector<34x48x3xf32>
    tpu.vector_store %arg7[%c0, %c0_0, %c0_1], %0 {strides = array<i32>} : memref<34x48x3xf32, #tpu.memory_space<vmem>>, vector<34x48x3xf32>,
    %c0_2 = arith.constant 0 : index
    %c0_3 = arith.constant 0 : index
    %c0_4 = arith.constant 0 : index
    %c0_5 = arith.constant 0 : index
    %2 = vector.load %arg1[%c0_2, %c0_3, %c0_4, %c0_5] : memref<1x32x32x3xf32, #tpu.memory_space<vmem>>, vector<1x32x32x3xf32>
    %3 = vector.shape_cast %2 : vector<1x32x32x3xf32> to vector<32x32x3xf32>
    %c1 = arith.constant 1 : index
    %c8 = arith.constant 8 : index
    %c0_6 = arith.constant 0 : index
    %4 = vector.load %arg7[%c1, %c8, %c0_6] : memref<34x48x3xf32, #tpu.memory_space<vmem>>, vector<32x32x3xf32>
    tpu.vector_store %arg7[%c1, %c8, %c0_6], %3 {strides = array<i32>} : memref<34x48x3xf32, #tpu.memory_space<vmem>>, vector<32x32x3xf32>,
    %cst_7 = arith.constant 0.000000e+00 : f32
    %5 = vector.broadcast %cst_7 : f32 to vector<1024x16xf32>
    %c0_8 = arith.constant 0 : index
    %c7 = arith.constant 7 : index
    %c0_9 = arith.constant 0 : index
    %6 = vector.load %arg7[%c0_8, %c7, %c0_9] : memref<34x48x3xf32, #tpu.memory_space<vmem>>, vector<32x32x3xf32>
    %7 = vector.shape_cast %6 : vector<32x32x3xf32> to vector<1024x3xf32>
    %c0_10 = arith.constant 0 : index
    %c0_11 = arith.constant 0 : index
    %c0_12 = arith.constant 0 : index
    %8 = vector.load %arg2[%c0_10, %c0_11, %c0_12] : memref<9x3x16xf32, #tpu.memory_space<vmem>>, vector<1x3x16xf32>
    %9 = vector.shape_cast %8 : vector<1x3x16xf32> to vector<3x16xf32>
    %cst_13 = arith.constant dense<0.000000e+00> : vector<1024x16xf32>
    %10 = tpu.matmul %7, %9, %cst_13 {dimension_numbers = #tpu.dot_dimension_numbers<[1], [0], [0], [1], [0, 0, 1, 1], [], []>} : vector<1024x3xf32>, vector<3x16xf32>, vector<1024x16xf32> -> vector<1024x16xf32>
    %11 = arith.addf %5, %10 : vector<1024x16xf32>
    %c0_14 = arith.constant 0 : index
    %c8_15 = arith.constant 8 : index
    %c0_16 = arith.constant 0 : index
    %12 = vector.load %arg7[%c0_14, %c8_15, %c0_16] : memref<34x48x3xf32, #tpu.memory_space<vmem>>, vector<32x32x3xf32>
    %13 = vector.shape_cast %12 : vector<32x32x3xf32> to vector<1024x3xf32>
    %c1_17 = arith.constant 1 : index
    %c0_18 = arith.constant 0 : index
    %c0_19 = arith.constant 0 : index
    %14 = vector.load %arg2[%c1_17, %c0_18, %c0_19] : memref<9x3x16xf32, #tpu.memory_space<vmem>>, vector<1x3x16xf32>
    %15 = vector.shape_cast %14 : vector<1x3x16xf32> to vector<3x16xf32>
    %cst_20 = arith.constant dense<0.000000e+00> : vector<1024x16xf32>
    %16 = tpu.matmul %13, %15, %cst_20 {dimension_numbers = #tpu.dot_dimension_numbers<[1], [0], [0], [1], [0, 0, 1, 1], [], []>} : vector<1024x3xf32>, vector<3x16xf32>, vector<1024x16xf32> -> vector<1024x16xf32>
    %17 = arith.addf %11, %16 : vector<1024x16xf32>
    %c0_21 = arith.constant 0 : index
    %c9 = arith.constant 9 : index
    %c0_22 = arith.constant 0 : index
    %18 = vector.load %arg7[%c0_21, %c9, %c0_22] : memref<34x48x3xf32, #tpu.memory_space<vmem>>, vector<32x32x3xf32>
    %19 = vector.shape_cast %18 : vector<32x32x3xf32> to vector<1024x3xf32>
    %c2 = arith.constant 2 : index
    %c0_23 = arith.constant 0 : index
    %c0_24 = arith.constant 0 : index
    %20 = vector.load %arg2[%c2, %c0_23, %c0_24] : memref<9x3x16xf32, #tpu.memory_space<vmem>>, vector<1x3x16xf32>
    %21 = vector.shape_cast %20 : vector<1x3x16xf32> to vector<3x16xf32>
    %cst_25 = arith.constant dense<0.000000e+00> : vector<1024x16xf32>
    %22 = tpu.matmul %19, %21, %cst_25 {dimension_numbers = #tpu.dot_dimension_numbers<[1], [0], [0], [1], [0, 0, 1, 1], [], []>} : vector<1024x3xf32>, vector<3x16xf32>, vector<1024x16xf32> -> vector<1024x16xf32>
    %23 = arith.addf %17, %22 : vector<1024x16xf32>
    %c1_26 = arith.constant 1 : index
    %c7_27 = arith.constant 7 : index
    %c0_28 = arith.constant 0 : index
    %24 = vector.load %arg7[%c1_26, %c7_27, %c0_28] : memref<34x48x3xf32, #tpu.memory_space<vmem>>, vector<32x32x3xf32>
    %25 = vector.shape_cast %24 : vector<32x32x3xf32> to vector<1024x3xf32>
    %c3 = arith.constant 3 : index
    %c0_29 = arith.constant 0 : index
    %c0_30 = arith.constant 0 : index
    %26 = vector.load %arg2[%c3, %c0_29, %c0_30] : memref<9x3x16xf32, #tpu.memory_space<vmem>>, vector<1x3x16xf32>
    %27 = vector.shape_cast %26 : vector<1x3x16xf32> to vector<3x16xf32>
    %cst_31 = arith.constant dense<0.000000e+00> : vector<1024x16xf32>
    %28 = tpu.matmul %25, %27, %cst_31 {dimension_numbers = #tpu.dot_dimension_numbers<[1], [0], [0], [1], [0, 0, 1, 1], [], []>} : vector<1024x3xf32>, vector<3x16xf32>, vector<1024x16xf32> -> vector<1024x16xf32>
    %29 = arith.addf %23, %28 : vector<1024x16xf32>
    %c1_32 = arith.constant 1 : index
    %c8_33 = arith.constant 8 : index
    %c0_34 = arith.constant 0 : index
    %30 = vector.load %arg7[%c1_32, %c8_33, %c0_34] : memref<34x48x3xf32, #tpu.memory_space<vmem>>, vector<32x32x3xf32>
    %31 = vector.shape_cast %30 : vector<32x32x3xf32> to vector<1024x3xf32>
    %c4 = arith.constant 4 : index
    %c0_35 = arith.constant 0 : index
    %c0_36 = arith.constant 0 : index
    %32 = vector.load %arg2[%c4, %c0_35, %c0_36] : memref<9x3x16xf32, #tpu.memory_space<vmem>>, vector<1x3x16xf32>
    %33 = vector.shape_cast %32 : vector<1x3x16xf32> to vector<3x16xf32>
    %cst_37 = arith.constant dense<0.000000e+00> : vector<1024x16xf32>
    %34 = tpu.matmul %31, %33, %cst_37 {dimension_numbers = #tpu.dot_dimension_numbers<[1], [0], [0], [1], [0, 0, 1, 1], [], []>} : vector<1024x3xf32>, vector<3x16xf32>, vector<1024x16xf32> -> vector<1024x16xf32>
    %35 = arith.addf %29, %34 : vector<1024x16xf32>
    %c1_38 = arith.constant 1 : index
    %c9_39 = arith.constant 9 : index
    %c0_40 = arith.constant 0 : index
    %36 = vector.load %arg7[%c1_38, %c9_39, %c0_40] : memref<34x48x3xf32, #tpu.memory_space<vmem>>, vector<32x32x3xf32>
    %37 = vector.shape_cast %36 : vector<32x32x3xf32> to vector<1024x3xf32>
    %c5 = arith.constant 5 : index
    %c0_41 = arith.constant 0 : index
    %c0_42 = arith.constant 0 : index
    %38 = vector.load %arg2[%c5, %c0_41, %c0_42] : memref<9x3x16xf32, #tpu.memory_space<vmem>>, vector<1x3x16xf32>
    %39 = vector.shape_cast %38 : vector<1x3x16xf32> to vector<3x16xf32>
    %cst_43 = arith.constant dense<0.000000e+00> : vector<1024x16xf32>
    %40 = tpu.matmul %37, %39, %cst_43 {dimension_numbers = #tpu.dot_dimension_numbers<[1], [0], [0], [1], [0, 0, 1, 1], [], []>} : vector<1024x3xf32>, vector<3x16xf32>, vector<1024x16xf32> -> vector<1024x16xf32>
    %41 = arith.addf %35, %40 : vector<1024x16xf32>
    %c2_44 = arith.constant 2 : index
    %c7_45 = arith.constant 7 : index
    %c0_46 = arith.constant 0 : index
    %42 = vector.load %arg7[%c2_44, %c7_45, %c0_46] : memref<34x48x3xf32, #tpu.memory_space<vmem>>, vector<32x32x3xf32>
    %43 = vector.shape_cast %42 : vector<32x32x3xf32> to vector<1024x3xf32>
    %c6 = arith.constant 6 : index
    %c0_47 = arith.constant 0 : index
    %c0_48 = arith.constant 0 : index
    %44 = vector.load %arg2[%c6, %c0_47, %c0_48] : memref<9x3x16xf32, #tpu.memory_space<vmem>>, vector<1x3x16xf32>
    %45 = vector.shape_cast %44 : vector<1x3x16xf32> to vector<3x16xf32>
    %cst_49 = arith.constant dense<0.000000e+00> : vector<1024x16xf32>
    %46 = tpu.matmul %43, %45, %cst_49 {dimension_numbers = #tpu.dot_dimension_numbers<[1], [0], [0], [1], [0, 0, 1, 1], [], []>} : vector<1024x3xf32>, vector<3x16xf32>, vector<1024x16xf32> -> vector<1024x16xf32>
    %47 = arith.addf %41, %46 : vector<1024x16xf32>
    %c2_50 = arith.constant 2 : index
    %c8_51 = arith.constant 8 : index
    %c0_52 = arith.constant 0 : index
    %48 = vector.load %arg7[%c2_50, %c8_51, %c0_52] : memref<34x48x3xf32, #tpu.memory_space<vmem>>, vector<32x32x3xf32>
    %49 = vector.shape_cast %48 : vector<32x32x3xf32> to vector<1024x3xf32>
    %c7_53 = arith.constant 7 : index
    %c0_54 = arith.constant 0 : index
    %c0_55 = arith.constant 0 : index
    %50 = vector.load %arg2[%c7_53, %c0_54, %c0_55] : memref<9x3x16xf32, #tpu.memory_space<vmem>>, vector<1x3x16xf32>
    %51 = vector.shape_cast %50 : vector<1x3x16xf32> to vector<3x16xf32>
    %cst_56 = arith.constant dense<0.000000e+00> : vector<1024x16xf32>
    %52 = tpu.matmul %49, %51, %cst_56 {dimension_numbers = #tpu.dot_dimension_numbers<[1], [0], [0], [1], [0, 0, 1, 1], [], []>} : vector<1024x3xf32>, vector<3x16xf32>, vector<1024x16xf32> -> vector<1024x16xf32>
    %53 = arith.addf %47, %52 : vector<1024x16xf32>
    %c2_57 = arith.constant 2 : index
    %c9_58 = arith.constant 9 : index
    %c0_59 = arith.constant 0 : index
    %54 = vector.load %arg7[%c2_57, %c9_58, %c0_59] : memref<34x48x3xf32, #tpu.memory_space<vmem>>, vector<32x32x3xf32>
    %55 = vector.shape_cast %54 : vector<32x32x3xf32> to vector<1024x3xf32>
    %c8_60 = arith.constant 8 : index
    %c0_61 = arith.constant 0 : index
    %c0_62 = arith.constant 0 : index
    %56 = vector.load %arg2[%c8_60, %c0_61, %c0_62] : memref<9x3x16xf32, #tpu.memory_space<vmem>>, vector<1x3x16xf32>
    %57 = vector.shape_cast %56 : vector<1x3x16xf32> to vector<3x16xf32>
    %cst_63 = arith.constant dense<0.000000e+00> : vector<1024x16xf32>
    %58 = tpu.matmul %55, %57, %cst_63 {dimension_numbers = #tpu.dot_dimension_numbers<[1], [0], [0], [1], [0, 0, 1, 1], [], []>} : vector<1024x3xf32>, vector<3x16xf32>, vector<1024x16xf32> -> vector<1024x16xf32>
    %59 = arith.addf %53, %58 : vector<1024x16xf32>
    %c0_64 = arith.constant 0 : index
    %c0_65 = arith.constant 0 : index
    %60 = vector.load %arg3[%c0_64, %c0_65] : memref<1x16xf32, #tpu.memory_space<vmem>>, vector<1x16xf32>
    %61 = vector.broadcast %60 : vector<1x16xf32> to vector<1024x16xf32>
    %62 = arith.addf %59, %61 : vector<1024x16xf32>
    %cst_66 = arith.constant 0.000000e+00 : f32
    %63 = vector.broadcast %cst_66 : f32 to vector<1024x16xf32>
    %64 = arith.maximumf %62, %63 : vector<1024x16xf32>
    %65 = vector.shape_cast %64 : vector<1024x16xf32> to vector<16x2x32x16xf32>
    %66 = vector.extract_strided_slice %65 {offsets = [0, 0, 0, 0], sizes = [16, 1, 32, 16], strides = [1, 1, 1, 1]} : vector<16x2x32x16xf32> to vector<16x1x32x16xf32>
    %67 = vector.shape_cast %66 : vector<16x1x32x16xf32> to vector<16x32x16xf32>
    %68 = vector.extract_strided_slice %65 {offsets = [0, 1, 0, 0], sizes = [16, 1, 32, 16], strides = [1, 1, 1, 1]} : vector<16x2x32x16xf32> to vector<16x1x32x16xf32>
    %69 = vector.shape_cast %68 : vector<16x1x32x16xf32> to vector<16x32x16xf32>
    %70 = arith.maximumf %67, %69 : vector<16x32x16xf32>
    %c0_67 = arith.constant 0 : index
    %c0_68 = arith.constant 0 : index
    %c0_69 = arith.constant 0 : index
    %71 = vector.load %arg9[%c0_67, %c0_68, %c0_69] : memref<16x32x16xf32, #tpu.memory_space<vmem>>, vector<16x32x16xf32>
    tpu.vector_store %arg9[%c0_67, %c0_68, %c0_69], %70 {strides = array<i32>} : memref<16x32x16xf32, #tpu.memory_space<vmem>>, vector<16x32x16xf32>,
    %c0_70 = arith.constant 0 : index
    %c0_71 = arith.constant 0 : index
    %c0_72 = arith.constant 0 : index
    %72 = tpu.strided_load %arg9[%c0_70, %c0_71, %c0_72] {strides = array<i32: 1, 2, 1>} : memref<16x32x16xf32, #tpu.memory_space<vmem>>, vector<16x16x16xf32>
    %c0_73 = arith.constant 0 : index
    %c1_74 = arith.constant 1 : index
    %c0_75 = arith.constant 0 : index
    %73 = tpu.strided_load %arg9[%c0_73, %c1_74, %c0_75] {strides = array<i32: 1, 2, 1>} : memref<16x32x16xf32, #tpu.memory_space<vmem>>, vector<16x16x16xf32>
    %74 = arith.maximumf %72, %73 : vector<16x16x16xf32>
    %cst_76 = arith.constant 0.000000e+00 : f32
    %75 = vector.broadcast %cst_76 : f32 to vector<18x32x16xf32>
    %c0_77 = arith.constant 0 : index
    %c0_78 = arith.constant 0 : index
    %c0_79 = arith.constant 0 : index
    %76 = vector.load %arg8[%c0_77, %c0_78, %c0_79] : memref<18x32x16xf32, #tpu.memory_space<vmem>>, vector<18x32x16xf32>
    tpu.vector_store %arg8[%c0_77, %c0_78, %c0_79], %75 {strides = array<i32>} : memref<18x32x16xf32, #tpu.memory_space<vmem>>, vector<18x32x16xf32>,
    %c1_80 = arith.constant 1 : index
    %c8_81 = arith.constant 8 : index
    %c0_82 = arith.constant 0 : index
    %77 = vector.load %arg8[%c1_80, %c8_81, %c0_82] : memref<18x32x16xf32, #tpu.memory_space<vmem>>, vector<16x16x16xf32>
    tpu.vector_store %arg8[%c1_80, %c8_81, %c0_82], %74 {strides = array<i32>} : memref<18x32x16xf32, #tpu.memory_space<vmem>>, vector<16x16x16xf32>,
    %cst_83 = arith.constant 0.000000e+00 : f32
    %78 = vector.broadcast %cst_83 : f32 to vector<256x32xf32>
    %c0_84 = arith.constant 0 : index
    %c7_85 = arith.constant 7 : index
    %c0_86 = arith.constant 0 : index
    %79 = vector.load %arg8[%c0_84, %c7_85, %c0_86] : memref<18x32x16xf32, #tpu.memory_space<vmem>>, vector<16x16x16xf32>
    %80 = vector.shape_cast %79 : vector<16x16x16xf32> to vector<256x16xf32>
    %c0_87 = arith.constant 0 : index
    %c0_88 = arith.constant 0 : index
    %c0_89 = arith.constant 0 : index
    %81 = vector.load %arg4[%c0_87, %c0_88, %c0_89] : memref<9x16x32xf32, #tpu.memory_space<vmem>>, vector<1x16x32xf32>
    %82 = vector.shape_cast %81 : vector<1x16x32xf32> to vector<16x32xf32>
    %cst_90 = arith.constant dense<0.000000e+00> : vector<256x32xf32>
    %83 = tpu.matmul %80, %82, %cst_90 {dimension_numbers = #tpu.dot_dimension_numbers<[1], [0], [0], [1], [0, 0, 1, 1], [], []>} : vector<256x16xf32>, vector<16x32xf32>, vector<256x32xf32> -> vector<256x32xf32>
    %84 = arith.addf %78, %83 : vector<256x32xf32>
    %c0_91 = arith.constant 0 : index
    %c8_92 = arith.constant 8 : index
    %c0_93 = arith.constant 0 : index
    %85 = vector.load %arg8[%c0_91, %c8_92, %c0_93] : memref<18x32x16xf32, #tpu.memory_space<vmem>>, vector<16x16x16xf32>
    %86 = vector.shape_cast %85 : vector<16x16x16xf32> to vector<256x16xf32>
    %c1_94 = arith.constant 1 : index
    %c0_95 = arith.constant 0 : index
    %c0_96 = arith.constant 0 : index
    %87 = vector.load %arg4[%c1_94, %c0_95, %c0_96] : memref<9x16x32xf32, #tpu.memory_space<vmem>>, vector<1x16x32xf32>
    %88 = vector.shape_cast %87 : vector<1x16x32xf32> to vector<16x32xf32>
    %cst_97 = arith.constant dense<0.000000e+00> : vector<256x32xf32>
    %89 = tpu.matmul %86, %88, %cst_97 {dimension_numbers = #tpu.dot_dimension_numbers<[1], [0], [0], [1], [0, 0, 1, 1], [], []>} : vector<256x16xf32>, vector<16x32xf32>, vector<256x32xf32> -> vector<256x32xf32>
    %90 = arith.addf %84, %89 : vector<256x32xf32>
    %c0_98 = arith.constant 0 : index
    %c9_99 = arith.constant 9 : index
    %c0_100 = arith.constant 0 : index
    %91 = vector.load %arg8[%c0_98, %c9_99, %c0_100] : memref<18x32x16xf32, #tpu.memory_space<vmem>>, vector<16x16x16xf32>
    %92 = vector.shape_cast %91 : vector<16x16x16xf32> to vector<256x16xf32>
    %c2_101 = arith.constant 2 : index
    %c0_102 = arith.constant 0 : index
    %c0_103 = arith.constant 0 : index
    %93 = vector.load %arg4[%c2_101, %c0_102, %c0_103] : memref<9x16x32xf32, #tpu.memory_space<vmem>>, vector<1x16x32xf32>
    %94 = vector.shape_cast %93 : vector<1x16x32xf32> to vector<16x32xf32>
    %cst_104 = arith.constant dense<0.000000e+00> : vector<256x32xf32>
    %95 = tpu.matmul %92, %94, %cst_104 {dimension_numbers = #tpu.dot_dimension_numbers<[1], [0], [0], [1], [0, 0, 1, 1], [], []>} : vector<256x16xf32>, vector<16x32xf32>, vector<256x32xf32> -> vector<256x32xf32>
    %96 = arith.addf %90, %95 : vector<256x32xf32>
    %c1_105 = arith.constant 1 : index
    %c7_106 = arith.constant 7 : index
    %c0_107 = arith.constant 0 : index
    %97 = vector.load %arg8[%c1_105, %c7_106, %c0_107] : memref<18x32x16xf32, #tpu.memory_space<vmem>>, vector<16x16x16xf32>
    %98 = vector.shape_cast %97 : vector<16x16x16xf32> to vector<256x16xf32>
    %c3_108 = arith.constant 3 : index
    %c0_109 = arith.constant 0 : index
    %c0_110 = arith.constant 0 : index
    %99 = vector.load %arg4[%c3_108, %c0_109, %c0_110] : memref<9x16x32xf32, #tpu.memory_space<vmem>>, vector<1x16x32xf32>
    %100 = vector.shape_cast %99 : vector<1x16x32xf32> to vector<16x32xf32>
    %cst_111 = arith.constant dense<0.000000e+00> : vector<256x32xf32>
    %101 = tpu.matmul %98, %100, %cst_111 {dimension_numbers = #tpu.dot_dimension_numbers<[1], [0], [0], [1], [0, 0, 1, 1], [], []>} : vector<256x16xf32>, vector<16x32xf32>, vector<256x32xf32> -> vector<256x32xf32>
    %102 = arith.addf %96, %101 : vector<256x32xf32>
    %c1_112 = arith.constant 1 : index
    %c8_113 = arith.constant 8 : index
    %c0_114 = arith.constant 0 : index
    %103 = vector.load %arg8[%c1_112, %c8_113, %c0_114] : memref<18x32x16xf32, #tpu.memory_space<vmem>>, vector<16x16x16xf32>
    %104 = vector.shape_cast %103 : vector<16x16x16xf32> to vector<256x16xf32>
    %c4_115 = arith.constant 4 : index
    %c0_116 = arith.constant 0 : index
    %c0_117 = arith.constant 0 : index
    %105 = vector.load %arg4[%c4_115, %c0_116, %c0_117] : memref<9x16x32xf32, #tpu.memory_space<vmem>>, vector<1x16x32xf32>
    %106 = vector.shape_cast %105 : vector<1x16x32xf32> to vector<16x32xf32>
    %cst_118 = arith.constant dense<0.000000e+00> : vector<256x32xf32>
    %107 = tpu.matmul %104, %106, %cst_118 {dimension_numbers = #tpu.dot_dimension_numbers<[1], [0], [0], [1], [0, 0, 1, 1], [], []>} : vector<256x16xf32>, vector<16x32xf32>, vector<256x32xf32> -> vector<256x32xf32>
    %108 = arith.addf %102, %107 : vector<256x32xf32>
    %c1_119 = arith.constant 1 : index
    %c9_120 = arith.constant 9 : index
    %c0_121 = arith.constant 0 : index
    %109 = vector.load %arg8[%c1_119, %c9_120, %c0_121] : memref<18x32x16xf32, #tpu.memory_space<vmem>>, vector<16x16x16xf32>
    %110 = vector.shape_cast %109 : vector<16x16x16xf32> to vector<256x16xf32>
    %c5_122 = arith.constant 5 : index
    %c0_123 = arith.constant 0 : index
    %c0_124 = arith.constant 0 : index
    %111 = vector.load %arg4[%c5_122, %c0_123, %c0_124] : memref<9x16x32xf32, #tpu.memory_space<vmem>>, vector<1x16x32xf32>
    %112 = vector.shape_cast %111 : vector<1x16x32xf32> to vector<16x32xf32>
    %cst_125 = arith.constant dense<0.000000e+00> : vector<256x32xf32>
    %113 = tpu.matmul %110, %112, %cst_125 {dimension_numbers = #tpu.dot_dimension_numbers<[1], [0], [0], [1], [0, 0, 1, 1], [], []>} : vector<256x16xf32>, vector<16x32xf32>, vector<256x32xf32> -> vector<256x32xf32>
    %114 = arith.addf %108, %113 : vector<256x32xf32>
    %c2_126 = arith.constant 2 : index
    %c7_127 = arith.constant 7 : index
    %c0_128 = arith.constant 0 : index
    %115 = vector.load %arg8[%c2_126, %c7_127, %c0_128] : memref<18x32x16xf32, #tpu.memory_space<vmem>>, vector<16x16x16xf32>
    %116 = vector.shape_cast %115 : vector<16x16x16xf32> to vector<256x16xf32>
    %c6_129 = arith.constant 6 : index
    %c0_130 = arith.constant 0 : index
    %c0_131 = arith.constant 0 : index
    %117 = vector.load %arg4[%c6_129, %c0_130, %c0_131] : memref<9x16x32xf32, #tpu.memory_space<vmem>>, vector<1x16x32xf32>
    %118 = vector.shape_cast %117 : vector<1x16x32xf32> to vector<16x32xf32>
    %cst_132 = arith.constant dense<0.000000e+00> : vector<256x32xf32>
    %119 = tpu.matmul %116, %118, %cst_132 {dimension_numbers = #tpu.dot_dimension_numbers<[1], [0], [0], [1], [0, 0, 1, 1], [], []>} : vector<256x16xf32>, vector<16x32xf32>, vector<256x32xf32> -> vector<256x32xf32>
    %120 = arith.addf %114, %119 : vector<256x32xf32>
    %c2_133 = arith.constant 2 : index
    %c8_134 = arith.constant 8 : index
    %c0_135 = arith.constant 0 : index
    %121 = vector.load %arg8[%c2_133, %c8_134, %c0_135] : memref<18x32x16xf32, #tpu.memory_space<vmem>>, vector<16x16x16xf32>
    %122 = vector.shape_cast %121 : vector<16x16x16xf32> to vector<256x16xf32>
    %c7_136 = arith.constant 7 : index
    %c0_137 = arith.constant 0 : index
    %c0_138 = arith.constant 0 : index
    %123 = vector.load %arg4[%c7_136, %c0_137, %c0_138] : memref<9x16x32xf32, #tpu.memory_space<vmem>>, vector<1x16x32xf32>
    %124 = vector.shape_cast %123 : vector<1x16x32xf32> to vector<16x32xf32>
    %cst_139 = arith.constant dense<0.000000e+00> : vector<256x32xf32>
    %125 = tpu.matmul %122, %124, %cst_139 {dimension_numbers = #tpu.dot_dimension_numbers<[1], [0], [0], [1], [0, 0, 1, 1], [], []>} : vector<256x16xf32>, vector<16x32xf32>, vector<256x32xf32> -> vector<256x32xf32>
    %126 = arith.addf %120, %125 : vector<256x32xf32>
    %c2_140 = arith.constant 2 : index
    %c9_141 = arith.constant 9 : index
    %c0_142 = arith.constant 0 : index
    %127 = vector.load %arg8[%c2_140, %c9_141, %c0_142] : memref<18x32x16xf32, #tpu.memory_space<vmem>>, vector<16x16x16xf32>
    %128 = vector.shape_cast %127 : vector<16x16x16xf32> to vector<256x16xf32>
    %c8_143 = arith.constant 8 : index
    %c0_144 = arith.constant 0 : index
    %c0_145 = arith.constant 0 : index
    %129 = vector.load %arg4[%c8_143, %c0_144, %c0_145] : memref<9x16x32xf32, #tpu.memory_space<vmem>>, vector<1x16x32xf32>
    %130 = vector.shape_cast %129 : vector<1x16x32xf32> to vector<16x32xf32>
    %cst_146 = arith.constant dense<0.000000e+00> : vector<256x32xf32>
    %131 = tpu.matmul %128, %130, %cst_146 {dimension_numbers = #tpu.dot_dimension_numbers<[1], [0], [0], [1], [0, 0, 1, 1], [], []>} : vector<256x16xf32>, vector<16x32xf32>, vector<256x32xf32> -> vector<256x32xf32>
    %132 = arith.addf %126, %131 : vector<256x32xf32>
    %c0_147 = arith.constant 0 : index
    %c0_148 = arith.constant 0 : index
    %133 = vector.load %arg5[%c0_147, %c0_148] : memref<1x32xf32, #tpu.memory_space<vmem>>, vector<1x32xf32>
    %134 = vector.broadcast %133 : vector<1x32xf32> to vector<256x32xf32>
    %135 = arith.addf %132, %134 : vector<256x32xf32>
    %cst_149 = arith.constant 0.000000e+00 : f32
    %136 = vector.broadcast %cst_149 : f32 to vector<256x32xf32>
    %137 = arith.maximumf %135, %136 : vector<256x32xf32>
    %138 = vector.shape_cast %137 : vector<256x32xf32> to vector<8x2x16x32xf32>
    %139 = vector.extract_strided_slice %138 {offsets = [0, 0, 0, 0], sizes = [8, 1, 16, 32], strides = [1, 1, 1, 1]} : vector<8x2x16x32xf32> to vector<8x1x16x32xf32>
    %140 = vector.shape_cast %139 : vector<8x1x16x32xf32> to vector<8x16x32xf32>
    %141 = vector.extract_strided_slice %138 {offsets = [0, 1, 0, 0], sizes = [8, 1, 16, 32], strides = [1, 1, 1, 1]} : vector<8x2x16x32xf32> to vector<8x1x16x32xf32>
    %142 = vector.shape_cast %141 : vector<8x1x16x32xf32> to vector<8x16x32xf32>
    %143 = arith.maximumf %140, %142 : vector<8x16x32xf32>
    %c0_150 = arith.constant 0 : index
    %c0_151 = arith.constant 0 : index
    %c0_152 = arith.constant 0 : index
    %144 = vector.load %arg10[%c0_150, %c0_151, %c0_152] : memref<8x16x32xf32, #tpu.memory_space<vmem>>, vector<8x16x32xf32>
    tpu.vector_store %arg10[%c0_150, %c0_151, %c0_152], %143 {strides = array<i32>} : memref<8x16x32xf32, #tpu.memory_space<vmem>>, vector<8x16x32xf32>,
    %c0_153 = arith.constant 0 : index
    %c0_154 = arith.constant 0 : index
    %c0_155 = arith.constant 0 : index
    %145 = tpu.strided_load %arg10[%c0_153, %c0_154, %c0_155] {strides = array<i32: 1, 2, 1>} : memref<8x16x32xf32, #tpu.memory_space<vmem>>, vector<8x8x32xf32>
    %c0_156 = arith.constant 0 : index
    %c1_157 = arith.constant 1 : index
    %c0_158 = arith.constant 0 : index
    %146 = tpu.strided_load %arg10[%c0_156, %c1_157, %c0_158] {strides = array<i32: 1, 2, 1>} : memref<8x16x32xf32, #tpu.memory_space<vmem>>, vector<8x8x32xf32>
    %147 = arith.maximumf %145, %146 : vector<8x8x32xf32>
    %148 = vector.shape_cast %147 : vector<8x8x32xf32> to vector<64x32xf32>
    %c0_159 = arith.constant 0 : index
    %c0_160 = arith.constant 0 : index
    %c0_161 = arith.constant 0 : index
    %149 = vector.load %arg6[%c0_159, %c0_160, %c0_161] : memref<1x64x32xf32, #tpu.memory_space<vmem>>, vector<1x64x32xf32>
    %150 = vector.shape_cast %149 : vector<1x64x32xf32> to vector<64x32xf32>
    %151 = vector.shape_cast %148 : vector<64x32xf32> to vector<1x64x32xf32>
    tpu.vector_store %arg6[%c0_159, %c0_160, %c0_161], %151 {strides = array<i32>} : memref<1x64x32xf32, #tpu.memory_space<vmem>>, vector<1x64x32xf32>,
    return
  }
  func.func @transform_0(%arg0: i32) -> (i32, i32, i32, i32) {
    %c0_i32 = arith.constant 0 : i32
    %c0_i32_0 = arith.constant 0 : i32
    %c0_i32_1 = arith.constant 0 : i32
    %c0_i32_2 = arith.constant 0 : i32
    return %arg0, %c0_i32, %c0_i32_0, %c0_i32_1 : i32, i32, i32, i32
  }
  func.func @transform_1(%arg0: i32) -> (i32, i32, i32) {
    %c0_i32 = arith.constant 0 : i32
    %c0_i32_0 = arith.constant 0 : i32
    %c0_i32_1 = arith.constant 0 : i32
    %c0_i32_2 = arith.constant 0 : i32
    return %c0_i32, %c0_i32_0, %c0_i32_1 : i32, i32, i32
  }
  func.func @transform_2(%arg0: i32) -> (i32, i32) {
    %c0_i32 = arith.constant 0 : i32
    %c0_i32_0 = arith.constant 0 : i32
    %c0_i32_1 = arith.constant 0 : i32
    return %c0_i32, %c0_i32_0 : i32, i32
  }
  func.func @transform_3(%arg0: i32) -> (i32, i32, i32) {
    %c0_i32 = arith.constant 0 : i32
    %c0_i32_0 = arith.constant 0 : i32
    %c0_i32_1 = arith.constant 0 : i32
    %c0_i32_2 = arith.constant 0 : i32
    return %c0_i32, %c0_i32_0, %c0_i32_1 : i32, i32, i32
  }
  func.func @transform_4(%arg0: i32) -> (i32, i32) {
    %c0_i32 = arith.constant 0 : i32
    %c0_i32_0 = arith.constant 0 : i32
    %c0_i32_1 = arith.constant 0 : i32
    return %c0_i32, %c0_i32_0 : i32, i32
  }
  func.func @transform_5(%arg0: i32) -> (i32, i32, i32) {
    %c0_i32 = arith.constant 0 : i32
    %c0_i32_0 = arith.constant 0 : i32
    %c0_i32_1 = arith.constant 0 : i32
    return %arg0, %c0_i32, %c0_i32_0 : i32, i32, i32
  }
}

module attributes {stable_mosaic.version = 11 : i64} {
  func.func @_fc_head_kernel(%arg0: memref<2x2048xf32, #tpu.memory_space<vmem>>, %arg1: memref<2048x256xf32, #tpu.memory_space<vmem>>, %arg2: memref<1x256xf32, #tpu.memory_space<vmem>>, %arg3: memref<256x50xf32, #tpu.memory_space<vmem>>, %arg4: memref<1x50xf32, #tpu.memory_space<vmem>>, %arg5: memref<2x50xf32, #tpu.memory_space<vmem>>) attributes {dimension_semantics = [], scalar_prefetch = 0 : i64, scratch_operands = 0 : i64, tpu.core_type = #tpu.core_type<tc>} {
    %c0 = arith.constant 0 : index
    %c0_0 = arith.constant 0 : index
    %0 = vector.load %arg0[%c0, %c0_0] : memref<2x2048xf32, #tpu.memory_space<vmem>>, vector<2x2048xf32>
    %c0_1 = arith.constant 0 : index
    %c0_2 = arith.constant 0 : index
    %1 = vector.load %arg1[%c0_1, %c0_2] : memref<2048x256xf32, #tpu.memory_space<vmem>>, vector<2048x256xf32>
    %cst = arith.constant dense<0.000000e+00> : vector<2x256xf32>
    %2 = tpu.matmul %0, %1, %cst {dimension_numbers = #tpu.dot_dimension_numbers<[1], [0], [0], [1], [0, 0, 1, 1], [], []>} : vector<2x2048xf32>, vector<2048x256xf32>, vector<2x256xf32> -> vector<2x256xf32>
    %c0_3 = arith.constant 0 : index
    %c0_4 = arith.constant 0 : index
    %3 = vector.load %arg2[%c0_3, %c0_4] : memref<1x256xf32, #tpu.memory_space<vmem>>, vector<1x256xf32>
    %4 = vector.broadcast %3 : vector<1x256xf32> to vector<2x256xf32>
    %5 = arith.addf %2, %4 : vector<2x256xf32>
    %cst_5 = arith.constant 0.000000e+00 : f32
    %6 = vector.broadcast %cst_5 : f32 to vector<2x256xf32>
    %7 = arith.maximumf %5, %6 : vector<2x256xf32>
    %c0_6 = arith.constant 0 : index
    %c0_7 = arith.constant 0 : index
    %8 = vector.load %arg3[%c0_6, %c0_7] : memref<256x50xf32, #tpu.memory_space<vmem>>, vector<256x50xf32>
    %cst_8 = arith.constant dense<0.000000e+00> : vector<2x50xf32>
    %9 = tpu.matmul %7, %8, %cst_8 {dimension_numbers = #tpu.dot_dimension_numbers<[1], [0], [0], [1], [0, 0, 1, 1], [], []>} : vector<2x256xf32>, vector<256x50xf32>, vector<2x50xf32> -> vector<2x50xf32>
    %c0_9 = arith.constant 0 : index
    %c0_10 = arith.constant 0 : index
    %10 = vector.load %arg4[%c0_9, %c0_10] : memref<1x50xf32, #tpu.memory_space<vmem>>, vector<1x50xf32>
    %11 = vector.broadcast %10 : vector<1x50xf32> to vector<2x50xf32>
    %12 = arith.addf %9, %11 : vector<2x50xf32>
    %c0_11 = arith.constant 0 : index
    %c0_12 = arith.constant 0 : index
    %13 = vector.load %arg5[%c0_11, %c0_12] : memref<2x50xf32, #tpu.memory_space<vmem>>, vector<2x50xf32>
    tpu.vector_store %arg5[%c0_11, %c0_12], %12 {strides = array<i32>} : memref<2x50xf32, #tpu.memory_space<vmem>>, vector<2x50xf32>,
    return
  }
}

</mosaic_0001>

<bundles_post_ra>
// kernel: custom_model_forward.3
= control target key start
LH: loop header
LB: loop body
LE: loop exit
PB: predicated region body
PF: predicated region fallthrough
CT: control target
= control target key end

     0   :  { %s3727_s0 = inlined_call_operand.vmem [shape: f32[2,2048], index: 0, kind: input, shape index: {}]   ;;  %s3728_s1 = inlined_call_operand.vmem [shape: f32[2048,256], index: 1, kind: input, shape index: {}]   ;;  %s3729_s2 = inlined_call_operand.vmem [shape: f32[1,256], index: 2, kind: input, shape index: {}]   ;;  %s3730_s3 = inlined_call_operand.vmem [shape: f32[256,50], index: 3, kind: input, shape index: {}]   ;;  %s3731_s4 = inlined_call_operand.vmem [shape: f32[1,50], index: 4, kind: input, shape index: {}]   ;;  %s3732_s5 = inlined_call_operand.hbm [shape: f32[2,50], index: 5, kind: output, shape index: {}]  }
   0x1   :  { %v26_v0 = vld [vmem:[%s3728_s1 + $0x8] sm:$0xff]  ;;  %v28_v1 = vld [vmem:[%s3728_s1 + $0x18] sm:$0xff]  ;;  %v25_v5 = vld [vmem:[%s3728_s1] sm:$0xff] }
   0x2   :  { %v282_v2 = vld [vmem:[%s3728_s1 + $0x808] sm:$0xff]  ;;  %v1368_v3 = vpack.c.bf16 %v28_v1, %v26_v0  ;;  %v284_v4 = vld [vmem:[%s3728_s1 + $0x818] sm:$0xff]  ;;  %v27_v6 = vld [vmem:[%s3728_s1 + $0x10] sm:$0xff] }
   0x3   :  { %v1624_v7 = vpack.c.bf16 %v284_v4, %v282_v2  ;;  %v1370_v8 = vpack.c.bf16 %v27_v6, %v25_v5  ;;  %v281_v9 = vld [vmem:[%s3728_s1 + $0x800] sm:$0xff]  ;;  %v283_v10 = vld [vmem:[%s3728_s1 + $0x810] sm:$0xff]  ;;  %v30_v11 = vld [vmem:[%s3728_s1 + $0x28] sm:$0xff] }
   0x4   :  { %1369 = vmatprep.subr.bf16.mxu1 %v1368_v3  ;;  %v1626_v12 = vpack.c.bf16 %v283_v10, %v281_v9  ;;  %v32_v13 = vld [vmem:[%s3728_s1 + $0x38] sm:$0xff]  ;;  %v286_v14 = vld [vmem:[%s3728_s1 + $0x828] sm:$0xff]  ;;  %v29_v18 = vld [vmem:[%s3728_s1 + $0x20] sm:$0xff] }
   0x5   :  { %v288_v15 = vld [vmem:[%s3728_s1 + $0x838] sm:$0xff]  ;;  %1625 = vmatprep.subr.bf16.mxu0 %v1624_v7  ;;  %1371 = vmatpush1.bf16.msra.mxu1 %v1370_v8  ;;  %v1372_v16 = vpack.c.bf16 %v32_v13, %v30_v11  ;;  %v31_v19 = vld [vmem:[%s3728_s1 + $0x30] sm:$0xff]  ;;  %v285_v20 = vld [vmem:[%s3728_s1 + $0x820] sm:$0xff] }
   0x6   :  { %v1628_v17 = vpack.c.bf16 %v288_v15, %v286_v14  ;;  %1627 = vmatpush1.bf16.msra.mxu0 %v1626_v12  ;;  %v1374_v21 = vpack.c.bf16 %v31_v19, %v29_v18  ;;  %v287_v22 = vld [vmem:[%s3728_s1 + $0x830] sm:$0xff]  ;;  %v34_v23 = vld [vmem:[%s3728_s1 + $0x48] sm:$0xff]  ;;  %v36_v24 = vld [vmem:[%s3728_s1 + $0x58] sm:$0xff] }
   0x7   :  { %1373 = vmatprep.subr.bf16.mxu1 %v1372_v16  ;;  %v1630_v25 = vpack.c.bf16 %v287_v22, %v285_v20  ;;  %v1376_v26 = vpack.c.bf16 %v36_v24, %v34_v23  ;;  %v290_v27 = vld [vmem:[%s3728_s1 + $0x848] sm:$0xff]  ;;  %v292_v28 = vld [vmem:[%s3728_s1 + $0x858] sm:$0xff]  ;;  %v33_v29 = vld [vmem:[%s3728_s1 + $0x40] sm:$0xff] }
   0x8   :  { %1629 = vmatprep.subr.bf16.mxu0 %v1628_v17  ;;  %v1632_v30 = vpack.c.bf16 %v292_v28, %v290_v27  ;;  %v35_v31 = vld [vmem:[%s3728_s1 + $0x50] sm:$0xff]  ;;  %v289_v32 = vld [vmem:[%s3728_s1 + $0x840] sm:$0xff]  ;;  %v38_v35 = vld [vmem:[%s3728_s1 + $0x68] sm:$0xff] }
   0x9   :  { %v291_v33 = vld [vmem:[%s3728_s1 + $0x850] sm:$0xff]  ;;  %1375 = vmatpush1.bf16.msra.mxu1 %v1374_v21  ;;  %v1378_v34 = vpack.c.bf16 %v35_v31, %v33_v29  ;;  %v40_v36 = vld [vmem:[%s3728_s1 + $0x78] sm:$0xff]  ;;  %v294_v37 = vld [vmem:[%s3728_s1 + $0x868] sm:$0xff] }
   0xa   :  { %1631 = vmatpush1.bf16.msra.mxu0 %v1630_v25  ;;  %1377 = vmatprep.subr.bf16.mxu1 %v1376_v26  ;;  %v1634_v38 = vpack.c.bf16 %v291_v33, %v289_v32  ;;  %v1380_v39 = vpack.c.bf16 %v40_v36, %v38_v35  ;;  %v296_v40 = vld [vmem:[%s3728_s1 + $0x878] sm:$0xff]  ;;  %v37_v41 = vld [vmem:[%s3728_s1 + $0x60] sm:$0xff]  ;;  %v39_v42 = vld [vmem:[%s3728_s1 + $0x70] sm:$0xff] }
   0xb   :  { %1633 = vmatprep.subr.bf16.mxu0 %v1632_v30  ;;  %v1636_v43 = vpack.c.bf16 %v296_v40, %v294_v37  ;;  %v293_v44 = vld [vmem:[%s3728_s1 + $0x860] sm:$0xff]  ;;  %v295_v45 = vld [vmem:[%s3728_s1 + $0x870] sm:$0xff]  ;;  %v42_v46 = vld [vmem:[%s3728_s1 + $0x88] sm:$0xff]  ;;  %v1382_v50 = vpack.c.bf16 %v39_v42, %v37_v41 }
   0xc   :  { %v44_v47 = vld [vmem:[%s3728_s1 + $0x98] sm:$0xff]  ;;  %v298_v48 = vld [vmem:[%s3728_s1 + $0x888] sm:$0xff]  ;;  %v1638_v51 = vpack.c.bf16 %v295_v45, %v293_v44  ;;  %v41_v53 = vld [vmem:[%s3728_s1 + $0x80] sm:$0xff] }
   0xd   :  { %v300_v49 = vld [vmem:[%s3728_s1 + $0x898] sm:$0xff]  ;;  %1379 = vmatpush1.bf16.msra.mxu1 %v1378_v34  ;;  %v1384_v52 = vpack.c.bf16 %v44_v47, %v42_v46  ;;  %v43_v54 = vld [vmem:[%s3728_s1 + $0x90] sm:$0xff]  ;;  %v297_v55 = vld [vmem:[%s3728_s1 + $0x880] sm:$0xff]  ;;  %v539_v46 = vlaneseq  ;;  %v1958_v47 = vmov 1983009808  }
   0xe   :  { %1635 = vmatpush1.bf16.msra.mxu0 %v1634_v38  ;;  %1381 = vmatprep.subr.bf16.mxu1 %v1380_v39  ;;  %v1640_v56 = vpack.c.bf16 %v300_v49, %v298_v48  ;;  %v299_v57 = vld [vmem:[%s3728_s1 + $0x890] sm:$0xff]  ;;  %v46_v58 = vld [vmem:[%s3728_s1 + $0xa8] sm:$0xff]  ;;  %v48_v59 = vld [vmem:[%s3728_s1 + $0xb8] sm:$0xff]  ;;  %v1386_v62 = vpack.c.bf16 %v43_v54, %v41_v53  ;;  %v555_v48 = vunpack.c.l.s4 %v1958_v47 }
   0xf   :  { %1637 = vmatprep.subr.bf16.mxu0 %v1636_v43  ;;  %v302_v60 = vld [vmem:[%s3728_s1 + $0x8a8] sm:$0xff]  ;;  %v304_v61 = vld [vmem:[%s3728_s1 + $0x8b8] sm:$0xff]  ;;  %v1642_v63 = vpack.c.bf16 %v299_v57, %v297_v55  ;;  %v1388_v0 = vpack.c.bf16 %v48_v59, %v46_v58  ;;  %v45_v1 = vld [vmem:[%s3728_s1 + $0xa0] sm:$0xff] }
  0x10   :  { %v47_v2 = vld [vmem:[%s3728_s1 + $0xb0] sm:$0xff]  ;;  %v301_v3 = vld [vmem:[%s3728_s1 + $0x8a0] sm:$0xff]  ;;  %v1644_v4 = vpack.c.bf16 %v304_v61, %v302_v60  ;;  %v50_v6 = vld [vmem:[%s3728_s1 + $0xc8] sm:$0xff]  ;;  %v2242_v61 = vshrl.u32 %v539_v46, 7 }
  0x11   :  { %1383 = vmatpush1.bf16.msra.mxu1 %v1382_v50  ;;  %v303_v5 = vld [vmem:[%s3728_s1 + $0x8b0] sm:$0xff]  ;;  %v52_v7 = vld [vmem:[%s3728_s1 + $0xd8] sm:$0xff]  ;;  %v306_v8 = vld [vmem:[%s3728_s1 + $0x8c8] sm:$0xff]  ;;  %v1390_v10 = vpack.c.bf16 %v47_v2, %v45_v1 }
  0x12   :  { %1639 = vmatpush1.bf16.msra.mxu0 %v1638_v51  ;;  %1385 = vmatprep.subr.bf16.mxu1 %v1384_v52  ;;  %v308_v9 = vld [vmem:[%s3728_s1 + $0x8d8] sm:$0xff]  ;;  %v1646_v11 = vpack.c.bf16 %v303_v5, %v301_v3  ;;  %v1392_v12 = vpack.c.bf16 %v52_v7, %v50_v6  ;;  %v49_v13 = vld [vmem:[%s3728_s1 + $0xc0] sm:$0xff]  ;;  %v51_v14 = vld [vmem:[%s3728_s1 + $0xd0] sm:$0xff] }
  0x13   :  { %1641 = vmatprep.subr.bf16.mxu0 %v1640_v56  ;;  %v305_v15 = vld [vmem:[%s3728_s1 + $0x8c0] sm:$0xff]  ;;  %v1648_v16 = vpack.c.bf16 %v308_v9, %v306_v8  ;;  %v307_v17 = vld [vmem:[%s3728_s1 + $0x8d0] sm:$0xff]  ;;  %v54_v18 = vld [vmem:[%s3728_s1 + $0xe8] sm:$0xff]  ;;  %v1394_v22 = vpack.c.bf16 %v51_v14, %v49_v13 }
  0x14   :  { %v56_v19 = vld [vmem:[%s3728_s1 + $0xf8] sm:$0xff]  ;;  %v310_v20 = vld [vmem:[%s3728_s1 + $0x8e8] sm:$0xff]  ;;  %v1650_v23 = vpack.c.bf16 %v307_v17, %v305_v15  ;;  %v53_v25 = vld [vmem:[%s3728_s1 + $0xe0] sm:$0xff] }
  0x15   :  { %1387 = vmatpush1.bf16.msra.mxu1 %v1386_v62  ;;  %v312_v21 = vld [vmem:[%s3728_s1 + $0x8f8] sm:$0xff]  ;;  %v1396_v24 = vpack.c.bf16 %v56_v19, %v54_v18  ;;  %v55_v26 = vld [vmem:[%s3728_s1 + $0xf0] sm:$0xff]  ;;  %v309_v27 = vld [vmem:[%s3728_s1 + $0x8e0] sm:$0xff]  ;;  %v556_v62 = vunpack.c.0.s8 %v555_v48 }
  0x16   :  { %1643 = vmatpush1.bf16.msra.mxu0 %v1642_v63  ;;  %1389 = vmatprep.subr.bf16.mxu1 %v1388_v0  ;;  %v1652_v28 = vpack.c.bf16 %v312_v21, %v310_v20  ;;  %v311_v29 = vld [vmem:[%s3728_s1 + $0x8f0] sm:$0xff]  ;;  %v58_v30 = vld [vmem:[%s3728_s1 + $0x108] sm:$0xff]  ;;  %v60_v31 = vld [vmem:[%s3728_s1 + $0x118] sm:$0xff]  ;;  %v1398_v34 = vpack.c.bf16 %v55_v26, %v53_v25 }
  0x17   :  { %1645 = vmatprep.subr.bf16.mxu0 %v1644_v4  ;;  %v314_v32 = vld [vmem:[%s3728_s1 + $0x908] sm:$0xff]  ;;  %v316_v33 = vld [vmem:[%s3728_s1 + $0x918] sm:$0xff]  ;;  %v1654_v35 = vpack.c.bf16 %v311_v29, %v309_v27  ;;  %v1400_v36 = vpack.c.bf16 %v60_v31, %v58_v30  ;;  %v57_v37 = vld [vmem:[%s3728_s1 + $0x100] sm:$0xff] }
  0x18   :  { %v59_v38 = vld [vmem:[%s3728_s1 + $0x110] sm:$0xff]  ;;  %v313_v39 = vld [vmem:[%s3728_s1 + $0x900] sm:$0xff]  ;;  %v1656_v40 = vpack.c.bf16 %v316_v33, %v314_v32  ;;  %v62_v42 = vld [vmem:[%s3728_s1 + $0x128] sm:$0xff] }
  0x19   :  { %1391 = vmatpush1.bf16.msra.mxu1 %v1390_v10  ;;  %v315_v41 = vld [vmem:[%s3728_s1 + $0x910] sm:$0xff]  ;;  %v64_v43 = vld [vmem:[%s3728_s1 + $0x138] sm:$0xff]  ;;  %v318_v44 = vld [vmem:[%s3728_s1 + $0x928] sm:$0xff]  ;;  %v1402_v49 = vpack.c.bf16 %v59_v38, %v57_v37 }
  0x1a   :  { %1647 = vmatpush1.bf16.msra.mxu0 %v1646_v11  ;;  %1393 = vmatprep.subr.bf16.mxu1 %v1392_v12  ;;  %v320_v45 = vld [vmem:[%s3728_s1 + $0x938] sm:$0xff]  ;;  %v1658_v50 = vpack.c.bf16 %v315_v41, %v313_v39  ;;  %v1404_v51 = vpack.c.bf16 %v64_v43, %v62_v42  ;;  %v61_v52 = vld [vmem:[%s3728_s1 + $0x120] sm:$0xff]  ;;  %v63_v53 = vld [vmem:[%s3728_s1 + $0x130] sm:$0xff]  ;;  %v2269_v11 = vsub.s32 %v556_v62, %v2242_v61 }
  0x1b   :  { %1649 = vmatprep.subr.bf16.mxu0 %v1648_v16  ;;  %v317_v54 = vld [vmem:[%s3728_s1 + $0x920] sm:$0xff]  ;;  %v1660_v55 = vpack.c.bf16 %v320_v45, %v318_v44  ;;  %v319_v56 = vld [vmem:[%s3728_s1 + $0x930] sm:$0xff]  ;;  %v66_v57 = vld [vmem:[%s3728_s1 + $0x148] sm:$0xff]  ;;  %v1406_v63 = vpack.c.bf16 %v63_v53, %v61_v52 }
  0x1c   :  { %v68_v58 = vld [vmem:[%s3728_s1 + $0x158] sm:$0xff]  ;;  %v322_v59 = vld [vmem:[%s3728_s1 + $0x948] sm:$0xff]  ;;  %v1662_v0 = vpack.c.bf16 %v319_v56, %v317_v54  ;;  %v65_v2 = vld [vmem:[%s3728_s1 + $0x140] sm:$0xff] }
  0x1d   :  { %1395 = vmatpush1.bf16.msra.mxu1 %v1394_v22  ;;  %v324_v60 = vld [vmem:[%s3728_s1 + $0x958] sm:$0xff]  ;;  %v1408_v1 = vpack.c.bf16 %v68_v58, %v66_v57  ;;  %v67_v3 = vld [vmem:[%s3728_s1 + $0x150] sm:$0xff]  ;;  %v321_v4 = vld [vmem:[%s3728_s1 + $0x940] sm:$0xff] }
  0x1e   :  { %1651 = vmatpush1.bf16.msra.mxu0 %v1650_v23  ;;  %1397 = vmatprep.subr.bf16.mxu1 %v1396_v24  ;;  %v1664_v5 = vpack.c.bf16 %v324_v60, %v322_v59  ;;  %v323_v6 = vld [vmem:[%s3728_s1 + $0x950] sm:$0xff]  ;;  %v70_v7 = vld [vmem:[%s3728_s1 + $0x168] sm:$0xff]  ;;  %v72_v8 = vld [vmem:[%s3728_s1 + $0x178] sm:$0xff]  ;;  %v1410_v12 = vpack.c.bf16 %v67_v3, %v65_v2 }
  0x1f   :  { %1653 = vmatprep.subr.bf16.mxu0 %v1652_v28  ;;  %v326_v9 = vld [vmem:[%s3728_s1 + $0x968] sm:$0xff]  ;;  %v328_v10 = vld [vmem:[%s3728_s1 + $0x978] sm:$0xff]  ;;  %v69_v13 = vld [vmem:[%s3728_s1 + $0x160] sm:$0xff]  ;;  %v1666_v14 = vpack.c.bf16 %v323_v6, %v321_v4  ;;  %v1412_v15 = vpack.c.bf16 %v72_v8, %v70_v7 }
  0x20   :  { %v71_v16 = vld [vmem:[%s3728_s1 + $0x170] sm:$0xff]  ;;  %v325_v17 = vld [vmem:[%s3728_s1 + $0x960] sm:$0xff]  ;;  %v1668_v19 = vpack.c.bf16 %v328_v10, %v326_v9  ;;  %v74_v20 = vld [vmem:[%s3728_s1 + $0x188] sm:$0xff] }
  0x21   :  { %1399 = vmatpush1.bf16.msra.mxu1 %v1398_v34  ;;  %v327_v18 = vld [vmem:[%s3728_s1 + $0x970] sm:$0xff]  ;;  %v76_v21 = vld [vmem:[%s3728_s1 + $0x198] sm:$0xff]  ;;  %v2292_v22 = vld [vmem:[%s3727_s0] sm:$0xff]  ;;  %v1414_v27 = vpack.c.bf16 %v71_v16, %v69_v13 }
  0x22   :  { %1655 = vmatpush1.bf16.msra.mxu0 %v1654_v35  ;;  %1401 = vmatprep.subr.bf16.mxu1 %v1400_v36  ;;  %v330_v23 = vld [vmem:[%s3728_s1 + $0x988] sm:$0xff]  ;;  %v332_v24 = vld [vmem:[%s3728_s1 + $0x998] sm:$0xff]  ;;  %v2302_v25 = vrot.slane %v2292_v22, %v2269_v11  ;;  %v2307_v26 = vld [vmem:[%s3727_s0 + $0x10] sm:$0xff]  ;;  %v1670_v29 = vpack.c.bf16 %v327_v18, %v325_v17  ;;  %v1416_v30 = vpack.c.bf16 %v76_v21, %v74_v20 }
  0x23   :  { %1657 = vmatprep.subr.bf16.mxu0 %v1656_v40  ;;  %v2311_v28 = vrot.slane %v2307_v26, %v2269_v11  ;;  %v73_v31 = vld [vmem:[%s3728_s1 + $0x180] sm:$0xff]  ;;  %v75_v32 = vld [vmem:[%s3728_s1 + $0x190] sm:$0xff]  ;;  %v1672_v35 = vpack.c.bf16 %v332_v24, %v330_v23  ;;  %v78_v37 = vld [vmem:[%s3728_s1 + $0x1a8] sm:$0xff] }
  0x24   :  { %v329_v33 = vld [vmem:[%s3728_s1 + $0x980] sm:$0xff]  ;;  %v568_v34 = vcombine.high %v2302_v25, %v2302_v25  ;;  %v331_v36 = vld [vmem:[%s3728_s1 + $0x990] sm:$0xff]  ;;  %v80_v38 = vld [vmem:[%s3728_s1 + $0x1b8] sm:$0xff]  ;;  %v1418_v42 = vpack.c.bf16 %v75_v32, %v73_v31 }
  0x25   :  { %1403 = vmatpush1.bf16.msra.mxu1 %v1402_v49  ;;  %v602_v39 = vcombine.high %v2311_v28, %v2311_v28  ;;  %v334_v40 = vld [vmem:[%s3728_s1 + $0x9a8] sm:$0xff]  ;;  %v336_v41 = vld [vmem:[%s3728_s1 + $0x9b8] sm:$0xff]  ;;  %v1674_v43 = vpack.c.bf16 %v331_v36, %v329_v33  ;;  %v1420_v44 = vpack.c.bf16 %v80_v38, %v78_v37  ;;  %v77_v45 = vld [vmem:[%s3728_s1 + $0x1a0] sm:$0xff] }
  0x26   :  { %1659 = vmatpush1.bf16.msra.mxu0 %v1658_v50  ;;  %1405 = vmatprep.subr.bf16.mxu1 %v1404_v51  ;;  %v79_v46 = vld [vmem:[%s3728_s1 + $0x1b0] sm:$0xff]  ;;  %v333_v47 = vld [vmem:[%s3728_s1 + $0x9a0] sm:$0xff]  ;;  %v1676_v48 = vpack.c.bf16 %v336_v41, %v334_v40  ;;  %v82_v50 = vld [vmem:[%s3728_s1 + $0x1c8] sm:$0xff] }
  0x27   :  { %1661 = vmatprep.subr.bf16.mxu0 %v1660_v55  ;;  %701 = vmatprep.mubr.f32.mxu1 %v568_v34  ;;  %v335_v49 = vld [vmem:[%s3728_s1 + $0x9b0] sm:$0xff]  ;;  %v84_v51 = vld [vmem:[%s3728_s1 + $0x1d8] sm:$0xff]  ;;  %v338_v52 = vld [vmem:[%s3728_s1 + $0x9c8] sm:$0xff]  ;;  %v1422_v54 = vpack.c.bf16 %v79_v46, %v77_v45 }
  0x28   :  { %985 = vmatprep.mubr.f32.mxu0 %v602_v39  ;;  %v340_v53 = vld [vmem:[%s3728_s1 + $0x9d8] sm:$0xff]  ;;  %v1678_v55 = vpack.c.bf16 %v335_v49, %v333_v47  ;;  %v1424_v56 = vpack.c.bf16 %v84_v51, %v82_v50  ;;  %v81_v57 = vld [vmem:[%s3728_s1 + $0x1c0] sm:$0xff]  ;;  %v83_v58 = vld [vmem:[%s3728_s1 + $0x1d0] sm:$0xff] }
  0x29   :  { %1407 = vmatpush1.bf16.msra.mxu1 %v1406_v63  ;;  %v337_v59 = vld [vmem:[%s3728_s1 + $0x9c0] sm:$0xff]  ;;  %v1680_v60 = vpack.c.bf16 %v340_v53, %v338_v52  ;;  %v339_v62 = vld [vmem:[%s3728_s1 + $0x9d0] sm:$0xff]  ;;  %v86_v63 = vld [vmem:[%s3728_s1 + $0x1e8] sm:$0xff]  ;;  %v1426_v3 = vpack.c.bf16 %v83_v58, %v81_v57 }
  0x2a   :  { %1663 = vmatpush1.bf16.msra.mxu0 %v1662_v0  ;;  %1409 = vmatprep.subr.bf16.mxu1 %v1408_v1  ;;  %v88_v0 = vld [vmem:[%s3728_s1 + $0x1f8] sm:$0xff]  ;;  %v342_v1 = vld [vmem:[%s3728_s1 + $0x9e8] sm:$0xff]  ;;  %v1682_v4 = vpack.c.bf16 %v339_v62, %v337_v59  ;;  %v85_v6 = vld [vmem:[%s3728_s1 + $0x1e0] sm:$0xff] }
  0x2b   :  { %1665 = vmatprep.subr.bf16.mxu0 %v1664_v5  ;;  %v344_v2 = vld [vmem:[%s3728_s1 + $0x9f8] sm:$0xff]  ;;  %v1428_v5 = vpack.c.bf16 %v88_v0, %v86_v63  ;;  %v87_v7 = vld [vmem:[%s3728_s1 + $0x1f0] sm:$0xff]  ;;  %v341_v8 = vld [vmem:[%s3728_s1 + $0x9e0] sm:$0xff] }
  0x2c   :  { %v1684_v9 = vpack.c.bf16 %v344_v2, %v342_v1  ;;  %v343_v10 = vld [vmem:[%s3728_s1 + $0x9f0] sm:$0xff]  ;;  %v90_v13 = vld [vmem:[%s3728_s1 + $0x208] sm:$0xff]  ;;  %v348_v17 = vld [vmem:[%s3728_s1 + $0xa18] sm:$0xff]  ;;  %v1430_v18 = vpack.c.bf16 %v87_v7, %v85_v6 }
  0x2d   :  { %1411 = vmatpush1.bf16.msra.mxu1 %v1410_v12  ;;  %v553_v12 = vcombine.high %v2292_v22, %v2292_v22  ;;  %v346_v16 = vld [vmem:[%s3728_s1 + $0xa08] sm:$0xff]  ;;  %v89_v21 = vld [vmem:[%s3728_s1 + $0x200] sm:$0xff]  ;;  %v91_v22 = vld [vmem:[%s3728_s1 + $0x210] sm:$0xff] }
  0x2e   :  { %1667 = vmatpush1.bf16.msra.mxu0 %v1666_v14  ;;  %1413 = vmatprep.subr.bf16.mxu1 %v1412_v15  ;;  %v92_v14 = vld [vmem:[%s3728_s1 + $0x218] sm:$0xff]  ;;  %v587_v15 = vcombine.high %v2307_v26, %v2307_v26  ;;  %v345_v23 = vld [vmem:[%s3728_s1 + $0xa00] sm:$0xff]  ;;  %v1688_v24 = vpack.c.bf16 %v348_v17, %v346_v16  ;;  %v347_v26 = vld [vmem:[%s3728_s1 + $0xa10] sm:$0xff]  ;;  %v1434_v34 = vpack.c.bf16 %v91_v22, %v89_v21 }
  0x2f   :  { %1669 = vmatprep.subr.bf16.mxu0 %v1668_v19  ;;  %v1686_v19 = vpack.c.bf16 %v343_v10, %v341_v8  ;;  %v1432_v20 = vpack.c.bf16 %v92_v14, %v90_v13  ;;  %v350_v31 = vld [vmem:[%s3728_s1 + $0xa28] sm:$0xff]  ;;  %v352_v32 = vld [vmem:[%s3728_s1 + $0xa38] sm:$0xff]  ;;  %v93_v37 = vld [vmem:[%s3728_s1 + $0x220] sm:$0xff] }
  0x30   :  { %v2445_v33 = vrot.slane %v587_v15, %v2269_v11  ;;  %v95_v38 = vld [vmem:[%s3728_s1 + $0x230] sm:$0xff]  ;;  %v349_v39 = vld [vmem:[%s3728_s1 + $0xa20] sm:$0xff]  ;;  %v1692_v40 = vpack.c.bf16 %v352_v32, %v350_v31  ;;  %v354_v45 = vld [vmem:[%s3728_s1 + $0xa48] sm:$0xff] }
  0x31   :  { %1415 = vmatpush1.bf16.msra.mxu1 %v1414_v27  ;;  %v94_v27 = vld [vmem:[%s3728_s1 + $0x228] sm:$0xff]  ;;  %v351_v41 = vld [vmem:[%s3728_s1 + $0xa30] sm:$0xff]  ;;  %v356_v46 = vld [vmem:[%s3728_s1 + $0xa58] sm:$0xff] }
  0x32   :  { %1671 = vmatpush1.bf16.msra.mxu0 %v1670_v29  ;;  %1417 = vmatprep.subr.bf16.mxu1 %v1416_v30  ;;  %v96_v29 = vld [vmem:[%s3728_s1 + $0x238] sm:$0xff]  ;;  %v2436_v30 = vrot.slane %v553_v12, %v2269_v11  ;;  %v603_v47 = vcombine.high %v2445_v33, %v2445_v33  ;;  %v1694_v49 = vpack.c.bf16 %v351_v41, %v349_v39  ;;  %v99_v51 = vld [vmem:[%s3728_s1 + $0x250] sm:$0xff]  ;;  %v353_v52 = vld [vmem:[%s3728_s1 + $0xa40] sm:$0xff] }
  0x33   :  { %1673 = vmatprep.subr.bf16.mxu0 %v1672_v35  ;;  %v1690_v35 = vpack.c.bf16 %v347_v26, %v345_v23  ;;  %v1436_v36 = vpack.c.bf16 %v96_v29, %v94_v27  ;;  %v1696_v53 = vpack.c.bf16 %v356_v46, %v354_v45  ;;  %v360_v57 = vld [vmem:[%s3728_s1 + $0xa78] sm:$0xff]  ;;  %v101_v62 = vld [vmem:[%s3728_s1 + $0x260] sm:$0xff]  ;;  %v103_v63 = vld [vmem:[%s3728_s1 + $0x270] sm:$0xff] }
  0x34   :  { %v357_v0 = vld [vmem:[%s3728_s1 + $0xa60] sm:$0xff]  ;;  %v359_v2 = vld [vmem:[%s3728_s1 + $0xa70] sm:$0xff]  ;;  %v364_v6 = vld [vmem:[%s3728_s1 + $0xa98] sm:$0xff]  ;;  %v1446_v7 = vpack.c.bf16 %v103_v63, %v101_v62 }
  0x35   :  { %1419 = vmatpush1.bf16.msra.mxu1 %v1418_v42  ;;  %v98_v42 = vld [vmem:[%s3728_s1 + $0x248] sm:$0xff]  ;;  %v1702_v8 = vpack.c.bf16 %v359_v2, %v357_v0  ;;  %v105_v10 = vld [vmem:[%s3728_s1 + $0x280] sm:$0xff]  ;;  %v107_v12 = vld [vmem:[%s3728_s1 + $0x290] sm:$0xff] }
  0x36   :  { %1675 = vmatpush1.bf16.msra.mxu0 %v1674_v43  ;;  %1421 = vmatprep.subr.bf16.mxu1 %v1420_v44  ;;  %v100_v43 = vld [vmem:[%s3728_s1 + $0x258] sm:$0xff]  ;;  %v569_v44 = vcombine.high %v2436_v30, %v2436_v30  ;;  %v361_v13 = vld [vmem:[%s3728_s1 + $0xa80] sm:$0xff]  ;;  %v363_v15 = vld [vmem:[%s3728_s1 + $0xa90] sm:$0xff] }
  0x37   :  { %1677 = vmatprep.subr.bf16.mxu0 %v1676_v48  ;;  %v1438_v48 = vpack.c.bf16 %v95_v38, %v93_v37  ;;  %v1440_v50 = vpack.c.bf16 %v100_v43, %v98_v42  ;;  %v110_v16 = vld [vmem:[%s3728_s1 + $0x2a8] sm:$0xff]  ;;  %v112_v17 = vld [vmem:[%s3728_s1 + $0x2b8] sm:$0xff]  ;;  %v1706_v21 = vpack.c.bf16 %v363_v15, %v361_v13  ;;  %v109_v23 = vld [vmem:[%s3728_s1 + $0x2a0] sm:$0xff] }
  0x38   :  { %v1452_v22 = vpack.c.bf16 %v112_v17, %v110_v16  ;;  %v365_v26 = vld [vmem:[%s3728_s1 + $0xaa0] sm:$0xff]  ;;  %v367_v29 = vld [vmem:[%s3728_s1 + $0xab0] sm:$0xff]  ;;  %v114_v31 = vld [vmem:[%s3728_s1 + $0x2c8] sm:$0xff] }
  0x39   :  { %1423 = vmatpush1.bf16.msra.mxu1 %v1422_v54  ;;  %v102_v54 = vld [vmem:[%s3728_s1 + $0x268] sm:$0xff]  ;;  %v116_v32 = vld [vmem:[%s3728_s1 + $0x2d8] sm:$0xff]  ;;  %v1710_v37 = vpack.c.bf16 %v367_v29, %v365_v26  ;;  %v113_v39 = vld [vmem:[%s3728_s1 + $0x2c0] sm:$0xff] }
  0x3a   :  { %1679 = vmatpush1.bf16.msra.mxu0 %v1678_v55  ;;  %1425 = vmatprep.subr.bf16.mxu1 %v1424_v56  ;;  %v104_v55 = vld [vmem:[%s3728_s1 + $0x278] sm:$0xff]  ;;  %v358_v56 = vld [vmem:[%s3728_s1 + $0xa68] sm:$0xff]  ;;  %v1456_v38 = vpack.c.bf16 %v116_v32, %v114_v31  ;;  %v369_v41 = vld [vmem:[%s3728_s1 + $0xac0] sm:$0xff] }
  0x3b   :  { %1681 = vmatprep.subr.bf16.mxu0 %v1680_v60  ;;  %v1444_v60 = vpack.c.bf16 %v104_v55, %v102_v54  ;;  %v1700_v1 = vpack.c.bf16 %v360_v57, %v358_v56  ;;  %v371_v43 = vld [vmem:[%s3728_s1 + $0xad0] sm:$0xff]  ;;  %v120_v45 = vld [vmem:[%s3728_s1 + $0x2f8] sm:$0xff]  ;;  %v374_v46 = vld [vmem:[%s3728_s1 + $0xae8] sm:$0xff] }
  0x3c   :  { %v122_v54 = vld [vmem:[%s3728_s1 + $0x308] sm:$0xff]  ;;  %v124_v55 = vld [vmem:[%s3728_s1 + $0x318] sm:$0xff]  ;;  %v121_v62 = vld [vmem:[%s3728_s1 + $0x300] sm:$0xff] }
  0x3d   :  { %1427 = vmatpush1.bf16.msra.mxu1 %v1426_v3  ;;  %v106_v3 = vld [vmem:[%s3728_s1 + $0x288] sm:$0xff]  ;;  %v380_v57 = vld [vmem:[%s3728_s1 + $0xb18] sm:$0xff]  ;;  %v123_v63 = vld [vmem:[%s3728_s1 + $0x310] sm:$0xff] }
  0x3e   :  { %1683 = vmatpush1.bf16.msra.mxu0 %v1682_v4  ;;  %1429 = vmatprep.subr.bf16.mxu1 %v1428_v5  ;;  %v108_v4 = vld [vmem:[%s3728_s1 + $0x298] sm:$0xff]  ;;  %v362_v5 = vld [vmem:[%s3728_s1 + $0xa88] sm:$0xff]  ;;  %v377_v0 = vld [vmem:[%s3728_s1 + $0xb00] sm:$0xff] }
  0x3f   :  { %1685 = vmatprep.subr.bf16.mxu0 %v1684_v9  ;;  %v1448_v9 = vpack.c.bf16 %v108_v4, %v106_v3  ;;  %v1704_v14 = vpack.c.bf16 %v364_v6, %v362_v5  ;;  %v378_v56 = vld [vmem:[%s3728_s1 + $0xb08] sm:$0xff]  ;;  %v379_v2 = vld [vmem:[%s3728_s1 + $0xb10] sm:$0xff]  ;;  %v128_v4 = vld [vmem:[%s3728_s1 + $0x338] sm:$0xff] }
  0x40   :  { %v126_v3 = vld [vmem:[%s3728_s1 + $0x328] sm:$0xff]  ;;  %v384_v6 = vld [vmem:[%s3728_s1 + $0xb38] sm:$0xff]  ;;  %v381_v13 = vld [vmem:[%s3728_s1 + $0xb20] sm:$0xff] }
  0x41   :  { %1431 = vmatpush1.bf16.msra.mxu1 %v1430_v18  ;;  %v366_v18 = vld [vmem:[%s3728_s1 + $0xaa8] sm:$0xff]  ;;  %v383_v15 = vld [vmem:[%s3728_s1 + $0xb30] sm:$0xff]  ;;  %v132_v17 = vld [vmem:[%s3728_s1 + $0x358] sm:$0xff] }
  0x42   :  { %1687 = vmatpush1.bf16.msra.mxu0 %v1686_v19  ;;  %1433 = vmatprep.subr.bf16.mxu1 %v1432_v20  ;;  %v368_v19 = vld [vmem:[%s3728_s1 + $0xab8] sm:$0xff]  ;;  %v1450_v20 = vpack.c.bf16 %v107_v12, %v105_v10  ;;  %v382_v5 = vld [vmem:[%s3728_s1 + $0xb28] sm:$0xff]  ;;  %v125_v10 = vld [vmem:[%s3728_s1 + $0x320] sm:$0xff] }
  0x43   :  { %1689 = vmatprep.subr.bf16.mxu0 %v1688_v24  ;;  %v111_v24 = vld [vmem:[%s3728_s1 + $0x2b0] sm:$0xff]  ;;  %v1708_v27 = vpack.c.bf16 %v368_v19, %v366_v18  ;;  %v130_v16 = vld [vmem:[%s3728_s1 + $0x348] sm:$0xff]  ;;  %v388_v19 = vld [vmem:[%s3728_s1 + $0xb58] sm:$0xff] }
  0x44   :  { %702 = vmatmul.mubr.f32.vlgmr.msra.gmra.mrb[0].mxu1 %v2302_v25  ;;  %v97_v25 = vld [vmem:[%s3728_s1 + $0x240] sm:$0xff]  ;;  %v127_v12 = vld [vmem:[%s3728_s1 + $0x330] sm:$0xff]  ;;  %v386_v18 = vld [vmem:[%s3728_s1 + $0xb48] sm:$0xff] }
  0x45   :  { %1435 = vmatpush1.bf16.msra.mxu1 %v1434_v34  ;;  %986 = vmatmul.mubr.f32.vlgmr.msra.gmra.mrb[0].mxu0 %v2311_v28  ;;  %v355_v28 = vld [vmem:[%s3728_s1 + $0xa50] sm:$0xff]  ;;  %v1442_v58 = vpack.c.bf16 %v99_v51, %v97_v25  ;;  %v370_v34 = vld [vmem:[%s3728_s1 + $0xac8] sm:$0xff]  ;;  %v117_v25 = vld [vmem:[%s3728_s1 + $0x2e0] sm:$0xff] }
  0x46   :  { %1691 = vmatpush1.bf16.msra.mxu0 %v1690_v35  ;;  %1437 = vmatprep.subr.bf16.mxu1 %v1436_v36  ;;  %v1698_v59 = vpack.c.bf16 %v355_v28, %v353_v52  ;;  %v372_v35 = vld [vmem:[%s3728_s1 + $0xad8] sm:$0xff]  ;;  %v1454_v36 = vpack.c.bf16 %v111_v24, %v109_v23  ;;  %v119_v51 = vld [vmem:[%s3728_s1 + $0x2f0] sm:$0xff]  ;;  %v373_v52 = vld [vmem:[%s3728_s1 + $0xae0] sm:$0xff] }
  0x47   :  { %1693 = vmatprep.subr.bf16.mxu0 %v1692_v40  ;;  %772 = vmatprep.mubr.f32.mxu1 %v569_v44  ;;  %v115_v40 = vld [vmem:[%s3728_s1 + $0x2d0] sm:$0xff]  ;;  %v1712_v42 = vpack.c.bf16 %v372_v35, %v370_v34  ;;  %v118_v44 = vld [vmem:[%s3728_s1 + $0x2e8] sm:$0xff]  ;;  %v129_v23 = vld [vmem:[%s3728_s1 + $0x340] sm:$0xff] }
  0x48   :  { %1056 = vmatprep.mubr.f32.mxu0 %v603_v47  ;;  %v376_v47 = vld [vmem:[%s3728_s1 + $0xaf8] sm:$0xff]  ;;  %v375_v28 = vld [vmem:[%s3728_s1 + $0xaf0] sm:$0xff]  ;;  %v385_v26 = vld [vmem:[%s3728_s1 + $0xb40] sm:$0xff] }
  0x49   :  { %1439 = vmatpush1.bf16.msra.mxu1 %v1438_v48  ;;  %v1458_v48 = vpack.c.bf16 %v115_v40, %v113_v39  ;;  %v131_v24 = vld [vmem:[%s3728_s1 + $0x350] sm:$0xff]  ;;  %v134_v31 = vld [vmem:[%s3728_s1 + $0x368] sm:$0xff]  ;;  %v136_v32 = vld [vmem:[%s3728_s1 + $0x378] sm:$0xff] }
  0x4a   :  { %1695 = vmatpush1.bf16.msra.mxu0 %v1694_v49  ;;  %1441 = vmatprep.subr.bf16.mxu1 %v1440_v50  ;;  %v1714_v49 = vpack.c.bf16 %v371_v43, %v369_v41  ;;  %v1460_v50 = vpack.c.bf16 %v120_v45, %v118_v44  ;;  %v387_v29 = vld [vmem:[%s3728_s1 + $0xb50] sm:$0xff]  ;;  %v390_v34 = vld [vmem:[%s3728_s1 + $0xb68] sm:$0xff]  ;;  %v392_v35 = vld [vmem:[%s3728_s1 + $0xb78] sm:$0xff] }
  0x4b   :  { %1697 = vmatprep.subr.bf16.mxu0 %v1696_v53  ;;  %v1716_v53 = vpack.c.bf16 %v376_v47, %v374_v46  ;;  %v133_v39 = vld [vmem:[%s3728_s1 + $0x360] sm:$0xff]  ;;  %v135_v40 = vld [vmem:[%s3728_s1 + $0x370] sm:$0xff]  ;;  %v138_v44 = vld [vmem:[%s3728_s1 + $0x388] sm:$0xff] }
  0x4c   :  { %v389_v41 = vld [vmem:[%s3728_s1 + $0xb60] sm:$0xff]  ;;  %v391_v43 = vld [vmem:[%s3728_s1 + $0xb70] sm:$0xff]  ;;  %v140_v45 = vld [vmem:[%s3728_s1 + $0x398] sm:$0xff] }
  0x4d   :  { %1443 = vmatpush1.bf16.msra.mxu1 %v1442_v58  ;;  %v1462_v58 = vpack.c.bf16 %v119_v51, %v117_v25  ;;  %v394_v46 = vld [vmem:[%s3728_s1 + $0xb88] sm:$0xff]  ;;  %v396_v47 = vld [vmem:[%s3728_s1 + $0xb98] sm:$0xff]  ;;  %v137_v25 = vld [vmem:[%s3728_s1 + $0x380] sm:$0xff] }
  0x4e   :  { %1699 = vmatpush1.bf16.msra.mxu0 %v1698_v59  ;;  %1445 = vmatprep.subr.bf16.mxu1 %v1444_v60  ;;  %v1718_v59 = vpack.c.bf16 %v375_v28, %v373_v52  ;;  %v1464_v60 = vpack.c.bf16 %v124_v55, %v122_v54  ;;  %v139_v51 = vld [vmem:[%s3728_s1 + $0x390] sm:$0xff]  ;;  %v393_v52 = vld [vmem:[%s3728_s1 + $0xb80] sm:$0xff]  ;;  %v142_v54 = vld [vmem:[%s3728_s1 + $0x3a8] sm:$0xff] }
  0x4f   :  { %1701 = vmatprep.subr.bf16.mxu0 %v1700_v1  ;;  %v1720_v1 = vpack.c.bf16 %v380_v57, %v378_v56  ;;  %v395_v28 = vld [vmem:[%s3728_s1 + $0xb90] sm:$0xff]  ;;  %v144_v55 = vld [vmem:[%s3728_s1 + $0x3b8] sm:$0xff]  ;;  %v398_v56 = vld [vmem:[%s3728_s1 + $0xba8] sm:$0xff] }
  0x50   :  { %v400_v57 = vld [vmem:[%s3728_s1 + $0xbb8] sm:$0xff] }
  0x51   :  { %1447 = vmatpush1.bf16.msra.mxu1 %v1446_v7  ;;  %v1466_v7 = vpack.c.bf16 %v123_v63, %v121_v62  ;;  %v141_v62 = vld [vmem:[%s3728_s1 + $0x3a0] sm:$0xff]  ;;  %v143_v63 = vld [vmem:[%s3728_s1 + $0x3b0] sm:$0xff] }
  0x52   :  { %1703 = vmatpush1.bf16.msra.mxu0 %v1702_v8  ;;  %1449 = vmatprep.subr.bf16.mxu1 %v1448_v9  ;;  %v1722_v8 = vpack.c.bf16 %v379_v2, %v377_v0  ;;  %v1468_v9 = vpack.c.bf16 %v128_v4, %v126_v3  ;;  %v397_v0 = vld [vmem:[%s3728_s1 + $0xba0] sm:$0xff]  ;;  %v399_v2 = vld [vmem:[%s3728_s1 + $0xbb0] sm:$0xff]  ;;  %v146_v3 = vld [vmem:[%s3728_s1 + $0x3c8] sm:$0xff] }
  0x53   :  { %1705 = vmatprep.subr.bf16.mxu0 %v1704_v14  ;;  %v1724_v14 = vpack.c.bf16 %v384_v6, %v382_v5  ;;  %v148_v4 = vld [vmem:[%s3728_s1 + $0x3d8] sm:$0xff]  ;;  %v402_v5 = vld [vmem:[%s3728_s1 + $0xbc8] sm:$0xff] }
  0x54   :  { %v404_v6 = vld [vmem:[%s3728_s1 + $0xbd8] sm:$0xff] }
  0x55   :  { %1451 = vmatpush1.bf16.msra.mxu1 %v1450_v20  ;;  %v1470_v20 = vpack.c.bf16 %v127_v12, %v125_v10  ;;  %v145_v10 = vld [vmem:[%s3728_s1 + $0x3c0] sm:$0xff]  ;;  %v147_v12 = vld [vmem:[%s3728_s1 + $0x3d0] sm:$0xff] }
  0x56   :  { %1707 = vmatpush1.bf16.msra.mxu0 %v1706_v21  ;;  %1453 = vmatprep.subr.bf16.mxu1 %v1452_v22  ;;  %v1726_v21 = vpack.c.bf16 %v383_v15, %v381_v13  ;;  %v1472_v22 = vpack.c.bf16 %v132_v17, %v130_v16  ;;  %v401_v13 = vld [vmem:[%s3728_s1 + $0xbc0] sm:$0xff]  ;;  %v403_v15 = vld [vmem:[%s3728_s1 + $0xbd0] sm:$0xff]  ;;  %v150_v16 = vld [vmem:[%s3728_s1 + $0x3e8] sm:$0xff] }
  0x57   :  { %1709 = vmatprep.subr.bf16.mxu0 %v1708_v27  ;;  %v1728_v27 = vpack.c.bf16 %v388_v19, %v386_v18  ;;  %v152_v17 = vld [vmem:[%s3728_s1 + $0x3f8] sm:$0xff]  ;;  %v406_v18 = vld [vmem:[%s3728_s1 + $0xbe8] sm:$0xff] }
  0x58   :  { %v408_v19 = vld [vmem:[%s3728_s1 + $0xbf8] sm:$0xff] }
  0x59   :  { %1455 = vmatpush1.bf16.msra.mxu1 %v1454_v36  ;;  %v1474_v36 = vpack.c.bf16 %v131_v24, %v129_v23  ;;  %v149_v23 = vld [vmem:[%s3728_s1 + $0x3e0] sm:$0xff]  ;;  %v151_v24 = vld [vmem:[%s3728_s1 + $0x3f0] sm:$0xff] }
  0x5a   :  { %1711 = vmatpush1.bf16.msra.mxu0 %v1710_v37  ;;  %1457 = vmatprep.subr.bf16.mxu1 %v1456_v38  ;;  %v1730_v37 = vpack.c.bf16 %v387_v29, %v385_v26  ;;  %v1476_v38 = vpack.c.bf16 %v136_v32, %v134_v31  ;;  %v405_v26 = vld [vmem:[%s3728_s1 + $0xbe0] sm:$0xff]  ;;  %v407_v29 = vld [vmem:[%s3728_s1 + $0xbf0] sm:$0xff]  ;;  %v154_v31 = vld [vmem:[%s3728_s1 + $0x408] sm:$0xff] }
  0x5b   :  { %1713 = vmatprep.subr.bf16.mxu0 %v1712_v42  ;;  %v1732_v42 = vpack.c.bf16 %v392_v35, %v390_v34  ;;  %v156_v32 = vld [vmem:[%s3728_s1 + $0x418] sm:$0xff]  ;;  %v410_v34 = vld [vmem:[%s3728_s1 + $0xc08] sm:$0xff] }
  0x5c   :  { %v412_v35 = vld [vmem:[%s3728_s1 + $0xc18] sm:$0xff] }
  0x5d   :  { %1459 = vmatpush1.bf16.msra.mxu1 %v1458_v48  ;;  %v1478_v48 = vpack.c.bf16 %v135_v40, %v133_v39  ;;  %v153_v39 = vld [vmem:[%s3728_s1 + $0x400] sm:$0xff]  ;;  %v155_v40 = vld [vmem:[%s3728_s1 + $0x410] sm:$0xff] }
  0x5e   :  { %1715 = vmatpush1.bf16.msra.mxu0 %v1714_v49  ;;  %1461 = vmatprep.subr.bf16.mxu1 %v1460_v50  ;;  %v1734_v49 = vpack.c.bf16 %v391_v43, %v389_v41  ;;  %v1480_v50 = vpack.c.bf16 %v140_v45, %v138_v44  ;;  %v409_v41 = vld [vmem:[%s3728_s1 + $0xc00] sm:$0xff]  ;;  %v411_v43 = vld [vmem:[%s3728_s1 + $0xc10] sm:$0xff]  ;;  %v158_v44 = vld [vmem:[%s3728_s1 + $0x428] sm:$0xff] }
  0x5f   :  { %1717 = vmatprep.subr.bf16.mxu0 %v1716_v53  ;;  %v1736_v53 = vpack.c.bf16 %v396_v47, %v394_v46  ;;  %v160_v45 = vld [vmem:[%s3728_s1 + $0x438] sm:$0xff]  ;;  %v414_v46 = vld [vmem:[%s3728_s1 + $0xc28] sm:$0xff] }
  0x60   :  { %v416_v47 = vld [vmem:[%s3728_s1 + $0xc38] sm:$0xff] }
  0x61   :  { %1463 = vmatpush1.bf16.msra.mxu1 %v1462_v58  ;;  %v1482_v58 = vpack.c.bf16 %v139_v51, %v137_v25  ;;  %v1754_v25 = vpack.c.bf16 %v411_v43, %v409_v41  ;;  %v1500_v51 = vpack.c.bf16 %v160_v45, %v158_v44  ;;  %v173_v43 = vld [vmem:[%s3728_s1 + $0x4a0] sm:$0xff]  ;;  %v175_v44 = vld [vmem:[%s3728_s1 + $0x4b0] sm:$0xff] }
  0x62   :  { %1719 = vmatpush1.bf16.msra.mxu0 %v1718_v59  ;;  %1465 = vmatprep.subr.bf16.mxu1 %v1464_v60  ;;  %v1738_v59 = vpack.c.bf16 %v395_v28, %v393_v52  ;;  %v1484_v60 = vpack.c.bf16 %v144_v55, %v142_v54  ;;  %v159_v52 = vld [vmem:[%s3728_s1 + $0x430] sm:$0xff]  ;;  %v2858_v54 = vld [vmem:[%s3727_s0 + $0x18] sm:$0xff]  ;;  %v1756_v55 = vpack.c.bf16 %v416_v47, %v414_v46  ;;  %v429_v45 = vld [vmem:[%s3728_s1 + $0xca0] sm:$0xff] }
  0x63   :  { %1721 = vmatprep.subr.bf16.mxu0 %v1720_v1  ;;  %v1740_v1 = vpack.c.bf16 %v400_v57, %v398_v56  ;;  %v415_v56 = vld [vmem:[%s3728_s1 + $0xc30] sm:$0xff]  ;;  %v162_v57 = vld [vmem:[%s3728_s1 + $0x448] sm:$0xff] }
  0x64   :  { %v431_v47 = vld [vmem:[%s3728_s1 + $0xcb0] sm:$0xff] }
  0x65   :  { %1467 = vmatpush1.bf16.msra.mxu1 %v1466_v7  ;;  %v1486_v7 = vpack.c.bf16 %v143_v63, %v141_v62  ;;  %v420_v62 = vld [vmem:[%s3728_s1 + $0xc58] sm:$0xff] }
  0x66   :  { %1723 = vmatpush1.bf16.msra.mxu0 %v1722_v8  ;;  %1469 = vmatprep.subr.bf16.mxu1 %v1468_v9  ;;  %v1742_v8 = vpack.c.bf16 %v399_v2, %v397_v0  ;;  %v1488_v9 = vpack.c.bf16 %v148_v4, %v146_v3  ;;  %v161_v3 = vld [vmem:[%s3728_s1 + $0x440] sm:$0xff]  ;;  %v163_v4 = vld [vmem:[%s3728_s1 + $0x450] sm:$0xff] }
  0x67   :  { %1725 = vmatprep.subr.bf16.mxu0 %v1724_v14  ;;  %v1744_v14 = vpack.c.bf16 %v404_v6, %v402_v5  ;;  %v419_v6 = vld [vmem:[%s3728_s1 + $0xc50] sm:$0xff] }
  0x69   :  { %1471 = vmatpush1.bf16.msra.mxu1 %v1470_v20  ;;  %v1490_v20 = vpack.c.bf16 %v147_v12, %v145_v10  ;;  %v424_v10 = vld [vmem:[%s3728_s1 + $0xc78] sm:$0xff]  ;;  %v1506_v12 = vpack.c.bf16 %v163_v4, %v161_v3 }
  0x6a   :  { %1727 = vmatpush1.bf16.msra.mxu0 %v1726_v21  ;;  %1473 = vmatprep.subr.bf16.mxu1 %v1472_v22  ;;  %v1746_v21 = vpack.c.bf16 %v403_v15, %v401_v13  ;;  %v1492_v22 = vpack.c.bf16 %v152_v17, %v150_v16  ;;  %v165_v15 = vld [vmem:[%s3728_s1 + $0x460] sm:$0xff]  ;;  %v167_v16 = vld [vmem:[%s3728_s1 + $0x470] sm:$0xff] }
  0x6b   :  { %1729 = vmatprep.subr.bf16.mxu0 %v1728_v27  ;;  %v1748_v27 = vpack.c.bf16 %v408_v19, %v406_v18  ;;  %v421_v17 = vld [vmem:[%s3728_s1 + $0xc60] sm:$0xff]  ;;  %v423_v19 = vld [vmem:[%s3728_s1 + $0xc70] sm:$0xff] }
  0x6d   :  { %1475 = vmatpush1.bf16.msra.mxu1 %v1474_v36  ;;  %v1494_v36 = vpack.c.bf16 %v151_v24, %v149_v23  ;;  %v428_v23 = vld [vmem:[%s3728_s1 + $0xc98] sm:$0xff]  ;;  %v1510_v24 = vpack.c.bf16 %v167_v16, %v165_v15 }
  0x6e   :  { %1731 = vmatpush1.bf16.msra.mxu0 %v1730_v37  ;;  %1477 = vmatprep.subr.bf16.mxu1 %v1476_v38  ;;  %v1750_v37 = vpack.c.bf16 %v407_v29, %v405_v26  ;;  %v1496_v38 = vpack.c.bf16 %v156_v32, %v154_v31  ;;  %v1766_v26 = vpack.c.bf16 %v423_v19, %v421_v17  ;;  %v169_v29 = vld [vmem:[%s3728_s1 + $0x480] sm:$0xff]  ;;  %v171_v31 = vld [vmem:[%s3728_s1 + $0x490] sm:$0xff] }
  0x6f   :  { %1733 = vmatprep.subr.bf16.mxu0 %v1732_v42  ;;  %v1752_v42 = vpack.c.bf16 %v412_v35, %v410_v34  ;;  %v425_v32 = vld [vmem:[%s3728_s1 + $0xc80] sm:$0xff]  ;;  %v427_v35 = vld [vmem:[%s3728_s1 + $0xc90] sm:$0xff] }
  0x70   :  { %v1770_v41 = vpack.c.bf16 %v427_v35, %v425_v32  ;;  %v185_v17 = vld [vmem:[%s3728_s1 + $0x500] sm:$0xff] }
  0x71   :  { %1479 = vmatpush1.bf16.msra.mxu1 %v1478_v48  ;;  %v1498_v48 = vpack.c.bf16 %v155_v40, %v153_v39  ;;  %v432_v39 = vld [vmem:[%s3728_s1 + $0xcb8] sm:$0xff]  ;;  %v1514_v40 = vpack.c.bf16 %v171_v31, %v169_v29  ;;  %v441_v19 = vld [vmem:[%s3728_s1 + $0xd00] sm:$0xff] }
  0x72   :  { %1735 = vmatpush1.bf16.msra.mxu0 %v1734_v49  ;;  %1481 = vmatprep.subr.bf16.mxu1 %v1480_v50  ;;  %v157_v49 = vld [vmem:[%s3728_s1 + $0x420] sm:$0xff]  ;;  %v2843_v50 = vld [vmem:[%s3727_s0 + $0x8] sm:$0xff] }
  0x73   :  { %1737 = vmatprep.subr.bf16.mxu0 %v1736_v53  ;;  %v413_v53 = vld [vmem:[%s3728_s1 + $0xc20] sm:$0xff]  ;;  %v2853_v28 = vrot.slane %v2843_v50, %v2269_v11  ;;  %v1502_v0 = vpack.c.bf16 %v159_v52, %v157_v49  ;;  %v180_v49 = vld [vmem:[%s3728_s1 + $0x4d8] sm:$0xff]  ;;  %v1518_v52 = vpack.c.bf16 %v175_v44, %v173_v43 }
  0x74   :  { %v189_v32 = vld [vmem:[%s3728_s1 + $0x520] sm:$0xff] }
  0x75   :  { %1483 = vmatpush1.bf16.msra.mxu1 %v1482_v58  ;;  %v164_v58 = vld [vmem:[%s3728_s1 + $0x458] sm:$0xff]  ;;  %v585_v63 = vcombine.high %v2853_v28, %v2853_v28  ;;  %v445_v35 = vld [vmem:[%s3728_s1 + $0xd20] sm:$0xff] }
  0x76   :  { %1739 = vmatpush1.bf16.msra.mxu0 %v1738_v59  ;;  %1485 = vmatprep.subr.bf16.mxu1 %v1484_v60  ;;  %v2871_v59 = vrot.slane %v2858_v54, %v2269_v11  ;;  %v418_v60 = vld [vmem:[%s3728_s1 + $0xc48] sm:$0xff]  ;;  %v1504_v2 = vpack.c.bf16 %v164_v58, %v162_v57  ;;  %v179_v57 = vld [vmem:[%s3728_s1 + $0x4d0] sm:$0xff]  ;;  %v433_v58 = vld [vmem:[%s3728_s1 + $0xcc0] sm:$0xff] }
  0x77   :  { %1741 = vmatprep.subr.bf16.mxu0 %v1740_v1  ;;  %v1760_v5 = vpack.c.bf16 %v420_v62, %v418_v60  ;;  %v435_v62 = vld [vmem:[%s3728_s1 + $0xcd0] sm:$0xff] }
  0x78   :  { %v619_v1 = vcombine.high %v2871_v59, %v2871_v59  ;;  %v1778_v3 = vpack.c.bf16 %v435_v62, %v433_v58  ;;  %v197_v58 = vld [vmem:[%s3728_s1 + $0x560] sm:$0xff] }
  0x79   :  { %1487 = vmatpush1.bf16.msra.mxu1 %v1486_v7  ;;  %v166_v7 = vld [vmem:[%s3728_s1 + $0x468] sm:$0xff]  ;;  %v453_v62 = vld [vmem:[%s3728_s1 + $0xd60] sm:$0xff] }
  0x7a   :  { %1743 = vmatpush1.bf16.msra.mxu0 %v1742_v8  ;;  %1489 = vmatprep.subr.bf16.mxu1 %v1488_v9  ;;  %v168_v8 = vld [vmem:[%s3728_s1 + $0x478] sm:$0xff]  ;;  %v422_v9 = vld [vmem:[%s3728_s1 + $0xc68] sm:$0xff] }
  0x7b   :  { %1745 = vmatprep.subr.bf16.mxu0 %v1744_v14  ;;  %v1508_v14 = vpack.c.bf16 %v168_v8, %v166_v7  ;;  %v1764_v18 = vpack.c.bf16 %v424_v10, %v422_v9  ;;  %v439_v8 = vld [vmem:[%s3728_s1 + $0xcf0] sm:$0xff]  ;;  %v186_v9 = vld [vmem:[%s3728_s1 + $0x508] sm:$0xff]  ;;  %v188_v10 = vld [vmem:[%s3728_s1 + $0x518] sm:$0xff] }
  0x7c   :  { %v1528_v16 = vpack.c.bf16 %v188_v10, %v186_v9  ;;  %v459_v10 = vld [vmem:[%s3728_s1 + $0xd90] sm:$0xff] }
  0x7d   :  { %1491 = vmatpush1.bf16.msra.mxu1 %v1490_v20  ;;  %v170_v20 = vld [vmem:[%s3728_s1 + $0x488] sm:$0xff] }
  0x7e   :  { %1747 = vmatpush1.bf16.msra.mxu0 %v1746_v21  ;;  %1493 = vmatprep.subr.bf16.mxu1 %v1492_v22  ;;  %v172_v21 = vld [vmem:[%s3728_s1 + $0x498] sm:$0xff]  ;;  %v426_v22 = vld [vmem:[%s3728_s1 + $0xc88] sm:$0xff] }
  0x7f   :  { %1749 = vmatprep.subr.bf16.mxu0 %v1748_v27  ;;  %v1512_v27 = vpack.c.bf16 %v172_v21, %v170_v20  ;;  %v1768_v34 = vpack.c.bf16 %v428_v23, %v426_v22  ;;  %v443_v21 = vld [vmem:[%s3728_s1 + $0xd10] sm:$0xff]  ;;  %v190_v22 = vld [vmem:[%s3728_s1 + $0x528] sm:$0xff]  ;;  %v192_v23 = vld [vmem:[%s3728_s1 + $0x538] sm:$0xff] }
  0x80   :  { %v1786_v29 = vpack.c.bf16 %v443_v21, %v441_v19  ;;  %v1532_v31 = vpack.c.bf16 %v192_v23, %v190_v22  ;;  %v205_v19 = vld [vmem:[%s3728_s1 + $0x5a0] sm:$0xff]  ;;  %v463_v23 = vld [vmem:[%s3728_s1 + $0xdb0] sm:$0xff] }
  0x81   :  { %1495 = vmatpush1.bf16.msra.mxu1 %v1494_v36  ;;  %v174_v36 = vld [vmem:[%s3728_s1 + $0x4a8] sm:$0xff]  ;;  %v461_v21 = vld [vmem:[%s3728_s1 + $0xda0] sm:$0xff] }
  0x82   :  { %1751 = vmatpush1.bf16.msra.mxu0 %v1750_v37  ;;  %1497 = vmatprep.subr.bf16.mxu1 %v1496_v38  ;;  %v176_v37 = vld [vmem:[%s3728_s1 + $0x4b8] sm:$0xff]  ;;  %v430_v38 = vld [vmem:[%s3728_s1 + $0xca8] sm:$0xff] }
  0x83   :  { %1753 = vmatprep.subr.bf16.mxu0 %v1752_v42  ;;  %v1516_v42 = vpack.c.bf16 %v176_v37, %v174_v36  ;;  %v1772_v46 = vpack.c.bf16 %v432_v39, %v430_v38  ;;  %v447_v37 = vld [vmem:[%s3728_s1 + $0xd30] sm:$0xff]  ;;  %v194_v38 = vld [vmem:[%s3728_s1 + $0x548] sm:$0xff]  ;;  %v196_v39 = vld [vmem:[%s3728_s1 + $0x558] sm:$0xff] }
  0x84   :  { %773 = vmatmul.mubr.f32.vlgmr.msra.gmra.mrb[0].mxu1 %v2436_v30  ;;  %v1758_v30 = vpack.c.bf16 %v415_v56, %v413_v53  ;;  %v1774_v53 = vpack.c.bf16 %v431_v47, %v429_v45  ;;  %v177_v56 = vld [vmem:[%s3728_s1 + $0x4c0] sm:$0xff]  ;;  %v1790_v43 = vpack.c.bf16 %v447_v37, %v445_v35  ;;  %v1536_v44 = vpack.c.bf16 %v196_v39, %v194_v38 }
  0x85   :  { %1499 = vmatpush1.bf16.msra.mxu1 %v1498_v48  ;;  %1057 = vmatmul.mubr.f32.vlgmr.msra.gmra.mrb[0].mxu0 %v2445_v33  ;;  %v417_v33 = vld [vmem:[%s3728_s1 + $0xc40] sm:$0xff]  ;;  %v178_v48 = vld [vmem:[%s3728_s1 + $0x4c8] sm:$0xff] }
  0x86   :  { %1755 = vmatpush1.bf16.msra.mxu0 %v1754_v25  ;;  %1501 = vmatprep.subr.bf16.mxu1 %v1500_v51  ;;  %v1762_v13 = vpack.c.bf16 %v419_v6, %v417_v33  ;;  %v434_v25 = vld [vmem:[%s3728_s1 + $0xcc8] sm:$0xff]  ;;  %v436_v51 = vld [vmem:[%s3728_s1 + $0xcd8] sm:$0xff]  ;;  %v181_v33 = vld [vmem:[%s3728_s1 + $0x4e0] sm:$0xff] }
  0x87   :  { %1757 = vmatprep.subr.bf16.mxu0 %v1756_v55  ;;  %843 = vmatprep.mubr.f32.mxu1 %v585_v63  ;;  %v1520_v55 = vpack.c.bf16 %v180_v49, %v178_v48  ;;  %v1776_v60 = vpack.c.bf16 %v436_v51, %v434_v25  ;;  %v182_v63 = vld [vmem:[%s3728_s1 + $0x4e8] sm:$0xff]  ;;  %v437_v6 = vld [vmem:[%s3728_s1 + $0xce0] sm:$0xff]  ;;  %v451_v49 = vld [vmem:[%s3728_s1 + $0xd50] sm:$0xff] }
  0x88   :  { %1127 = vmatprep.mubr.f32.mxu0 %v619_v1  ;;  %v438_v1 = vld [vmem:[%s3728_s1 + $0xce8] sm:$0xff]  ;;  %v1782_v15 = vpack.c.bf16 %v439_v8, %v437_v6  ;;  %v193_v45 = vld [vmem:[%s3728_s1 + $0x540] sm:$0xff]  ;;  %v200_v51 = vld [vmem:[%s3728_s1 + $0x578] sm:$0xff] }
  0x89   :  { %1503 = vmatpush1.bf16.msra.mxu1 %v1502_v0  ;;  %v184_v0 = vld [vmem:[%s3728_s1 + $0x4f8] sm:$0xff]  ;;  %v449_v47 = vld [vmem:[%s3728_s1 + $0xd40] sm:$0xff]  ;;  %v198_v25 = vld [vmem:[%s3728_s1 + $0x568] sm:$0xff] }
  0x8a   :  { %1759 = vmatpush1.bf16.msra.mxu0 %v1758_v30  ;;  %1505 = vmatprep.subr.bf16.mxu1 %v1504_v2  ;;  %v440_v30 = vld [vmem:[%s3728_s1 + $0xcf8] sm:$0xff]  ;;  %v1522_v2 = vpack.c.bf16 %v179_v57, %v177_v56  ;;  %v1524_v4 = vpack.c.bf16 %v184_v0, %v182_v63  ;;  %v1794_v56 = vpack.c.bf16 %v451_v49, %v449_v47  ;;  %v455_v0 = vld [vmem:[%s3728_s1 + $0xd70] sm:$0xff]  ;;  %v201_v6 = vld [vmem:[%s3728_s1 + $0x580] sm:$0xff] }
  0x8b   :  { %1761 = vmatprep.subr.bf16.mxu0 %v1760_v5  ;;  %v183_v5 = vld [vmem:[%s3728_s1 + $0x4f0] sm:$0xff]  ;;  %v1780_v7 = vpack.c.bf16 %v440_v30, %v438_v1  ;;  %v1540_v57 = vpack.c.bf16 %v200_v51, %v198_v25  ;;  %v202_v1 = vld [vmem:[%s3728_s1 + $0x588] sm:$0xff]  ;;  %v204_v30 = vld [vmem:[%s3728_s1 + $0x598] sm:$0xff] }
  0x8c   :  { %v457_v8 = vld [vmem:[%s3728_s1 + $0xd80] sm:$0xff] }
  0x8d   :  { %1507 = vmatpush1.bf16.msra.mxu1 %v1506_v12  ;;  %v442_v12 = vld [vmem:[%s3728_s1 + $0xd08] sm:$0xff] }
  0x8e   :  { %1763 = vmatpush1.bf16.msra.mxu0 %v1762_v13  ;;  %1509 = vmatprep.subr.bf16.mxu1 %v1508_v14  ;;  %v444_v13 = vld [vmem:[%s3728_s1 + $0xd18] sm:$0xff]  ;;  %v1526_v14 = vpack.c.bf16 %v183_v5, %v181_v33  ;;  %v1798_v33 = vpack.c.bf16 %v455_v0, %v453_v62  ;;  %v1544_v5 = vpack.c.bf16 %v204_v30, %v202_v1 }
  0x8f   :  { %1765 = vmatprep.subr.bf16.mxu0 %v1764_v18  ;;  %v187_v18 = vld [vmem:[%s3728_s1 + $0x510] sm:$0xff]  ;;  %v1784_v20 = vpack.c.bf16 %v444_v13, %v442_v12  ;;  %v206_v12 = vld [vmem:[%s3728_s1 + $0x5a8] sm:$0xff]  ;;  %v208_v13 = vld [vmem:[%s3728_s1 + $0x5b8] sm:$0xff] }
  0x91   :  { %1511 = vmatpush1.bf16.msra.mxu1 %v1510_v24  ;;  %v446_v24 = vld [vmem:[%s3728_s1 + $0xd28] sm:$0xff] }
  0x92   :  { %1767 = vmatpush1.bf16.msra.mxu0 %v1766_v26  ;;  %1513 = vmatprep.subr.bf16.mxu1 %v1512_v27  ;;  %v448_v26 = vld [vmem:[%s3728_s1 + $0xd38] sm:$0xff]  ;;  %v1530_v27 = vpack.c.bf16 %v187_v18, %v185_v17  ;;  %v1802_v17 = vpack.c.bf16 %v459_v10, %v457_v8  ;;  %v1548_v18 = vpack.c.bf16 %v208_v13, %v206_v12 }
  0x93   :  { %1769 = vmatprep.subr.bf16.mxu0 %v1768_v34  ;;  %v191_v34 = vld [vmem:[%s3728_s1 + $0x530] sm:$0xff]  ;;  %v1788_v36 = vpack.c.bf16 %v448_v26, %v446_v24  ;;  %v210_v24 = vld [vmem:[%s3728_s1 + $0x5c8] sm:$0xff]  ;;  %v212_v26 = vld [vmem:[%s3728_s1 + $0x5d8] sm:$0xff] }
  0x95   :  { %1515 = vmatpush1.bf16.msra.mxu1 %v1514_v40  ;;  %v450_v40 = vld [vmem:[%s3728_s1 + $0xd48] sm:$0xff] }
  0x96   :  { %1771 = vmatpush1.bf16.msra.mxu0 %v1770_v41  ;;  %1517 = vmatprep.subr.bf16.mxu1 %v1516_v42  ;;  %v452_v41 = vld [vmem:[%s3728_s1 + $0xd58] sm:$0xff]  ;;  %v1534_v42 = vpack.c.bf16 %v191_v34, %v189_v32 }
  0x97   :  { %1773 = vmatprep.subr.bf16.mxu0 %v1772_v46  ;;  %v195_v46 = vld [vmem:[%s3728_s1 + $0x550] sm:$0xff]  ;;  %v1792_v48 = vpack.c.bf16 %v452_v41, %v450_v40 }
  0x99   :  { %1519 = vmatpush1.bf16.msra.mxu1 %v1518_v52  ;;  %v454_v52 = vld [vmem:[%s3728_s1 + $0xd68] sm:$0xff] }
  0x9a   :  { %1775 = vmatpush1.bf16.msra.mxu0 %v1774_v53  ;;  %1521 = vmatprep.subr.bf16.mxu1 %v1520_v55  ;;  %v456_v53 = vld [vmem:[%s3728_s1 + $0xd78] sm:$0xff]  ;;  %v1538_v55 = vpack.c.bf16 %v195_v46, %v193_v45 }
  0x9b   :  { %1777 = vmatprep.subr.bf16.mxu0 %v1776_v60  ;;  %v199_v60 = vld [vmem:[%s3728_s1 + $0x570] sm:$0xff]  ;;  %v1796_v63 = vpack.c.bf16 %v456_v53, %v454_v52 }
  0x9d   :  { %1523 = vmatpush1.bf16.msra.mxu1 %v1522_v2  ;;  %v458_v2 = vld [vmem:[%s3728_s1 + $0xd88] sm:$0xff] }
  0x9e   :  { %1779 = vmatpush1.bf16.msra.mxu0 %v1778_v3  ;;  %1525 = vmatprep.subr.bf16.mxu1 %v1524_v4  ;;  %v460_v3 = vld [vmem:[%s3728_s1 + $0xd98] sm:$0xff]  ;;  %v1542_v4 = vpack.c.bf16 %v199_v60, %v197_v58 }
  0x9f   :  { %1781 = vmatprep.subr.bf16.mxu0 %v1780_v7  ;;  %v203_v7 = vld [vmem:[%s3728_s1 + $0x590] sm:$0xff]  ;;  %v1800_v9 = vpack.c.bf16 %v460_v3, %v458_v2 }
  0xa1   :  { %1527 = vmatpush1.bf16.msra.mxu1 %v1526_v14  ;;  %v462_v14 = vld [vmem:[%s3728_s1 + $0xda8] sm:$0xff] }
  0xa2   :  { %1783 = vmatpush1.bf16.msra.mxu0 %v1782_v15  ;;  %1529 = vmatprep.subr.bf16.mxu1 %v1528_v16  ;;  %v464_v15 = vld [vmem:[%s3728_s1 + $0xdb8] sm:$0xff]  ;;  %v1546_v16 = vpack.c.bf16 %v203_v7, %v201_v6 }
  0xa3   :  { %1785 = vmatprep.subr.bf16.mxu0 %v1784_v20  ;;  %v207_v20 = vld [vmem:[%s3728_s1 + $0x5b0] sm:$0xff]  ;;  %v1804_v22 = vpack.c.bf16 %v464_v15, %v462_v14 }
  0xa5   :  { %1531 = vmatpush1.bf16.msra.mxu1 %v1530_v27  ;;  %v466_v27 = vld [vmem:[%s3728_s1 + $0xdc8] sm:$0xff] }
  0xa6   :  { %1787 = vmatpush1.bf16.msra.mxu0 %v1786_v29  ;;  %1533 = vmatprep.subr.bf16.mxu1 %v1532_v31  ;;  %v468_v29 = vld [vmem:[%s3728_s1 + $0xdd8] sm:$0xff]  ;;  %v1550_v31 = vpack.c.bf16 %v207_v20, %v205_v19 }
  0xa7   :  { %1789 = vmatprep.subr.bf16.mxu0 %v1788_v36 }
  0xa9   :  { %1535 = vmatpush1.bf16.msra.mxu1 %v1534_v42 }
  0xaa   :  { %1791 = vmatpush1.bf16.msra.mxu0 %v1790_v43  ;;  %1537 = vmatprep.subr.bf16.mxu1 %v1536_v44 }
  0xab   :  { %1793 = vmatprep.subr.bf16.mxu0 %v1792_v48 }
  0xad   :  { %1539 = vmatpush1.bf16.msra.mxu1 %v1538_v55 }
  0xae   :  { %1795 = vmatpush1.bf16.msra.mxu0 %v1794_v56  ;;  %1541 = vmatprep.subr.bf16.mxu1 %v1540_v57 }
  0xaf   :  { %1797 = vmatprep.subr.bf16.mxu0 %v1796_v63 }
  0xb1   :  { %1543 = vmatpush1.bf16.msra.mxu1 %v1542_v4 }
  0xb2   :  { %1799 = vmatpush1.bf16.msra.mxu0 %v1798_v33  ;;  %1545 = vmatprep.subr.bf16.mxu1 %v1544_v5 }
  0xb3   :  { %1801 = vmatprep.subr.bf16.mxu0 %v1800_v9 }
  0xb5   :  { %1547 = vmatpush1.bf16.msra.mxu1 %v1546_v16 }
  0xb6   :  { %10 = vsyncpa [#allocation3], 0  ;;  %1803 = vmatpush1.bf16.msra.mxu0 %v1802_v17  ;;  %1549 = vmatprep.subr.bf16.mxu1 %v1548_v18  ;;  %v1806_v32 = vpack.c.bf16 %v463_v23, %v461_v21  ;;  %v1552_v34 = vpack.c.bf16 %v212_v26, %v210_v24  ;;  %v209_v35 = vld [vmem:[%s3728_s1 + $0x5c0] sm:$0xff]  ;;  %v211_v36 = vld [vmem:[%s3728_s1 + $0x5d0] sm:$0xff]  ;;  %v1808_v38 = vpack.c.bf16 %v468_v29, %v466_v27  ;;  %vm1316_vm0 = vcmask 402432  }
  0xb7   :  { %v465_v37 = vld [vmem:[%s3728_s1 + $0xdc0] sm:$0xff]  ;;  %1805 = vmatprep.subr.bf16.mxu0 %v1804_v22  ;;  %v467_v39 = vld [vmem:[%s3728_s1 + $0xdd0] sm:$0xff]  ;;  %v214_v40 = vld [vmem:[%s3728_s1 + $0x5e8] sm:$0xff]  ;;  %v1554_v44 = vpack.c.bf16 %v211_v36, %v209_v35  ;;  %v570_v55 = vcombine.high %v2843_v50, %v2843_v50  ;;  %v604_v58 = vcombine.high %v2858_v54, %v2858_v54 }
  0xb8   :  { %v216_v41 = vld [vmem:[%s3728_s1 + $0x5f8] sm:$0xff]  ;;  %v470_v42 = vld [vmem:[%s3728_s1 + $0xde8] sm:$0xff]  ;;  %v1810_v45 = vpack.c.bf16 %v467_v39, %v465_v37  ;;  %v213_v47 = vld [vmem:[%s3728_s1 + $0x5e0] sm:$0xff] }
  0xb9   :  { %v472_v43 = vld [vmem:[%s3728_s1 + $0xdf8] sm:$0xff]  ;;  %1551 = vmatpush1.bf16.msra.mxu1 %v1550_v31  ;;  %v1556_v46 = vpack.c.bf16 %v216_v41, %v214_v40  ;;  %v215_v48 = vld [vmem:[%s3728_s1 + $0x5f0] sm:$0xff]  ;;  %v469_v49 = vld [vmem:[%s3728_s1 + $0xde0] sm:$0xff]  ;;  %v3244_v4 = vrot.slane %v570_v55, %v2269_v11  ;;  %v3253_v6 = vrot.slane %v604_v58, %v2269_v11 }
  0xba   :  { %1807 = vmatpush1.bf16.msra.mxu0 %v1806_v32  ;;  %1553 = vmatprep.subr.bf16.mxu1 %v1552_v34  ;;  %v1812_v25 = vpack.c.bf16 %v472_v43, %v470_v42  ;;  %v471_v51 = vld [vmem:[%s3728_s1 + $0xdf0] sm:$0xff]  ;;  %v218_v52 = vld [vmem:[%s3728_s1 + $0x608] sm:$0xff]  ;;  %v220_v53 = vld [vmem:[%s3728_s1 + $0x618] sm:$0xff]  ;;  %v1558_v60 = vpack.c.bf16 %v215_v48, %v213_v47 }
  0xbb   :  { %1809 = vmatprep.subr.bf16.mxu0 %v1808_v38  ;;  %v474_v56 = vld [vmem:[%s3728_s1 + $0xe08] sm:$0xff]  ;;  %v476_v57 = vld [vmem:[%s3728_s1 + $0xe18] sm:$0xff]  ;;  %v1814_v62 = vpack.c.bf16 %v471_v51, %v469_v49  ;;  %v1560_v63 = vpack.c.bf16 %v220_v53, %v218_v52  ;;  %v217_v50 = vld [vmem:[%s3728_s1 + $0x600] sm:$0xff]  ;;  %v586_v17 = vcombine.high %v3244_v4, %v3244_v4  ;;  %v620_v20 = vcombine.high %v3253_v6, %v3253_v6 }
  0xbc   :  { %v219_v0 = vld [vmem:[%s3728_s1 + $0x610] sm:$0xff]  ;;  %v473_v1 = vld [vmem:[%s3728_s1 + $0xe00] sm:$0xff]  ;;  %v1816_v54 = vpack.c.bf16 %v476_v57, %v474_v56  ;;  %v222_v2 = vld [vmem:[%s3728_s1 + $0x628] sm:$0xff] }
  0xbd   :  { %1555 = vmatpush1.bf16.msra.mxu1 %v1554_v44  ;;  %v475_v30 = vld [vmem:[%s3728_s1 + $0xe10] sm:$0xff]  ;;  %v224_v3 = vld [vmem:[%s3728_s1 + $0x638] sm:$0xff]  ;;  %v478_v33 = vld [vmem:[%s3728_s1 + $0xe28] sm:$0xff]  ;;  %v1562_v7 = vpack.c.bf16 %v219_v0, %v217_v50 }
  0xbe   :  { %1811 = vmatpush1.bf16.msra.mxu0 %v1810_v45  ;;  %1557 = vmatprep.subr.bf16.mxu1 %v1556_v46  ;;  %v480_v5 = vld [vmem:[%s3728_s1 + $0xe38] sm:$0xff]  ;;  %v1818_v8 = vpack.c.bf16 %v475_v30, %v473_v1  ;;  %v1564_v9 = vpack.c.bf16 %v224_v3, %v222_v2  ;;  %v221_v10 = vld [vmem:[%s3728_s1 + $0x620] sm:$0xff]  ;;  %v223_v12 = vld [vmem:[%s3728_s1 + $0x630] sm:$0xff] }
  0xbf   :  { %1813 = vmatprep.subr.bf16.mxu0 %v1812_v25  ;;  %v477_v13 = vld [vmem:[%s3728_s1 + $0xe20] sm:$0xff]  ;;  %v1820_v11 = vpack.c.bf16 %v480_v5, %v478_v33  ;;  %v479_v14 = vld [vmem:[%s3728_s1 + $0xe30] sm:$0xff]  ;;  %v226_v15 = vld [vmem:[%s3728_s1 + $0x648] sm:$0xff]  ;;  %v1566_v21 = vpack.c.bf16 %v223_v12, %v221_v10 }
  0xc0   :  { %v228_v16 = vld [vmem:[%s3728_s1 + $0x658] sm:$0xff]  ;;  %v482_v18 = vld [vmem:[%s3728_s1 + $0xe48] sm:$0xff]  ;;  %v1822_v22 = vpack.c.bf16 %v479_v14, %v477_v13  ;;  %v227_v24 = vld [vmem:[%s3728_s1 + $0x650] sm:$0xff] }
  0xc1   :  { %1559 = vmatpush1.bf16.msra.mxu1 %v1558_v60  ;;  %v484_v19 = vld [vmem:[%s3728_s1 + $0xe58] sm:$0xff]  ;;  %v1568_v23 = vpack.c.bf16 %v228_v16, %v226_v15  ;;  %v481_v26 = vld [vmem:[%s3728_s1 + $0xe40] sm:$0xff]  ;;  %v230_v29 = vld [vmem:[%s3728_s1 + $0x668] sm:$0xff] }
  0xc2   :  { %1815 = vmatpush1.bf16.msra.mxu0 %v1814_v62  ;;  %1561 = vmatprep.subr.bf16.mxu1 %v1560_v63  ;;  %v1824_v27 = vpack.c.bf16 %v484_v19, %v482_v18  ;;  %v232_v31 = vld [vmem:[%s3728_s1 + $0x678] sm:$0xff]  ;;  %v486_v32 = vld [vmem:[%s3728_s1 + $0xe68] sm:$0xff]  ;;  %v229_v38 = vld [vmem:[%s3728_s1 + $0x660] sm:$0xff] }
  0xc3   :  { %1817 = vmatprep.subr.bf16.mxu0 %v1816_v54  ;;  %v488_v34 = vld [vmem:[%s3728_s1 + $0xe78] sm:$0xff]  ;;  %v1572_v37 = vpack.c.bf16 %v232_v31, %v230_v29  ;;  %v231_v39 = vld [vmem:[%s3728_s1 + $0x670] sm:$0xff]  ;;  %v485_v40 = vld [vmem:[%s3728_s1 + $0xe60] sm:$0xff] }
  0xc4   :  { %844 = vmatmul.mubr.f32.vlgmr.msra.gmra.mrb[0].mxu1 %v2853_v28  ;;  %v225_v28 = vld [vmem:[%s3728_s1 + $0x640] sm:$0xff]  ;;  %v1828_v41 = vpack.c.bf16 %v488_v34, %v486_v32  ;;  %v487_v42 = vld [vmem:[%s3728_s1 + $0xe70] sm:$0xff]  ;;  %v234_v43 = vld [vmem:[%s3728_s1 + $0x688] sm:$0xff]  ;;  %v1574_v47 = vpack.c.bf16 %v231_v39, %v229_v38 }
  0xc5   :  { %1563 = vmatpush1.bf16.msra.mxu1 %v1562_v7  ;;  %1128 = vmatmul.mubr.f32.vlgmr.msra.gmra.mrb[0].mxu0 %v2871_v59  ;;  %v483_v59 = vld [vmem:[%s3728_s1 + $0xe50] sm:$0xff]  ;;  %v1570_v35 = vpack.c.bf16 %v227_v24, %v225_v28  ;;  %v236_v44 = vld [vmem:[%s3728_s1 + $0x698] sm:$0xff]  ;;  %v490_v45 = vld [vmem:[%s3728_s1 + $0xe88] sm:$0xff]  ;;  %v1830_v48 = vpack.c.bf16 %v487_v42, %v485_v40 }
  0xc6   :  { %1819 = vmatpush1.bf16.msra.mxu0 %v1818_v8  ;;  %1565 = vmatprep.subr.bf16.mxu1 %v1564_v9  ;;  %v1826_v36 = vpack.c.bf16 %v483_v59, %v481_v26  ;;  %v492_v46 = vld [vmem:[%s3728_s1 + $0xe98] sm:$0xff]  ;;  %v1576_v49 = vpack.c.bf16 %v236_v44, %v234_v43  ;;  %v233_v25 = vld [vmem:[%s3728_s1 + $0x680] sm:$0xff]  ;;  %v235_v51 = vld [vmem:[%s3728_s1 + $0x690] sm:$0xff] }
  0xc7   :  { %1821 = vmatprep.subr.bf16.mxu0 %v1820_v11  ;;  %914 = vmatprep.mubr.f32.mxu1 %v586_v17  ;;  %v489_v52 = vld [vmem:[%s3728_s1 + $0xe80] sm:$0xff]  ;;  %v1832_v53 = vpack.c.bf16 %v492_v46, %v490_v45  ;;  %v491_v55 = vld [vmem:[%s3728_s1 + $0xe90] sm:$0xff]  ;;  %v238_v56 = vld [vmem:[%s3728_s1 + $0x6a8] sm:$0xff]  ;;  %v1578_v62 = vpack.c.bf16 %v235_v51, %v233_v25 }
  0xc8   :  { %1198 = vmatprep.mubr.f32.mxu0 %v620_v20  ;;  %v240_v57 = vld [vmem:[%s3728_s1 + $0x6b8] sm:$0xff]  ;;  %v494_v58 = vld [vmem:[%s3728_s1 + $0xea8] sm:$0xff]  ;;  %v1834_v63 = vpack.c.bf16 %v491_v55, %v489_v52  ;;  %v237_v0 = vld [vmem:[%s3728_s1 + $0x6a0] sm:$0xff] }
  0xc9   :  { %1567 = vmatpush1.bf16.msra.mxu1 %v1566_v21  ;;  %v496_v60 = vld [vmem:[%s3728_s1 + $0xeb8] sm:$0xff]  ;;  %v1580_v50 = vpack.c.bf16 %v240_v57, %v238_v56  ;;  %v239_v1 = vld [vmem:[%s3728_s1 + $0x6b0] sm:$0xff]  ;;  %v493_v54 = vld [vmem:[%s3728_s1 + $0xea0] sm:$0xff] }
  0xca   :  { %1823 = vmatpush1.bf16.msra.mxu0 %v1822_v22  ;;  %1569 = vmatprep.subr.bf16.mxu1 %v1568_v23  ;;  %v1836_v30 = vpack.c.bf16 %v496_v60, %v494_v58  ;;  %v495_v2 = vld [vmem:[%s3728_s1 + $0xeb0] sm:$0xff]  ;;  %v242_v3 = vld [vmem:[%s3728_s1 + $0x6c8] sm:$0xff]  ;;  %v244_v33 = vld [vmem:[%s3728_s1 + $0x6d8] sm:$0xff]  ;;  %v1582_v8 = vpack.c.bf16 %v239_v1, %v237_v0 }
  0xcb   :  { %1825 = vmatprep.subr.bf16.mxu0 %v1824_v27  ;;  %v498_v5 = vld [vmem:[%s3728_s1 + $0xec8] sm:$0xff]  ;;  %v500_v7 = vld [vmem:[%s3728_s1 + $0xed8] sm:$0xff]  ;;  %v1838_v9 = vpack.c.bf16 %v495_v2, %v493_v54  ;;  %v1584_v10 = vpack.c.bf16 %v244_v33, %v242_v3  ;;  %v241_v12 = vld [vmem:[%s3728_s1 + $0x6c0] sm:$0xff] }
  0xcc   :  { %v243_v13 = vld [vmem:[%s3728_s1 + $0x6d0] sm:$0xff]  ;;  %v497_v11 = vld [vmem:[%s3728_s1 + $0xec0] sm:$0xff]  ;;  %v1840_v14 = vpack.c.bf16 %v500_v7, %v498_v5  ;;  %v246_v16 = vld [vmem:[%s3728_s1 + $0x6e8] sm:$0xff] }
  0xcd   :  { %1571 = vmatpush1.bf16.msra.mxu1 %v1570_v35  ;;  %v499_v15 = vld [vmem:[%s3728_s1 + $0xed0] sm:$0xff]  ;;  %v248_v17 = vld [vmem:[%s3728_s1 + $0x6f8] sm:$0xff]  ;;  %v502_v18 = vld [vmem:[%s3728_s1 + $0xee8] sm:$0xff]  ;;  %v1586_v20 = vpack.c.bf16 %v243_v13, %v241_v12 }
  0xce   :  { %1827 = vmatpush1.bf16.msra.mxu0 %v1826_v36  ;;  %1573 = vmatprep.subr.bf16.mxu1 %v1572_v37  ;;  %v504_v19 = vld [vmem:[%s3728_s1 + $0xef8] sm:$0xff]  ;;  %v1842_v21 = vpack.c.bf16 %v499_v15, %v497_v11  ;;  %v1588_v22 = vpack.c.bf16 %v248_v17, %v246_v16  ;;  %v245_v23 = vld [vmem:[%s3728_s1 + $0x6e0] sm:$0xff]  ;;  %v247_v28 = vld [vmem:[%s3728_s1 + $0x6f0] sm:$0xff] }
  0xcf   :  { %1829 = vmatprep.subr.bf16.mxu0 %v1828_v41  ;;  %v501_v24 = vld [vmem:[%s3728_s1 + $0xee0] sm:$0xff]  ;;  %v1844_v26 = vpack.c.bf16 %v504_v19, %v502_v18  ;;  %v503_v27 = vld [vmem:[%s3728_s1 + $0xef0] sm:$0xff]  ;;  %v250_v59 = vld [vmem:[%s3728_s1 + $0x708] sm:$0xff]  ;;  %v1590_v34 = vpack.c.bf16 %v247_v28, %v245_v23 }
  0xd0   :  { %v252_v29 = vld [vmem:[%s3728_s1 + $0x718] sm:$0xff]  ;;  %v506_v31 = vld [vmem:[%s3728_s1 + $0xf08] sm:$0xff]  ;;  %v1846_v35 = vpack.c.bf16 %v503_v27, %v501_v24  ;;  %v249_v37 = vld [vmem:[%s3728_s1 + $0x700] sm:$0xff] }
  0xd1   :  { %1575 = vmatpush1.bf16.msra.mxu1 %v1574_v47  ;;  %v508_v32 = vld [vmem:[%s3728_s1 + $0xf18] sm:$0xff]  ;;  %v1592_v36 = vpack.c.bf16 %v252_v29, %v250_v59  ;;  %v251_v38 = vld [vmem:[%s3728_s1 + $0x710] sm:$0xff]  ;;  %v505_v39 = vld [vmem:[%s3728_s1 + $0xf00] sm:$0xff] }
  0xd2   :  { %1831 = vmatpush1.bf16.msra.mxu0 %v1830_v48  ;;  %1577 = vmatprep.subr.bf16.mxu1 %v1576_v49  ;;  %v1848_v40 = vpack.c.bf16 %v508_v32, %v506_v31  ;;  %v507_v41 = vld [vmem:[%s3728_s1 + $0xf10] sm:$0xff]  ;;  %v254_v42 = vld [vmem:[%s3728_s1 + $0x728] sm:$0xff]  ;;  %v256_v43 = vld [vmem:[%s3728_s1 + $0x738] sm:$0xff]  ;;  %v1594_v46 = vpack.c.bf16 %v251_v38, %v249_v37 }
  0xd3   :  { %1833 = vmatprep.subr.bf16.mxu0 %v1832_v53  ;;  %v510_v44 = vld [vmem:[%s3728_s1 + $0xf28] sm:$0xff]  ;;  %v512_v45 = vld [vmem:[%s3728_s1 + $0xf38] sm:$0xff]  ;;  %v1850_v47 = vpack.c.bf16 %v507_v41, %v505_v39  ;;  %v1596_v48 = vpack.c.bf16 %v256_v43, %v254_v42  ;;  %v253_v49 = vld [vmem:[%s3728_s1 + $0x720] sm:$0xff] }
  0xd4   :  { %v255_v25 = vld [vmem:[%s3728_s1 + $0x730] sm:$0xff]  ;;  %v509_v51 = vld [vmem:[%s3728_s1 + $0xf20] sm:$0xff]  ;;  %v1852_v52 = vpack.c.bf16 %v512_v45, %v510_v44  ;;  %v258_v55 = vld [vmem:[%s3728_s1 + $0x748] sm:$0xff] }
  0xd5   :  { %1579 = vmatpush1.bf16.msra.mxu1 %v1578_v62  ;;  %v511_v53 = vld [vmem:[%s3728_s1 + $0xf30] sm:$0xff]  ;;  %v260_v56 = vld [vmem:[%s3728_s1 + $0x758] sm:$0xff]  ;;  %v514_v57 = vld [vmem:[%s3728_s1 + $0xf48] sm:$0xff]  ;;  %v1598_v60 = vpack.c.bf16 %v255_v25, %v253_v49 }
  0xd6   :  { %1835 = vmatpush1.bf16.msra.mxu0 %v1834_v63  ;;  %1581 = vmatprep.subr.bf16.mxu1 %v1580_v50  ;;  %v516_v58 = vld [vmem:[%s3728_s1 + $0xf58] sm:$0xff]  ;;  %v1854_v62 = vpack.c.bf16 %v511_v53, %v509_v51  ;;  %v1600_v63 = vpack.c.bf16 %v260_v56, %v258_v55  ;;  %v257_v50 = vld [vmem:[%s3728_s1 + $0x740] sm:$0xff]  ;;  %v259_v0 = vld [vmem:[%s3728_s1 + $0x750] sm:$0xff] }
  0xd7   :  { %1837 = vmatprep.subr.bf16.mxu0 %v1836_v30  ;;  %v513_v1 = vld [vmem:[%s3728_s1 + $0xf40] sm:$0xff]  ;;  %v1856_v54 = vpack.c.bf16 %v516_v58, %v514_v57  ;;  %v515_v30 = vld [vmem:[%s3728_s1 + $0xf50] sm:$0xff]  ;;  %v262_v2 = vld [vmem:[%s3728_s1 + $0x768] sm:$0xff]  ;;  %v1602_v7 = vpack.c.bf16 %v259_v0, %v257_v50 }
  0xd8   :  { %v264_v3 = vld [vmem:[%s3728_s1 + $0x778] sm:$0xff]  ;;  %v518_v33 = vld [vmem:[%s3728_s1 + $0xf68] sm:$0xff]  ;;  %v263_v12 = vld [vmem:[%s3728_s1 + $0x770] sm:$0xff] }
  0xd9   :  { %1583 = vmatpush1.bf16.msra.mxu1 %v1582_v8  ;;  %v520_v5 = vld [vmem:[%s3728_s1 + $0xf78] sm:$0xff]  ;;  %v1858_v8 = vpack.c.bf16 %v515_v30, %v513_v1  ;;  %v517_v13 = vld [vmem:[%s3728_s1 + $0xf60] sm:$0xff]  ;;  %v266_v15 = vld [vmem:[%s3728_s1 + $0x788] sm:$0xff] }
  0xda   :  { %1839 = vmatpush1.bf16.msra.mxu0 %v1838_v9  ;;  %1585 = vmatprep.subr.bf16.mxu1 %v1584_v10  ;;  %v1604_v9 = vpack.c.bf16 %v264_v3, %v262_v2  ;;  %v261_v10 = vld [vmem:[%s3728_s1 + $0x760] sm:$0xff]  ;;  %v1860_v11 = vpack.c.bf16 %v520_v5, %v518_v33  ;;  %v268_v16 = vld [vmem:[%s3728_s1 + $0x798] sm:$0xff]  ;;  %v522_v17 = vld [vmem:[%s3728_s1 + $0xf88] sm:$0xff] }
  0xdb   :  { %1841 = vmatprep.subr.bf16.mxu0 %v1840_v14  ;;  %v519_v14 = vld [vmem:[%s3728_s1 + $0xf70] sm:$0xff]  ;;  %v524_v18 = vld [vmem:[%s3728_s1 + $0xf98] sm:$0xff]  ;;  %v1606_v19 = vpack.c.bf16 %v263_v12, %v261_v10  ;;  %v521_v28 = vld [vmem:[%s3728_s1 + $0xf80] sm:$0xff] }
  0xdc   :  { %v267_v23 = vld [vmem:[%s3728_s1 + $0x790] sm:$0xff]  ;;  %v1864_v24 = vpack.c.bf16 %v524_v18, %v522_v17  ;;  %v270_v27 = vld [vmem:[%s3728_s1 + $0x7a8] sm:$0xff]  ;;  %v272_v59 = vld [vmem:[%s3728_s1 + $0x7b8] sm:$0xff] }
  0xdd   :  { %1587 = vmatpush1.bf16.msra.mxu1 %v1586_v20  ;;  %v1862_v20 = vpack.c.bf16 %v519_v14, %v517_v13  ;;  %v526_v29 = vld [vmem:[%s3728_s1 + $0xfa8] sm:$0xff]  ;;  %v528_v31 = vld [vmem:[%s3728_s1 + $0xfb8] sm:$0xff]  ;;  %v271_v37 = vld [vmem:[%s3728_s1 + $0x7b0] sm:$0xff] }
  0xde   :  { %1843 = vmatpush1.bf16.msra.mxu0 %v1842_v21  ;;  %1589 = vmatprep.subr.bf16.mxu1 %v1588_v22  ;;  %v1608_v21 = vpack.c.bf16 %v268_v16, %v266_v15  ;;  %v265_v22 = vld [vmem:[%s3728_s1 + $0x780] sm:$0xff]  ;;  %v1868_v39 = vpack.c.bf16 %v528_v31, %v526_v29  ;;  %v274_v41 = vld [vmem:[%s3728_s1 + $0x7c8] sm:$0xff]  ;;  %v276_v42 = vld [vmem:[%s3728_s1 + $0x7d8] sm:$0xff] }
  0xdf   :  { %1845 = vmatprep.subr.bf16.mxu0 %v1844_v26  ;;  %v523_v26 = vld [vmem:[%s3728_s1 + $0xf90] sm:$0xff]  ;;  %v1610_v32 = vpack.c.bf16 %v267_v23, %v265_v22  ;;  %v525_v38 = vld [vmem:[%s3728_s1 + $0xfa0] sm:$0xff]  ;;  %v530_v43 = vld [vmem:[%s3728_s1 + $0xfc8] sm:$0xff] }
  0xe0   :  { %v532_v44 = vld [vmem:[%s3728_s1 + $0xfd8] sm:$0xff]  ;;  %v275_v49 = vld [vmem:[%s3728_s1 + $0x7d0] sm:$0xff]  ;;  %v529_v25 = vld [vmem:[%s3728_s1 + $0xfc0] sm:$0xff] }
  0xe1   :  { %1591 = vmatpush1.bf16.msra.mxu1 %v1590_v34  ;;  %v1866_v34 = vpack.c.bf16 %v523_v26, %v521_v28  ;;  %v1872_v51 = vpack.c.bf16 %v532_v44, %v530_v43  ;;  %v278_v53 = vld [vmem:[%s3728_s1 + $0x7e8] sm:$0xff]  ;;  %v280_v55 = vld [vmem:[%s3728_s1 + $0x7f8] sm:$0xff]  ;;  %v279_v50 = vld [vmem:[%s3728_s1 + $0x7f0] sm:$0xff] }
  0xe2   :  { %1847 = vmatpush1.bf16.msra.mxu0 %v1846_v35  ;;  %1593 = vmatprep.subr.bf16.mxu1 %v1592_v36  ;;  %v1612_v35 = vpack.c.bf16 %v272_v59, %v270_v27  ;;  %v269_v36 = vld [vmem:[%s3728_s1 + $0x7a0] sm:$0xff]  ;;  %v534_v56 = vld [vmem:[%s3728_s1 + $0xfe8] sm:$0xff]  ;;  %v536_v57 = vld [vmem:[%s3728_s1 + $0xff8] sm:$0xff] }
  0xe3   :  { %1849 = vmatprep.subr.bf16.mxu0 %v1848_v40  ;;  %v527_v40 = vld [vmem:[%s3728_s1 + $0xfb0] sm:$0xff]  ;;  %v1614_v45 = vpack.c.bf16 %v271_v37, %v269_v36  ;;  %v533_v0 = vld [vmem:[%s3728_s1 + $0xfe0] sm:$0xff]  ;;  %v1876_v1 = vpack.c.bf16 %v536_v57, %v534_v56  ;;  %v1224_v2 = vld [vmem:[%s3730_s3 + $0x88] sm:$0xff] }
  0xe4   :  { %v1223_v30 = vld [vmem:[%s3730_s3 + $0x80] sm:$0xff]  ;;  %v1226_v10 = vld [vmem:[%s3730_s3 + $0x98] sm:$0xff]  ;;  %v1228_v16 = vld [vmem:[%s3730_s3 + $0xa8] sm:$0xff] }
  0xe5   :  { %1595 = vmatpush1.bf16.msra.mxu1 %v1594_v46  ;;  %v1870_v46 = vpack.c.bf16 %v527_v40, %v525_v38  ;;  %v1880_v5 = vpack.c.bf16 %v1224_v2, %v1223_v30  ;;  %v1210_v14 = vld [vmem:[%s3730_s3 + $0x18] sm:$0xff]  ;;  %v1227_v15 = vld [vmem:[%s3730_s3 + $0xa0] sm:$0xff]  ;;  %v1213_v23 = vld [vmem:[%s3730_s3 + $0x30] sm:$0xff] }
  0xe6   :  { %1851 = vmatpush1.bf16.msra.mxu0 %v1850_v47  ;;  %1597 = vmatprep.subr.bf16.mxu1 %v1596_v48  ;;  %v1616_v47 = vpack.c.bf16 %v276_v42, %v274_v41  ;;  %v273_v48 = vld [vmem:[%s3728_s1 + $0x7c0] sm:$0xff]  ;;  %v1888_v18 = vpack.c.bf16 %v1228_v16, %v1227_v15  ;;  %v1214_v28 = vld [vmem:[%s3730_s3 + $0x38] sm:$0xff]  ;;  %v1232_v26 = vld [vmem:[%s3730_s3 + $0xc8] sm:$0xff] }
  0xe7   :  { %1853 = vmatprep.subr.bf16.mxu0 %v1852_v52  ;;  %v531_v52 = vld [vmem:[%s3728_s1 + $0xfd0] sm:$0xff]  ;;  %v1618_v58 = vpack.c.bf16 %v275_v49, %v273_v48  ;;  %v1894_v27 = vpack.c.bf16 %v1214_v28, %v1213_v23  ;;  %v1215_v29 = vld [vmem:[%s3730_s3 + $0x40] sm:$0xff]  ;;  %v1216_v31 = vld [vmem:[%s3730_s3 + $0x48] sm:$0xff] }
  0xe8   :  { %v1217_v37 = vld [vmem:[%s3730_s3 + $0x50] sm:$0xff]  ;;  %v1218_v38 = vld [vmem:[%s3730_s3 + $0x58] sm:$0xff]  ;;  %v1235_v40 = vld [vmem:[%s3730_s3 + $0xe0] sm:$0xff] }
  0xe9   :  { %1599 = vmatpush1.bf16.msra.mxu1 %v1598_v60  ;;  %v1874_v60 = vpack.c.bf16 %v531_v52, %v529_v25  ;;  %v1236_v41 = vld [vmem:[%s3730_s3 + $0xe8] sm:$0xff]  ;;  %v1219_v43 = vld [vmem:[%s3730_s3 + $0x60] sm:$0xff]  ;;  %v1221_v49 = vld [vmem:[%s3730_s3 + $0x70] sm:$0xff]  ;;  %v541_v52 = vsub.s32 0, %v2242_v61 }
  0xea   :  { %1855 = vmatpush1.bf16.msra.mxu0 %v1854_v62  ;;  %1601 = vmatprep.subr.bf16.mxu1 %v1600_v63  ;;  %v1620_v62 = vpack.c.bf16 %v280_v55, %v278_v53  ;;  %v277_v63 = vld [vmem:[%s3728_s1 + $0x7e0] sm:$0xff]  ;;  %v1904_v42 = vpack.c.bf16 %v1236_v41, %v1235_v40  ;;  %v1220_v44 = vld [vmem:[%s3730_s3 + $0x68] sm:$0xff]  ;;  %v1222_v25 = vld [vmem:[%s3730_s3 + $0x78] sm:$0xff]  ;;  %v545_v55 = vsub.s32 1, %v2242_v61 }
  0xeb   :  { %1857 = vmatprep.subr.bf16.mxu0 %v1856_v54  ;;  %v535_v54 = vld [vmem:[%s3728_s1 + $0xff0] sm:$0xff]  ;;  %v1622_v3 = vpack.c.bf16 %v279_v50, %v277_v63  ;;  %v537_v53 = vld [vmem:[%s3729_s2] sm:$0x3]  ;;  %s1959_s2 = smov [#allocation2]  }
  0xec   :  { %v1878_v33 = vpack.c.bf16 %v535_v54, %v533_v0  ;;  %v542_v56 = vrot.slane %v537_v53, %v541_v52  ;;  %v546_v57 = vrot.slane %v537_v53, %v545_v55  ;;  %s1324_s18 = sshll.u32 %s1959_s2, 4  ;;  %s1325_s18 = int_to_ptr.vmem [resolvable:$true] %s1324_s18 }
  0xed   :  { %1603 = vmatpush1.bf16.msra.mxu1 %v1602_v7  ;;  %v1207_v7 = vld [vmem:[%s3730_s3] sm:$0xff]  ;;  %s1934_s19 = scalar_lea.vmem %s1325_s18, 32  ;;  %p1939_p1 = scmp.lt.s32.totalorder %s1325_s18, %s1325_s18 }
  0xee   :  { %1859 = vmatpush1.bf16.msra.mxu0 %v1858_v8  ;;  %1605 = vmatprep.subr.bf16.mxu1 %v1604_v9  ;;  %v1208_v8 = vld [vmem:[%s3730_s3 + $0x8] sm:$0xff]  ;;  %v1225_v9 = vld [vmem:[%s3730_s3 + $0x90] sm:$0xff]  ;;  %p1935_p0 = scmp.ne.s32.totalorder %s1325_s18, %s1934_s19  ;;  %p1940_p2 = scmp.lt.s32.totalorder %s1934_s19, %s1934_s19 }
  0xef   :  { %1861 = vmatprep.subr.bf16.mxu0 %v1860_v11  ;;  %v1882_v12 = vpack.c.bf16 %v1208_v8, %v1207_v7  ;;  %v1884_v13 = vpack.c.bf16 %v1226_v10, %v1225_v9  ;;  %v1209_v11 = vld [vmem:[%s3730_s3 + $0x10] sm:$0xff] }
  0xf0   :  { %v1886_v17 = vpack.c.bf16 %v1210_v14, %v1209_v11  ;;  %p1941_p3 = por %p1940_p2, %p1939_p1 }
  0xf1   :  { %1607 = vmatpush1.bf16.msra.mxu1 %v1606_v19  ;;  %v1211_v19 = vld [vmem:[%s3730_s3 + $0x20] sm:$0xff] }
  0xf2   :  { %1863 = vmatpush1.bf16.msra.mxu0 %v1862_v20  ;;  %1609 = vmatprep.subr.bf16.mxu1 %v1608_v21  ;;  %v1212_v20 = vld [vmem:[%s3730_s3 + $0x28] sm:$0xff]  ;;  %v1229_v21 = vld [vmem:[%s3730_s3 + $0xb0] sm:$0xff]  ;;  %p1942_p4 = pnand %p1941_p3, %p1935_p0 }
  0xf3   :  { %1865 = vmatprep.subr.bf16.mxu0 %v1864_v24  ;;  %v1231_v24 = vld [vmem:[%s3730_s3 + $0xc0] sm:$0xff] }
  0xf4   :  { %v1896_v59 = vpack.c.bf16 %v1232_v26, %v1231_v24 }
  0xf5   :  { %1611 = vmatpush1.bf16.msra.mxu1 %v1610_v32  ;;  %v1233_v32 = vld [vmem:[%s3730_s3 + $0xd0] sm:$0xff] }
  0xf6   :  { %1867 = vmatpush1.bf16.msra.mxu0 %v1866_v34  ;;  %1613 = vmatprep.subr.bf16.mxu1 %v1612_v35  ;;  %v1234_v34 = vld [vmem:[%s3730_s3 + $0xd8] sm:$0xff]  ;;  %v1898_v35 = vpack.c.bf16 %v1216_v31, %v1215_v29 }
  0xf7   :  { %1869 = vmatprep.subr.bf16.mxu0 %v1868_v39  ;;  %v1900_v36 = vpack.c.bf16 %v1234_v34, %v1233_v32  ;;  %v1902_v39 = vpack.c.bf16 %v1218_v38, %v1217_v37 }
  0xf9   :  { %1615 = vmatpush1.bf16.msra.mxu1 %v1614_v45  ;;  %v1906_v45 = vpack.c.bf16 %v1220_v44, %v1219_v43 }
  0xfa   :  { %1871 = vmatpush1.bf16.msra.mxu0 %v1870_v46  ;;  %1617 = vmatprep.subr.bf16.mxu1 %v1616_v47  ;;  %v1237_v46 = vld [vmem:[%s3730_s3 + $0xf0] sm:$0xff]  ;;  %v1238_v47 = vld [vmem:[%s3730_s3 + $0xf8] sm:$0xff] }
  0xfb   :  { %1873 = vmatprep.subr.bf16.mxu0 %v1872_v51  ;;  %v1908_v48 = vpack.c.bf16 %v1238_v47, %v1237_v46  ;;  %v1910_v51 = vpack.c.bf16 %v1222_v25, %v1221_v49 }
  0xfd   :  { %1619 = vmatpush1.bf16.msra.mxu1 %v1618_v58 }
  0xfe   :  { %1875 = vmatpush1.bf16.msra.mxu0 %v1874_v60  ;;  %1621 = vmatprep.subr.bf16.mxu1 %v1620_v62 }
  0xff   :  { %1877 = vmatprep.subr.bf16.mxu0 %v1876_v1 }
 0x101   :  { %1623 = vmatpush1.bf16.msra.mxu1 %v1622_v3 }
 0x102   :  { %1879 = vmatpush1.bf16.msra.mxu0 %v1878_v33  ;;  %1881 = vmatprep.subr.bf16.mxu1 %v1880_v5  ;;  %v1332_v33 = vld [vmem:[%s3731_s4] ss:$0 sm:$0xff] }
 0x104   :  { %915 = vmatmul.mubr.f32.vlgmr.msra.gmra.mrb[0].mxu1 %v3244_v4  ;;  %v1230_v4 = vld [vmem:[%s3730_s3 + $0xb8] sm:$0xff] }
 0x105   :  { %1199 = vmatmul.mubr.f32.vlgmr.msra.gmra.mrb[0].mxu0 %v3253_v6  ;;  %1883 = vmatpush3.bf16.msra.mxu1 %v1882_v12  ;;  %v1890_v6 = vpack.c.bf16 %v1212_v20, %v1211_v19  ;;  %v1892_v22 = vpack.c.bf16 %v1230_v4, %v1229_v21 }
 0x106   :  { %1885 = vmatprep.subr.bf16.mxu1 %v1884_v13 }
 0x109   :  { %1887 = vmatpush3.bf16.msra.mxu1 %v1886_v17 }
 0x10a   :  { %1889 = vmatprep.subr.bf16.mxu1 %v1888_v18 }
 0x10d   :  { %1891 = vmatpush3.bf16.msra.mxu1 %v1890_v6 }
 0x10e   :  { %1893 = vmatprep.subr.bf16.mxu1 %v1892_v22 }
 0x111   :  { %1895 = vmatpush3.bf16.msra.mxu1 %v1894_v27 }
 0x112   :  { %1897 = vmatprep.subr.bf16.mxu1 %v1896_v59 }
 0x115   :  { %1899 = vmatpush3.bf16.msra.mxu1 %v1898_v35 }
 0x116   :  { %1901 = vmatprep.subr.bf16.mxu1 %v1900_v36 }
 0x119   :  { %1903 = vmatpush3.bf16.msra.mxu1 %v1902_v39 }
 0x11a   :  { %1905 = vmatprep.subr.bf16.mxu1 %v1904_v42 }
 0x11d   :  { %1907 = vmatpush3.bf16.msra.mxu1 %v1906_v45 }
 0x11e   :  { %1909 = vmatprep.subr.bf16.mxu1 %v1908_v48 }
 0x121   :  { %1911 = vmatpush3.bf16.msra.mxu1 %v1910_v51 }
 0x1d7   :  { %v916_v58 = vpop.f32.mrb[0].mxu1 }
 0x1d8   :  { %v1912_v60 = vadd.f32 %v916_v58, %v542_v56  ;;  %v1200_v62 = vpop.f32.mrb[0].mxu0  ;;  %v918_v63 = vpop.f32.mrb[1].mxu1 }
 0x1d9   :  { %v1914_v50 = vadd.f32 %v918_v63, %v546_v57  ;;  %v1202_v0 = vpop.f32.mrb[1].mxu0 }
 0x1da   :  { %v1913_v1 = vadd.f32 %v1912_v60, %v1200_v62 }
 0x1db   :  { %v1915_v54 = vadd.f32 %v1914_v50, %v1202_v0 }
 0x1dc   :  { %v1205_v2 = vmax.f32 %v1913_v1, 0.0 }
 0x1dd   :  { %v1206_v30 = vmax.f32 %v1915_v54, 0.0 }
 0x1df   :  { %1310 = vmatprep.mubr.f32.mxu1 %v1206_v30 }
 0x1e0   :  { %1311 = vmatmul.mubr.f32.vlgmr.msra.gmra.mrb[2].mxu1 %v1205_v2 }
 0x2b3   :  { %v1365_v3 = vpop.f32.mrb[2].mxu1 }
 0x2b4   :  { %v1366_v61 = vpop.f32.mrb[3].mxu1 }
 0x2b5   :  { %v1367_v5 = vadd.f32 %v1366_v61, %v1365_v3 }
 0x2b7   :  { %v1313_v7 = vadd.f32 %v1367_v5, %v1332_v33 }
 0x2b9   :  { %1317 = vst.msk [vmem:[#allocation2] sm:$0x3] %vm1316_vm0, %v1313_v7 }
 0x2ba   :  { %1945 = shalt.err (!%p1942_p4)
}
 0x2bb   :  { %s1946_s22 = scalar_lea.hbm %s3732_s5, 32 }
 0x2bc   :  { %p1947_p5 = scmp.ne.s32.totalorder %s3732_s5, %s1946_s22  ;;  %p1950_p6 = scmp.lt.u32.totalorder %s1946_s22, %s3732_s5 }
 0x2be   :  { %p1952_p7 = pnand %p1950_p6, %p1947_p5 }
 0x2c0   :  { %1955 = shalt.err (!%p1952_p7)
}
 0x2c1   :  { %1327 = dma.vmem_to_hbm [thread:$0]  %s1325_s18, 32, %s3732_s5, [#allocation3]  }
 0x2c2   :  { %1956 = dma.done.wait [#allocation3], 32  }
 0x2c3   :  { %1957 = vsyncadd [#allocation3], 4294967264 }
 0x2c4   :  { %1331 = vsyncpa [#allocation3], 1 }

// kernel: custom_model_forward.2
= control target key start
LH: loop header
LB: loop body
LE: loop exit
PB: predicated region body
PF: predicated region fallthrough
CT: control target
= control target key end

     0   :  { %10 = vsyncpa [#allocation7], 0  ;;  %s28364_s0 = inlined_call_operand.vmem [shape: f32[2,32,32,3], index: 0, kind: input, shape index: {}]   ;;  %s28365_s1 = inlined_call_operand.hbm [shape: f32[9,3,16], index: 1, kind: input, shape index: {}]   ;;  %s28366_s2 = inlined_call_operand.hbm [shape: f32[1,16], index: 2, kind: input, shape index: {}]   ;;  %s28367_s3 = inlined_call_operand.hbm [shape: f32[9,16,32], index: 3, kind: input, shape index: {}]   ;;  %s28368_s4 = inlined_call_operand.hbm [shape: f32[1,32], index: 4, kind: input, shape index: {}]   ;;  %s28369_s5 = inlined_call_operand.vmem [shape: f32[2,64,32], index: 5, kind: output, shape index: {}]  }
   0x1   :  { %11 = vsyncpa [#allocation9], 0 }
   0x2   :  { %12 = vsyncpa [#allocation12], 0  ;;  %s23678_s18 = smov 0  }
   0x3 LB: > { %s23639_s19 = smov [#allocation8]   ;;  %s23684_s21 = sadd.s32 4294967295, %s23637_s18   ;;  %s23637_s18 = sphi %s23678_s18, %s18_s18  }
   0x4   : > { %s185_s20 = sshll.u32 %s23639_s19, 4  ;;  %p16970_p0 = scmp.ge.s32.totalorder %s23637_s18, 1  ;;  %s186_s20 = int_to_ptr.vmem [resolvable:$true] %s185_s20 }
   0x5   : > { %p159_p1 = scmp.lt.s32.totalorder %s23637_s18, 3  ;;  %p28370_p2 = scmp.eq.s32.totalorder %s23684_s21, 0 }
   0x6   : > { %s23640_s23 = smov [#allocation6]   ;;  %s23641_s26 = smov [#allocation10]  }
   0x7   : > { %p23689_p3 = pnand %p16970_p0, %p159_p1  ;;  %s171_s24 = sshll.u32 %s23640_s23, 4  ;;  %s23695_s24 = int_to_ptr.vmem [resolvable:$true] %s171_s24 }
   0x8   : > { %s195_s27 = sshll.u32 %s23641_s26, 4  ;;  %s23507_s30 = scalar_lea.hbm %s28366_s2, 16  ;;  %s23703_s27 = int_to_ptr.vmem [resolvable:$true] %s195_s27 }
   0x9   : > { %s28434_s22 = scalar_select %p23689_p3, 1, 0 }
   0xa   : > { %p23455_p4 = pneg %p23689_p3  ;;  %p23508_p6 = scmp.ne.s32.totalorder %s28366_s2, %s23507_s30 }
   0xb   : > { %p23514_p10 = scmp.lt.u32.totalorder %s23507_s30, %s28366_s2 }
   0xc   : > { %p23699_p5 = pnand %p28370_p2, %p23455_p4 }
   0xe   : > { %p23713_p7 = pneg %p23699_p5 }
  0x10   : > { %p23510_p8 = pnand %p23713_p7, %p23508_p6 }
  0x12   : > { %p23511_p9 = pneg %p23510_p8 }
  0x14   : > { %p23516_p11 = pnand %p23514_p10, %p23511_p9 }
  0x16   : > { %23519 = shalt.err (!%p23516_p11)
}
  0x17   : > { %s23520_s11 = scalar_lea.vmem %s186_s20, 16  ;;  %s23527_s12 = scalar_lea.vmem %s186_s20, 32 }
  0x18   : > { %p23521_p12 = scmp.ne.s32.totalorder %s186_s20, %s23520_s11  ;;  %p23528_p1 = scmp.lt.s32.totalorder %s186_s20, %s186_s20 }
  0x19   : > { %p23529_p4 = scmp.lt.s32.totalorder %s23527_s12, %s23520_s11 }
  0x1a   : > { %p23523_p13 = pnand %p23521_p12, %p23713_p7 }
  0x1b   : > { %p23530_p2 = por %p23529_p4, %p23528_p1 }
  0x1c   : > { %p23524_p0 = pneg %p23523_p13 }
  0x1e   : > { %p23531_p3 = pnand %p23530_p2, %p23524_p0 }
  0x20   : > { %23534 = shalt.err (!%p23531_p3)
}
  0x21   : > { %23461 = dma.hbm_to_vmem [thread:$0]  (!%p23699_p5), %s28366_s2, 16, %s186_s20, [#allocation9]  }
  0x22   : > { %s23535_s17 = scalar_lea.hbm %s28365_s1, 576 }
  0x23   : > { %p23536_p6 = scmp.ne.s32.totalorder %s28365_s1, %s23535_s17  ;;  %p23542_p2 = scmp.lt.u32.totalorder %s23535_s17, %s28365_s1 }
  0x25   : > { %p23538_p8 = pnand %p23536_p6, %p23713_p7 }
  0x27   : > { %p23539_p9 = pneg %p23538_p8 }
  0x29   : > { %p23544_p3 = pnand %p23542_p2, %p23539_p9 }
  0x2b   : > { %23547 = shalt.err (!%p23544_p3)
}
  0x2c   : > { %s23548_s20 = scalar_lea.vmem %s23695_s24, 576  ;;  %p23556_p13 = scmp.lt.s32.totalorder %s23695_s24, %s23695_s24 }
  0x2d   : > { %p23549_p10 = scmp.ne.s32.totalorder %s23695_s24, %s23548_s20  ;;  %p23557_p0 = scmp.lt.s32.totalorder %s23548_s20, %s23548_s20 }
  0x2f   : > { %p23551_p11 = pnand %p23549_p10, %p23713_p7  ;;  %p23558_p1 = por %p23557_p0, %p23556_p13 }
  0x31   : > { %p23552_p12 = pneg %p23551_p11 }
  0x33   : > { %p23559_p4 = pnand %p23558_p1, %p23552_p12 }
  0x35   : > { %23562 = shalt.err (!%p23559_p4)
}
  0x36   : > { %s23642_s29 = smov 64   ;;  %s23643_s30 = smov 4  }
  0x37   : > { %23458 = dma.hbm_to_vmem [thread:$0]  (!%p23699_p5), %s28365_s1, 576, %s23695_s24, [#allocation7], %s23642_s29, %s23642_s29, %s23643_s30  }
  0x38   : > { %s23563_s11 = scalar_lea.hbm %s28367_s3, 2304 }
  0x39   : > { %p23564_p6 = scmp.ne.s32.totalorder %s28367_s3, %s23563_s11  ;;  %p23570_p2 = scmp.lt.u32.totalorder %s23563_s11, %s28367_s3 }
  0x3b   : > { %p23566_p8 = pnand %p23564_p6, %p23713_p7 }
  0x3d   : > { %p23567_p9 = pneg %p23566_p8 }
  0x3f   : > { %p23572_p3 = pnand %p23570_p2, %p23567_p9 }
  0x41   : > { %23575 = shalt.err (!%p23572_p3)
}
  0x42   : > { %s23576_s24 = scalar_lea.vmem %s23703_s27, 2304  ;;  %p23584_p13 = scmp.lt.s32.totalorder %s23703_s27, %s23703_s27 }
  0x43   : > { %p23577_p10 = scmp.ne.s32.totalorder %s23703_s27, %s23576_s24  ;;  %p23585_p0 = scmp.lt.s32.totalorder %s23576_s24, %s23576_s24 }
  0x45   : > { %p23579_p11 = pnand %p23577_p10, %p23713_p7  ;;  %p23586_p1 = por %p23585_p0, %p23584_p13 }
  0x47   : > { %p23580_p12 = pneg %p23579_p11 }
  0x49   : > { %p23587_p4 = pnand %p23586_p1, %p23580_p12 }
  0x4b   : > { %23590 = shalt.err (!%p23587_p4)
}
  0x4c   : > { %s23644_s16 = smov 128   ;;  %s23645_s17 = smov 8  }
  0x4d   : > { %23464 = dma.hbm_to_vmem [thread:$0]  (!%p23699_p5), %s28367_s3, 2304, %s23703_s27, [#allocation9], %s23644_s16, %s23644_s16, %s23645_s17  }
  0x4e   : > { %s23646_s26 = smov [#allocation11]   ;;  %s23591_s30 = scalar_lea.hbm %s28368_s4, 16 }
  0x4f   : > { %s209_s28 = sshll.u32 %s23646_s26, 4  ;;  %p23592_p6 = scmp.ne.s32.totalorder %s28368_s4, %s23591_s30  ;;  %s210_s28 = int_to_ptr.vmem [resolvable:$true] %s209_s28 }
  0x50   : > { %p23598_p2 = scmp.lt.u32.totalorder %s23591_s30, %s28368_s4 }
  0x51   : > { %p23594_p8 = pnand %p23592_p6, %p23713_p7 }
  0x53   : > { %p23595_p9 = pneg %p23594_p8 }
  0x55   : > { %p23600_p3 = pnand %p23598_p2, %p23595_p9 }
  0x57   : > { %23603 = shalt.err (!%p23600_p3)
}
  0x58   : > { %s23604_s27 = scalar_lea.vmem %s210_s28, 16  ;;  %s23611_s11 = scalar_lea.vmem %s210_s28, 32 }
  0x59   : > { %p23605_p10 = scmp.ne.s32.totalorder %s210_s28, %s23604_s27  ;;  %p23612_p13 = scmp.lt.s32.totalorder %s210_s28, %s210_s28 }
  0x5a   : > { %p23613_p0 = scmp.lt.s32.totalorder %s23611_s11, %s23604_s27 }
  0x5b   : > { %p23607_p11 = pnand %p23605_p10, %p23713_p7 }
  0x5c   : > { %p23614_p1 = por %p23613_p0, %p23612_p13 }
  0x5d   : > { %p23608_p12 = pneg %p23607_p11 }
  0x5f   : > { %p23615_p4 = pnand %p23614_p1, %p23608_p12 }
  0x61   : > { %23618 = shalt.err (!%p23615_p4)
}
  0x62   : > { %23467 = dma.hbm_to_vmem [thread:$0]  (!%p23699_p5), %s28368_s4, 16, %s210_s28, [#allocation12]  }
  0x63   : > { %p28437_p6 = scmp.ne.s32.totalorder %s28434_s22, 0 }
  0x65   : > { %230 = sbr.rel (%p28437_p6) target bundleno = 2641 (0xa51), region = 40 }
  0x6c   : > { %p28438_p8 = scmp.eq.s32.totalorder %s23684_s21, 0 }
  0x6e   : > { %23624 = dma.done.wait (%p28438_p8), [#allocation7], 576   ;;  %p28439_p7 = pmov %p28438_p8 }
  0x70   : > { %23626 = vsyncadd (%p28439_p7), [#allocation7], 4294966720  ;;  %p28440_p9 = pmov %p28439_p7 }
  0x71   : > { %p28441_p2 = pmov %p28439_p7 }
  0x72   : > { %23628 = dma.done.wait (%p28440_p9), [#allocation9], 2320  }
  0x73   : > { %23630 = vsyncadd (%p28441_p2), [#allocation9], 4294964976  ;;  %p28442_p3 = pmov %p28441_p2 }
  0x74   : > { %p28443_p5 = pmov %p28441_p2 }
  0x75   : > { %23632 = dma.done.wait (%p28442_p3), [#allocation12], 16  }
  0x76   : > { %23634 = vsyncadd (%p28443_p5), [#allocation12], 4294967280  ;;  %vm280_vm0 = vcmask 23552   ;;  %p270_p10 = scmp.lt.s32.totalorder %s23684_s21, 1  ;;  %v28372_v0 = vmov 0.0   ;;  %vm1385_vm1 = vcmask 1042432  }
  0x77   : > { %282 = vst.msk [vmem:[#allocation2 + $0x8] sm:$0xff] %vm280_vm0, %v28372_v0  ;;  %281 = vst.msk [vmem:[#allocation2] sm:$0xff] %vm280_vm0, %v28372_v0  ;;  %v1000_v1 = vld [vmem:[#allocation6 + $0x4] sm:$0x7]  ;;  %v4665_v2 = vld [vmem:[#allocation6 + $0xc] sm:$0x7] }
  0x78   : > { %283 = vst.msk [vmem:[#allocation2 + $0x10] sm:$0xff] %vm280_vm0, %v28372_v0  ;;  %284 = vst.msk [vmem:[#allocation2 + $0x18] sm:$0xff] %vm280_vm0, %v28372_v0  ;;  %s28709_s21 = smov (!%p270_p10, %s23684_s21), 1  ;;  %19907 = vmatprep.subr.msk.mxu1 %vm1385_vm1, %v1000_v1  ;;  %20489 = vmatprep.subr.msk.mxu0 %vm1385_vm1, %v4665_v2  ;;  %v6015_v8 = vld [vmem:[#allocation6 + $0x10] sm:$0x7]  ;;  %vm12964_vm2 = vcmask 130048  }
  0x79   : > { %285 = vst.msk [vmem:[#allocation2 + $0x20] sm:$0xff] %vm280_vm0, %v28372_v0  ;;  %286 = vst.msk [vmem:[#allocation2 + $0x28] sm:$0xff] %vm280_vm0, %v28372_v0  ;;  %s18438_s22 = sshll.u32 %s28709_s21, 10  ;;  %19908 = vmatpush3.msk.msra.mxu1 %vm1385_vm1, %v1000_v1  ;;  %20490 = vmatpush3.msk.msra.mxu0 %vm1385_vm1, %v4665_v2  ;;  %vm16808_vm3 = vcmask 261120   ;;  %s18439_s15 = sshll.u32 %s28709_s21, 6 }
  0x7a   : > { %287 = vst.msk [vmem:[#allocation2 + $0x30] sm:$0xff] %vm280_vm0, %v28372_v0  ;;  %288 = vst.msk [vmem:[#allocation2 + $0x38] sm:$0xff] %vm280_vm0, %v28372_v0  ;;  %s24225_s14 = scalar_lea.vmem %s28364_s0, %s18438_s22  ;;  %20683 = vmatprep.subr.msk.mxu0 %vm1385_vm1, %v6015_v8  ;;  %s28305_s17 = scalar_lea.vmem %s28369_s5, %s18439_s15 }
  0x7b   : > { %289 = vst.msk [vmem:[#allocation2 + $0x40] sm:$0xff] %vm280_vm0, %v28372_v0  ;;  %290 = vst.msk [vmem:[#allocation2 + $0x48] sm:$0xff] %vm280_vm0, %v28372_v0  ;;  %v485_v3 = vld [vmem:[%s24225_s14] sm:$0xff]  ;;  %v486_v9 = vld [vmem:[%s24225_s14 + $0x8] sm:$0xff] }
  0x7c   : > { %291 = vst.msk [vmem:[#allocation2 + $0x50] sm:$0xff] %vm280_vm0, %v28372_v0  ;;  %292 = vst.msk [vmem:[#allocation2 + $0x58] sm:$0xff] %vm280_vm0, %v28372_v0  ;;  %v487_v10 = vld [vmem:[%s24225_s14 + $0x10] sm:$0xff]  ;;  %v488_v11 = vld [vmem:[%s24225_s14 + $0x18] sm:$0xff] }
  0x7d   : > { %293 = vst.msk [vmem:[#allocation2 + $0x60] sm:$0xff] %vm280_vm0, %v28372_v0  ;;  %294 = vst.msk [vmem:[#allocation2 + $0x68] sm:$0xff] %vm280_vm0, %v28372_v0  ;;  %v489_v12 = vld [vmem:[%s24225_s14 + $0x20] sm:$0xff]  ;;  %v490_v13 = vld [vmem:[%s24225_s14 + $0x28] sm:$0xff] }
  0x7e   : > { %295 = vst.msk [vmem:[#allocation2 + $0x70] sm:$0xff] %vm280_vm0, %v28372_v0  ;;  %296 = vst.msk [vmem:[#allocation2 + $0x78] sm:$0xff] %vm280_vm0, %v28372_v0  ;;  %v871_v4 = vld [vmem:[#allocation2 + $0x8] sm:$0xff]  ;;  %v491_v14 = vld [vmem:[%s24225_s14 + $0x30] sm:$0xff] }
  0x7f   : > { %297 = vst.msk [vmem:[#allocation2 + $0x80] sm:$0xff] %vm280_vm0, %v28372_v0  ;;  %298 = vst.msk [vmem:[#allocation2 + $0x88] sm:$0xff] %vm280_vm0, %v28372_v0  ;;  %v872_v5 = vld [vmem:[#allocation2 + $0x10] sm:$0xff]  ;;  %v873_v6 = vld [vmem:[#allocation2 + $0x18] sm:$0xff]  ;;  %19909 = vmatprep.mubr.msk.f32.mxu1 %vm280_vm0, %v871_v4 }
  0x80   : > { %299 = vst.msk [vmem:[#allocation2 + $0x90] sm:$0xff] %vm280_vm0, %v28372_v0  ;;  %300 = vst.msk [vmem:[#allocation2 + $0x98] sm:$0xff] %vm280_vm0, %v28372_v0  ;;  %v874_v7 = vld [vmem:[#allocation2 + $0x20] sm:$0xff]  ;;  %19910 = vmatmul.mubr.msk.f32.vlgmr.msra.gmra.mrb[0].mxu1 %vm280_vm0, %v872_v5  ;;  %v492_v15 = vld [vmem:[%s24225_s14 + $0x38] sm:$0xff] }
  0x81   : > { %301 = vst.msk [vmem:[#allocation2 + $0xa0] sm:$0xff] %vm280_vm0, %v28372_v0  ;;  %302 = vst.msk [vmem:[#allocation2 + $0xa8] sm:$0xff] %vm280_vm0, %v28372_v0  ;;  %19912 = vmatprep.mubr.msk.f32.mxu1 %vm280_vm0, %v873_v6  ;;  %v493_v16 = vld [vmem:[%s24225_s14 + $0x40] sm:$0xff]  ;;  %v494_v17 = vld [vmem:[%s24225_s14 + $0x48] sm:$0xff] }
  0x82   : > { %303 = vst.msk [vmem:[#allocation2 + $0xb0] sm:$0xff] %vm280_vm0, %v28372_v0  ;;  %304 = vst.msk [vmem:[#allocation2 + $0xb8] sm:$0xff] %vm280_vm0, %v28372_v0  ;;  %v495_v18 = vld [vmem:[%s24225_s14 + $0x50] sm:$0xff]  ;;  %v496_v19 = vld [vmem:[%s24225_s14 + $0x58] sm:$0xff] }
  0x83   : > { %305 = vst.msk [vmem:[#allocation2 + $0xc0] sm:$0xff] %vm280_vm0, %v28372_v0  ;;  %306 = vst.msk [vmem:[#allocation2 + $0xc8] sm:$0xff] %vm280_vm0, %v28372_v0  ;;  %v497_v20 = vld [vmem:[%s24225_s14 + $0x60] sm:$0xff]  ;;  %v498_v21 = vld [vmem:[%s24225_s14 + $0x68] sm:$0xff] }
  0x84   : > { %307 = vst.msk [vmem:[#allocation2 + $0xd0] sm:$0xff] %vm280_vm0, %v28372_v0  ;;  %308 = vst.msk [vmem:[#allocation2 + $0xd8] sm:$0xff] %vm280_vm0, %v28372_v0  ;;  %19913 = vmatmul.mubr.msk.f32.gmra.mrb[2].mxu1 %vm280_vm0, %v874_v7  ;;  %v499_v22 = vld [vmem:[%s24225_s14 + $0x70] sm:$0xff]  ;;  %v500_v23 = vld [vmem:[%s24225_s14 + $0x78] sm:$0xff] }
  0x85   : > { %309 = vst.msk [vmem:[#allocation2 + $0xe0] sm:$0xff] %vm280_vm0, %v28372_v0  ;;  %310 = vst.msk [vmem:[#allocation2 + $0xe8] sm:$0xff] %vm280_vm0, %v28372_v0  ;;  %v501_v24 = vld [vmem:[%s24225_s14 + $0x80] sm:$0xff]  ;;  %v502_v27 = vld [vmem:[%s24225_s14 + $0x88] sm:$0xff] }
  0x86   : > { %311 = vst.msk [vmem:[#allocation2 + $0xf0] sm:$0xff] %vm280_vm0, %v28372_v0  ;;  %312 = vst.msk [vmem:[#allocation2 + $0xf8] sm:$0xff] %vm280_vm0, %v28372_v0  ;;  %v503_v28 = vld [vmem:[%s24225_s14 + $0x90] sm:$0xff]  ;;  %v504_v29 = vld [vmem:[%s24225_s14 + $0x98] sm:$0xff] }
  0x87   : > { %313 = vst.msk [vmem:[#allocation2 + $0x100] sm:$0xff] %vm280_vm0, %v28372_v0  ;;  %314 = vst.msk [vmem:[#allocation2 + $0x108] sm:$0xff] %vm280_vm0, %v28372_v0  ;;  %v505_v30 = vld [vmem:[%s24225_s14 + $0xa0] sm:$0xff]  ;;  %v506_v33 = vld [vmem:[%s24225_s14 + $0xa8] sm:$0xff] }
  0x88   : > { %315 = vst.msk [vmem:[#allocation2 + $0x110] sm:$0xff] %vm280_vm0, %v28372_v0  ;;  %316 = vst.msk [vmem:[#allocation2 + $0x118] sm:$0xff] %vm280_vm0, %v28372_v0  ;;  %v507_v52 = vld [vmem:[%s24225_s14 + $0xb0] sm:$0xff]  ;;  %v508_v53 = vld [vmem:[%s24225_s14 + $0xb8] sm:$0xff] }
  0x89   : > { %317 = vst.msk [vmem:[#allocation2 + $0x120] sm:$0xff] %vm280_vm0, %v28372_v0  ;;  %318 = vst.msk [vmem:[#allocation2 + $0x128] sm:$0xff] %vm280_vm0, %v28372_v0  ;;  %v509_v54 = vld [vmem:[%s24225_s14 + $0xc0] sm:$0xff]  ;;  %v510_v55 = vld [vmem:[%s24225_s14 + $0xc8] sm:$0xff] }
  0x8a   : > { %319 = vst.msk [vmem:[#allocation2 + $0x130] sm:$0xff] %vm280_vm0, %v28372_v0  ;;  %320 = vst.msk [vmem:[#allocation2 + $0x138] sm:$0xff] %vm280_vm0, %v28372_v0  ;;  %v511_v56 = vld [vmem:[%s24225_s14 + $0xd0] sm:$0xff]  ;;  %v512_v59 = vld [vmem:[%s24225_s14 + $0xd8] sm:$0xff] }
  0x8b   : > { %321 = vst.msk [vmem:[#allocation2 + $0x140] sm:$0xff] %vm280_vm0, %v28372_v0  ;;  %322 = vst.msk [vmem:[#allocation2 + $0x148] sm:$0xff] %vm280_vm0, %v28372_v0  ;;  %v513_v60 = vld [vmem:[%s24225_s14 + $0xe0] sm:$0xff]  ;;  %v514_v61 = vld [vmem:[%s24225_s14 + $0xe8] sm:$0xff] }
  0x8c   : > { %323 = vst.msk [vmem:[#allocation2 + $0x150] sm:$0xff] %vm280_vm0, %v28372_v0  ;;  %324 = vst.msk [vmem:[#allocation2 + $0x158] sm:$0xff] %vm280_vm0, %v28372_v0  ;;  %v515_v1 = vld [vmem:[%s24225_s14 + $0xf0] sm:$0xff]  ;;  %v516_v2 = vld [vmem:[%s24225_s14 + $0xf8] sm:$0xff] }
  0x8d   : > { %325 = vst.msk [vmem:[#allocation2 + $0x160] sm:$0xff] %vm280_vm0, %v28372_v0  ;;  %326 = vst.msk [vmem:[#allocation2 + $0x168] sm:$0xff] %vm280_vm0, %v28372_v0  ;;  %v518_v4 = vld [vmem:[%s24225_s14 + $0x108] sm:$0xff]  ;;  %v519_v5 = vld [vmem:[%s24225_s14 + $0x110] sm:$0xff] }
  0x8e   : > { %327 = vst.msk [vmem:[#allocation2 + $0x170] sm:$0xff] %vm280_vm0, %v28372_v0  ;;  %328 = vst.msk [vmem:[#allocation2 + $0x178] sm:$0xff] %vm280_vm0, %v28372_v0  ;;  %v520_v6 = vld [vmem:[%s24225_s14 + $0x118] sm:$0xff]  ;;  %v521_v7 = vld [vmem:[%s24225_s14 + $0x120] sm:$0xff] }
  0x8f   : > { %329 = vst.msk [vmem:[#allocation2 + $0x180] sm:$0xff] %vm280_vm0, %v28372_v0  ;;  %330 = vst.msk [vmem:[#allocation2 + $0x188] sm:$0xff] %vm280_vm0, %v28372_v0 }
  0x90   : > { %331 = vst.msk [vmem:[#allocation2 + $0x190] sm:$0xff] %vm280_vm0, %v28372_v0  ;;  %332 = vst.msk [vmem:[#allocation2 + $0x198] sm:$0xff] %vm280_vm0, %v28372_v0 }
  0x91   : > { %333 = vst.msk [vmem:[#allocation2 + $0x1a0] sm:$0xff] %vm280_vm0, %v28372_v0  ;;  %334 = vst.msk [vmem:[#allocation2 + $0x1a8] sm:$0xff] %vm280_vm0, %v28372_v0 }
  0x92   : > { %335 = vst.msk [vmem:[#allocation2 + $0x1b0] sm:$0xff] %vm280_vm0, %v28372_v0  ;;  %336 = vst.msk [vmem:[#allocation2 + $0x1b8] sm:$0xff] %vm280_vm0, %v28372_v0 }
  0x93   : > { %337 = vst.msk [vmem:[#allocation2 + $0x1c0] sm:$0xff] %vm280_vm0, %v28372_v0  ;;  %338 = vst.msk [vmem:[#allocation2 + $0x1c8] sm:$0xff] %vm280_vm0, %v28372_v0 }
  0x94   : > { %339 = vst.msk [vmem:[#allocation2 + $0x1d0] sm:$0xff] %vm280_vm0, %v28372_v0  ;;  %340 = vst.msk [vmem:[#allocation2 + $0x1d8] sm:$0xff] %vm280_vm0, %v28372_v0 }
  0x95   : > { %341 = vst.msk [vmem:[#allocation2 + $0x1e0] sm:$0xff] %vm280_vm0, %v28372_v0  ;;  %342 = vst.msk [vmem:[#allocation2 + $0x1e8] sm:$0xff] %vm280_vm0, %v28372_v0 }
  0x96   : > { %343 = vst.msk [vmem:[#allocation2 + $0x1f0] sm:$0xff] %vm280_vm0, %v28372_v0  ;;  %344 = vst.msk [vmem:[#allocation2 + $0x1f8] sm:$0xff] %vm280_vm0, %v28372_v0 }
  0x97   : > { %345 = vst.msk [vmem:[#allocation2 + $0x200] sm:$0xff] %vm280_vm0, %v28372_v0  ;;  %346 = vst.msk [vmem:[#allocation2 + $0x208] sm:$0xff] %vm280_vm0, %v28372_v0 }
  0x98   : > { %347 = vst.msk [vmem:[#allocation2 + $0x210] sm:$0xff] %vm280_vm0, %v28372_v0  ;;  %348 = vst.msk [vmem:[#allocation2 + $0x218] sm:$0xff] %vm280_vm0, %v28372_v0 }
  0x99   : > { %349 = vst.msk [vmem:[#allocation2 + $0x220] sm:$0xff] %vm280_vm0, %v28372_v0  ;;  %350 = vst.msk [vmem:[#allocation2 + $0x228] sm:$0xff] %vm280_vm0, %v28372_v0 }
  0x9a   : > { %351 = vst.msk [vmem:[#allocation2 + $0x230] sm:$0xff] %vm280_vm0, %v28372_v0  ;;  %352 = vst.msk [vmem:[#allocation2 + $0x238] sm:$0xff] %vm280_vm0, %v28372_v0 }
  0x9b   : > { %353 = vst.msk [vmem:[#allocation2 + $0x240] sm:$0xff] %vm280_vm0, %v28372_v0  ;;  %354 = vst.msk [vmem:[#allocation2 + $0x248] sm:$0xff] %vm280_vm0, %v28372_v0 }
  0x9c   : > { %355 = vst.msk [vmem:[#allocation2 + $0x250] sm:$0xff] %vm280_vm0, %v28372_v0  ;;  %356 = vst.msk [vmem:[#allocation2 + $0x258] sm:$0xff] %vm280_vm0, %v28372_v0 }
  0x9d   : > { %357 = vst.msk [vmem:[#allocation2 + $0x260] sm:$0xff] %vm280_vm0, %v28372_v0  ;;  %358 = vst.msk [vmem:[#allocation2 + $0x268] sm:$0xff] %vm280_vm0, %v28372_v0 }
  0x9e   : > { %359 = vst.msk [vmem:[#allocation2 + $0x270] sm:$0xff] %vm280_vm0, %v28372_v0  ;;  %360 = vst.msk [vmem:[#allocation2 + $0x278] sm:$0xff] %vm280_vm0, %v28372_v0 }
  0x9f   : > { %361 = vst.msk [vmem:[#allocation2 + $0x280] sm:$0xff] %vm280_vm0, %v28372_v0  ;;  %362 = vst.msk [vmem:[#allocation2 + $0x288] sm:$0xff] %vm280_vm0, %v28372_v0 }
  0xa0   : > { %363 = vst.msk [vmem:[#allocation2 + $0x290] sm:$0xff] %vm280_vm0, %v28372_v0  ;;  %364 = vst.msk [vmem:[#allocation2 + $0x298] sm:$0xff] %vm280_vm0, %v28372_v0 }
  0xa1   : > { %365 = vst.msk [vmem:[#allocation2 + $0x2a0] sm:$0xff] %vm280_vm0, %v28372_v0  ;;  %366 = vst.msk [vmem:[#allocation2 + $0x2a8] sm:$0xff] %vm280_vm0, %v28372_v0 }
  0xa2   : > { %367 = vst.msk [vmem:[#allocation2 + $0x2b0] sm:$0xff] %vm280_vm0, %v28372_v0  ;;  %368 = vst.msk [vmem:[#allocation2 + $0x2b8] sm:$0xff] %vm280_vm0, %v28372_v0 }
  0xa3   : > { %369 = vst.msk [vmem:[#allocation2 + $0x2c0] sm:$0xff] %vm280_vm0, %v28372_v0  ;;  %370 = vst.msk [vmem:[#allocation2 + $0x2c8] sm:$0xff] %vm280_vm0, %v28372_v0 }
  0xa4   : > { %371 = vst.msk [vmem:[#allocation2 + $0x2d0] sm:$0xff] %vm280_vm0, %v28372_v0  ;;  %372 = vst.msk [vmem:[#allocation2 + $0x2d8] sm:$0xff] %vm280_vm0, %v28372_v0 }
  0xa5   : > { %373 = vst.msk [vmem:[#allocation2 + $0x2e0] sm:$0xff] %vm280_vm0, %v28372_v0  ;;  %374 = vst.msk [vmem:[#allocation2 + $0x2e8] sm:$0xff] %vm280_vm0, %v28372_v0 }
  0xa6   : > { %375 = vst.msk [vmem:[#allocation2 + $0x2f0] sm:$0xff] %vm280_vm0, %v28372_v0  ;;  %376 = vst.msk [vmem:[#allocation2 + $0x2f8] sm:$0xff] %vm280_vm0, %v28372_v0 }
  0xa7   : > { %377 = vst.msk [vmem:[#allocation2 + $0x300] sm:$0xff] %vm280_vm0, %v28372_v0  ;;  %378 = vst.msk [vmem:[#allocation2 + $0x308] sm:$0xff] %vm280_vm0, %v28372_v0 }
  0xa8   : > { %379 = vst.msk [vmem:[#allocation2 + $0x310] sm:$0xff] %vm280_vm0, %v28372_v0  ;;  %380 = vst.msk [vmem:[#allocation2 + $0x318] sm:$0xff] %vm280_vm0, %v28372_v0 }
  0xa9   : > { %381 = vst.msk [vmem:[#allocation2 + $0x320] sm:$0xff] %vm280_vm0, %v28372_v0  ;;  %382 = vst.msk [vmem:[#allocation2 + $0x328] sm:$0xff] %vm280_vm0, %v28372_v0 }
  0xaa   : > { %383 = vst.msk [vmem:[#allocation2 + $0x330] sm:$0xff] %vm280_vm0, %v28372_v0  ;;  %384 = vst.msk [vmem:[#allocation2 + $0x338] sm:$0xff] %vm280_vm0, %v28372_v0 }
  0xab   : > { %385 = vst.msk [vmem:[#allocation2 + $0x340] sm:$0xff] %vm280_vm0, %v28372_v0  ;;  %386 = vst.msk [vmem:[#allocation2 + $0x348] sm:$0xff] %vm280_vm0, %v28372_v0 }
  0xac   : > { %387 = vst.msk [vmem:[#allocation2 + $0x350] sm:$0xff] %vm280_vm0, %v28372_v0  ;;  %388 = vst.msk [vmem:[#allocation2 + $0x358] sm:$0xff] %vm280_vm0, %v28372_v0 }
  0xad   : > { %389 = vst.msk [vmem:[#allocation2 + $0x360] sm:$0xff] %vm280_vm0, %v28372_v0  ;;  %390 = vst.msk [vmem:[#allocation2 + $0x368] sm:$0xff] %vm280_vm0, %v28372_v0 }
  0xae   : > { %391 = vst.msk [vmem:[#allocation2 + $0x370] sm:$0xff] %vm280_vm0, %v28372_v0  ;;  %392 = vst.msk [vmem:[#allocation2 + $0x378] sm:$0xff] %vm280_vm0, %v28372_v0 }
  0xaf   : > { %393 = vst.msk [vmem:[#allocation2 + $0x380] sm:$0xff] %vm280_vm0, %v28372_v0  ;;  %394 = vst.msk [vmem:[#allocation2 + $0x388] sm:$0xff] %vm280_vm0, %v28372_v0 }
  0xb0   : > { %395 = vst.msk [vmem:[#allocation2 + $0x390] sm:$0xff] %vm280_vm0, %v28372_v0  ;;  %396 = vst.msk [vmem:[#allocation2 + $0x398] sm:$0xff] %vm280_vm0, %v28372_v0 }
  0xb1   : > { %397 = vst.msk [vmem:[#allocation2 + $0x3a0] sm:$0xff] %vm280_vm0, %v28372_v0  ;;  %398 = vst.msk [vmem:[#allocation2 + $0x3a8] sm:$0xff] %vm280_vm0, %v28372_v0 }
  0xb2   : > { %399 = vst.msk [vmem:[#allocation2 + $0x3b0] sm:$0xff] %vm280_vm0, %v28372_v0  ;;  %400 = vst.msk [vmem:[#allocation2 + $0x3b8] sm:$0xff] %vm280_vm0, %v28372_v0 }
  0xb3   : > { %401 = vst.msk [vmem:[#allocation2 + $0x3c0] sm:$0xff] %vm280_vm0, %v28372_v0  ;;  %402 = vst.msk [vmem:[#allocation2 + $0x3c8] sm:$0xff] %vm280_vm0, %v28372_v0 }
  0xb4   : > { %403 = vst.msk [vmem:[#allocation2 + $0x3d0] sm:$0xff] %vm280_vm0, %v28372_v0  ;;  %404 = vst.msk [vmem:[#allocation2 + $0x3d8] sm:$0xff] %vm280_vm0, %v28372_v0 }
  0xb5   : > { %405 = vst.msk [vmem:[#allocation2 + $0x3e0] sm:$0xff] %vm280_vm0, %v28372_v0  ;;  %406 = vst.msk [vmem:[#allocation2 + $0x3e8] sm:$0xff] %vm280_vm0, %v28372_v0 }
  0xb6   : > { %407 = vst.msk [vmem:[#allocation2 + $0x3f0] sm:$0xff] %vm280_vm0, %v28372_v0  ;;  %408 = vst.msk [vmem:[#allocation2 + $0x3f8] sm:$0xff] %vm280_vm0, %v28372_v0 }
  0xb7   : > { %409 = vst.msk [vmem:[#allocation2 + $0x400] sm:$0xff] %vm280_vm0, %v28372_v0  ;;  %410 = vst.msk [vmem:[#allocation2 + $0x408] sm:$0xff] %vm280_vm0, %v28372_v0 }
  0xb8   : > { %411 = vst.msk [vmem:[#allocation2 + $0x410] sm:$0xff] %vm280_vm0, %v28372_v0  ;;  %412 = vst.msk [vmem:[#allocation2 + $0x418] sm:$0xff] %vm280_vm0, %v28372_v0 }
  0xb9   : > { %413 = vst.msk [vmem:[#allocation2 + $0x420] sm:$0xff] %vm280_vm0, %v28372_v0  ;;  %414 = vst.msk [vmem:[#allocation2 + $0x428] sm:$0xff] %vm280_vm0, %v28372_v0 }
  0xba   : > { %415 = vst.msk [vmem:[#allocation2 + $0x430] sm:$0xff] %vm280_vm0, %v28372_v0  ;;  %416 = vst.msk [vmem:[#allocation2 + $0x438] sm:$0xff] %vm280_vm0, %v28372_v0 }
  0xbb   : > { %417 = vst.msk [vmem:[#allocation2 + $0x440] sm:$0xff] %vm280_vm0, %v28372_v0  ;;  %418 = vst.msk [vmem:[#allocation2 + $0x448] sm:$0xff] %vm280_vm0, %v28372_v0 }
  0xbc   : > { %419 = vst.msk [vmem:[#allocation2 + $0x450] sm:$0xff] %vm280_vm0, %v28372_v0  ;;  %420 = vst.msk [vmem:[#allocation2 + $0x458] sm:$0xff] %vm280_vm0, %v28372_v0 }
  0xbd   : > { %421 = vst.msk [vmem:[#allocation2 + $0x460] sm:$0xff] %vm280_vm0, %v28372_v0  ;;  %422 = vst.msk [vmem:[#allocation2 + $0x468] sm:$0xff] %vm280_vm0, %v28372_v0 }
  0xbe   : > { %423 = vst.msk [vmem:[#allocation2 + $0x470] sm:$0xff] %vm280_vm0, %v28372_v0  ;;  %424 = vst.msk [vmem:[#allocation2 + $0x478] sm:$0xff] %vm280_vm0, %v28372_v0 }
  0xbf   : > { %425 = vst.msk [vmem:[#allocation2 + $0x480] sm:$0xff] %vm280_vm0, %v28372_v0  ;;  %426 = vst.msk [vmem:[#allocation2 + $0x488] sm:$0xff] %vm280_vm0, %v28372_v0 }
  0xc0   : > { %427 = vst.msk [vmem:[#allocation2 + $0x490] sm:$0xff] %vm280_vm0, %v28372_v0  ;;  %428 = vst.msk [vmem:[#allocation2 + $0x498] sm:$0xff] %vm280_vm0, %v28372_v0 }
  0xc1   : > { %429 = vst.msk [vmem:[#allocation2 + $0x4a0] sm:$0xff] %vm280_vm0, %v28372_v0  ;;  %430 = vst.msk [vmem:[#allocation2 + $0x4a8] sm:$0xff] %vm280_vm0, %v28372_v0 }
  0xc2   : > { %431 = vst.msk [vmem:[#allocation2 + $0x4b0] sm:$0xff] %vm280_vm0, %v28372_v0  ;;  %432 = vst.msk [vmem:[#allocation2 + $0x4b8] sm:$0xff] %vm280_vm0, %v28372_v0 }
  0xc3   : > { %433 = vst.msk [vmem:[#allocation2 + $0x4c0] sm:$0xff] %vm280_vm0, %v28372_v0  ;;  %434 = vst.msk [vmem:[#allocation2 + $0x4c8] sm:$0xff] %vm280_vm0, %v28372_v0 }
  0xc4   : > { %435 = vst.msk [vmem:[#allocation2 + $0x4d0] sm:$0xff] %vm280_vm0, %v28372_v0  ;;  %436 = vst.msk [vmem:[#allocation2 + $0x4d8] sm:$0xff] %vm280_vm0, %v28372_v0 }
  0xc5   : > { %437 = vst.msk [vmem:[#allocation2 + $0x4e0] sm:$0xff] %vm280_vm0, %v28372_v0  ;;  %438 = vst.msk [vmem:[#allocation2 + $0x4e8] sm:$0xff] %vm280_vm0, %v28372_v0 }
  0xc6   : > { %439 = vst.msk [vmem:[#allocation2 + $0x4f0] sm:$0xff] %vm280_vm0, %v28372_v0  ;;  %440 = vst.msk [vmem:[#allocation2 + $0x4f8] sm:$0xff] %vm280_vm0, %v28372_v0 }
  0xc7   : > { %441 = vst.msk [vmem:[#allocation2 + $0x500] sm:$0xff] %vm280_vm0, %v28372_v0  ;;  %442 = vst.msk [vmem:[#allocation2 + $0x508] sm:$0xff] %vm280_vm0, %v28372_v0 }
  0xc8   : > { %443 = vst.msk [vmem:[#allocation2 + $0x510] sm:$0xff] %vm280_vm0, %v28372_v0  ;;  %444 = vst.msk [vmem:[#allocation2 + $0x518] sm:$0xff] %vm280_vm0, %v28372_v0 }
  0xc9   : > { %445 = vst.msk [vmem:[#allocation2 + $0x520] sm:$0xff] %vm280_vm0, %v28372_v0  ;;  %446 = vst.msk [vmem:[#allocation2 + $0x528] sm:$0xff] %vm280_vm0, %v28372_v0 }
  0xca   : > { %447 = vst.msk [vmem:[#allocation2 + $0x530] sm:$0xff] %vm280_vm0, %v28372_v0  ;;  %448 = vst.msk [vmem:[#allocation2 + $0x538] sm:$0xff] %vm280_vm0, %v28372_v0 }
  0xcb   : > { %449 = vst.msk [vmem:[#allocation2 + $0x540] sm:$0xff] %vm280_vm0, %v28372_v0  ;;  %450 = vst.msk [vmem:[#allocation2 + $0x548] sm:$0xff] %vm280_vm0, %v28372_v0 }
  0xcc   : > { %451 = vst.msk [vmem:[#allocation2 + $0x550] sm:$0xff] %vm280_vm0, %v28372_v0  ;;  %452 = vst.msk [vmem:[#allocation2 + $0x558] sm:$0xff] %vm280_vm0, %v28372_v0 }
  0xcd   : > { %453 = vst.msk [vmem:[#allocation2 + $0x560] sm:$0xff] %vm280_vm0, %v28372_v0  ;;  %454 = vst.msk [vmem:[#allocation2 + $0x568] sm:$0xff] %vm280_vm0, %v28372_v0 }
  0xce   : > { %455 = vst.msk [vmem:[#allocation2 + $0x570] sm:$0xff] %vm280_vm0, %v28372_v0  ;;  %456 = vst.msk [vmem:[#allocation2 + $0x578] sm:$0xff] %vm280_vm0, %v28372_v0 }
  0xcf   : > { %457 = vst.msk [vmem:[#allocation2 + $0x580] sm:$0xff] %vm280_vm0, %v28372_v0  ;;  %458 = vst.msk [vmem:[#allocation2 + $0x588] sm:$0xff] %vm280_vm0, %v28372_v0 }
  0xd0   : > { %459 = vst.msk [vmem:[#allocation2 + $0x590] sm:$0xff] %vm280_vm0, %v28372_v0  ;;  %460 = vst.msk [vmem:[#allocation2 + $0x598] sm:$0xff] %vm280_vm0, %v28372_v0 }
  0xd1   : > { %461 = vst.msk [vmem:[#allocation2 + $0x5a0] sm:$0xff] %vm280_vm0, %v28372_v0  ;;  %462 = vst.msk [vmem:[#allocation2 + $0x5a8] sm:$0xff] %vm280_vm0, %v28372_v0 }
  0xd2   : > { %463 = vst.msk [vmem:[#allocation2 + $0x5b0] sm:$0xff] %vm280_vm0, %v28372_v0  ;;  %464 = vst.msk [vmem:[#allocation2 + $0x5b8] sm:$0xff] %vm280_vm0, %v28372_v0 }
  0xd3   : > { %465 = vst.msk [vmem:[#allocation2 + $0x5c0] sm:$0xff] %vm280_vm0, %v28372_v0  ;;  %466 = vst.msk [vmem:[#allocation2 + $0x5c8] sm:$0xff] %vm280_vm0, %v28372_v0 }
  0xd4   : > { %467 = vst.msk [vmem:[#allocation2 + $0x5d0] sm:$0xff] %vm280_vm0, %v28372_v0  ;;  %468 = vst.msk [vmem:[#allocation2 + $0x5d8] sm:$0xff] %vm280_vm0, %v28372_v0 }
  0xd5   : > { %469 = vst.msk [vmem:[#allocation2 + $0x5e0] sm:$0xff] %vm280_vm0, %v28372_v0  ;;  %470 = vst.msk [vmem:[#allocation2 + $0x5e8] sm:$0xff] %vm280_vm0, %v28372_v0 }
  0xd6   : > { %471 = vst.msk [vmem:[#allocation2 + $0x5f0] sm:$0xff] %vm280_vm0, %v28372_v0  ;;  %472 = vst.msk [vmem:[#allocation2 + $0x5f8] sm:$0xff] %vm280_vm0, %v28372_v0 }
  0xd7   : > { %473 = vst.msk [vmem:[#allocation2 + $0x600] sm:$0xff] %vm280_vm0, %v28372_v0  ;;  %474 = vst.msk [vmem:[#allocation2 + $0x608] sm:$0xff] %vm280_vm0, %v28372_v0 }
  0xd8   : > { %475 = vst.msk [vmem:[#allocation2 + $0x610] sm:$0xff] %vm280_vm0, %v28372_v0  ;;  %476 = vst.msk [vmem:[#allocation2 + $0x618] sm:$0xff] %vm280_vm0, %v28372_v0 }
  0xd9   : > { %477 = vst.msk [vmem:[#allocation2 + $0x620] sm:$0xff] %vm280_vm0, %v28372_v0  ;;  %478 = vst.msk [vmem:[#allocation2 + $0x628] sm:$0xff] %vm280_vm0, %v28372_v0 }
  0xda   : > { %479 = vst.msk [vmem:[#allocation2 + $0x630] sm:$0xff] %vm280_vm0, %v28372_v0  ;;  %480 = vst.msk [vmem:[#allocation2 + $0x638] sm:$0xff] %vm280_vm0, %v28372_v0 }
  0xdb   : > { %481 = vst.msk [vmem:[#allocation2 + $0x640] sm:$0xff] %vm280_vm0, %v28372_v0  ;;  %482 = vst.msk [vmem:[#allocation2 + $0x648] sm:$0xff] %vm280_vm0, %v28372_v0 }
  0xdc   : > { %483 = vst.msk [vmem:[#allocation2 + $0x650] sm:$0xff] %vm280_vm0, %v28372_v0  ;;  %484 = vst.msk [vmem:[#allocation2 + $0x658] sm:$0xff] %vm280_vm0, %v28372_v0 }
  0xdd   : > { %614 = vst.msk [vmem:[#allocation2 + $0x38] sm:$0xff] %vm280_vm0, %v485_v3  ;;  %615 = vst.msk [vmem:[#allocation2 + $0x40] sm:$0xff] %vm280_vm0, %v486_v9  ;;  %v517_v3 = vld [vmem:[%s24225_s14 + $0x100] sm:$0xff]  ;;  %v523_v9 = vld [vmem:[%s24225_s14 + $0x130] sm:$0xff] }
  0xde   : > { %616 = vst.msk [vmem:[#allocation2 + $0x48] sm:$0xff] %vm280_vm0, %v487_v10  ;;  %617 = vst.msk [vmem:[#allocation2 + $0x50] sm:$0xff] %vm280_vm0, %v488_v11  ;;  %v524_v10 = vld [vmem:[%s24225_s14 + $0x138] sm:$0xff]  ;;  %v525_v11 = vld [vmem:[%s24225_s14 + $0x140] sm:$0xff] }
  0xdf   : > { %618 = vst.msk [vmem:[#allocation2 + $0x68] sm:$0xff] %vm280_vm0, %v489_v12  ;;  %619 = vst.msk [vmem:[#allocation2 + $0x70] sm:$0xff] %vm280_vm0, %v490_v13  ;;  %v526_v12 = vld [vmem:[%s24225_s14 + $0x148] sm:$0xff]  ;;  %v527_v13 = vld [vmem:[%s24225_s14 + $0x150] sm:$0xff] }
  0xe0   : > { %620 = vst.msk [vmem:[#allocation2 + $0x78] sm:$0xff] %vm280_vm0, %v491_v14  ;;  %621 = vst.msk [vmem:[#allocation2 + $0x80] sm:$0xff] %vm280_vm0, %v492_v15  ;;  %v528_v14 = vld [vmem:[%s24225_s14 + $0x158] sm:$0xff]  ;;  %v529_v15 = vld [vmem:[%s24225_s14 + $0x160] sm:$0xff] }
  0xe1   : > { %622 = vst.msk [vmem:[#allocation2 + $0x98] sm:$0xff] %vm280_vm0, %v493_v16  ;;  %623 = vst.msk [vmem:[#allocation2 + $0xa0] sm:$0xff] %vm280_vm0, %v494_v17 }
  0xe2   : > { %624 = vst.msk [vmem:[#allocation2 + $0xa8] sm:$0xff] %vm280_vm0, %v495_v18  ;;  %625 = vst.msk [vmem:[#allocation2 + $0xb0] sm:$0xff] %vm280_vm0, %v496_v19 }
  0xe3   : > { %626 = vst.msk [vmem:[#allocation2 + $0xc8] sm:$0xff] %vm280_vm0, %v497_v20  ;;  %627 = vst.msk [vmem:[#allocation2 + $0xd0] sm:$0xff] %vm280_vm0, %v498_v21 }
  0xe4   : > { %v4536_v25 = vld [vmem:[#allocation2 + $0x37] sm:$0xff]  ;;  %628 = vst.msk [vmem:[#allocation2 + $0xd8] sm:$0xff] %vm280_vm0, %v499_v22  ;;  %629 = vst.msk [vmem:[#allocation2 + $0xe0] sm:$0xff] %vm280_vm0, %v500_v23  ;;  %v4537_v31 = vld [vmem:[#allocation2 + $0x3f] sm:$0xff] }
  0xe5   : > { %v875_v26 = vld [vmem:[#allocation2 + $0x38] sm:$0xff]  ;;  %630 = vst.msk [vmem:[#allocation2 + $0xf8] sm:$0xff] %vm280_vm0, %v501_v24  ;;  %20491 = vmatprep.mubr.msk.f32.mxu0 %vm280_vm0, %v4536_v25  ;;  %631 = vst.msk [vmem:[#allocation2 + $0x100] sm:$0xff] %vm280_vm0, %v502_v27  ;;  %v876_v32 = vld [vmem:[#allocation2 + $0x40] sm:$0xff] }
  0xe6   : > { %19915 = vmatprep.mubr.msk.f32.mxu1 %vm280_vm0, %v875_v26  ;;  %632 = vst.msk [vmem:[#allocation2 + $0x108] sm:$0xff] %vm280_vm0, %v503_v28  ;;  %633 = vst.msk [vmem:[#allocation2 + $0x110] sm:$0xff] %vm280_vm0, %v504_v29  ;;  %20492 = vmatmul.mubr.msk.f32.vlgmr.msra.gmra.mrb[0].mxu0 %vm280_vm0, %v4537_v31  ;;  %v4538_v34 = vld [vmem:[#allocation2 + $0x47] sm:$0xff]  ;;  %v4539_v36 = vld [vmem:[#allocation2 + $0x4f] sm:$0xff] }
  0xe7   : > { %634 = vst.msk [vmem:[#allocation2 + $0x128] sm:$0xff] %vm280_vm0, %v505_v30  ;;  %19916 = vmatmul.mubr.msk.f32.gmra.mrb[4].mxu1 %vm280_vm0, %v876_v32  ;;  %v877_v35 = vld [vmem:[#allocation2 + $0x48] sm:$0xff]  ;;  %635 = vst.msk [vmem:[#allocation2 + $0x130] sm:$0xff] %vm280_vm0, %v506_v33  ;;  %20684 = vmatpush3.msk.msra.mxu0 %vm1385_vm1, %v6015_v8  ;;  %v878_v37 = vld [vmem:[#allocation2 + $0x50] sm:$0xff] }
  0xe8   : > { %20494 = vmatprep.mubr.msk.f32.mxu0 %vm280_vm0, %v4538_v34  ;;  %19918 = vmatprep.mubr.msk.f32.mxu1 %vm280_vm0, %v877_v35  ;;  %v4540_v38 = vld [vmem:[#allocation2 + $0x67] sm:$0xff]  ;;  %v4541_v40 = vld [vmem:[#allocation2 + $0x6f] sm:$0xff]  ;;  %v4542_v42 = vld [vmem:[#allocation2 + $0x77] sm:$0xff]  ;;  %636 = vst.msk [vmem:[#allocation2 + $0x138] sm:$0xff] %vm280_vm0, %v507_v52 }
  0xe9   : > { %v879_v39 = vld [vmem:[#allocation2 + $0x68] sm:$0xff]  ;;  %v880_v41 = vld [vmem:[#allocation2 + $0x70] sm:$0xff]  ;;  %v881_v43 = vld [vmem:[#allocation2 + $0x78] sm:$0xff]  ;;  %637 = vst.msk [vmem:[#allocation2 + $0x140] sm:$0xff] %vm280_vm0, %v508_v53 }
  0xea   : > { %20495 = vmatmul.mubr.msk.f32.gmra.mrb[2].mxu0 %vm280_vm0, %v4539_v36  ;;  %v4543_v44 = vld [vmem:[#allocation2 + $0x7f] sm:$0xff]  ;;  %v4544_v46 = vld [vmem:[#allocation2 + $0x97] sm:$0xff]  ;;  %v4546_v50 = vld [vmem:[#allocation2 + $0xa7] sm:$0xff]  ;;  %638 = vst.msk [vmem:[#allocation2 + $0x158] sm:$0xff] %vm280_vm0, %v509_v54 }
  0xeb   : > { %19919 = vmatmul.mubr.msk.f32.gmra.mrb[6].mxu1 %vm280_vm0, %v878_v37  ;;  %20497 = vmatprep.mubr.msk.f32.mxu0 %vm280_vm0, %v4540_v38  ;;  %v882_v45 = vld [vmem:[#allocation2 + $0x80] sm:$0xff]  ;;  %v883_v47 = vld [vmem:[#allocation2 + $0x98] sm:$0xff]  ;;  %v885_v51 = vld [vmem:[#allocation2 + $0xa8] sm:$0xff]  ;;  %639 = vst.msk [vmem:[#allocation2 + $0x160] sm:$0xff] %vm280_vm0, %v510_v55 }
  0xec   : > { %19921 = vmatprep.mubr.msk.f32.mxu1 %vm280_vm0, %v879_v39  ;;  %v4545_v48 = vld [vmem:[#allocation2 + $0x9f] sm:$0xff]  ;;  %v4547_v57 = vld [vmem:[#allocation2 + $0xaf] sm:$0xff]  ;;  %640 = vst.msk [vmem:[#allocation2 + $0x168] sm:$0xff] %vm280_vm0, %v511_v56  ;;  %v4548_v62 = vld [vmem:[#allocation2 + $0xc7] sm:$0xff] }
  0xed   : > { %v884_v49 = vld [vmem:[#allocation2 + $0xa0] sm:$0xff]  ;;  %v886_v58 = vld [vmem:[#allocation2 + $0xb0] sm:$0xff]  ;;  %v24314_v63 = vld [vmem:[#allocation2 + $0xc8] sm:$0xff]  ;;  %641 = vst.msk [vmem:[#allocation2 + $0x170] sm:$0xff] %vm280_vm0, %v512_v59 }
  0xee   : > { %20498 = vmatmul.mubr.msk.f32.gmra.mrb[4].mxu0 %vm280_vm0, %v4541_v40  ;;  %642 = vst.msk [vmem:[#allocation2 + $0x188] sm:$0xff] %vm280_vm0, %v513_v60  ;;  %643 = vst.msk [vmem:[#allocation2 + $0x190] sm:$0xff] %vm280_vm0, %v514_v61  ;;  %v522_v8 = vld [vmem:[%s24225_s14 + $0x128] sm:$0xff]  ;;  %v24353_v17 = vld [vmem:[#allocation2 + $0xd0] sm:$0xff] }
  0xef   : > { %19922 = vmatmul.mubr.msk.f32.gmra.mrb[8].mxu1 %vm280_vm0, %v880_v41  ;;  %20500 = vmatprep.mubr.msk.f32.mxu0 %vm280_vm0, %v4542_v42  ;;  %644 = vst.msk [vmem:[#allocation2 + $0x198] sm:$0xff] %vm280_vm0, %v515_v1  ;;  %645 = vst.msk [vmem:[#allocation2 + $0x1a0] sm:$0xff] %vm280_vm0, %v516_v2  ;;  %v4549_v16 = vld [vmem:[#allocation2 + $0xcf] sm:$0xff]  ;;  %v4550_v18 = vld [vmem:[#allocation2 + $0xd7] sm:$0xff] }
  0xf0   : > { %19924 = vmatprep.mubr.msk.f32.mxu1 %vm280_vm0, %v881_v43  ;;  %646 = vst.msk [vmem:[#allocation2 + $0x1b8] sm:$0xff] %vm280_vm0, %v517_v3  ;;  %647 = vst.msk [vmem:[#allocation2 + $0x1c0] sm:$0xff] %vm280_vm0, %v518_v4  ;;  %v24358_v19 = vld [vmem:[#allocation2 + $0xd8] sm:$0xff]  ;;  %v24366_v21 = vld [vmem:[#allocation2 + $0xe0] sm:$0xff] }
  0xf1   : > { %648 = vst.msk [vmem:[#allocation2 + $0x1c8] sm:$0xff] %vm280_vm0, %v519_v5  ;;  %649 = vst.msk [vmem:[#allocation2 + $0x1d0] sm:$0xff] %vm280_vm0, %v520_v6  ;;  %v4551_v20 = vld [vmem:[#allocation2 + $0xdf] sm:$0xff]  ;;  %v4552_v22 = vld [vmem:[#allocation2 + $0xf7] sm:$0xff] }
  0xf2   : > { %20501 = vmatmul.mubr.msk.f32.gmra.mrb[6].mxu0 %vm280_vm0, %v4543_v44  ;;  %650 = vst.msk [vmem:[#allocation2 + $0x1e8] sm:$0xff] %vm280_vm0, %v521_v7  ;;  %651 = vst.msk [vmem:[#allocation2 + $0x1f0] sm:$0xff] %vm280_vm0, %v522_v8  ;;  %v24368_v23 = vld [vmem:[#allocation2 + $0xf8] sm:$0xff]  ;;  %v24376_v25 = vld [vmem:[#allocation2 + $0x100] sm:$0xff] }
  0xf3   : > { %19925 = vmatmul.mubr.msk.f32.gmra.mrb[10].mxu1 %vm280_vm0, %v882_v45  ;;  %20503 = vmatprep.mubr.msk.f32.mxu0 %vm280_vm0, %v4544_v46  ;;  %652 = vst.msk [vmem:[#allocation2 + $0x1f8] sm:$0xff] %vm280_vm0, %v523_v9  ;;  %653 = vst.msk [vmem:[#allocation2 + $0x200] sm:$0xff] %vm280_vm0, %v524_v10  ;;  %v4553_v24 = vld [vmem:[#allocation2 + $0xff] sm:$0xff]  ;;  %v4554_v26 = vld [vmem:[#allocation2 + $0x107] sm:$0xff] }
  0xf4   : > { %19927 = vmatprep.mubr.msk.f32.mxu1 %vm280_vm0, %v883_v47  ;;  %654 = vst.msk [vmem:[#allocation2 + $0x218] sm:$0xff] %vm280_vm0, %v525_v11  ;;  %655 = vst.msk [vmem:[#allocation2 + $0x220] sm:$0xff] %vm280_vm0, %v526_v12  ;;  %v24378_v27 = vld [vmem:[#allocation2 + $0x108] sm:$0xff]  ;;  %v24386_v29 = vld [vmem:[#allocation2 + $0x110] sm:$0xff] }
  0xf5   : > { %656 = vst.msk [vmem:[#allocation2 + $0x228] sm:$0xff] %vm280_vm0, %v527_v13  ;;  %657 = vst.msk [vmem:[#allocation2 + $0x230] sm:$0xff] %vm280_vm0, %v528_v14  ;;  %v4555_v28 = vld [vmem:[#allocation2 + $0x10f] sm:$0xff]  ;;  %v4556_v30 = vld [vmem:[#allocation2 + $0x127] sm:$0xff] }
  0xf6   : > { %20504 = vmatmul.mubr.msk.f32.gmra.mrb[8].mxu0 %vm280_vm0, %v4545_v48  ;;  %658 = vst.msk [vmem:[#allocation2 + $0x248] sm:$0xff] %vm280_vm0, %v529_v15  ;;  %v24388_v31 = vld [vmem:[#allocation2 + $0x128] sm:$0xff]  ;;  %v24390_v33 = vld [vmem:[#allocation2 + $0x130] sm:$0xff]  ;;  %v24395_v35 = vld [vmem:[#allocation2 + $0x138] sm:$0xff] }
  0xf7   : > { %19928 = vmatmul.mubr.msk.f32.gmra.mrb[12].mxu1 %vm280_vm0, %v884_v49  ;;  %20506 = vmatprep.mubr.msk.f32.mxu0 %vm280_vm0, %v4546_v50  ;;  %v4557_v32 = vld [vmem:[#allocation2 + $0x12f] sm:$0xff]  ;;  %v4558_v34 = vld [vmem:[#allocation2 + $0x137] sm:$0xff]  ;;  %v533_v39 = vld [vmem:[%s24225_s14 + $0x180] sm:$0xff] }
  0xf8   : > { %19930 = vmatprep.mubr.msk.f32.mxu1 %vm280_vm0, %v885_v51  ;;  %v530_v36 = vld [vmem:[%s24225_s14 + $0x168] sm:$0xff]  ;;  %v531_v37 = vld [vmem:[%s24225_s14 + $0x170] sm:$0xff]  ;;  %v532_v38 = vld [vmem:[%s24225_s14 + $0x178] sm:$0xff]  ;;  %662 = vst.msk [vmem:[#allocation2 + $0x278] sm:$0xff] %vm280_vm0, %v533_v39 }
  0xf9   : > { %659 = vst.msk [vmem:[#allocation2 + $0x250] sm:$0xff] %vm280_vm0, %v530_v36  ;;  %660 = vst.msk [vmem:[#allocation2 + $0x258] sm:$0xff] %vm280_vm0, %v531_v37  ;;  %v534_v40 = vld [vmem:[%s24225_s14 + $0x188] sm:$0xff]  ;;  %v535_v41 = vld [vmem:[%s24225_s14 + $0x190] sm:$0xff] }
  0xfa   : > { %20507 = vmatmul.mubr.msk.f32.gmra.mrb[10].mxu0 %vm280_vm0, %v4547_v57  ;;  %661 = vst.msk [vmem:[#allocation2 + $0x260] sm:$0xff] %vm280_vm0, %v532_v38  ;;  %663 = vst.msk [vmem:[#allocation2 + $0x280] sm:$0xff] %vm280_vm0, %v534_v40  ;;  %v536_v42 = vld [vmem:[%s24225_s14 + $0x198] sm:$0xff]  ;;  %v537_v43 = vld [vmem:[%s24225_s14 + $0x1a0] sm:$0xff] }
  0xfb   : > { %19931 = vmatmul.mubr.msk.f32.gmra.mrb[14].mxu1 %vm280_vm0, %v886_v58  ;;  %20509 = vmatprep.mubr.msk.f32.mxu0 %vm280_vm0, %v4548_v62  ;;  %v4559_v44 = vld [vmem:[#allocation2 + $0x13f] sm:$0xff]  ;;  %664 = vst.msk [vmem:[#allocation2 + $0x288] sm:$0xff] %vm280_vm0, %v535_v41  ;;  %665 = vst.msk [vmem:[#allocation2 + $0x290] sm:$0xff] %vm280_vm0, %v536_v42  ;;  %v538_v46 = vld [vmem:[%s24225_s14 + $0x1a8] sm:$0xff] }
  0xfc   : > { %19933 = vmatprep.mubr.msk.f32.mxu1 %vm280_vm0, %v24314_v63  ;;  %v24413_v45 = vld [vmem:[#allocation2 + $0x140] sm:$0xff]  ;;  %666 = vst.msk [vmem:[#allocation2 + $0x2a8] sm:$0xff] %vm280_vm0, %v537_v43  ;;  %v539_v47 = vld [vmem:[%s24225_s14 + $0x1b0] sm:$0xff]  ;;  %v540_v48 = vld [vmem:[%s24225_s14 + $0x1b8] sm:$0xff] }
  0xfd   : > { %v4560_v49 = vld [vmem:[#allocation2 + $0x157] sm:$0xff]  ;;  %667 = vst.msk [vmem:[#allocation2 + $0x2b0] sm:$0xff] %vm280_vm0, %v538_v46  ;;  %668 = vst.msk [vmem:[#allocation2 + $0x2b8] sm:$0xff] %vm280_vm0, %v539_v47  ;;  %v541_v51 = vld [vmem:[%s24225_s14 + $0x1c0] sm:$0xff] }
  0xfe   : > { %20510 = vmatmul.mubr.msk.f32.gmra.mrb[12].mxu0 %vm280_vm0, %v4549_v16  ;;  %v24424_v50 = vld [vmem:[#allocation2 + $0x158] sm:$0xff]  ;;  %669 = vst.msk [vmem:[#allocation2 + $0x2c0] sm:$0xff] %vm280_vm0, %v540_v48  ;;  %v542_v52 = vld [vmem:[%s24225_s14 + $0x1c8] sm:$0xff]  ;;  %v543_v53 = vld [vmem:[%s24225_s14 + $0x1d0] sm:$0xff] }
  0xff   : > { %19934 = vmatmul.mubr.msk.f32.gmra.mrb[16].mxu1 %vm280_vm0, %v24353_v17  ;;  %20512 = vmatprep.mubr.msk.f32.mxu0 %vm280_vm0, %v4550_v18  ;;  %670 = vst.msk [vmem:[#allocation2 + $0x2d8] sm:$0xff] %vm280_vm0, %v541_v51  ;;  %671 = vst.msk [vmem:[#allocation2 + $0x2e0] sm:$0xff] %vm280_vm0, %v542_v52  ;;  %v544_v54 = vld [vmem:[%s24225_s14 + $0x1d8] sm:$0xff]  ;;  %v545_v55 = vld [vmem:[%s24225_s14 + $0x1e0] sm:$0xff] }
 0x100   : > { %19936 = vmatprep.mubr.msk.f32.mxu1 %vm280_vm0, %v24358_v19  ;;  %672 = vst.msk [vmem:[#allocation2 + $0x2e8] sm:$0xff] %vm280_vm0, %v543_v53  ;;  %v546_v56 = vld [vmem:[%s24225_s14 + $0x1e8] sm:$0xff]  ;;  %673 = vst.msk [vmem:[#allocation2 + $0x2f0] sm:$0xff] %vm280_vm0, %v544_v54  ;;  %v547_v57 = vld [vmem:[%s24225_s14 + $0x1f0] sm:$0xff] }
 0x101   : > { %674 = vst.msk [vmem:[#allocation2 + $0x308] sm:$0xff] %vm280_vm0, %v545_v55  ;;  %675 = vst.msk [vmem:[#allocation2 + $0x310] sm:$0xff] %vm280_vm0, %v546_v56  ;;  %v548_v58 = vld [vmem:[%s24225_s14 + $0x1f8] sm:$0xff]  ;;  %v549_v59 = vld [vmem:[%s24225_s14 + $0x200] sm:$0xff] }
 0x102   : > { %20513 = vmatmul.mubr.msk.f32.gmra.mrb[14].mxu0 %vm280_vm0, %v4551_v20  ;;  %676 = vst.msk [vmem:[#allocation2 + $0x318] sm:$0xff] %vm280_vm0, %v547_v57  ;;  %677 = vst.msk [vmem:[#allocation2 + $0x320] sm:$0xff] %vm280_vm0, %v548_v58  ;;  %v550_v60 = vld [vmem:[%s24225_s14 + $0x208] sm:$0xff]  ;;  %v551_v61 = vld [vmem:[%s24225_s14 + $0x210] sm:$0xff] }
 0x103   : > { %19937 = vmatmul.mubr.msk.f32.gmra.mrb[18].mxu1 %vm280_vm0, %v24366_v21  ;;  %20515 = vmatprep.mubr.msk.f32.mxu0 %vm280_vm0, %v4552_v22  ;;  %678 = vst.msk [vmem:[#allocation2 + $0x338] sm:$0xff] %vm280_vm0, %v549_v59  ;;  %v552_v62 = vld [vmem:[%s24225_s14 + $0x218] sm:$0xff]  ;;  %679 = vst.msk [vmem:[#allocation2 + $0x340] sm:$0xff] %vm280_vm0, %v550_v60  ;;  %v24462_v2 = vld [vmem:[#allocation2 + $0x160] sm:$0xff] }
 0x104   : > { %19939 = vmatprep.mubr.msk.f32.mxu1 %vm280_vm0, %v24368_v23  ;;  %680 = vst.msk [vmem:[#allocation2 + $0x348] sm:$0xff] %vm280_vm0, %v551_v61  ;;  %681 = vst.msk [vmem:[#allocation2 + $0x350] sm:$0xff] %vm280_vm0, %v552_v62  ;;  %v4561_v1 = vld [vmem:[#allocation2 + $0x15f] sm:$0xff]  ;;  %v4562_v3 = vld [vmem:[#allocation2 + $0x167] sm:$0xff] }
 0x105   : > { %v24464_v4 = vld [vmem:[#allocation2 + $0x168] sm:$0xff]  ;;  %v24472_v6 = vld [vmem:[#allocation2 + $0x170] sm:$0xff]  ;;  %v24484_v12 = vld [vmem:[#allocation2 + $0x198] sm:$0xff] }
 0x106   : > { %20516 = vmatmul.mubr.msk.f32.gmra.mrb[16].mxu0 %vm280_vm0, %v4553_v24  ;;  %v4563_v5 = vld [vmem:[#allocation2 + $0x16f] sm:$0xff]  ;;  %v4564_v7 = vld [vmem:[#allocation2 + $0x187] sm:$0xff]  ;;  %v4566_v11 = vld [vmem:[#allocation2 + $0x197] sm:$0xff] }
 0x107   : > { %19940 = vmatmul.mubr.msk.f32.gmra.mrb[20].mxu1 %vm280_vm0, %v24376_v25  ;;  %20518 = vmatprep.mubr.msk.f32.mxu0 %vm280_vm0, %v4554_v26  ;;  %v24474_v8 = vld [vmem:[#allocation2 + $0x188] sm:$0xff]  ;;  %v24482_v10 = vld [vmem:[#allocation2 + $0x190] sm:$0xff]  ;;  %v4567_v13 = vld [vmem:[#allocation2 + $0x19f] sm:$0xff] }
 0x108   : > { %19942 = vmatprep.mubr.msk.f32.mxu1 %vm280_vm0, %v24378_v27  ;;  %v4565_v9 = vld [vmem:[#allocation2 + $0x18f] sm:$0xff]  ;;  %v24492_v14 = vld [vmem:[#allocation2 + $0x1a0] sm:$0xff]  ;;  %v4568_v15 = vld [vmem:[#allocation2 + $0x1b7] sm:$0xff] }
 0x109   : > { %v24494_v16 = vld [vmem:[#allocation2 + $0x1b8] sm:$0xff]  ;;  %v24496_v20 = vld [vmem:[#allocation2 + $0x1c0] sm:$0xff]  ;;  %v554_v24 = vld [vmem:[%s24225_s14 + $0x228] sm:$0xff] }
 0x10a   : > { %20519 = vmatmul.mubr.msk.f32.gmra.mrb[18].mxu0 %vm280_vm0, %v4555_v28  ;;  %v4569_v18 = vld [vmem:[#allocation2 + $0x1bf] sm:$0xff]  ;;  %v4570_v26 = vld [vmem:[#allocation2 + $0x1c7] sm:$0xff]  ;;  %683 = vst.msk [vmem:[#allocation2 + $0x370] sm:$0xff] %vm280_vm0, %v554_v24  ;;  %v559_v37 = vld [vmem:[%s24225_s14 + $0x250] sm:$0xff] }
 0x10b   : > { %19943 = vmatmul.mubr.msk.f32.gmra.mrb[22].mxu1 %vm280_vm0, %v24386_v29  ;;  %20521 = vmatprep.mubr.msk.f32.mxu0 %vm280_vm0, %v4556_v30  ;;  %v553_v22 = vld [vmem:[%s24225_s14 + $0x220] sm:$0xff]  ;;  %v24503_v28 = vld [vmem:[#allocation2 + $0x1c8] sm:$0xff]  ;;  %v555_v30 = vld [vmem:[%s24225_s14 + $0x230] sm:$0xff]  ;;  %688 = vst.msk [vmem:[#allocation2 + $0x3a8] sm:$0xff] %vm280_vm0, %v559_v37 }
 0x10c   : > { %19945 = vmatprep.mubr.msk.f32.mxu1 %vm280_vm0, %v24388_v31  ;;  %682 = vst.msk [vmem:[#allocation2 + $0x368] sm:$0xff] %vm280_vm0, %v553_v22  ;;  %684 = vst.msk [vmem:[#allocation2 + $0x378] sm:$0xff] %vm280_vm0, %v555_v30  ;;  %v558_v36 = vld [vmem:[%s24225_s14 + $0x248] sm:$0xff]  ;;  %v560_v38 = vld [vmem:[%s24225_s14 + $0x258] sm:$0xff] }
 0x10d   : > { %687 = vst.msk [vmem:[#allocation2 + $0x3a0] sm:$0xff] %vm280_vm0, %v558_v36  ;;  %689 = vst.msk [vmem:[#allocation2 + $0x3b0] sm:$0xff] %vm280_vm0, %v560_v38  ;;  %v561_v39 = vld [vmem:[%s24225_s14 + $0x260] sm:$0xff]  ;;  %v562_v40 = vld [vmem:[%s24225_s14 + $0x268] sm:$0xff] }
 0x10e   : > { %20522 = vmatmul.mubr.msk.f32.gmra.mrb[20].mxu0 %vm280_vm0, %v4557_v32  ;;  %v556_v32 = vld [vmem:[%s24225_s14 + $0x238] sm:$0xff]  ;;  %v563_v41 = vld [vmem:[%s24225_s14 + $0x270] sm:$0xff]  ;;  %690 = vst.msk [vmem:[#allocation2 + $0x3c8] sm:$0xff] %vm280_vm0, %v561_v39  ;;  %691 = vst.msk [vmem:[#allocation2 + $0x3d0] sm:$0xff] %vm280_vm0, %v562_v40 }
 0x10f   : > { %19946 = vmatmul.mubr.msk.f32.gmra.mrb[24].mxu1 %vm280_vm0, %v24390_v33  ;;  %20524 = vmatprep.mubr.msk.f32.mxu0 %vm280_vm0, %v4558_v34  ;;  %v557_v34 = vld [vmem:[%s24225_s14 + $0x240] sm:$0xff]  ;;  %685 = vst.msk [vmem:[#allocation2 + $0x380] sm:$0xff] %vm280_vm0, %v556_v32  ;;  %v4571_v42 = vld [vmem:[#allocation2 + $0x1cf] sm:$0xff]  ;;  %692 = vst.msk [vmem:[#allocation2 + $0x3d8] sm:$0xff] %vm280_vm0, %v563_v41 }
 0x110   : > { %19948 = vmatprep.mubr.msk.f32.mxu1 %vm280_vm0, %v24395_v35  ;;  %686 = vst.msk [vmem:[#allocation2 + $0x398] sm:$0xff] %vm280_vm0, %v557_v34  ;;  %v24525_v43 = vld [vmem:[#allocation2 + $0x1d0] sm:$0xff]  ;;  %v565_v47 = vld [vmem:[%s24225_s14 + $0x280] sm:$0xff]  ;;  %v566_v51 = vld [vmem:[%s24225_s14 + $0x288] sm:$0xff] }
 0x111   : > { %v24531_v46 = vld [vmem:[#allocation6 + $0x14] sm:$0x7]  ;;  %v4572_v48 = vld [vmem:[#allocation2 + $0x1e7] sm:$0xff]  ;;  %694 = vst.msk [vmem:[#allocation2 + $0x3f8] sm:$0xff] %vm280_vm0, %v565_v47  ;;  %v568_v53 = vld [vmem:[%s24225_s14 + $0x298] sm:$0xff] }
 0x112   : > { %20525 = vmatmul.mubr.msk.f32.gmra.mrb[22].mxu0 %vm280_vm0, %v4559_v44  ;;  %v564_v44 = vld [vmem:[%s24225_s14 + $0x278] sm:$0xff]  ;;  %v567_v52 = vld [vmem:[%s24225_s14 + $0x290] sm:$0xff]  ;;  %695 = vst.msk [vmem:[#allocation2 + $0x400] sm:$0xff] %vm280_vm0, %v566_v51  ;;  %697 = vst.msk [vmem:[#allocation2 + $0x410] sm:$0xff] %vm280_vm0, %v568_v53  ;;  %20877 = vmatprep.subr.msk.mxu0 %vm1385_vm1, %v24531_v46 }
 0x113   : > { %19949 = vmatmul.mubr.msk.f32.gmra.mrb[26].mxu1 %vm280_vm0, %v24413_v45  ;;  %20527 = vmatprep.mubr.msk.f32.mxu0 %vm280_vm0, %v4560_v49  ;;  %v24537_v49 = vld [vmem:[#allocation2 + $0x1e8] sm:$0xff]  ;;  %693 = vst.msk [vmem:[#allocation2 + $0x3e0] sm:$0xff] %vm280_vm0, %v564_v44  ;;  %696 = vst.msk [vmem:[#allocation2 + $0x408] sm:$0xff] %vm280_vm0, %v567_v52  ;;  %v569_v54 = vld [vmem:[%s24225_s14 + $0x2a0] sm:$0xff] }
 0x114   : > { %19951 = vmatprep.mubr.msk.f32.mxu1 %vm280_vm0, %v24424_v50  ;;  %v570_v55 = vld [vmem:[%s24225_s14 + $0x2a8] sm:$0xff]  ;;  %v571_v56 = vld [vmem:[%s24225_s14 + $0x2b0] sm:$0xff]  ;;  %698 = vst.msk [vmem:[#allocation2 + $0x428] sm:$0xff] %vm280_vm0, %v569_v54  ;;  %v572_v57 = vld [vmem:[%s24225_s14 + $0x2b8] sm:$0xff] }
 0x115   : > { %699 = vst.msk [vmem:[#allocation2 + $0x430] sm:$0xff] %vm280_vm0, %v570_v55  ;;  %700 = vst.msk [vmem:[#allocation2 + $0x438] sm:$0xff] %vm280_vm0, %v571_v56  ;;  %v573_v58 = vld [vmem:[%s24225_s14 + $0x2c0] sm:$0xff]  ;;  %v574_v59 = vld [vmem:[%s24225_s14 + $0x2c8] sm:$0xff] }
 0x116   : > { %20528 = vmatmul.mubr.msk.f32.gmra.mrb[24].mxu0 %vm280_vm0, %v4561_v1  ;;  %701 = vst.msk [vmem:[#allocation2 + $0x440] sm:$0xff] %vm280_vm0, %v572_v57  ;;  %702 = vst.msk [vmem:[#allocation2 + $0x458] sm:$0xff] %vm280_vm0, %v573_v58  ;;  %v4573_v60 = vld [vmem:[#allocation2 + $0x1ef] sm:$0xff]  ;;  %v4574_v62 = vld [vmem:[#allocation2 + $0x1f7] sm:$0xff] }
 0x117   : > { %19952 = vmatmul.mubr.msk.f32.gmra.mrb[28].mxu1 %vm280_vm0, %v24462_v2  ;;  %20530 = vmatprep.mubr.msk.f32.mxu0 %vm280_vm0, %v4562_v3  ;;  %703 = vst.msk [vmem:[#allocation2 + $0x460] sm:$0xff] %vm280_vm0, %v574_v59  ;;  %v24570_v61 = vld [vmem:[#allocation2 + $0x1f0] sm:$0xff]  ;;  %v24572_v1 = vld [vmem:[#allocation2 + $0x1f8] sm:$0xff]  ;;  %v577_v32 = vld [vmem:[%s24225_s14 + $0x2e0] sm:$0xff] }
 0x118   : > { %19954 = vmatprep.mubr.msk.f32.mxu1 %vm280_vm0, %v24464_v4  ;;  %v4575_v3 = vld [vmem:[#allocation2 + $0x1ff] sm:$0xff]  ;;  %v575_v22 = vld [vmem:[%s24225_s14 + $0x2d0] sm:$0xff]  ;;  %v578_v34 = vld [vmem:[%s24225_s14 + $0x2e8] sm:$0xff]  ;;  %706 = vst.msk [vmem:[#allocation2 + $0x488] sm:$0xff] %vm280_vm0, %v577_v32 }
 0x119   : > { %v576_v24 = vld [vmem:[%s24225_s14 + $0x2d8] sm:$0xff]  ;;  %v24596_v30 = vld [vmem:[#allocation2 + $0x230] sm:$0xff]  ;;  %704 = vst.msk [vmem:[#allocation2 + $0x468] sm:$0xff] %vm280_vm0, %v575_v22  ;;  %v4580_v37 = vld [vmem:[#allocation2 + $0x247] sm:$0xff] }
 0x11a   : > { %20531 = vmatmul.mubr.msk.f32.gmra.mrb[26].mxu0 %vm280_vm0, %v4563_v5  ;;  %v24580_v5 = vld [vmem:[#allocation2 + $0x200] sm:$0xff]  ;;  %705 = vst.msk [vmem:[#allocation2 + $0x470] sm:$0xff] %vm280_vm0, %v576_v24  ;;  %v579_v36 = vld [vmem:[%s24225_s14 + $0x2f0] sm:$0xff]  ;;  %v24606_v38 = vld [vmem:[#allocation2 + $0x248] sm:$0xff] }
 0x11b   : > { %19955 = vmatmul.mubr.msk.f32.gmra.mrb[30].mxu1 %vm280_vm0, %v24472_v6  ;;  %20533 = vmatprep.mubr.msk.f32.mxu0 %vm280_vm0, %v4564_v7  ;;  %v4576_v7 = vld [vmem:[#allocation2 + $0x217] sm:$0xff]  ;;  %707 = vst.msk [vmem:[#allocation2 + $0x490] sm:$0xff] %vm280_vm0, %v578_v34  ;;  %708 = vst.msk [vmem:[#allocation2 + $0x498] sm:$0xff] %vm280_vm0, %v579_v36  ;;  %v581_v40 = vld [vmem:[%s24225_s14 + $0x300] sm:$0xff] }
 0x11c   : > { %19957 = vmatprep.mubr.msk.f32.mxu1 %vm280_vm0, %v24474_v8  ;;  %v580_v39 = vld [vmem:[%s24225_s14 + $0x2f8] sm:$0xff]  ;;  %v582_v41 = vld [vmem:[%s24225_s14 + $0x308] sm:$0xff]  ;;  %710 = vst.msk [vmem:[#allocation2 + $0x4b8] sm:$0xff] %vm280_vm0, %v581_v40  ;;  %v585_v47 = vld [vmem:[%s24225_s14 + $0x320] sm:$0xff] }
 0x11d   : > { %709 = vst.msk [vmem:[#allocation2 + $0x4a0] sm:$0xff] %vm280_vm0, %v580_v39  ;;  %711 = vst.msk [vmem:[#allocation2 + $0x4c0] sm:$0xff] %vm280_vm0, %v582_v41  ;;  %v584_v44 = vld [vmem:[%s24225_s14 + $0x318] sm:$0xff]  ;;  %v587_v51 = vld [vmem:[%s24225_s14 + $0x330] sm:$0xff] }
 0x11e   : > { %20534 = vmatmul.mubr.msk.f32.gmra.mrb[28].mxu0 %vm280_vm0, %v4565_v9  ;;  %v24582_v9 = vld [vmem:[#allocation2 + $0x218] sm:$0xff]  ;;  %713 = vst.msk [vmem:[#allocation2 + $0x4d0] sm:$0xff] %vm280_vm0, %v584_v44  ;;  %714 = vst.msk [vmem:[#allocation2 + $0x4e8] sm:$0xff] %vm280_vm0, %v585_v47  ;;  %v4581_v53 = vld [vmem:[#allocation2 + $0x24f] sm:$0xff] }
 0x11f   : > { %19958 = vmatmul.mubr.msk.f32.gmra.mrb[32].mxu1 %vm280_vm0, %v24482_v10  ;;  %20536 = vmatprep.mubr.msk.f32.mxu0 %vm280_vm0, %v4566_v11  ;;  %v4577_v11 = vld [vmem:[#allocation2 + $0x21f] sm:$0xff]  ;;  %716 = vst.msk [vmem:[#allocation2 + $0x4f8] sm:$0xff] %vm280_vm0, %v587_v51  ;;  %v590_v55 = vld [vmem:[%s24225_s14 + $0x348] sm:$0xff]  ;;  %v591_v56 = vld [vmem:[%s24225_s14 + $0x350] sm:$0xff] }
 0x120   : > { %19960 = vmatprep.mubr.msk.f32.mxu1 %vm280_vm0, %v24484_v12  ;;  %v588_v52 = vld [vmem:[%s24225_s14 + $0x338] sm:$0xff]  ;;  %v589_v54 = vld [vmem:[%s24225_s14 + $0x340] sm:$0xff]  ;;  %719 = vst.msk [vmem:[#allocation2 + $0x520] sm:$0xff] %vm280_vm0, %v590_v55  ;;  %720 = vst.msk [vmem:[#allocation2 + $0x528] sm:$0xff] %vm280_vm0, %v591_v56 }
 0x121   : > { %717 = vst.msk [vmem:[#allocation2 + $0x500] sm:$0xff] %vm280_vm0, %v588_v52  ;;  %718 = vst.msk [vmem:[#allocation2 + $0x518] sm:$0xff] %vm280_vm0, %v589_v54  ;;  %v592_v57 = vld [vmem:[%s24225_s14 + $0x358] sm:$0xff]  ;;  %v593_v58 = vld [vmem:[%s24225_s14 + $0x360] sm:$0xff] }
 0x122   : > { %20537 = vmatmul.mubr.msk.f32.gmra.mrb[30].mxu0 %vm280_vm0, %v4567_v13  ;;  %v24590_v13 = vld [vmem:[#allocation2 + $0x220] sm:$0xff]  ;;  %v594_v59 = vld [vmem:[%s24225_s14 + $0x368] sm:$0xff]  ;;  %721 = vst.msk [vmem:[#allocation2 + $0x530] sm:$0xff] %vm280_vm0, %v592_v57  ;;  %722 = vst.msk [vmem:[#allocation2 + $0x548] sm:$0xff] %vm280_vm0, %v593_v58 }
 0x123   : > { %19961 = vmatmul.mubr.msk.f32.gmra.mrb[34].mxu1 %vm280_vm0, %v24492_v14  ;;  %20539 = vmatprep.mubr.msk.f32.mxu0 %vm280_vm0, %v4568_v15  ;;  %v4578_v15 = vld [vmem:[#allocation2 + $0x227] sm:$0xff]  ;;  %723 = vst.msk [vmem:[#allocation2 + $0x550] sm:$0xff] %vm280_vm0, %v594_v59  ;;  %v4584_v24 = vld [vmem:[#allocation2 + $0x277] sm:$0xff]  ;;  %v4585_v32 = vld [vmem:[#allocation2 + $0x27f] sm:$0xff] }
 0x124   : > { %19963 = vmatprep.mubr.msk.f32.mxu1 %vm280_vm0, %v24494_v16  ;;  %v24664_v22 = vld [vmem:[#allocation2 + $0x260] sm:$0xff]  ;;  %v598_v40 = vld [vmem:[%s24225_s14 + $0x388] sm:$0xff]  ;;  %v599_v41 = vld [vmem:[%s24225_s14 + $0x390] sm:$0xff] }
 0x125   : > { %v24671_v34 = vld [vmem:[#allocation2 + $0x280] sm:$0xff]  ;;  %727 = vst.msk [vmem:[#allocation2 + $0x580] sm:$0xff] %vm280_vm0, %v598_v40  ;;  %728 = vst.msk [vmem:[#allocation2 + $0x588] sm:$0xff] %vm280_vm0, %v599_v41  ;;  %v602_v47 = vld [vmem:[%s24225_s14 + $0x3a8] sm:$0xff] }
 0x126   : > { %20540 = vmatmul.mubr.msk.f32.gmra.mrb[32].mxu0 %vm280_vm0, %v4569_v18  ;;  %v24592_v18 = vld [vmem:[#allocation2 + $0x228] sm:$0xff]  ;;  %v597_v39 = vld [vmem:[%s24225_s14 + $0x380] sm:$0xff]  ;;  %v24695_v51 = vld [vmem:[#allocation2 + $0x290] sm:$0xff]  ;;  %731 = vst.msk [vmem:[#allocation2 + $0x5b0] sm:$0xff] %vm280_vm0, %v602_v47 }
 0x127   : > { %19964 = vmatmul.mubr.msk.f32.gmra.mrb[36].mxu1 %vm280_vm0, %v24496_v20  ;;  %20542 = vmatprep.mubr.msk.f32.mxu0 %vm280_vm0, %v4570_v26  ;;  %v4579_v26 = vld [vmem:[#allocation2 + $0x22f] sm:$0xff]  ;;  %v4586_v36 = vld [vmem:[#allocation2 + $0x287] sm:$0xff]  ;;  %726 = vst.msk [vmem:[#allocation2 + $0x578] sm:$0xff] %vm280_vm0, %v597_v39  ;;  %v604_v55 = vld [vmem:[%s24225_s14 + $0x3b8] sm:$0xff] }
 0x128   : > { %19966 = vmatprep.mubr.msk.f32.mxu1 %vm280_vm0, %v24503_v28  ;;  %v601_v44 = vld [vmem:[%s24225_s14 + $0x3a0] sm:$0xff]  ;;  %v603_v54 = vld [vmem:[%s24225_s14 + $0x3b0] sm:$0xff]  ;;  %733 = vst.msk [vmem:[#allocation2 + $0x5c0] sm:$0xff] %vm280_vm0, %v604_v55  ;;  %v24712_v59 = vld [vmem:[#allocation2 + $0x2b8] sm:$0xff] }
 0x129   : > { %730 = vst.msk [vmem:[#allocation2 + $0x5a8] sm:$0xff] %vm280_vm0, %v601_v44  ;;  %v4588_v52 = vld [vmem:[#allocation2 + $0x2a7] sm:$0xff]  ;;  %732 = vst.msk [vmem:[#allocation2 + $0x5b8] sm:$0xff] %vm280_vm0, %v603_v54  ;;  %v4589_v56 = vld [vmem:[#allocation2 + $0x2af] sm:$0xff] }
 0x12a   : > { %20543 = vmatmul.mubr.msk.f32.gmra.mrb[34].mxu0 %vm280_vm0, %v4571_v42  ;;  %v583_v42 = vld [vmem:[%s24225_s14 + $0x310] sm:$0xff]  ;;  %v608_v39 = vld [vmem:[%s24225_s14 + $0x3d8] sm:$0xff]  ;;  %v24737_v41 = vld [vmem:[#allocation2 + $0x2e0] sm:$0xff] }
 0x12b   : > { %19967 = vmatmul.mubr.msk.f32.gmra.mrb[38].mxu1 %vm280_vm0, %v24525_v43  ;;  %20545 = vmatprep.mubr.msk.f32.mxu0 %vm280_vm0, %v4572_v48  ;;  %712 = vst.msk [vmem:[#allocation2 + $0x4c8] sm:$0xff] %vm280_vm0, %v583_v42  ;;  %v586_v48 = vld [vmem:[%s24225_s14 + $0x328] sm:$0xff]  ;;  %v600_v42 = vld [vmem:[%s24225_s14 + $0x398] sm:$0xff]  ;;  %v24709_v57 = vld [vmem:[#allocation2 + $0x2b0] sm:$0xff] }
 0x12c   : > { %19969 = vmatprep.mubr.msk.f32.mxu1 %vm280_vm0, %v24537_v49  ;;  %715 = vst.msk [vmem:[#allocation2 + $0x4f0] sm:$0xff] %vm280_vm0, %v586_v48  ;;  %729 = vst.msk [vmem:[#allocation2 + $0x590] sm:$0xff] %vm280_vm0, %v600_v42  ;;  %v4587_v48 = vld [vmem:[#allocation2 + $0x28f] sm:$0xff]  ;;  %v4590_v58 = vld [vmem:[#allocation2 + $0x2b7] sm:$0xff] }
 0x12d   : > { %v4593_v40 = vld [vmem:[#allocation2 + $0x2df] sm:$0xff]  ;;  %737 = vst.msk [vmem:[#allocation2 + $0x5f0] sm:$0xff] %vm280_vm0, %v608_v39  ;;  %v4594_v42 = vld [vmem:[#allocation2 + $0x2e7] sm:$0xff]  ;;  %v4595_v47 = vld [vmem:[#allocation2 + $0x2ef] sm:$0xff] }
 0x12e   : > { %20546 = vmatmul.mubr.msk.f32.gmra.mrb[36].mxu0 %vm280_vm0, %v4573_v60  ;;  %v24647_v60 = vld [vmem:[#allocation2 + $0x250] sm:$0xff]  ;;  %v24740_v44 = vld [vmem:[#allocation2 + $0x2e8] sm:$0xff]  ;;  %v870_v55 = vld [vmem:[#allocation6] sm:$0x7] }
 0x12f   : > { %19970 = vmatmul.mubr.msk.f32.gmra.mrb[40].mxu1 %vm280_vm0, %v24570_v61  ;;  %20548 = vmatprep.mubr.msk.f32.mxu0 %vm280_vm0, %v4574_v62  ;;  %v595_v62 = vld [vmem:[%s24225_s14 + $0x370] sm:$0xff]  ;;  %v24750_v54 = vld [vmem:[#allocation2 + $0x308] sm:$0xff]  ;;  %v24772_v39 = vld [vmem:[#allocation2 + $0x338] sm:$0xff] }
 0x130   : > { %19972 = vmatprep.mubr.msk.f32.mxu1 %vm280_vm0, %v24572_v1  ;;  %724 = vst.msk [vmem:[#allocation2 + $0x558] sm:$0xff] %vm280_vm0, %v595_v62  ;;  %v605_v62 = vld [vmem:[%s24225_s14 + $0x3c0] sm:$0xff]  ;;  %20101 = vmatprep.subr.msk.mxu1 %vm1385_vm1, %v870_v55  ;;  %v24802_v0 = vld [vmem:[#allocation2 + $0x378] sm:$0xff] }
 0x131   : > { %734 = vst.msk [vmem:[#allocation2 + $0x5d8] sm:$0xff] %vm280_vm0, %v605_v62  ;;  %v4598_v62 = vld [vmem:[#allocation2 + $0x317] sm:$0xff]  ;;  %20102 = vmatpush3.msk.msra.mxu1 %vm1385_vm1, %v870_v55  ;;  %v4603_v55 = vld [vmem:[#allocation2 + $0x34f] sm:$0xff]  ;;  %28447 = vst [vmem:[#allocation19_spill] sm:$0xff] %v24802_v0 }
 0x132   : > { %20549 = vmatmul.mubr.msk.f32.gmra.mrb[38].mxu0 %vm280_vm0, %v4575_v3  ;;  %v596_v3 = vld [vmem:[%s24225_s14 + $0x378] sm:$0xff] }
 0x133   : > { %19973 = vmatmul.mubr.msk.f32.gmra.mrb[42].mxu1 %vm280_vm0, %v24580_v5  ;;  %20551 = vmatprep.mubr.msk.f32.mxu0 %vm280_vm0, %v4576_v7  ;;  %v4582_v7 = vld [vmem:[#allocation2 + $0x257] sm:$0xff]  ;;  %725 = vst.msk [vmem:[#allocation2 + $0x560] sm:$0xff] %vm280_vm0, %v596_v3  ;;  %v606_v3 = vld [vmem:[%s24225_s14 + $0x3c8] sm:$0xff] }
 0x134   : > { %19975 = vmatprep.mubr.msk.f32.mxu1 %vm280_vm0, %v24582_v9  ;;  %735 = vst.msk [vmem:[#allocation2 + $0x5e0] sm:$0xff] %vm280_vm0, %v606_v3  ;;  %v24760_v3 = vld [vmem:[#allocation2 + $0x318] sm:$0xff] }
 0x136   : > { %20552 = vmatmul.mubr.msk.f32.gmra.mrb[40].mxu0 %vm280_vm0, %v4577_v11  ;;  %v24654_v11 = vld [vmem:[#allocation2 + $0x258] sm:$0xff] }
 0x137   : > { %19976 = vmatmul.mubr.msk.f32.gmra.mrb[44].mxu1 %vm280_vm0, %v24590_v13  ;;  %20554 = vmatprep.mubr.msk.f32.mxu0 %vm280_vm0, %v4578_v15  ;;  %v4583_v15 = vld [vmem:[#allocation2 + $0x25f] sm:$0xff] }
 0x138   : > { %19978 = vmatprep.mubr.msk.f32.mxu1 %vm280_vm0, %v24592_v18 }
 0x13a   : > { %20555 = vmatmul.mubr.msk.f32.gmra.mrb[42].mxu0 %vm280_vm0, %v4579_v26  ;;  %v24666_v26 = vld [vmem:[#allocation2 + $0x278] sm:$0xff] }
 0x13b   : > { %19979 = vmatmul.mubr.msk.f32.gmra.mrb[46].mxu1 %vm280_vm0, %v24596_v30  ;;  %20557 = vmatprep.mubr.msk.f32.mxu0 %vm280_vm0, %v4580_v37  ;;  %v24676_v37 = vld [vmem:[#allocation2 + $0x288] sm:$0xff] }
 0x13c   : > { %19981 = vmatprep.mubr.msk.f32.mxu1 %vm280_vm0, %v24606_v38 }
 0x13e   : > { %20558 = vmatmul.mubr.msk.f32.gmra.mrb[44].mxu0 %vm280_vm0, %v4581_v53  ;;  %v24698_v53 = vld [vmem:[#allocation2 + $0x2a8] sm:$0xff] }
 0x13f   : > { %19982 = vmatmul.mubr.msk.f32.gmra.mrb[48].mxu1 %vm280_vm0, %v24647_v60  ;;  %20560 = vmatprep.mubr.msk.f32.mxu0 %vm280_vm0, %v4582_v7  ;;  %v4591_v7 = vld [vmem:[#allocation2 + $0x2bf] sm:$0xff] }
 0x140   : > { %19984 = vmatprep.mubr.msk.f32.mxu1 %vm280_vm0, %v24654_v11 }
 0x142   : > { %20561 = vmatmul.mubr.msk.f32.gmra.mrb[46].mxu0 %vm280_vm0, %v4583_v15  ;;  %v24723_v15 = vld [vmem:[#allocation2 + $0x2c0] sm:$0xff] }
 0x143   : > { %19985 = vmatmul.mubr.msk.f32.gmra.mrb[50].mxu1 %vm280_vm0, %v24664_v22  ;;  %20563 = vmatprep.mubr.msk.f32.mxu0 %vm280_vm0, %v4584_v24  ;;  %v4592_v24 = vld [vmem:[#allocation2 + $0x2d7] sm:$0xff] }
 0x144   : > { %19987 = vmatprep.mubr.msk.f32.mxu1 %vm280_vm0, %v24666_v26 }
 0x146   : > { %20564 = vmatmul.mubr.msk.f32.gmra.mrb[48].mxu0 %vm280_vm0, %v4585_v32  ;;  %v24726_v32 = vld [vmem:[#allocation2 + $0x2d8] sm:$0xff] }
 0x147   : > { %19988 = vmatmul.mubr.msk.f32.gmra.mrb[52].mxu1 %vm280_vm0, %v24671_v34  ;;  %20566 = vmatprep.mubr.msk.f32.mxu0 %vm280_vm0, %v4586_v36  ;;  %v607_v36 = vld [vmem:[%s24225_s14 + $0x3d0] sm:$0xff] }
 0x148   : > { %19990 = vmatprep.mubr.msk.f32.mxu1 %vm280_vm0, %v24676_v37  ;;  %736 = vst.msk [vmem:[#allocation2 + $0x5e8] sm:$0xff] %vm280_vm0, %v607_v36  ;;  %v4600_v36 = vld [vmem:[#allocation2 + $0x337] sm:$0xff] }
 0x14a   : > { %20567 = vmatmul.mubr.msk.f32.gmra.mrb[50].mxu0 %vm280_vm0, %v4587_v48  ;;  %v24748_v48 = vld [vmem:[#allocation2 + $0x2f0] sm:$0xff] }
 0x14b   : > { %19991 = vmatmul.mubr.msk.f32.gmra.mrb[54].mxu1 %vm280_vm0, %v24695_v51  ;;  %20569 = vmatprep.mubr.msk.f32.mxu0 %vm280_vm0, %v4588_v52  ;;  %v4596_v52 = vld [vmem:[#allocation2 + $0x307] sm:$0xff] }
 0x14c   : > { %19993 = vmatprep.mubr.msk.f32.mxu1 %vm280_vm0, %v24698_v53 }
 0x14e   : > { %20570 = vmatmul.mubr.msk.f32.gmra.mrb[52].mxu0 %vm280_vm0, %v4589_v56  ;;  %v4597_v56 = vld [vmem:[#allocation2 + $0x30f] sm:$0xff] }
 0x14f   : > { %19994 = vmatmul.mubr.msk.f32.gmra.mrb[56].mxu1 %vm280_vm0, %v24709_v57  ;;  %20572 = vmatprep.mubr.msk.f32.mxu0 %vm280_vm0, %v4590_v58  ;;  %v24758_v58 = vld [vmem:[#allocation2 + $0x310] sm:$0xff] }
 0x150   : > { %19996 = vmatprep.mubr.msk.f32.mxu1 %vm280_vm0, %v24712_v59 }
 0x152   : > { %20573 = vmatmul.mubr.msk.f32.gmra.mrb[54].mxu0 %vm280_vm0, %v4591_v7  ;;  %v4599_v7 = vld [vmem:[#allocation2 + $0x31f] sm:$0xff] }
 0x153   : > { %19997 = vmatmul.mubr.msk.f32.gmra.mrb[58].mxu1 %vm280_vm0, %v24723_v15  ;;  %20575 = vmatprep.mubr.msk.f32.mxu0 %vm280_vm0, %v4592_v24  ;;  %v24770_v24 = vld [vmem:[#allocation2 + $0x320] sm:$0xff] }
 0x154   : > { %19999 = vmatprep.mubr.msk.f32.mxu1 %vm280_vm0, %v24726_v32 }
 0x156   : > { %20576 = vmatmul.mubr.msk.f32.gmra.mrb[56].mxu0 %vm280_vm0, %v4593_v40  ;;  %v4601_v40 = vld [vmem:[#allocation2 + $0x33f] sm:$0xff] }
 0x157   : > { %20000 = vmatmul.mubr.msk.f32.gmra.mrb[60].mxu1 %vm280_vm0, %v24737_v41  ;;  %20578 = vmatprep.mubr.msk.f32.mxu0 %vm280_vm0, %v4594_v42  ;;  %v24780_v42 = vld [vmem:[#allocation2 + $0x340] sm:$0xff] }
 0x158   : > { %20002 = vmatprep.mubr.msk.f32.mxu1 %vm280_vm0, %v24740_v44 }
 0x15a   : > { %20579 = vmatmul.mubr.msk.f32.gmra.mrb[58].mxu0 %vm280_vm0, %v4595_v47  ;;  %v4602_v47 = vld [vmem:[#allocation2 + $0x347] sm:$0xff] }
 0x15b   : > { %20003 = vmatmul.mubr.msk.f32.gmra.mrb[62].mxu1 %vm280_vm0, %v24748_v48  ;;  %20581 = vmatprep.mubr.msk.f32.mxu0 %vm280_vm0, %v4596_v52  ;;  %v24782_v52 = vld [vmem:[#allocation2 + $0x348] sm:$0xff] }
 0x15c   : > { %20005 = vmatprep.mubr.msk.f32.mxu1 %vm280_vm0, %v24750_v54 }
 0x15e   : > { %20582 = vmatmul.mubr.msk.f32.gmra.mrb[60].mxu0 %vm280_vm0, %v4597_v56  ;;  %v24790_v56 = vld [vmem:[#allocation2 + $0x350] sm:$0xff] }
 0x15f   : > { %20006 = vmatmul.mubr.msk.f32.gmra.mrb[64].mxu1 %vm280_vm0, %v24758_v58  ;;  %20584 = vmatprep.mubr.msk.f32.mxu0 %vm280_vm0, %v4598_v62  ;;  %28444 = vst [vmem:[#allocation16_spill] sm:$0xff] %v24790_v56  ;;  %v4604_v62 = vld [vmem:[#allocation2 + $0x367] sm:$0xff] }
 0x160   : > { %20008 = vmatprep.mubr.msk.f32.mxu1 %vm280_vm0, %v24760_v3 }
 0x162   : > { %20585 = vmatmul.mubr.msk.f32.gmra.mrb[62].mxu0 %vm280_vm0, %v4599_v7  ;;  %v24792_v7 = vld [vmem:[#allocation2 + $0x368] sm:$0xff] }
 0x163   : > { %20009 = vmatmul.mubr.msk.f32.gmra.mrb[66].mxu1 %vm280_vm0, %v24770_v24  ;;  %20587 = vmatprep.mubr.msk.f32.mxu0 %vm280_vm0, %v4600_v36  ;;  %28445 = vst [vmem:[#allocation17_spill] sm:$0xff] %v24792_v7  ;;  %v4605_v36 = vld [vmem:[#allocation2 + $0x36f] sm:$0xff] }
 0x164   : > { %20011 = vmatprep.mubr.msk.f32.mxu1 %vm280_vm0, %v24772_v39 }
 0x166   : > { %20588 = vmatmul.mubr.msk.f32.gmra.mrb[64].mxu0 %vm280_vm0, %v4601_v40  ;;  %v24800_v40 = vld [vmem:[#allocation2 + $0x370] sm:$0xff] }
 0x167   : > { %20012 = vmatmul.mubr.msk.f32.gmra.mrb[68].mxu1 %vm280_vm0, %v24780_v42  ;;  %20590 = vmatprep.mubr.msk.f32.mxu0 %vm280_vm0, %v4602_v47  ;;  %28446 = vst [vmem:[#allocation18_spill] sm:$0xff] %v24800_v40  ;;  %v4606_v47 = vld [vmem:[#allocation2 + $0x377] sm:$0xff] }
 0x168   : > { %20014 = vmatprep.mubr.msk.f32.mxu1 %vm280_vm0, %v24782_v52 }
 0x16a   : > { %20591 = vmatmul.mubr.msk.f32.gmra.mrb[66].mxu0 %vm280_vm0, %v4603_v55  ;;  %v4607_v55 = vld [vmem:[#allocation2 + $0x37f] sm:$0xff] }
 0x16b   : > { %20015 = vmatmul.mubr.msk.f32.gmra.mrb[70].mxu1 %vm280_vm0, %v24790_v56  ;;  %20593 = vmatprep.mubr.msk.f32.mxu0 %vm280_vm0, %v4604_v62  ;;  %v24810_v62 = vld [vmem:[#allocation2 + $0x380] sm:$0xff]  ;;  %v24812_v56 = vld [vmem:[#allocation2 + $0x398] sm:$0xff] }
 0x16c   : > { %20017 = vmatprep.mubr.msk.f32.mxu1 %vm280_vm0, %v24792_v7  ;;  %28448 = vst [vmem:[#allocation20_spill] sm:$0xff] %v24810_v62  ;;  %v4608_v7 = vld [vmem:[#allocation2 + $0x397] sm:$0xff]  ;;  %28449 = vst [vmem:[#allocation21_spill] sm:$0xff] %v24812_v56 }
 0x16e   : > { %20594 = vmatmul.mubr.msk.f32.gmra.mrb[68].mxu0 %vm280_vm0, %v4605_v36  ;;  %v4609_v36 = vld [vmem:[#allocation2 + $0x39f] sm:$0xff] }
 0x16f   : > { %20018 = vmatmul.mubr.msk.f32.gmra.mrb[72].mxu1 %vm280_vm0, %v24800_v40  ;;  %20596 = vmatprep.mubr.msk.f32.mxu0 %vm280_vm0, %v4606_v47  ;;  %v24820_v47 = vld [vmem:[#allocation2 + $0x3a0] sm:$0xff]  ;;  %v24822_v40 = vld [vmem:[#allocation2 + $0x3a8] sm:$0xff] }
 0x170   : > { %20020 = vmatprep.mubr.msk.f32.mxu1 %vm280_vm0, %v24802_v0  ;;  %28450 = vst [vmem:[#allocation22_spill] sm:$0xff] %v24820_v47  ;;  %v4610_v0 = vld [vmem:[#allocation2 + $0x3a7] sm:$0xff]  ;;  %28451 = vst [vmem:[#allocation23_spill] sm:$0xff] %v24822_v40 }
 0x172   : > { %20597 = vmatmul.mubr.msk.f32.gmra.mrb[70].mxu0 %vm280_vm0, %v4607_v55  ;;  %v24830_v55 = vld [vmem:[#allocation2 + $0x3b0] sm:$0xff] }
 0x173   : > { %20021 = vmatmul.mubr.msk.f32.gmra.mrb[74].mxu1 %vm280_vm0, %v24810_v62  ;;  %20599 = vmatprep.mubr.msk.f32.mxu0 %vm280_vm0, %v4608_v7  ;;  %v4611_v7 = vld [vmem:[#allocation2 + $0x3af] sm:$0xff]  ;;  %28452 = vst [vmem:[#allocation24_spill] sm:$0xff] %v24830_v55 }
 0x174   : > { %20023 = vmatprep.mubr.msk.f32.mxu1 %vm280_vm0, %v24812_v56  ;;  %v4612_v56 = vld [vmem:[#allocation2 + $0x3c7] sm:$0xff] }
 0x175   : > { %v24832_v62 = vld [vmem:[#allocation2 + $0x3c8] sm:$0xff] }
 0x176   : > { %20600 = vmatmul.mubr.msk.f32.gmra.mrb[72].mxu0 %vm280_vm0, %v4609_v36  ;;  %28453 = vst [vmem:[#allocation25_spill] sm:$0xff] %v24832_v62  ;;  %v24840_v36 = vld [vmem:[#allocation2 + $0x3d0] sm:$0xff] }
 0x177   : > { %20024 = vmatmul.mubr.msk.f32.gmra.mrb[76].mxu1 %vm280_vm0, %v24820_v47  ;;  %20602 = vmatprep.mubr.msk.f32.mxu0 %vm280_vm0, %v4610_v0  ;;  %v4613_v0 = vld [vmem:[#allocation2 + $0x3cf] sm:$0xff]  ;;  %v24842_v47 = vld [vmem:[#allocation2 + $0x3d8] sm:$0xff] }
 0x178   : > { %20026 = vmatprep.mubr.msk.f32.mxu1 %vm280_vm0, %v24822_v40  ;;  %v4614_v40 = vld [vmem:[#allocation2 + $0x3d7] sm:$0xff]  ;;  %28454 = vst [vmem:[#allocation26_spill] sm:$0xff] %v24842_v47 }
 0x17a   : > { %20603 = vmatmul.mubr.msk.f32.gmra.mrb[74].mxu0 %vm280_vm0, %v4611_v7  ;;  %v24850_v7 = vld [vmem:[#allocation2 + $0x3e0] sm:$0xff] }
 0x17b   : > { %20027 = vmatmul.mubr.msk.f32.gmra.mrb[78].mxu1 %vm280_vm0, %v24830_v55  ;;  %20605 = vmatprep.mubr.msk.f32.mxu0 %vm280_vm0, %v4612_v56  ;;  %v4615_v56 = vld [vmem:[#allocation2 + $0x3df] sm:$0xff]  ;;  %28455 = vst [vmem:[#allocation27_spill] sm:$0xff] %v24850_v7 }
 0x17c   : > { %20029 = vmatprep.mubr.msk.f32.mxu1 %vm280_vm0, %v24832_v62  ;;  %v24852_v62 = vld [vmem:[#allocation2 + $0x3f8] sm:$0xff] }
 0x17d   : > { %28456 = vst [vmem:[#allocation28_spill] sm:$0xff] %v24852_v62  ;;  %v23493_v55 = vld [vmem:[#allocation2 + $0x38] sm:$0xff] }
 0x17e   : > { %20606 = vmatmul.mubr.msk.f32.gmra.mrb[76].mxu0 %vm280_vm0, %v4613_v0  ;;  %v24862_v0 = vld [vmem:[#allocation2 + $0x408] sm:$0xff] }
 0x17f   : > { %20030 = vmatmul.mubr.msk.f32.gmra.mrb[80].mxu1 %vm280_vm0, %v24840_v36  ;;  %20608 = vmatprep.mubr.msk.f32.mxu0 %vm280_vm0, %v4614_v40  ;;  %v24860_v40 = vld [vmem:[#allocation2 + $0x400] sm:$0xff] }
 0x180   : > { %20032 = vmatprep.mubr.msk.f32.mxu1 %vm280_vm0, %v24842_v47  ;;  %28457 = vst [vmem:[#allocation29_spill] sm:$0xff] %v24860_v40  ;;  %v23494_v47 = vld [vmem:[#allocation2 + $0x40] sm:$0xff] }
 0x182   : > { %20609 = vmatmul.mubr.msk.f32.gmra.mrb[78].mxu0 %vm280_vm0, %v4615_v56  ;;  %v23495_v56 = vld [vmem:[#allocation2 + $0x48] sm:$0xff] }
 0x183   : > { %20033 = vmatmul.mubr.msk.f32.gmra.mrb[82].mxu1 %vm280_vm0, %v24850_v7  ;;  %20685 = vmatprep.mubr.msk.f32.mxu0 %vm280_vm0, %v23493_v55  ;;  %v24870_v55 = vld [vmem:[#allocation2 + $0x410] sm:$0xff] }
 0x184   : > { %20035 = vmatprep.mubr.msk.f32.mxu1 %vm280_vm0, %v24852_v62  ;;  %28458 = vst [vmem:[#allocation30_spill] sm:$0xff] %v24870_v55  ;;  %v24874_v62 = vld [vmem:[#allocation2 + $0x428] sm:$0xff]  ;;  %v23496_v7 = vld [vmem:[#allocation2 + $0x50] sm:$0xff] }
 0x185   : > { %28459 = vst [vmem:[#allocation31_spill] sm:$0xff] %v24874_v62 }
 0x186   : > { %20686 = vmatmul.mubr.msk.f32.vlgmr.msra.gmra.mrb[0].mxu0 %vm280_vm0, %v23494_v47  ;;  %v23497_v47 = vld [vmem:[#allocation2 + $0x68] sm:$0xff] }
 0x187   : > { %20036 = vmatmul.mubr.msk.f32.gmra.mrb[84].mxu1 %vm280_vm0, %v24860_v40  ;;  %20878 = vmatpush3.msk.msra.mxu0 %vm1385_vm1, %v24531_v46  ;;  %v24882_v46 = vld [vmem:[#allocation2 + $0x430] sm:$0xff] }
 0x188   : > { %20688 = vmatprep.mubr.msk.f32.mxu0 %vm280_vm0, %v23495_v56  ;;  %20038 = vmatprep.mubr.msk.f32.mxu1 %vm280_vm0, %v24862_v0  ;;  %28460 = vst [vmem:[#allocation32_spill] sm:$0xff] %v24882_v46  ;;  %v24884_v56 = vld [vmem:[#allocation2 + $0x438] sm:$0xff]  ;;  %v23498_v40 = vld [vmem:[#allocation2 + $0x70] sm:$0xff] }
 0x189   : > { %28461 = vst [vmem:[#allocation33_spill] sm:$0xff] %v24884_v56 }
 0x18a   : > { %20689 = vmatmul.mubr.msk.f32.gmra.mrb[2].mxu0 %vm280_vm0, %v23496_v7  ;;  %v23499_v7 = vld [vmem:[#allocation2 + $0x78] sm:$0xff] }
 0x18b   : > { %20039 = vmatmul.mubr.msk.f32.gmra.mrb[86].mxu1 %vm280_vm0, %v24870_v55  ;;  %20691 = vmatprep.mubr.msk.f32.mxu0 %vm280_vm0, %v23497_v47  ;;  %v24892_v47 = vld [vmem:[#allocation2 + $0x440] sm:$0xff]  ;;  %v24894_v55 = vld [vmem:[#allocation2 + $0x458] sm:$0xff] }
 0x18c   : > { %20041 = vmatprep.mubr.msk.f32.mxu1 %vm280_vm0, %v24874_v62  ;;  %28462 = vst [vmem:[#allocation34_spill] sm:$0xff] %v24892_v47  ;;  %28463 = vst [vmem:[#allocation35_spill] sm:$0xff] %v24894_v55  ;;  %v23500_v62 = vld [vmem:[#allocation2 + $0x80] sm:$0xff] }
 0x18e   : > { %20692 = vmatmul.mubr.msk.f32.gmra.mrb[4].mxu0 %vm280_vm0, %v23498_v40  ;;  %v23501_v40 = vld [vmem:[#allocation2 + $0x98] sm:$0xff] }
 0x18f   : > { %20042 = vmatmul.mubr.msk.f32.gmra.mrb[88].mxu1 %vm280_vm0, %v24882_v46  ;;  %20694 = vmatprep.mubr.msk.f32.mxu0 %vm280_vm0, %v23499_v7  ;;  %v24902_v7 = vld [vmem:[#allocation2 + $0x460] sm:$0xff]  ;;  %v24904_v46 = vld [vmem:[#allocation2 + $0x468] sm:$0xff] }
 0x190   : > { %20044 = vmatprep.mubr.msk.f32.mxu1 %vm280_vm0, %v24884_v56  ;;  %v23502_v56 = vld [vmem:[#allocation2 + $0xa0] sm:$0xff] }
 0x192   : > { %20695 = vmatmul.mubr.msk.f32.gmra.mrb[6].mxu0 %vm280_vm0, %v23500_v62  ;;  %v23503_v62 = vld [vmem:[#allocation2 + $0xa8] sm:$0xff] }
 0x193   : > { %20045 = vmatmul.mubr.msk.f32.gmra.mrb[90].mxu1 %vm280_vm0, %v24892_v47  ;;  %20697 = vmatprep.mubr.msk.f32.mxu0 %vm280_vm0, %v23501_v40  ;;  %v24912_v40 = vld [vmem:[#allocation2 + $0x470] sm:$0xff]  ;;  %v24914_v47 = vld [vmem:[#allocation2 + $0x488] sm:$0xff] }
 0x194   : > { %20047 = vmatprep.mubr.msk.f32.mxu1 %vm280_vm0, %v24894_v55  ;;  %v23504_v55 = vld [vmem:[#allocation2 + $0xb0] sm:$0xff] }
 0x196   : > { %20698 = vmatmul.mubr.msk.f32.gmra.mrb[8].mxu0 %vm280_vm0, %v23502_v56  ;;  %v24923_v56 = vld [vmem:[#allocation2 + $0x490] sm:$0xff] }
 0x197   : > { %20048 = vmatmul.mubr.msk.f32.gmra.mrb[92].mxu1 %vm280_vm0, %v24902_v7  ;;  %20700 = vmatprep.mubr.msk.f32.mxu0 %vm280_vm0, %v23503_v62  ;;  %v24925_v62 = vld [vmem:[#allocation2 + $0x498] sm:$0xff] }
 0x198   : > { %20050 = vmatprep.mubr.msk.f32.mxu1 %vm280_vm0, %v24904_v46 }
 0x19a   : > { %20701 = vmatmul.mubr.msk.f32.gmra.mrb[10].mxu0 %vm280_vm0, %v23504_v55  ;;  %v24937_v55 = vld [vmem:[#allocation2 + $0x4b8] sm:$0xff] }
 0x19b   : > { %20051 = vmatmul.mubr.msk.f32.gmra.mrb[94].mxu1 %vm280_vm0, %v24912_v40  ;;  %20703 = vmatprep.mubr.msk.f32.mxu0 %vm280_vm0, %v24314_v63  ;;  %v24935_v63 = vld [vmem:[#allocation2 + $0x4a0] sm:$0xff] }
 0x19c   : > { %20053 = vmatprep.mubr.msk.f32.mxu1 %vm280_vm0, %v24914_v47 }
 0x19e   : > { %20704 = vmatmul.mubr.msk.f32.gmra.mrb[12].mxu0 %vm280_vm0, %v24353_v17  ;;  %v24947_v17 = vld [vmem:[#allocation2 + $0x4c0] sm:$0xff] }
 0x19f   : > { %20054 = vmatmul.mubr.msk.f32.gmra.mrb[96].mxu1 %vm280_vm0, %v24923_v56  ;;  %20706 = vmatprep.mubr.msk.f32.mxu0 %vm280_vm0, %v24358_v19  ;;  %v24949_v19 = vld [vmem:[#allocation2 + $0x4c8] sm:$0xff] }
 0x1a0   : > { %20056 = vmatprep.mubr.msk.f32.mxu1 %vm280_vm0, %v24925_v62 }
 0x1a2   : > { %20707 = vmatmul.mubr.msk.f32.gmra.mrb[14].mxu0 %vm280_vm0, %v24366_v21  ;;  %v24959_v21 = vld [vmem:[#allocation2 + $0x4d0] sm:$0xff] }
 0x1a3   : > { %20057 = vmatmul.mubr.msk.f32.gmra.mrb[98].mxu1 %vm280_vm0, %v24935_v63  ;;  %20709 = vmatprep.mubr.msk.f32.mxu0 %vm280_vm0, %v24368_v23  ;;  %v24961_v23 = vld [vmem:[#allocation2 + $0x4e8] sm:$0xff] }
 0x1a4   : > { %20059 = vmatprep.mubr.msk.f32.mxu1 %vm280_vm0, %v24937_v55 }
 0x1a6   : > { %20710 = vmatmul.mubr.msk.f32.gmra.mrb[16].mxu0 %vm280_vm0, %v24376_v25  ;;  %v24971_v25 = vld [vmem:[#allocation2 + $0x4f0] sm:$0xff] }
 0x1a7   : > { %20060 = vmatmul.mubr.msk.f32.gmra.mrb[100].mxu1 %vm280_vm0, %v24947_v17  ;;  %20712 = vmatprep.mubr.msk.f32.mxu0 %vm280_vm0, %v24378_v27  ;;  %v24973_v27 = vld [vmem:[#allocation2 + $0x4f8] sm:$0xff] }
 0x1a8   : > { %20062 = vmatprep.mubr.msk.f32.mxu1 %vm280_vm0, %v24949_v19 }
 0x1aa   : > { %20713 = vmatmul.mubr.msk.f32.gmra.mrb[18].mxu0 %vm280_vm0, %v24386_v29  ;;  %v24983_v29 = vld [vmem:[#allocation2 + $0x500] sm:$0xff] }
 0x1ab   : > { %20063 = vmatmul.mubr.msk.f32.gmra.mrb[102].mxu1 %vm280_vm0, %v24959_v21  ;;  %20715 = vmatprep.mubr.msk.f32.mxu0 %vm280_vm0, %v24388_v31  ;;  %v24985_v31 = vld [vmem:[#allocation2 + $0x518] sm:$0xff] }
 0x1ac   : > { %20065 = vmatprep.mubr.msk.f32.mxu1 %vm280_vm0, %v24961_v23 }
 0x1ae   : > { %20716 = vmatmul.mubr.msk.f32.gmra.mrb[20].mxu0 %vm280_vm0, %v24390_v33  ;;  %v24995_v33 = vld [vmem:[#allocation2 + $0x520] sm:$0xff] }
 0x1af   : > { %20066 = vmatmul.mubr.msk.f32.gmra.mrb[104].mxu1 %vm280_vm0, %v24971_v25  ;;  %20718 = vmatprep.mubr.msk.f32.mxu0 %vm280_vm0, %v24395_v35  ;;  %v24997_v35 = vld [vmem:[#allocation2 + $0x528] sm:$0xff] }
 0x1b0   : > { %20068 = vmatprep.mubr.msk.f32.mxu1 %vm280_vm0, %v24973_v27 }
 0x1b2   : > { %20719 = vmatmul.mubr.msk.f32.gmra.mrb[22].mxu0 %vm280_vm0, %v24413_v45  ;;  %v25007_v45 = vld [vmem:[#allocation2 + $0x530] sm:$0xff] }
 0x1b3   : > { %20069 = vmatmul.mubr.msk.f32.gmra.mrb[106].mxu1 %vm280_vm0, %v24983_v29  ;;  %20721 = vmatprep.mubr.msk.f32.mxu0 %vm280_vm0, %v24424_v50  ;;  %v25009_v50 = vld [vmem:[#allocation2 + $0x548] sm:$0xff] }
 0x1b4   : > { %20071 = vmatprep.mubr.msk.f32.mxu1 %vm280_vm0, %v24985_v31 }
 0x1b6   : > { %20722 = vmatmul.mubr.msk.f32.gmra.mrb[24].mxu0 %vm280_vm0, %v24462_v2  ;;  %v25019_v2 = vld [vmem:[#allocation2 + $0x550] sm:$0xff] }
 0x1b7   : > { %20072 = vmatmul.mubr.msk.f32.gmra.mrb[108].mxu1 %vm280_vm0, %v24995_v33  ;;  %20724 = vmatprep.mubr.msk.f32.mxu0 %vm280_vm0, %v24464_v4  ;;  %v25021_v4 = vld [vmem:[#allocation2 + $0x558] sm:$0xff] }
 0x1b8   : > { %20074 = vmatprep.mubr.msk.f32.mxu1 %vm280_vm0, %v24997_v35 }
 0x1ba   : > { %20725 = vmatmul.mubr.msk.f32.gmra.mrb[26].mxu0 %vm280_vm0, %v24472_v6  ;;  %v25031_v6 = vld [vmem:[#allocation2 + $0x560] sm:$0xff] }
 0x1bb   : > { %20075 = vmatmul.mubr.msk.f32.gmra.mrb[110].mxu1 %vm280_vm0, %v25007_v45  ;;  %20727 = vmatprep.mubr.msk.f32.mxu0 %vm280_vm0, %v24474_v8  ;;  %v25033_v8 = vld [vmem:[#allocation2 + $0x578] sm:$0xff] }
 0x1bc   : > { %20077 = vmatprep.mubr.msk.f32.mxu1 %vm280_vm0, %v25009_v50 }
 0x1be   : > { %20728 = vmatmul.mubr.msk.f32.gmra.mrb[28].mxu0 %vm280_vm0, %v24482_v10  ;;  %v25043_v10 = vld [vmem:[#allocation2 + $0x580] sm:$0xff] }
 0x1bf   : > { %20078 = vmatmul.mubr.msk.f32.gmra.mrb[112].mxu1 %vm280_vm0, %v25019_v2  ;;  %20730 = vmatprep.mubr.msk.f32.mxu0 %vm280_vm0, %v24484_v12  ;;  %v25045_v12 = vld [vmem:[#allocation2 + $0x588] sm:$0xff] }
 0x1c0   : > { %20080 = vmatprep.mubr.msk.f32.mxu1 %vm280_vm0, %v25021_v4 }
 0x1c2   : > { %20731 = vmatmul.mubr.msk.f32.gmra.mrb[30].mxu0 %vm280_vm0, %v24492_v14  ;;  %v25055_v14 = vld [vmem:[#allocation2 + $0x590] sm:$0xff] }
 0x1c3   : > { %20081 = vmatmul.mubr.msk.f32.gmra.mrb[114].mxu1 %vm280_vm0, %v25031_v6  ;;  %20733 = vmatprep.mubr.msk.f32.mxu0 %vm280_vm0, %v24494_v16  ;;  %v25057_v16 = vld [vmem:[#allocation2 + $0x5a8] sm:$0xff] }
 0x1c4   : > { %20083 = vmatprep.mubr.msk.f32.mxu1 %vm280_vm0, %v25033_v8 }
 0x1c6   : > { %20734 = vmatmul.mubr.msk.f32.gmra.mrb[32].mxu0 %vm280_vm0, %v24496_v20  ;;  %v25067_v20 = vld [vmem:[#allocation2 + $0x5b0] sm:$0xff] }
 0x1c7   : > { %20084 = vmatmul.mubr.msk.f32.gmra.mrb[116].mxu1 %vm280_vm0, %v25043_v10  ;;  %20736 = vmatprep.mubr.msk.f32.mxu0 %vm280_vm0, %v24503_v28  ;;  %v25069_v28 = vld [vmem:[#allocation2 + $0x5b8] sm:$0xff] }
 0x1c8   : > { %20086 = vmatprep.mubr.msk.f32.mxu1 %vm280_vm0, %v25045_v12 }
 0x1ca   : > { %20737 = vmatmul.mubr.msk.f32.gmra.mrb[34].mxu0 %vm280_vm0, %v24525_v43  ;;  %v25079_v43 = vld [vmem:[#allocation2 + $0x5c0] sm:$0xff] }
 0x1cb   : > { %20087 = vmatmul.mubr.msk.f32.gmra.mrb[118].mxu1 %vm280_vm0, %v25055_v14  ;;  %20739 = vmatprep.mubr.msk.f32.mxu0 %vm280_vm0, %v24537_v49  ;;  %v25081_v49 = vld [vmem:[#allocation2 + $0x5d8] sm:$0xff] }
 0x1cc   : > { %20089 = vmatprep.mubr.msk.f32.mxu1 %vm280_vm0, %v25057_v16 }
 0x1ce   : > { %20740 = vmatmul.mubr.msk.f32.gmra.mrb[36].mxu0 %vm280_vm0, %v24570_v61  ;;  %v25091_v61 = vld [vmem:[#allocation2 + $0x5e0] sm:$0xff] }
 0x1cf   : > { %20090 = vmatmul.mubr.msk.f32.gmra.mrb[120].mxu1 %vm280_vm0, %v25067_v20  ;;  %20742 = vmatprep.mubr.msk.f32.mxu0 %vm280_vm0, %v24572_v1  ;;  %28464 = vst [vmem:[#allocation36_spill] sm:$0xff] %v25091_v61  ;;  %v25093_v1 = vld [vmem:[#allocation2 + $0x5e8] sm:$0xff] }
 0x1d0   : > { %20092 = vmatprep.mubr.msk.f32.mxu1 %vm280_vm0, %v25069_v28 }
 0x1d2   : > { %20743 = vmatmul.mubr.msk.f32.gmra.mrb[38].mxu0 %vm280_vm0, %v24580_v5  ;;  %v25103_v5 = vld [vmem:[#allocation2 + $0x5f0] sm:$0xff] }
 0x1d3   : > { %20093 = vmatmul.mubr.msk.f32.gmra.mrb[122].mxu1 %vm280_vm0, %v25079_v43  ;;  %20745 = vmatprep.mubr.msk.f32.mxu0 %vm280_vm0, %v24582_v9  ;;  %v742_v9 = vld [vmem:[#allocation2 + $0x7] sm:$0xff] }
 0x1d4   : > { %20095 = vmatprep.mubr.msk.f32.mxu1 %vm280_vm0, %v25081_v49 }
 0x1d6   : > { %20746 = vmatmul.mubr.msk.f32.gmra.mrb[40].mxu0 %vm280_vm0, %v24590_v13  ;;  %v743_v13 = vld [vmem:[#allocation2 + $0xf] sm:$0xff] }
 0x1d7   : > { %20096 = vmatmul.mubr.msk.f32.gmra.mrb[124].mxu1 %vm280_vm0, %v25091_v61  ;;  %20748 = vmatprep.mubr.msk.f32.mxu0 %vm280_vm0, %v24592_v18  ;;  %v744_v61 = vld [vmem:[#allocation2 + $0x17] sm:$0xff]  ;;  %v745_v18 = vld [vmem:[#allocation2 + $0x1f] sm:$0xff] }
 0x1d8   : > { %20098 = vmatprep.mubr.msk.f32.mxu1 %vm280_vm0, %v25093_v1 }
 0x1da   : > { %20749 = vmatmul.mubr.msk.f32.gmra.mrb[42].mxu0 %vm280_vm0, %v24596_v30  ;;  %v746_v30 = vld [vmem:[#allocation2 + $0x37] sm:$0xff] }
 0x1db   : > { %20099 = vmatmul.mubr.msk.f32.gmra.mrb[126].mxu1 %vm280_vm0, %v25103_v5  ;;  %20751 = vmatprep.mubr.msk.f32.mxu0 %vm280_vm0, %v24606_v38  ;;  %v747_v38 = vld [vmem:[#allocation2 + $0x3f] sm:$0xff] }
 0x1dc   : > { %20103 = vmatprep.mubr.msk.f32.mxu1 %vm280_vm0, %v742_v9  ;;  %v611_v9 = vld [vmem:[%s24225_s14 + $0x3f0] sm:$0xff] }
 0x1dd   : > { %740 = vst.msk [vmem:[#allocation2 + $0x618] sm:$0xff] %vm280_vm0, %v611_v9  ;;  %v28474_v9 = vld [vmem:[#allocation25_spill] sm:$0xff] }
 0x1de   : > { %20752 = vmatmul.mubr.msk.f32.gmra.mrb[44].mxu0 %vm280_vm0, %v24647_v60  ;;  %v748_v60 = vld [vmem:[#allocation2 + $0x47] sm:$0xff] }
 0x1df   : > { %20104 = vmatmul.mubr.msk.f32.vlgmr.msra.gmra.mrb[0].mxu1 %vm280_vm0, %v743_v13  ;;  %20754 = vmatprep.mubr.msk.f32.mxu0 %vm280_vm0, %v24654_v11  ;;  %v749_v11 = vld [vmem:[#allocation2 + $0x4f] sm:$0xff]  ;;  %v612_v13 = vld [vmem:[%s24225_s14 + $0x3f8] sm:$0xff] }
 0x1e0   : > { %20106 = vmatprep.mubr.msk.f32.mxu1 %vm280_vm0, %v744_v61  ;;  %v609_v61 = vld [vmem:[%s24225_s14 + $0x3e0] sm:$0xff]  ;;  %741 = vst.msk [vmem:[#allocation2 + $0x620] sm:$0xff] %vm280_vm0, %v612_v13  ;;  %v775_v13 = vld [vmem:[#allocation2 + $0x18f] sm:$0xff] }
 0x1e1   : > { %738 = vst.msk [vmem:[#allocation2 + $0x608] sm:$0xff] %vm280_vm0, %v609_v61  ;;  %v28472_v61 = vld [vmem:[#allocation23_spill] sm:$0xff] }
 0x1e2   : > { %20755 = vmatmul.mubr.msk.f32.gmra.mrb[46].mxu0 %vm280_vm0, %v24664_v22  ;;  %v750_v22 = vld [vmem:[#allocation2 + $0x67] sm:$0xff] }
 0x1e3   : > { %20107 = vmatmul.mubr.msk.f32.gmra.mrb[2].mxu1 %vm280_vm0, %v745_v18  ;;  %20757 = vmatprep.mubr.msk.f32.mxu0 %vm280_vm0, %v24666_v26  ;;  %v751_v26 = vld [vmem:[#allocation2 + $0x6f] sm:$0xff]  ;;  %v762_v18 = vld [vmem:[#allocation2 + $0xf7] sm:$0xff] }
 0x1e4   : > { %20109 = vmatprep.mubr.msk.f32.mxu1 %vm280_vm0, %v746_v30  ;;  %v764_v30 = vld [vmem:[#allocation2 + $0x107] sm:$0xff] }
 0x1e6   : > { %20758 = vmatmul.mubr.msk.f32.gmra.mrb[48].mxu0 %vm280_vm0, %v24671_v34  ;;  %v752_v34 = vld [vmem:[#allocation2 + $0x77] sm:$0xff] }
 0x1e7   : > { %20110 = vmatmul.mubr.msk.f32.gmra.mrb[4].mxu1 %vm280_vm0, %v747_v38  ;;  %20760 = vmatprep.mubr.msk.f32.mxu0 %vm280_vm0, %v24676_v37  ;;  %v753_v37 = vld [vmem:[#allocation2 + $0x7f] sm:$0xff] }
 0x1e8   : > { %20112 = vmatprep.mubr.msk.f32.mxu1 %vm280_vm0, %v748_v60  ;;  %v28466_v38 = vld [vmem:[#allocation17_spill] sm:$0xff]  ;;  %v768_v60 = vld [vmem:[#allocation2 + $0x137] sm:$0xff] }
 0x1ea   : > { %20761 = vmatmul.mubr.msk.f32.gmra.mrb[50].mxu0 %vm280_vm0, %v24695_v51  ;;  %v754_v51 = vld [vmem:[#allocation2 + $0x97] sm:$0xff] }
 0x1eb   : > { %20113 = vmatmul.mubr.msk.f32.gmra.mrb[6].mxu1 %vm280_vm0, %v749_v11  ;;  %20763 = vmatprep.mubr.msk.f32.mxu0 %vm280_vm0, %v24698_v53  ;;  %v755_v53 = vld [vmem:[#allocation2 + $0x9f] sm:$0xff]  ;;  %v28467_v11 = vld [vmem:[#allocation18_spill] sm:$0xff] }
 0x1ec   : > { %20115 = vmatprep.mubr.msk.f32.mxu1 %vm280_vm0, %v750_v22  ;;  %v769_v22 = vld [vmem:[#allocation2 + $0x13f] sm:$0xff] }
 0x1ee   : > { %20764 = vmatmul.mubr.msk.f32.gmra.mrb[52].mxu0 %vm280_vm0, %v24709_v57  ;;  %v756_v57 = vld [vmem:[#allocation2 + $0xa7] sm:$0xff] }
 0x1ef   : > { %20116 = vmatmul.mubr.msk.f32.gmra.mrb[8].mxu1 %vm280_vm0, %v751_v26  ;;  %20766 = vmatprep.mubr.msk.f32.mxu0 %vm280_vm0, %v24712_v59  ;;  %v610_v59 = vld [vmem:[%s24225_s14 + $0x3e8] sm:$0xff]  ;;  %v770_v26 = vld [vmem:[#allocation2 + $0x157] sm:$0xff] }
 0x1f0   : > { %20118 = vmatprep.mubr.msk.f32.mxu1 %vm280_vm0, %v752_v34  ;;  %739 = vst.msk [vmem:[#allocation2 + $0x610] sm:$0xff] %vm280_vm0, %v610_v59  ;;  %v28469_v34 = vld [vmem:[#allocation20_spill] sm:$0xff]  ;;  %v773_v59 = vld [vmem:[#allocation2 + $0x16f] sm:$0xff] }
 0x1f2   : > { %20767 = vmatmul.mubr.msk.f32.gmra.mrb[54].mxu0 %vm280_vm0, %v24723_v15  ;;  %v757_v15 = vld [vmem:[#allocation2 + $0xaf] sm:$0xff] }
 0x1f3   : > { %20119 = vmatmul.mubr.msk.f32.gmra.mrb[10].mxu1 %vm280_vm0, %v753_v37  ;;  %20769 = vmatprep.mubr.msk.f32.mxu0 %vm280_vm0, %v24726_v32  ;;  %v758_v32 = vld [vmem:[#allocation2 + $0xc7] sm:$0xff] }
 0x1f4   : > { %20121 = vmatprep.mubr.msk.f32.mxu1 %vm280_vm0, %v754_v51  ;;  %v28470_v37 = vld [vmem:[#allocation21_spill] sm:$0xff] }
 0x1f5   : > { %v771_v51 = vld [vmem:[#allocation2 + $0x15f] sm:$0xff] }
 0x1f6   : > { %20770 = vmatmul.mubr.msk.f32.gmra.mrb[56].mxu0 %vm280_vm0, %v24737_v41  ;;  %v759_v41 = vld [vmem:[#allocation2 + $0xcf] sm:$0xff] }
 0x1f7   : > { %20122 = vmatmul.mubr.msk.f32.gmra.mrb[12].mxu1 %vm280_vm0, %v755_v53  ;;  %20772 = vmatprep.mubr.msk.f32.mxu0 %vm280_vm0, %v24740_v44  ;;  %v760_v44 = vld [vmem:[#allocation2 + $0xd7] sm:$0xff]  ;;  %v772_v53 = vld [vmem:[#allocation2 + $0x167] sm:$0xff] }
 0x1f8   : > { %20124 = vmatprep.mubr.msk.f32.mxu1 %vm280_vm0, %v756_v57  ;;  %v28471_v57 = vld [vmem:[#allocation22_spill] sm:$0xff] }
 0x1fa   : > { %20773 = vmatmul.mubr.msk.f32.gmra.mrb[58].mxu0 %vm280_vm0, %v24748_v48  ;;  %v761_v48 = vld [vmem:[#allocation2 + $0xdf] sm:$0xff] }
 0x1fb   : > { %20125 = vmatmul.mubr.msk.f32.gmra.mrb[14].mxu1 %vm280_vm0, %v757_v15  ;;  %20775 = vmatprep.mubr.msk.f32.mxu0 %vm280_vm0, %v24750_v54  ;;  %v763_v54 = vld [vmem:[#allocation2 + $0xff] sm:$0xff]  ;;  %v774_v15 = vld [vmem:[#allocation2 + $0x187] sm:$0xff] }
 0x1fc   : > { %20127 = vmatprep.mubr.msk.f32.mxu1 %vm280_vm0, %v758_v32  ;;  %v28473_v32 = vld [vmem:[#allocation24_spill] sm:$0xff] }
 0x1fe   : > { %20776 = vmatmul.mubr.msk.f32.gmra.mrb[60].mxu0 %vm280_vm0, %v24758_v58  ;;  %v25180_v58 = vld [vmem:[#allocation6 + $0x18] sm:$0x7] }
 0x1ff   : > { %20128 = vmatmul.mubr.msk.f32.gmra.mrb[16].mxu1 %vm280_vm0, %v759_v41  ;;  %20778 = vmatprep.mubr.msk.f32.mxu0 %vm280_vm0, %v24760_v3  ;;  %v765_v3 = vld [vmem:[#allocation2 + $0x10f] sm:$0xff]  ;;  %v776_v41 = vld [vmem:[#allocation2 + $0x197] sm:$0xff] }
 0x200   : > { %20130 = vmatprep.mubr.msk.f32.mxu1 %vm280_vm0, %v760_v44  ;;  %21071 = vmatprep.subr.msk.mxu0 %vm1385_vm1, %v25180_v58  ;;  %v28475_v44 = vld [vmem:[#allocation26_spill] sm:$0xff] }
 0x202   : > { %20779 = vmatmul.mubr.msk.f32.gmra.mrb[62].mxu0 %vm280_vm0, %v24770_v24  ;;  %v766_v24 = vld [vmem:[#allocation2 + $0x127] sm:$0xff] }
 0x203   : > { %20131 = vmatmul.mubr.msk.f32.gmra.mrb[18].mxu1 %vm280_vm0, %v761_v48  ;;  %20781 = vmatprep.mubr.msk.f32.mxu0 %vm280_vm0, %v24772_v39  ;;  %v28465_v39 = vld [vmem:[#allocation16_spill] sm:$0xff] }
 0x204   : > { %20133 = vmatprep.mubr.msk.f32.mxu1 %vm280_vm0, %v762_v18  ;;  %v777_v48 = vld [vmem:[#allocation2 + $0x19f] sm:$0xff]  ;;  %v778_v18 = vld [vmem:[#allocation2 + $0x1b7] sm:$0xff] }
 0x206   : > { %20782 = vmatmul.mubr.msk.f32.gmra.mrb[64].mxu0 %vm280_vm0, %v24780_v42  ;;  %v767_v42 = vld [vmem:[#allocation2 + $0x12f] sm:$0xff] }
 0x207   : > { %20134 = vmatmul.mubr.msk.f32.gmra.mrb[20].mxu1 %vm280_vm0, %v763_v54  ;;  %20784 = vmatprep.mubr.msk.f32.mxu0 %vm280_vm0, %v24782_v52  ;;  %v28468_v52 = vld [vmem:[#allocation19_spill] sm:$0xff] }
 0x208   : > { %20136 = vmatprep.mubr.msk.f32.mxu1 %vm280_vm0, %v764_v30  ;;  %v28476_v54 = vld [vmem:[#allocation27_spill] sm:$0xff]  ;;  %v28477_v30 = vld [vmem:[#allocation28_spill] sm:$0xff] }
 0x20a   : > { %20785 = vmatmul.mubr.msk.f32.gmra.mrb[66].mxu0 %vm280_vm0, %v28465_v39  ;;  %v781_v39 = vld [vmem:[#allocation2 + $0x1cf] sm:$0xff] }
 0x20b   : > { %20137 = vmatmul.mubr.msk.f32.gmra.mrb[22].mxu1 %vm280_vm0, %v765_v3  ;;  %20787 = vmatprep.mubr.msk.f32.mxu0 %vm280_vm0, %v28466_v38  ;;  %v780_v3 = vld [vmem:[#allocation2 + $0x1c7] sm:$0xff] }
 0x20c   : > { %20139 = vmatprep.mubr.msk.f32.mxu1 %vm280_vm0, %v766_v24  ;;  %v28478_v24 = vld [vmem:[#allocation29_spill] sm:$0xff] }
 0x20d   : > { %v782_v38 = vld [vmem:[#allocation2 + $0x1e7] sm:$0xff] }
 0x20e   : > { %20788 = vmatmul.mubr.msk.f32.gmra.mrb[68].mxu0 %vm280_vm0, %v28467_v11  ;;  %v783_v11 = vld [vmem:[#allocation2 + $0x1ef] sm:$0xff] }
 0x20f   : > { %20140 = vmatmul.mubr.msk.f32.gmra.mrb[24].mxu1 %vm280_vm0, %v767_v42  ;;  %20790 = vmatprep.mubr.msk.f32.mxu0 %vm280_vm0, %v28468_v52  ;;  %v28479_v42 = vld [vmem:[#allocation30_spill] sm:$0xff]  ;;  %v784_v52 = vld [vmem:[#allocation2 + $0x1f7] sm:$0xff] }
 0x210   : > { %20142 = vmatprep.mubr.msk.f32.mxu1 %vm280_vm0, %v768_v60  ;;  %v28480_v60 = vld [vmem:[#allocation31_spill] sm:$0xff] }
 0x212   : > { %20791 = vmatmul.mubr.msk.f32.gmra.mrb[70].mxu0 %vm280_vm0, %v28469_v34  ;;  %v786_v34 = vld [vmem:[#allocation2 + $0x217] sm:$0xff] }
 0x213   : > { %20143 = vmatmul.mubr.msk.f32.gmra.mrb[26].mxu1 %vm280_vm0, %v769_v22  ;;  %20793 = vmatprep.mubr.msk.f32.mxu0 %vm280_vm0, %v28470_v37  ;;  %v28481_v22 = vld [vmem:[#allocation32_spill] sm:$0xff]  ;;  %v28483_v37 = vld [vmem:[#allocation34_spill] sm:$0xff] }
 0x214   : > { %20145 = vmatprep.mubr.msk.f32.mxu1 %vm280_vm0, %v770_v26  ;;  %v785_v26 = vld [vmem:[#allocation2 + $0x1ff] sm:$0xff] }
 0x216   : > { %20794 = vmatmul.mubr.msk.f32.gmra.mrb[72].mxu0 %vm280_vm0, %v28471_v57  ;;  %v788_v57 = vld [vmem:[#allocation2 + $0x227] sm:$0xff] }
 0x217   : > { %20146 = vmatmul.mubr.msk.f32.gmra.mrb[28].mxu1 %vm280_vm0, %v771_v51  ;;  %20796 = vmatprep.mubr.msk.f32.mxu0 %vm280_vm0, %v28472_v61  ;;  %v28484_v51 = vld [vmem:[#allocation35_spill] sm:$0xff] }
 0x218   : > { %20148 = vmatprep.mubr.msk.f32.mxu1 %vm280_vm0, %v772_v53  ;;  %v787_v53 = vld [vmem:[#allocation2 + $0x21f] sm:$0xff]  ;;  %v789_v61 = vld [vmem:[#allocation2 + $0x22f] sm:$0xff] }
 0x21a   : > { %20797 = vmatmul.mubr.msk.f32.gmra.mrb[74].mxu0 %vm280_vm0, %v28473_v32  ;;  %v808_v32 = vld [vmem:[#allocation2 + $0x317] sm:$0xff] }
 0x21b   : > { %20149 = vmatmul.mubr.msk.f32.gmra.mrb[30].mxu1 %vm280_vm0, %v773_v59  ;;  %20799 = vmatprep.mubr.msk.f32.mxu0 %vm280_vm0, %v28474_v9  ;;  %v790_v59 = vld [vmem:[#allocation2 + $0x247] sm:$0xff] }
 0x21c   : > { %20151 = vmatprep.mubr.msk.f32.mxu1 %vm280_vm0, %v774_v15  ;;  %v792_v15 = vld [vmem:[#allocation2 + $0x257] sm:$0xff]  ;;  %v814_v9 = vld [vmem:[#allocation2 + $0x367] sm:$0xff] }
 0x21e   : > { %20800 = vmatmul.mubr.msk.f32.gmra.mrb[76].mxu0 %vm280_vm0, %v24840_v36  ;;  %v779_v36 = vld [vmem:[#allocation2 + $0x1bf] sm:$0xff] }
 0x21f   : > { %20152 = vmatmul.mubr.msk.f32.gmra.mrb[32].mxu1 %vm280_vm0, %v775_v13  ;;  %20802 = vmatprep.mubr.msk.f32.mxu0 %vm280_vm0, %v28475_v44  ;;  %v28485_v13 = vld [vmem:[#allocation36_spill] sm:$0xff]  ;;  %v823_v44 = vld [vmem:[#allocation2 + $0x3cf] sm:$0xff] }
 0x220   : > { %20154 = vmatprep.mubr.msk.f32.mxu1 %vm280_vm0, %v776_v41  ;;  %v822_v41 = vld [vmem:[#allocation2 + $0x3c7] sm:$0xff] }
 0x222   : > { %20803 = vmatmul.mubr.msk.f32.gmra.mrb[78].mxu0 %vm280_vm0, %v28476_v54  ;;  %v25373_v54 = vld [vmem:[#allocation2 + $0x39] sm:$0xff] }
 0x223   : > { %20155 = vmatmul.mubr.msk.f32.gmra.mrb[34].mxu1 %vm280_vm0, %v777_v48  ;;  %20805 = vmatprep.mubr.msk.f32.mxu0 %vm280_vm0, %v28477_v30  ;;  %v6012_v48 = vld [vmem:[#allocation2 + $0x618] sm:$0xff] }
 0x224   : > { %20157 = vmatprep.mubr.msk.f32.mxu1 %vm280_vm0, %v778_v18  ;;  %v824_v18 = vld [vmem:[#allocation2 + $0x3d7] sm:$0xff] }
 0x225   : > { %v826_v30 = vld [vmem:[#allocation2 + $0x3f7] sm:$0xff] }
 0x226   : > { %20806 = vmatmul.mubr.msk.f32.gmra.mrb[80].mxu0 %vm280_vm0, %v28478_v24  ;;  %v25382_v24 = vld [vmem:[#allocation2 + $0x49] sm:$0xff] }
 0x227   : > { %20158 = vmatmul.mubr.msk.f32.gmra.mrb[36].mxu1 %vm280_vm0, %v779_v36  ;;  %20808 = vmatprep.mubr.msk.f32.mxu0 %vm280_vm0, %v24862_v0  ;;  %v28482_v0 = vld [vmem:[#allocation33_spill] sm:$0xff] }
 0x228   : > { %20160 = vmatprep.mubr.msk.f32.mxu1 %vm280_vm0, %v780_v3  ;;  %v25380_v36 = vld [vmem:[#allocation2 + $0x41] sm:$0xff] }
 0x229   : > { %v827_v3 = vld [vmem:[#allocation2 + $0x3ff] sm:$0xff] }
 0x22a   : > { %20809 = vmatmul.mubr.msk.f32.gmra.mrb[82].mxu0 %vm280_vm0, %v28479_v42  ;;  %v829_v42 = vld [vmem:[#allocation2 + $0x40f] sm:$0xff] }
 0x22b   : > { %20161 = vmatmul.mubr.msk.f32.gmra.mrb[38].mxu1 %vm280_vm0, %v781_v39  ;;  %20811 = vmatprep.mubr.msk.f32.mxu0 %vm280_vm0, %v28480_v60  ;;  %v828_v39 = vld [vmem:[#allocation2 + $0x407] sm:$0xff] }
 0x22c   : > { %20163 = vmatprep.mubr.msk.f32.mxu1 %vm280_vm0, %v782_v38  ;;  %v25391_v38 = vld [vmem:[#allocation2 + $0x51] sm:$0xff]  ;;  %v25394_v60 = vld [vmem:[#allocation2 + $0x69] sm:$0xff] }
 0x22e   : > { %20812 = vmatmul.mubr.msk.f32.gmra.mrb[84].mxu0 %vm280_vm0, %v28481_v22  ;;  %v25404_v22 = vld [vmem:[#allocation2 + $0x79] sm:$0xff] }
 0x22f   : > { %20164 = vmatmul.mubr.msk.f32.gmra.mrb[40].mxu1 %vm280_vm0, %v783_v11  ;;  %20814 = vmatprep.mubr.msk.f32.mxu0 %vm280_vm0, %v28482_v0  ;;  %v830_v11 = vld [vmem:[#allocation2 + $0x427] sm:$0xff]  ;;  %v832_v0 = vld [vmem:[#allocation2 + $0x437] sm:$0xff] }
 0x230   : > { %20166 = vmatprep.mubr.msk.f32.mxu1 %vm280_vm0, %v784_v52  ;;  %v831_v52 = vld [vmem:[#allocation2 + $0x42f] sm:$0xff] }
 0x232   : > { %20815 = vmatmul.mubr.msk.f32.gmra.mrb[86].mxu0 %vm280_vm0, %v28483_v37  ;;  %v25414_v37 = vld [vmem:[#allocation2 + $0x99] sm:$0xff] }
 0x233   : > { %20167 = vmatmul.mubr.msk.f32.gmra.mrb[42].mxu1 %vm280_vm0, %v785_v26  ;;  %20817 = vmatprep.mubr.msk.f32.mxu0 %vm280_vm0, %v28484_v51  ;;  %v25412_v26 = vld [vmem:[#allocation2 + $0x81] sm:$0xff]  ;;  %v834_v51 = vld [vmem:[#allocation2 + $0x457] sm:$0xff] }
 0x234   : > { %20169 = vmatprep.mubr.msk.f32.mxu1 %vm280_vm0, %v786_v34  ;;  %v833_v34 = vld [vmem:[#allocation2 + $0x43f] sm:$0xff] }
 0x236   : > { %20818 = vmatmul.mubr.msk.f32.gmra.mrb[88].mxu0 %vm280_vm0, %v24902_v7  ;;  %v791_v7 = vld [vmem:[#allocation2 + $0x24f] sm:$0xff] }
 0x237   : > { %20170 = vmatmul.mubr.msk.f32.gmra.mrb[44].mxu1 %vm280_vm0, %v787_v53  ;;  %20820 = vmatprep.mubr.msk.f32.mxu0 %vm280_vm0, %v24904_v46  ;;  %v793_v46 = vld [vmem:[#allocation2 + $0x25f] sm:$0xff] }
 0x238   : > { %20172 = vmatprep.mubr.msk.f32.mxu1 %vm280_vm0, %v788_v57  ;;  %v25422_v53 = vld [vmem:[#allocation2 + $0xa1] sm:$0xff] }
 0x239   : > { %v835_v57 = vld [vmem:[#allocation2 + $0x45f] sm:$0xff] }
 0x23a   : > { %20821 = vmatmul.mubr.msk.f32.gmra.mrb[90].mxu0 %vm280_vm0, %v24912_v40  ;;  %v794_v40 = vld [vmem:[#allocation2 + $0x277] sm:$0xff] }
 0x23b   : > { %20173 = vmatmul.mubr.msk.f32.gmra.mrb[46].mxu1 %vm280_vm0, %v789_v61  ;;  %20823 = vmatprep.mubr.msk.f32.mxu0 %vm280_vm0, %v24914_v47  ;;  %v795_v47 = vld [vmem:[#allocation2 + $0x27f] sm:$0xff]  ;;  %v25424_v61 = vld [vmem:[#allocation2 + $0xa9] sm:$0xff] }
 0x23c   : > { %20175 = vmatprep.mubr.msk.f32.mxu1 %vm280_vm0, %v790_v59  ;;  %v836_v59 = vld [vmem:[#allocation2 + $0x467] sm:$0xff] }
 0x23e   : > { %20824 = vmatmul.mubr.msk.f32.gmra.mrb[92].mxu0 %vm280_vm0, %v24923_v56  ;;  %v796_v56 = vld [vmem:[#allocation2 + $0x287] sm:$0xff] }
 0x23f   : > { %20176 = vmatmul.mubr.msk.f32.gmra.mrb[48].mxu1 %vm280_vm0, %v791_v7  ;;  %20826 = vmatprep.mubr.msk.f32.mxu0 %vm280_vm0, %v24925_v62  ;;  %v797_v62 = vld [vmem:[#allocation2 + $0x28f] sm:$0xff] }
 0x240   : > { %20178 = vmatprep.mubr.msk.f32.mxu1 %vm280_vm0, %v792_v15  ;;  %v25432_v7 = vld [vmem:[#allocation2 + $0xb1] sm:$0xff] }
 0x241   : > { %v837_v15 = vld [vmem:[#allocation2 + $0x46f] sm:$0xff] }
 0x242   : > { %20827 = vmatmul.mubr.msk.f32.gmra.mrb[94].mxu0 %vm280_vm0, %v24935_v63  ;;  %v798_v63 = vld [vmem:[#allocation2 + $0x2a7] sm:$0xff] }
 0x243   : > { %20179 = vmatmul.mubr.msk.f32.gmra.mrb[50].mxu1 %vm280_vm0, %v793_v46  ;;  %20829 = vmatprep.mubr.msk.f32.mxu0 %vm280_vm0, %v24937_v55  ;;  %v799_v55 = vld [vmem:[#allocation2 + $0x2af] sm:$0xff] }
 0x244   : > { %20181 = vmatprep.mubr.msk.f32.mxu1 %vm280_vm0, %v794_v40  ;;  %v25434_v46 = vld [vmem:[#allocation2 + $0xc9] sm:$0xff] }
 0x245   : > { %v838_v40 = vld [vmem:[#allocation2 + $0x487] sm:$0xff] }
 0x246   : > { %20830 = vmatmul.mubr.msk.f32.gmra.mrb[96].mxu0 %vm280_vm0, %v24947_v17  ;;  %v800_v17 = vld [vmem:[#allocation2 + $0x2b7] sm:$0xff] }
 0x247   : > { %20182 = vmatmul.mubr.msk.f32.gmra.mrb[52].mxu1 %vm280_vm0, %v795_v47  ;;  %20832 = vmatprep.mubr.msk.f32.mxu0 %vm280_vm0, %v24949_v19  ;;  %v801_v19 = vld [vmem:[#allocation2 + $0x2bf] sm:$0xff]  ;;  %v25442_v47 = vld [vmem:[#allocation2 + $0xd1] sm:$0xff] }
 0x248   : > { %20184 = vmatprep.mubr.msk.f32.mxu1 %vm280_vm0, %v796_v56  ;;  %v839_v56 = vld [vmem:[#allocation2 + $0x48f] sm:$0xff] }
 0x24a   : > { %20833 = vmatmul.mubr.msk.f32.gmra.mrb[98].mxu0 %vm280_vm0, %v24959_v21  ;;  %v802_v21 = vld [vmem:[#allocation2 + $0x2d7] sm:$0xff] }
 0x24b   : > { %20185 = vmatmul.mubr.msk.f32.gmra.mrb[54].mxu1 %vm280_vm0, %v797_v62  ;;  %20835 = vmatprep.mubr.msk.f32.mxu0 %vm280_vm0, %v24961_v23  ;;  %v803_v23 = vld [vmem:[#allocation2 + $0x2df] sm:$0xff] }
 0x24c   : > { %20187 = vmatprep.mubr.msk.f32.mxu1 %vm280_vm0, %v798_v63  ;;  %v25444_v62 = vld [vmem:[#allocation2 + $0xd9] sm:$0xff] }
 0x24d   : > { %v840_v63 = vld [vmem:[#allocation2 + $0x497] sm:$0xff] }
 0x24e   : > { %20836 = vmatmul.mubr.msk.f32.gmra.mrb[100].mxu0 %vm280_vm0, %v24971_v25  ;;  %v804_v25 = vld [vmem:[#allocation2 + $0x2e7] sm:$0xff] }
 0x24f   : > { %20188 = vmatmul.mubr.msk.f32.gmra.mrb[56].mxu1 %vm280_vm0, %v799_v55  ;;  %20838 = vmatprep.mubr.msk.f32.mxu0 %vm280_vm0, %v24973_v27  ;;  %v805_v27 = vld [vmem:[#allocation2 + $0x2ef] sm:$0xff]  ;;  %v25452_v55 = vld [vmem:[#allocation2 + $0xe1] sm:$0xff] }
 0x250   : > { %20190 = vmatprep.mubr.msk.f32.mxu1 %vm280_vm0, %v800_v17  ;;  %v841_v17 = vld [vmem:[#allocation2 + $0x49f] sm:$0xff] }
 0x252   : > { %20839 = vmatmul.mubr.msk.f32.gmra.mrb[102].mxu0 %vm280_vm0, %v24983_v29  ;;  %v806_v29 = vld [vmem:[#allocation2 + $0x307] sm:$0xff] }
 0x253   : > { %20191 = vmatmul.mubr.msk.f32.gmra.mrb[58].mxu1 %vm280_vm0, %v801_v19  ;;  %20841 = vmatprep.mubr.msk.f32.mxu0 %vm280_vm0, %v24985_v31  ;;  %v3315_v31 = vld [vmem:[#allocation6 + $0x8] sm:$0x7]  ;;  %v25454_v19 = vld [vmem:[#allocation2 + $0xf9] sm:$0xff] }
 0x254   : > { %20193 = vmatprep.mubr.msk.f32.mxu1 %vm280_vm0, %v802_v21  ;;  %20295 = vmatprep.subr.msk.mxu1 %vm1385_vm1, %v3315_v31  ;;  %v842_v21 = vld [vmem:[#allocation2 + $0x4b7] sm:$0xff] }
 0x255   : > { %20296 = vmatpush3.msk.msra.mxu1 %vm1385_vm1, %v3315_v31  ;;  %v25472_v31 = vld [vmem:[#allocation2 + $0x111] sm:$0xff] }
 0x256   : > { %20842 = vmatmul.mubr.msk.f32.gmra.mrb[104].mxu0 %vm280_vm0, %v24995_v33  ;;  %v807_v33 = vld [vmem:[#allocation2 + $0x30f] sm:$0xff] }
 0x257   : > { %20194 = vmatmul.mubr.msk.f32.gmra.mrb[60].mxu1 %vm280_vm0, %v803_v23  ;;  %20844 = vmatprep.mubr.msk.f32.mxu0 %vm280_vm0, %v24997_v35  ;;  %v809_v35 = vld [vmem:[#allocation2 + $0x31f] sm:$0xff] }
 0x258   : > { %20196 = vmatprep.mubr.msk.f32.mxu1 %vm280_vm0, %v804_v25  ;;  %v25462_v23 = vld [vmem:[#allocation2 + $0x101] sm:$0xff] }
 0x259   : > { %v843_v25 = vld [vmem:[#allocation2 + $0x4bf] sm:$0xff] }
 0x25a   : > { %20845 = vmatmul.mubr.msk.f32.gmra.mrb[106].mxu0 %vm280_vm0, %v25007_v45  ;;  %v810_v45 = vld [vmem:[#allocation2 + $0x337] sm:$0xff] }
 0x25b   : > { %20197 = vmatmul.mubr.msk.f32.gmra.mrb[62].mxu1 %vm280_vm0, %v805_v27  ;;  %20847 = vmatprep.mubr.msk.f32.mxu0 %vm280_vm0, %v25009_v50  ;;  %v25324_v50 = vld [vmem:[#allocation6 + $0xc] sm:$0x7] }
 0x25c   : > { %20199 = vmatprep.mubr.msk.f32.mxu1 %vm280_vm0, %v806_v29  ;;  %22157 = vmatprep.subr.msk.mxu1 %vm1385_vm1, %v25324_v50  ;;  %v25464_v27 = vld [vmem:[#allocation2 + $0x109] sm:$0xff] }
 0x25d   : > { %v844_v29 = vld [vmem:[#allocation2 + $0x4c7] sm:$0xff] }
 0x25e   : > { %20848 = vmatmul.mubr.msk.f32.gmra.mrb[108].mxu0 %vm280_vm0, %v25019_v2  ;;  %v811_v2 = vld [vmem:[#allocation2 + $0x33f] sm:$0xff] }
 0x25f   : > { %20200 = vmatmul.mubr.msk.f32.gmra.mrb[64].mxu1 %vm280_vm0, %v807_v33  ;;  %20850 = vmatprep.mubr.msk.f32.mxu0 %vm280_vm0, %v25021_v4  ;;  %v812_v4 = vld [vmem:[#allocation2 + $0x347] sm:$0xff]  ;;  %v845_v33 = vld [vmem:[#allocation2 + $0x4cf] sm:$0xff] }
 0x260   : > { %20202 = vmatprep.mubr.msk.f32.mxu1 %vm280_vm0, %v808_v32  ;;  %v25474_v32 = vld [vmem:[#allocation2 + $0x129] sm:$0xff] }
 0x262   : > { %20851 = vmatmul.mubr.msk.f32.gmra.mrb[110].mxu0 %vm280_vm0, %v25031_v6  ;;  %v813_v6 = vld [vmem:[#allocation2 + $0x34f] sm:$0xff] }
 0x263   : > { %20203 = vmatmul.mubr.msk.f32.gmra.mrb[66].mxu1 %vm280_vm0, %v809_v35  ;;  %20853 = vmatprep.mubr.msk.f32.mxu0 %vm280_vm0, %v25033_v8  ;;  %v815_v8 = vld [vmem:[#allocation2 + $0x36f] sm:$0xff]  ;;  %v846_v35 = vld [vmem:[#allocation2 + $0x4e7] sm:$0xff] }
 0x264   : > { %20205 = vmatprep.mubr.msk.f32.mxu1 %vm280_vm0, %v810_v45  ;;  %v25482_v45 = vld [vmem:[#allocation2 + $0x131] sm:$0xff] }
 0x266   : > { %20854 = vmatmul.mubr.msk.f32.gmra.mrb[112].mxu0 %vm280_vm0, %v25043_v10  ;;  %v816_v10 = vld [vmem:[#allocation2 + $0x377] sm:$0xff] }
 0x267   : > { %20206 = vmatmul.mubr.msk.f32.gmra.mrb[68].mxu1 %vm280_vm0, %v811_v2  ;;  %20856 = vmatprep.mubr.msk.f32.mxu0 %vm280_vm0, %v25045_v12  ;;  %v817_v12 = vld [vmem:[#allocation2 + $0x37f] sm:$0xff]  ;;  %v847_v2 = vld [vmem:[#allocation2 + $0x4ef] sm:$0xff] }
 0x268   : > { %20208 = vmatprep.mubr.msk.f32.mxu1 %vm280_vm0, %v812_v4  ;;  %v25484_v4 = vld [vmem:[#allocation2 + $0x139] sm:$0xff] }
 0x26a   : > { %20857 = vmatmul.mubr.msk.f32.gmra.mrb[114].mxu0 %vm280_vm0, %v25055_v14  ;;  %v818_v14 = vld [vmem:[#allocation2 + $0x397] sm:$0xff] }
 0x26b   : > { %20209 = vmatmul.mubr.msk.f32.gmra.mrb[70].mxu1 %vm280_vm0, %v813_v6  ;;  %20859 = vmatprep.mubr.msk.f32.mxu0 %vm280_vm0, %v25057_v16  ;;  %v819_v16 = vld [vmem:[#allocation2 + $0x39f] sm:$0xff]  ;;  %v848_v6 = vld [vmem:[#allocation2 + $0x4f7] sm:$0xff] }
 0x26c   : > { %20211 = vmatprep.mubr.msk.f32.mxu1 %vm280_vm0, %v814_v9  ;;  %v25492_v9 = vld [vmem:[#allocation2 + $0x141] sm:$0xff] }
 0x26e   : > { %20860 = vmatmul.mubr.msk.f32.gmra.mrb[116].mxu0 %vm280_vm0, %v25067_v20  ;;  %v820_v20 = vld [vmem:[#allocation2 + $0x3a7] sm:$0xff] }
 0x26f   : > { %20212 = vmatmul.mubr.msk.f32.gmra.mrb[72].mxu1 %vm280_vm0, %v815_v8  ;;  %20862 = vmatprep.mubr.msk.f32.mxu0 %vm280_vm0, %v25069_v28  ;;  %v821_v28 = vld [vmem:[#allocation2 + $0x3af] sm:$0xff]  ;;  %v849_v8 = vld [vmem:[#allocation2 + $0x4ff] sm:$0xff] }
 0x270   : > { %20214 = vmatprep.mubr.msk.f32.mxu1 %vm280_vm0, %v816_v10  ;;  %v25494_v10 = vld [vmem:[#allocation2 + $0x159] sm:$0xff] }
 0x272   : > { %20863 = vmatmul.mubr.msk.f32.gmra.mrb[118].mxu0 %vm280_vm0, %v25079_v43  ;;  %v6010_v43 = vld [vmem:[#allocation2 + $0x608] sm:$0xff] }
 0x273   : > { %20215 = vmatmul.mubr.msk.f32.gmra.mrb[74].mxu1 %vm280_vm0, %v817_v12  ;;  %20865 = vmatprep.mubr.msk.f32.mxu0 %vm280_vm0, %v25081_v49  ;;  %v6011_v49 = vld [vmem:[#allocation2 + $0x610] sm:$0xff] }
 0x274   : > { %20217 = vmatprep.mubr.msk.f32.mxu1 %vm280_vm0, %v818_v14  ;;  %v850_v12 = vld [vmem:[#allocation2 + $0x517] sm:$0xff]  ;;  %v25502_v14 = vld [vmem:[#allocation2 + $0x161] sm:$0xff] }
 0x276   : > { %20866 = vmatmul.mubr.msk.f32.gmra.mrb[120].mxu0 %vm280_vm0, %v28485_v13  ;;  %v852_v13 = vld [vmem:[#allocation2 + $0x527] sm:$0xff] }
 0x277   : > { %20218 = vmatmul.mubr.msk.f32.gmra.mrb[76].mxu1 %vm280_vm0, %v819_v16  ;;  %20868 = vmatprep.mubr.msk.f32.mxu0 %vm280_vm0, %v25093_v1  ;;  %v6013_v1 = vld [vmem:[#allocation2 + $0x620] sm:$0xff] }
 0x278   : > { %20220 = vmatprep.mubr.msk.f32.mxu1 %vm280_vm0, %v820_v20  ;;  %v851_v16 = vld [vmem:[#allocation2 + $0x51f] sm:$0xff]  ;;  %v25504_v20 = vld [vmem:[#allocation2 + $0x169] sm:$0xff] }
 0x27a   : > { %20869 = vmatmul.mubr.msk.f32.gmra.mrb[122].mxu0 %vm280_vm0, %v25103_v5  ;;  %v825_v5 = vld [vmem:[#allocation2 + $0x3df] sm:$0xff] }
 0x27b   : > { %20221 = vmatmul.mubr.msk.f32.gmra.mrb[78].mxu1 %vm280_vm0, %v821_v28  ;;  %20871 = vmatprep.mubr.msk.f32.mxu0 %vm280_vm0, %v6010_v43  ;;  %v25512_v28 = vld [vmem:[#allocation2 + $0x171] sm:$0xff] }
 0x27c   : > { %20223 = vmatprep.mubr.msk.f32.mxu1 %vm280_vm0, %v822_v41  ;;  %v853_v43 = vld [vmem:[#allocation2 + $0x52f] sm:$0xff] }
 0x27d   : > { %v25514_v41 = vld [vmem:[#allocation2 + $0x189] sm:$0xff] }
 0x27e   : > { %20872 = vmatmul.mubr.msk.f32.gmra.mrb[124].mxu0 %vm280_vm0, %v6011_v49  ;;  %v854_v49 = vld [vmem:[#allocation2 + $0x547] sm:$0xff] }
 0x27f   : > { %20224 = vmatmul.mubr.msk.f32.gmra.mrb[80].mxu1 %vm280_vm0, %v823_v44  ;;  %20874 = vmatprep.mubr.msk.f32.mxu0 %vm280_vm0, %v6012_v48  ;;  %v25522_v44 = vld [vmem:[#allocation2 + $0x191] sm:$0xff] }
 0x280   : > { %20226 = vmatprep.mubr.msk.f32.mxu1 %vm280_vm0, %v824_v18  ;;  %v855_v48 = vld [vmem:[#allocation2 + $0x54f] sm:$0xff]  ;;  %v25524_v18 = vld [vmem:[#allocation2 + $0x199] sm:$0xff] }
 0x282   : > { %20875 = vmatmul.mubr.msk.f32.gmra.mrb[126].mxu0 %vm280_vm0, %v6013_v1  ;;  %v856_v1 = vld [vmem:[#allocation2 + $0x557] sm:$0xff] }
 0x283   : > { %20227 = vmatmul.mubr.msk.f32.gmra.mrb[82].mxu1 %vm280_vm0, %v825_v5  ;;  %20879 = vmatprep.mubr.msk.f32.mxu0 %vm280_vm0, %v25373_v54  ;;  %v25532_v5 = vld [vmem:[#allocation2 + $0x1a1] sm:$0xff] }
 0x284   : > { %20229 = vmatprep.mubr.msk.f32.mxu1 %vm280_vm0, %v826_v30  ;;  %v857_v30 = vld [vmem:[#allocation2 + $0x55f] sm:$0xff] }
 0x286   : > { %20880 = vmatmul.mubr.msk.f32.vlgmr.msra.gmra.mrb[0].mxu0 %vm280_vm0, %v25380_v36 }
 0x287   : > { %20230 = vmatmul.mubr.msk.f32.gmra.mrb[84].mxu1 %vm280_vm0, %v827_v3  ;;  %21072 = vmatpush3.msk.msra.mxu0 %vm1385_vm1, %v25180_v58  ;;  %v25402_v58 = vld [vmem:[#allocation2 + $0x71] sm:$0xff]  ;;  %v25534_v3 = vld [vmem:[#allocation2 + $0x1b9] sm:$0xff] }
 0x288   : > { %20882 = vmatprep.mubr.msk.f32.mxu0 %vm280_vm0, %v25382_v24  ;;  %20232 = vmatprep.mubr.msk.f32.mxu1 %vm280_vm0, %v828_v39  ;;  %v858_v39 = vld [vmem:[#allocation2 + $0x577] sm:$0xff] }
 0x28a   : > { %20883 = vmatmul.mubr.msk.f32.gmra.mrb[2].mxu0 %vm280_vm0, %v25391_v38 }
 0x28b   : > { %20233 = vmatmul.mubr.msk.f32.gmra.mrb[86].mxu1 %vm280_vm0, %v829_v42  ;;  %20885 = vmatprep.mubr.msk.f32.mxu0 %vm280_vm0, %v25394_v60  ;;  %v25542_v42 = vld [vmem:[#allocation2 + $0x1c1] sm:$0xff] }
 0x28c   : > { %20235 = vmatprep.mubr.msk.f32.mxu1 %vm280_vm0, %v830_v11  ;;  %v859_v11 = vld [vmem:[#allocation2 + $0x57f] sm:$0xff] }
 0x28e   : > { %20886 = vmatmul.mubr.msk.f32.gmra.mrb[4].mxu0 %vm280_vm0, %v25402_v58 }
 0x28f   : > { %20236 = vmatmul.mubr.msk.f32.gmra.mrb[88].mxu1 %vm280_vm0, %v831_v52  ;;  %20888 = vmatprep.mubr.msk.f32.mxu0 %vm280_vm0, %v25404_v22  ;;  %v25544_v52 = vld [vmem:[#allocation2 + $0x1c9] sm:$0xff] }
 0x290   : > { %20238 = vmatprep.mubr.msk.f32.mxu1 %vm280_vm0, %v832_v0  ;;  %v860_v0 = vld [vmem:[#allocation2 + $0x587] sm:$0xff] }
 0x292   : > { %20889 = vmatmul.mubr.msk.f32.gmra.mrb[6].mxu0 %vm280_vm0, %v25412_v26 }
 0x293   : > { %20239 = vmatmul.mubr.msk.f32.gmra.mrb[90].mxu1 %vm280_vm0, %v833_v34  ;;  %20891 = vmatprep.mubr.msk.f32.mxu0 %vm280_vm0, %v25414_v37  ;;  %v25552_v34 = vld [vmem:[#allocation2 + $0x1d1] sm:$0xff] }
 0x294   : > { %20241 = vmatprep.mubr.msk.f32.mxu1 %vm280_vm0, %v834_v51  ;;  %v861_v51 = vld [vmem:[#allocation2 + $0x58f] sm:$0xff] }
 0x296   : > { %20892 = vmatmul.mubr.msk.f32.gmra.mrb[8].mxu0 %vm280_vm0, %v25422_v53 }
 0x297   : > { %20242 = vmatmul.mubr.msk.f32.gmra.mrb[92].mxu1 %vm280_vm0, %v835_v57  ;;  %20894 = vmatprep.mubr.msk.f32.mxu0 %vm280_vm0, %v25424_v61  ;;  %v25554_v57 = vld [vmem:[#allocation2 + $0x1e9] sm:$0xff] }
 0x298   : > { %20244 = vmatprep.mubr.msk.f32.mxu1 %vm280_vm0, %v836_v59  ;;  %v862_v59 = vld [vmem:[#allocation2 + $0x5a7] sm:$0xff] }
 0x29a   : > { %20895 = vmatmul.mubr.msk.f32.gmra.mrb[10].mxu0 %vm280_vm0, %v25432_v7 }
 0x29b   : > { %20245 = vmatmul.mubr.msk.f32.gmra.mrb[94].mxu1 %vm280_vm0, %v837_v15  ;;  %20897 = vmatprep.mubr.msk.f32.mxu0 %vm280_vm0, %v25434_v46  ;;  %v25562_v15 = vld [vmem:[#allocation2 + $0x1f1] sm:$0xff] }
 0x29c   : > { %20247 = vmatprep.mubr.msk.f32.mxu1 %vm280_vm0, %v838_v40  ;;  %v863_v40 = vld [vmem:[#allocation2 + $0x5af] sm:$0xff] }
 0x29e   : > { %20898 = vmatmul.mubr.msk.f32.gmra.mrb[12].mxu0 %vm280_vm0, %v25442_v47 }
 0x29f   : > { %20248 = vmatmul.mubr.msk.f32.gmra.mrb[96].mxu1 %vm280_vm0, %v839_v56  ;;  %20900 = vmatprep.mubr.msk.f32.mxu0 %vm280_vm0, %v25444_v62  ;;  %v25564_v56 = vld [vmem:[#allocation2 + $0x1f9] sm:$0xff] }
 0x2a0   : > { %20250 = vmatprep.mubr.msk.f32.mxu1 %vm280_vm0, %v840_v63  ;;  %v864_v63 = vld [vmem:[#allocation2 + $0x5b7] sm:$0xff] }
 0x2a2   : > { %20901 = vmatmul.mubr.msk.f32.gmra.mrb[14].mxu0 %vm280_vm0, %v25452_v55 }
 0x2a3   : > { %20251 = vmatmul.mubr.msk.f32.gmra.mrb[98].mxu1 %vm280_vm0, %v841_v17  ;;  %20903 = vmatprep.mubr.msk.f32.mxu0 %vm280_vm0, %v25454_v19  ;;  %v25572_v17 = vld [vmem:[#allocation2 + $0x201] sm:$0xff] }
 0x2a4   : > { %20253 = vmatprep.mubr.msk.f32.mxu1 %vm280_vm0, %v842_v21  ;;  %v865_v21 = vld [vmem:[#allocation2 + $0x5bf] sm:$0xff] }
 0x2a6   : > { %20904 = vmatmul.mubr.msk.f32.gmra.mrb[16].mxu0 %vm280_vm0, %v25462_v23 }
 0x2a7   : > { %20254 = vmatmul.mubr.msk.f32.gmra.mrb[100].mxu1 %vm280_vm0, %v843_v25  ;;  %20906 = vmatprep.mubr.msk.f32.mxu0 %vm280_vm0, %v25464_v27  ;;  %v25574_v25 = vld [vmem:[#allocation2 + $0x219] sm:$0xff] }
 0x2a8   : > { %20256 = vmatprep.mubr.msk.f32.mxu1 %vm280_vm0, %v844_v29  ;;  %v866_v29 = vld [vmem:[#allocation2 + $0x5d7] sm:$0xff] }
 0x2aa   : > { %20907 = vmatmul.mubr.msk.f32.gmra.mrb[18].mxu0 %vm280_vm0, %v25472_v31 }
 0x2ab   : > { %20257 = vmatmul.mubr.msk.f32.gmra.mrb[102].mxu1 %vm280_vm0, %v845_v33  ;;  %20909 = vmatprep.mubr.msk.f32.mxu0 %vm280_vm0, %v25474_v32  ;;  %v25582_v33 = vld [vmem:[#allocation2 + $0x221] sm:$0xff] }
 0x2ac   : > { %20259 = vmatprep.mubr.msk.f32.mxu1 %vm280_vm0, %v846_v35  ;;  %v867_v35 = vld [vmem:[#allocation2 + $0x5df] sm:$0xff] }
 0x2ae   : > { %20910 = vmatmul.mubr.msk.f32.gmra.mrb[20].mxu0 %vm280_vm0, %v25482_v45 }
 0x2af   : > { %20260 = vmatmul.mubr.msk.f32.gmra.mrb[104].mxu1 %vm280_vm0, %v847_v2  ;;  %20912 = vmatprep.mubr.msk.f32.mxu0 %vm280_vm0, %v25484_v4  ;;  %v25584_v2 = vld [vmem:[#allocation2 + $0x229] sm:$0xff] }
 0x2b0   : > { %20262 = vmatprep.mubr.msk.f32.mxu1 %vm280_vm0, %v848_v6  ;;  %v868_v6 = vld [vmem:[#allocation2 + $0x5e7] sm:$0xff] }
 0x2b2   : > { %20913 = vmatmul.mubr.msk.f32.gmra.mrb[22].mxu0 %vm280_vm0, %v25492_v9 }
 0x2b3   : > { %20263 = vmatmul.mubr.msk.f32.gmra.mrb[106].mxu1 %vm280_vm0, %v849_v8  ;;  %20915 = vmatprep.mubr.msk.f32.mxu0 %vm280_vm0, %v25494_v10  ;;  %v25592_v8 = vld [vmem:[#allocation2 + $0x231] sm:$0xff] }
 0x2b4   : > { %20265 = vmatprep.mubr.msk.f32.mxu1 %vm280_vm0, %v850_v12  ;;  %v869_v12 = vld [vmem:[#allocation2 + $0x5ef] sm:$0xff] }
 0x2b6   : > { %20916 = vmatmul.mubr.msk.f32.gmra.mrb[24].mxu0 %vm280_vm0, %v25502_v14 }
 0x2b7   : > { %20266 = vmatmul.mubr.msk.f32.gmra.mrb[108].mxu1 %vm280_vm0, %v851_v16  ;;  %20918 = vmatprep.mubr.msk.f32.mxu0 %vm280_vm0, %v25504_v20  ;;  %v25594_v16 = vld [vmem:[#allocation2 + $0x249] sm:$0xff] }
 0x2b8   : > { %20268 = vmatprep.mubr.msk.f32.mxu1 %vm280_vm0, %v852_v13  ;;  %v3186_v13 = vld [vmem:[#allocation2 + $0x9] sm:$0xff] }
 0x2ba   : > { %20919 = vmatmul.mubr.msk.f32.gmra.mrb[26].mxu0 %vm280_vm0, %v25512_v28 }
 0x2bb   : > { %20269 = vmatmul.mubr.msk.f32.gmra.mrb[110].mxu1 %vm280_vm0, %v853_v43  ;;  %20921 = vmatprep.mubr.msk.f32.mxu0 %vm280_vm0, %v25514_v41  ;;  %v25602_v43 = vld [vmem:[#allocation2 + $0x251] sm:$0xff] }
 0x2bc   : > { %20271 = vmatprep.mubr.msk.f32.mxu1 %vm280_vm0, %v854_v49  ;;  %v3187_v49 = vld [vmem:[#allocation2 + $0x11] sm:$0xff] }
 0x2be   : > { %20922 = vmatmul.mubr.msk.f32.gmra.mrb[28].mxu0 %vm280_vm0, %v25522_v44 }
 0x2bf   : > { %20272 = vmatmul.mubr.msk.f32.gmra.mrb[112].mxu1 %vm280_vm0, %v855_v48  ;;  %20924 = vmatprep.mubr.msk.f32.mxu0 %vm280_vm0, %v25524_v18  ;;  %v25604_v48 = vld [vmem:[#allocation2 + $0x259] sm:$0xff] }
 0x2c0   : > { %20274 = vmatprep.mubr.msk.f32.mxu1 %vm280_vm0, %v856_v1  ;;  %v3188_v1 = vld [vmem:[#allocation2 + $0x19] sm:$0xff] }
 0x2c2   : > { %20925 = vmatmul.mubr.msk.f32.gmra.mrb[30].mxu0 %vm280_vm0, %v25532_v5 }
 0x2c3   : > { %20275 = vmatmul.mubr.msk.f32.gmra.mrb[114].mxu1 %vm280_vm0, %v857_v30  ;;  %20927 = vmatprep.mubr.msk.f32.mxu0 %vm280_vm0, %v25534_v3  ;;  %v25612_v30 = vld [vmem:[#allocation2 + $0x261] sm:$0xff] }
 0x2c4   : > { %20277 = vmatprep.mubr.msk.f32.mxu1 %vm280_vm0, %v858_v39  ;;  %v3189_v39 = vld [vmem:[#allocation2 + $0x21] sm:$0xff] }
 0x2c6   : > { %20928 = vmatmul.mubr.msk.f32.gmra.mrb[32].mxu0 %vm280_vm0, %v25542_v42 }
 0x2c7   : > { %20278 = vmatmul.mubr.msk.f32.gmra.mrb[116].mxu1 %vm280_vm0, %v859_v11  ;;  %20930 = vmatprep.mubr.msk.f32.mxu0 %vm280_vm0, %v25544_v52  ;;  %v25614_v11 = vld [vmem:[#allocation2 + $0x279] sm:$0xff] }
 0x2c8   : > { %20280 = vmatprep.mubr.msk.f32.mxu1 %vm280_vm0, %v860_v0  ;;  %v25625_v0 = vld [vmem:[#allocation2 + $0x281] sm:$0xff] }
 0x2ca   : > { %20931 = vmatmul.mubr.msk.f32.gmra.mrb[34].mxu0 %vm280_vm0, %v25552_v34 }
 0x2cb   : > { %20281 = vmatmul.mubr.msk.f32.gmra.mrb[118].mxu1 %vm280_vm0, %v861_v51  ;;  %20933 = vmatprep.mubr.msk.f32.mxu0 %vm280_vm0, %v25554_v57  ;;  %v25627_v51 = vld [vmem:[#allocation2 + $0x289] sm:$0xff] }
 0x2cc   : > { %20283 = vmatprep.mubr.msk.f32.mxu1 %vm280_vm0, %v862_v59  ;;  %v25639_v59 = vld [vmem:[#allocation2 + $0x2a9] sm:$0xff] }
 0x2ce   : > { %20934 = vmatmul.mubr.msk.f32.gmra.mrb[36].mxu0 %vm280_vm0, %v25562_v15 }
 0x2cf   : > { %20284 = vmatmul.mubr.msk.f32.gmra.mrb[120].mxu1 %vm280_vm0, %v863_v40  ;;  %20936 = vmatprep.mubr.msk.f32.mxu0 %vm280_vm0, %v25564_v56  ;;  %v25751_v40 = vld [vmem:[#allocation2 + $0x379] sm:$0xff] }
 0x2d0   : > { %20286 = vmatprep.mubr.msk.f32.mxu1 %vm280_vm0, %v864_v63  ;;  %v25883_v63 = vld [vmem:[#allocation2 + $0x489] sm:$0xff] }
 0x2d2   : > { %20937 = vmatmul.mubr.msk.f32.gmra.mrb[38].mxu0 %vm280_vm0, %v25572_v17 }
 0x2d3   : > { %20287 = vmatmul.mubr.msk.f32.gmra.mrb[122].mxu1 %vm280_vm0, %v865_v21  ;;  %20939 = vmatprep.mubr.msk.f32.mxu0 %vm280_vm0, %v25574_v25  ;;  %v25895_v21 = vld [vmem:[#allocation2 + $0x499] sm:$0xff] }
 0x2d4   : > { %20289 = vmatprep.mubr.msk.f32.mxu1 %vm280_vm0, %v866_v29  ;;  %v25907_v29 = vld [vmem:[#allocation2 + $0x4b9] sm:$0xff] }
 0x2d6   : > { %20940 = vmatmul.mubr.msk.f32.gmra.mrb[40].mxu0 %vm280_vm0, %v25582_v33 }
 0x2d7   : > { %20290 = vmatmul.mubr.msk.f32.gmra.mrb[124].mxu1 %vm280_vm0, %v867_v35  ;;  %20942 = vmatprep.mubr.msk.f32.mxu0 %vm280_vm0, %v25584_v2  ;;  %v25919_v35 = vld [vmem:[#allocation2 + $0x4c9] sm:$0xff] }
 0x2d8   : > { %20292 = vmatprep.mubr.msk.f32.mxu1 %vm280_vm0, %v868_v6  ;;  %v25931_v6 = vld [vmem:[#allocation2 + $0x4e9] sm:$0xff] }
 0x2da   : > { %20943 = vmatmul.mubr.msk.f32.gmra.mrb[42].mxu0 %vm280_vm0, %v25592_v8 }
 0x2db   : > { %20293 = vmatmul.mubr.msk.f32.gmra.mrb[126].mxu1 %vm280_vm0, %v869_v12  ;;  %20945 = vmatprep.mubr.msk.f32.mxu0 %vm280_vm0, %v25594_v16  ;;  %v25943_v12 = vld [vmem:[#allocation2 + $0x4f9] sm:$0xff] }
 0x2dc   : > { %20297 = vmatprep.mubr.msk.f32.mxu1 %vm280_vm0, %v3186_v13  ;;  %v25955_v13 = vld [vmem:[#allocation2 + $0x519] sm:$0xff] }
 0x2de   : > { %20946 = vmatmul.mubr.msk.f32.gmra.mrb[44].mxu0 %vm280_vm0, %v25602_v43 }
 0x2df   : > { %20298 = vmatmul.mubr.msk.f32.vlgmr.msra.gmra.mrb[0].mxu1 %vm280_vm0, %v3187_v49  ;;  %20948 = vmatprep.mubr.msk.f32.mxu0 %vm280_vm0, %v25604_v48  ;;  %v25967_v49 = vld [vmem:[#allocation2 + $0x529] sm:$0xff] }
 0x2e0   : > { %20300 = vmatprep.mubr.msk.f32.mxu1 %vm280_vm0, %v3188_v1  ;;  %22158 = vmatpush3.msk.msra.mxu1 %vm1385_vm1, %v25324_v50  ;;  %v25637_v50 = vld [vmem:[#allocation2 + $0x291] sm:$0xff]  ;;  %v25979_v1 = vld [vmem:[#allocation2 + $0x549] sm:$0xff] }
 0x2e2   : > { %20949 = vmatmul.mubr.msk.f32.gmra.mrb[46].mxu0 %vm280_vm0, %v25612_v30 }
 0x2e3   : > { %20301 = vmatmul.mubr.msk.f32.gmra.mrb[2].mxu1 %vm280_vm0, %v3189_v39  ;;  %20951 = vmatprep.mubr.msk.f32.mxu0 %vm280_vm0, %v25614_v11  ;;  %v25991_v39 = vld [vmem:[#allocation2 + $0x559] sm:$0xff] }
 0x2e4   : > { %20303 = vmatprep.mubr.msk.f32.mxu1 %vm280_vm0, %v25373_v54  ;;  %v25649_v54 = vld [vmem:[#allocation2 + $0x2b1] sm:$0xff] }
 0x2e6   : > { %20952 = vmatmul.mubr.msk.f32.gmra.mrb[48].mxu0 %vm280_vm0, %v25625_v0 }
 0x2e7   : > { %20304 = vmatmul.mubr.msk.f32.gmra.mrb[4].mxu1 %vm280_vm0, %v25380_v36  ;;  %20954 = vmatprep.mubr.msk.f32.mxu0 %vm280_vm0, %v25627_v51  ;;  %v25651_v36 = vld [vmem:[#allocation2 + $0x2b9] sm:$0xff] }
 0x2e8   : > { %20306 = vmatprep.mubr.msk.f32.mxu1 %vm280_vm0, %v25382_v24  ;;  %v25661_v24 = vld [vmem:[#allocation2 + $0x2c1] sm:$0xff] }
 0x2ea   : > { %20955 = vmatmul.mubr.msk.f32.gmra.mrb[50].mxu0 %vm280_vm0, %v25637_v50 }
 0x2eb   : > { %20307 = vmatmul.mubr.msk.f32.gmra.mrb[6].mxu1 %vm280_vm0, %v25391_v38  ;;  %20957 = vmatprep.mubr.msk.f32.mxu0 %vm280_vm0, %v25639_v59  ;;  %v25663_v38 = vld [vmem:[#allocation2 + $0x2d9] sm:$0xff] }
 0x2ec   : > { %20309 = vmatprep.mubr.msk.f32.mxu1 %vm280_vm0, %v25394_v60  ;;  %v25673_v60 = vld [vmem:[#allocation2 + $0x2e1] sm:$0xff] }
 0x2ee   : > { %20958 = vmatmul.mubr.msk.f32.gmra.mrb[52].mxu0 %vm280_vm0, %v25649_v54 }
 0x2ef   : > { %20310 = vmatmul.mubr.msk.f32.gmra.mrb[8].mxu1 %vm280_vm0, %v25402_v58  ;;  %20960 = vmatprep.mubr.msk.f32.mxu0 %vm280_vm0, %v25651_v36  ;;  %v25675_v58 = vld [vmem:[#allocation2 + $0x2e9] sm:$0xff] }
 0x2f0   : > { %20312 = vmatprep.mubr.msk.f32.mxu1 %vm280_vm0, %v25404_v22  ;;  %v25685_v22 = vld [vmem:[#allocation2 + $0x2f1] sm:$0xff] }
 0x2f2   : > { %20961 = vmatmul.mubr.msk.f32.gmra.mrb[54].mxu0 %vm280_vm0, %v25661_v24 }
 0x2f3   : > { %20313 = vmatmul.mubr.msk.f32.gmra.mrb[10].mxu1 %vm280_vm0, %v25412_v26  ;;  %20963 = vmatprep.mubr.msk.f32.mxu0 %vm280_vm0, %v25663_v38  ;;  %v25687_v26 = vld [vmem:[#allocation2 + $0x309] sm:$0xff] }
 0x2f4   : > { %20315 = vmatprep.mubr.msk.f32.mxu1 %vm280_vm0, %v25414_v37  ;;  %v25697_v37 = vld [vmem:[#allocation2 + $0x311] sm:$0xff] }
 0x2f6   : > { %20964 = vmatmul.mubr.msk.f32.gmra.mrb[56].mxu0 %vm280_vm0, %v25673_v60 }
 0x2f7   : > { %20316 = vmatmul.mubr.msk.f32.gmra.mrb[12].mxu1 %vm280_vm0, %v25422_v53  ;;  %20966 = vmatprep.mubr.msk.f32.mxu0 %vm280_vm0, %v25675_v58  ;;  %v25699_v53 = vld [vmem:[#allocation2 + $0x319] sm:$0xff] }
 0x2f8   : > { %20318 = vmatprep.mubr.msk.f32.mxu1 %vm280_vm0, %v25424_v61  ;;  %v25709_v61 = vld [vmem:[#allocation2 + $0x321] sm:$0xff] }
 0x2fa   : > { %20967 = vmatmul.mubr.msk.f32.gmra.mrb[58].mxu0 %vm280_vm0, %v25685_v22 }
 0x2fb   : > { %20319 = vmatmul.mubr.msk.f32.gmra.mrb[14].mxu1 %vm280_vm0, %v25432_v7  ;;  %20969 = vmatprep.mubr.msk.f32.mxu0 %vm280_vm0, %v25687_v26  ;;  %v25711_v7 = vld [vmem:[#allocation2 + $0x339] sm:$0xff] }
 0x2fc   : > { %20321 = vmatprep.mubr.msk.f32.mxu1 %vm280_vm0, %v25434_v46  ;;  %v25721_v46 = vld [vmem:[#allocation2 + $0x341] sm:$0xff] }
 0x2fe   : > { %20970 = vmatmul.mubr.msk.f32.gmra.mrb[60].mxu0 %vm280_vm0, %v25697_v37 }
 0x2ff   : > { %20322 = vmatmul.mubr.msk.f32.gmra.mrb[16].mxu1 %vm280_vm0, %v25442_v47  ;;  %20972 = vmatprep.mubr.msk.f32.mxu0 %vm280_vm0, %v25699_v53  ;;  %v25723_v47 = vld [vmem:[#allocation6 + $0x1c] sm:$0x7] }
 0x300   : > { %20324 = vmatprep.mubr.msk.f32.mxu1 %vm280_vm0, %v25444_v62  ;;  %v25725_v62 = vld [vmem:[#allocation2 + $0x349] sm:$0xff]  ;;  %21265 = vmatprep.subr.msk.mxu0 %vm1385_vm1, %v25723_v47 }
 0x302   : > { %20973 = vmatmul.mubr.msk.f32.gmra.mrb[62].mxu0 %vm280_vm0, %v25709_v61 }
 0x303   : > { %20325 = vmatmul.mubr.msk.f32.gmra.mrb[18].mxu1 %vm280_vm0, %v25452_v55  ;;  %20975 = vmatprep.mubr.msk.f32.mxu0 %vm280_vm0, %v25711_v7  ;;  %v25737_v55 = vld [vmem:[#allocation2 + $0x351] sm:$0xff] }
 0x304   : > { %20327 = vmatprep.mubr.msk.f32.mxu1 %vm280_vm0, %v25454_v19  ;;  %v25739_v19 = vld [vmem:[#allocation2 + $0x369] sm:$0xff] }
 0x306   : > { %20976 = vmatmul.mubr.msk.f32.gmra.mrb[64].mxu0 %vm280_vm0, %v25721_v46 }
 0x307   : > { %20328 = vmatmul.mubr.msk.f32.gmra.mrb[20].mxu1 %vm280_vm0, %v25462_v23  ;;  %20978 = vmatprep.mubr.msk.f32.mxu0 %vm280_vm0, %v25725_v62  ;;  %v25749_v23 = vld [vmem:[#allocation2 + $0x371] sm:$0xff] }
 0x308   : > { %20330 = vmatprep.mubr.msk.f32.mxu1 %vm280_vm0, %v25464_v27  ;;  %v25761_v27 = vld [vmem:[#allocation2 + $0x381] sm:$0xff] }
 0x30a   : > { %20979 = vmatmul.mubr.msk.f32.gmra.mrb[66].mxu0 %vm280_vm0, %v25737_v55 }
 0x30b   : > { %20331 = vmatmul.mubr.msk.f32.gmra.mrb[22].mxu1 %vm280_vm0, %v25472_v31  ;;  %20981 = vmatprep.mubr.msk.f32.mxu0 %vm280_vm0, %v25739_v19  ;;  %v25763_v31 = vld [vmem:[#allocation2 + $0x399] sm:$0xff] }
 0x30c   : > { %20333 = vmatprep.mubr.msk.f32.mxu1 %vm280_vm0, %v25474_v32  ;;  %v25773_v32 = vld [vmem:[#allocation2 + $0x3a1] sm:$0xff] }
 0x30e   : > { %20982 = vmatmul.mubr.msk.f32.gmra.mrb[68].mxu0 %vm280_vm0, %v25749_v23 }
 0x30f   : > { %20334 = vmatmul.mubr.msk.f32.gmra.mrb[24].mxu1 %vm280_vm0, %v25482_v45  ;;  %20984 = vmatprep.mubr.msk.f32.mxu0 %vm280_vm0, %v25751_v40  ;;  %v25775_v45 = vld [vmem:[#allocation2 + $0x3a9] sm:$0xff] }
 0x310   : > { %20336 = vmatprep.mubr.msk.f32.mxu1 %vm280_vm0, %v25484_v4  ;;  %v25785_v4 = vld [vmem:[#allocation2 + $0x3b1] sm:$0xff] }
 0x312   : > { %20985 = vmatmul.mubr.msk.f32.gmra.mrb[70].mxu0 %vm280_vm0, %v25761_v27 }
 0x313   : > { %20337 = vmatmul.mubr.msk.f32.gmra.mrb[26].mxu1 %vm280_vm0, %v25492_v9  ;;  %20987 = vmatprep.mubr.msk.f32.mxu0 %vm280_vm0, %v25763_v31  ;;  %v25787_v9 = vld [vmem:[#allocation2 + $0x3c9] sm:$0xff] }
 0x314   : > { %20339 = vmatprep.mubr.msk.f32.mxu1 %vm280_vm0, %v25494_v10  ;;  %v25797_v10 = vld [vmem:[#allocation2 + $0x3d1] sm:$0xff] }
 0x316   : > { %20988 = vmatmul.mubr.msk.f32.gmra.mrb[72].mxu0 %vm280_vm0, %v25773_v32 }
 0x317   : > { %20340 = vmatmul.mubr.msk.f32.gmra.mrb[28].mxu1 %vm280_vm0, %v25502_v14  ;;  %20990 = vmatprep.mubr.msk.f32.mxu0 %vm280_vm0, %v25775_v45  ;;  %v25799_v14 = vld [vmem:[#allocation2 + $0x3d9] sm:$0xff] }
 0x318   : > { %20342 = vmatprep.mubr.msk.f32.mxu1 %vm280_vm0, %v25504_v20  ;;  %v25809_v20 = vld [vmem:[#allocation2 + $0x3e1] sm:$0xff] }
 0x31a   : > { %20991 = vmatmul.mubr.msk.f32.gmra.mrb[74].mxu0 %vm280_vm0, %v25785_v4 }
 0x31b   : > { %20343 = vmatmul.mubr.msk.f32.gmra.mrb[30].mxu1 %vm280_vm0, %v25512_v28  ;;  %20993 = vmatprep.mubr.msk.f32.mxu0 %vm280_vm0, %v25787_v9  ;;  %v25811_v28 = vld [vmem:[#allocation2 + $0x3f9] sm:$0xff] }
 0x31c   : > { %20345 = vmatprep.mubr.msk.f32.mxu1 %vm280_vm0, %v25514_v41  ;;  %v25821_v41 = vld [vmem:[#allocation2 + $0x401] sm:$0xff] }
 0x31e   : > { %20994 = vmatmul.mubr.msk.f32.gmra.mrb[76].mxu0 %vm280_vm0, %v25797_v10 }
 0x31f   : > { %20346 = vmatmul.mubr.msk.f32.gmra.mrb[32].mxu1 %vm280_vm0, %v25522_v44  ;;  %20996 = vmatprep.mubr.msk.f32.mxu0 %vm280_vm0, %v25799_v14  ;;  %v25823_v44 = vld [vmem:[#allocation2 + $0x409] sm:$0xff] }
 0x320   : > { %20348 = vmatprep.mubr.msk.f32.mxu1 %vm280_vm0, %v25524_v18  ;;  %v25833_v18 = vld [vmem:[#allocation2 + $0x411] sm:$0xff] }
 0x322   : > { %20997 = vmatmul.mubr.msk.f32.gmra.mrb[78].mxu0 %vm280_vm0, %v25809_v20 }
 0x323   : > { %20349 = vmatmul.mubr.msk.f32.gmra.mrb[34].mxu1 %vm280_vm0, %v25532_v5  ;;  %20999 = vmatprep.mubr.msk.f32.mxu0 %vm280_vm0, %v25811_v28  ;;  %v25835_v5 = vld [vmem:[#allocation2 + $0x429] sm:$0xff] }
 0x324   : > { %20351 = vmatprep.mubr.msk.f32.mxu1 %vm280_vm0, %v25534_v3  ;;  %v25845_v3 = vld [vmem:[#allocation2 + $0x431] sm:$0xff] }
 0x326   : > { %21000 = vmatmul.mubr.msk.f32.gmra.mrb[80].mxu0 %vm280_vm0, %v25821_v41 }
 0x327   : > { %20352 = vmatmul.mubr.msk.f32.gmra.mrb[36].mxu1 %vm280_vm0, %v25542_v42  ;;  %21002 = vmatprep.mubr.msk.f32.mxu0 %vm280_vm0, %v25823_v44  ;;  %v25847_v42 = vld [vmem:[#allocation2 + $0x439] sm:$0xff] }
 0x328   : > { %20354 = vmatprep.mubr.msk.f32.mxu1 %vm280_vm0, %v25544_v52  ;;  %v25857_v52 = vld [vmem:[#allocation2 + $0x441] sm:$0xff] }
 0x32a   : > { %21003 = vmatmul.mubr.msk.f32.gmra.mrb[82].mxu0 %vm280_vm0, %v25833_v18 }
 0x32b   : > { %20355 = vmatmul.mubr.msk.f32.gmra.mrb[38].mxu1 %vm280_vm0, %v25552_v34  ;;  %21005 = vmatprep.mubr.msk.f32.mxu0 %vm280_vm0, %v25835_v5  ;;  %v25859_v34 = vld [vmem:[#allocation2 + $0x459] sm:$0xff] }
 0x32c   : > { %20357 = vmatprep.mubr.msk.f32.mxu1 %vm280_vm0, %v25554_v57  ;;  %v25869_v57 = vld [vmem:[#allocation2 + $0x461] sm:$0xff] }
 0x32e   : > { %21006 = vmatmul.mubr.msk.f32.gmra.mrb[84].mxu0 %vm280_vm0, %v25845_v3 }
 0x32f   : > { %20358 = vmatmul.mubr.msk.f32.gmra.mrb[40].mxu1 %vm280_vm0, %v25562_v15  ;;  %21008 = vmatprep.mubr.msk.f32.mxu0 %vm280_vm0, %v25847_v42  ;;  %v25871_v15 = vld [vmem:[#allocation2 + $0x469] sm:$0xff] }
 0x330   : > { %20360 = vmatprep.mubr.msk.f32.mxu1 %vm280_vm0, %v25564_v56  ;;  %v25881_v56 = vld [vmem:[#allocation2 + $0x471] sm:$0xff] }
 0x332   : > { %21009 = vmatmul.mubr.msk.f32.gmra.mrb[86].mxu0 %vm280_vm0, %v25857_v52 }
 0x333   : > { %20361 = vmatmul.mubr.msk.f32.gmra.mrb[42].mxu1 %vm280_vm0, %v25572_v17  ;;  %21011 = vmatprep.mubr.msk.f32.mxu0 %vm280_vm0, %v25859_v34  ;;  %v25893_v17 = vld [vmem:[#allocation2 + $0x491] sm:$0xff] }
 0x334   : > { %20363 = vmatprep.mubr.msk.f32.mxu1 %vm280_vm0, %v25574_v25  ;;  %v25905_v25 = vld [vmem:[#allocation2 + $0x4a1] sm:$0xff] }
 0x336   : > { %21012 = vmatmul.mubr.msk.f32.gmra.mrb[88].mxu0 %vm280_vm0, %v25869_v57 }
 0x337   : > { %20364 = vmatmul.mubr.msk.f32.gmra.mrb[44].mxu1 %vm280_vm0, %v25582_v33  ;;  %21014 = vmatprep.mubr.msk.f32.mxu0 %vm280_vm0, %v25871_v15  ;;  %v25917_v33 = vld [vmem:[#allocation2 + $0x4c1] sm:$0xff] }
 0x338   : > { %20366 = vmatprep.mubr.msk.f32.mxu1 %vm280_vm0, %v25584_v2  ;;  %v25929_v2 = vld [vmem:[#allocation2 + $0x4d1] sm:$0xff] }
 0x33a   : > { %21015 = vmatmul.mubr.msk.f32.gmra.mrb[90].mxu0 %vm280_vm0, %v25881_v56 }
 0x33b   : > { %20367 = vmatmul.mubr.msk.f32.gmra.mrb[46].mxu1 %vm280_vm0, %v25592_v8  ;;  %21017 = vmatprep.mubr.msk.f32.mxu0 %vm280_vm0, %v25883_v63  ;;  %v25941_v8 = vld [vmem:[#allocation2 + $0x4f1] sm:$0xff] }
 0x33c   : > { %20369 = vmatprep.mubr.msk.f32.mxu1 %vm280_vm0, %v25594_v16  ;;  %v25953_v16 = vld [vmem:[#allocation2 + $0x501] sm:$0xff] }
 0x33e   : > { %21018 = vmatmul.mubr.msk.f32.gmra.mrb[92].mxu0 %vm280_vm0, %v25893_v17 }
 0x33f   : > { %20370 = vmatmul.mubr.msk.f32.gmra.mrb[48].mxu1 %vm280_vm0, %v25602_v43  ;;  %21020 = vmatprep.mubr.msk.f32.mxu0 %vm280_vm0, %v25895_v21  ;;  %v25965_v43 = vld [vmem:[#allocation2 + $0x521] sm:$0xff] }
 0x340   : > { %20372 = vmatprep.mubr.msk.f32.mxu1 %vm280_vm0, %v25604_v48  ;;  %v25977_v48 = vld [vmem:[#allocation2 + $0x531] sm:$0xff] }
 0x342   : > { %21021 = vmatmul.mubr.msk.f32.gmra.mrb[94].mxu0 %vm280_vm0, %v25905_v25 }
 0x343   : > { %20373 = vmatmul.mubr.msk.f32.gmra.mrb[50].mxu1 %vm280_vm0, %v25612_v30  ;;  %21023 = vmatprep.mubr.msk.f32.mxu0 %vm280_vm0, %v25907_v29  ;;  %v25989_v30 = vld [vmem:[#allocation2 + $0x551] sm:$0xff] }
 0x344   : > { %20375 = vmatprep.mubr.msk.f32.mxu1 %vm280_vm0, %v25614_v11  ;;  %v26001_v11 = vld [vmem:[#allocation2 + $0x561] sm:$0xff] }
 0x346   : > { %21024 = vmatmul.mubr.msk.f32.gmra.mrb[96].mxu0 %vm280_vm0, %v25917_v33 }
 0x347   : > { %20376 = vmatmul.mubr.msk.f32.gmra.mrb[52].mxu1 %vm280_vm0, %v25625_v0  ;;  %21026 = vmatprep.mubr.msk.f32.mxu0 %vm280_vm0, %v25919_v35  ;;  %v26003_v0 = vld [vmem:[#allocation2 + $0x579] sm:$0xff] }
 0x348   : > { %20378 = vmatprep.mubr.msk.f32.mxu1 %vm280_vm0, %v25627_v51  ;;  %v26013_v51 = vld [vmem:[#allocation2 + $0x581] sm:$0xff] }
 0x34a   : > { %21027 = vmatmul.mubr.msk.f32.gmra.mrb[98].mxu0 %vm280_vm0, %v25929_v2 }
 0x34b   : > { %20379 = vmatmul.mubr.msk.f32.gmra.mrb[54].mxu1 %vm280_vm0, %v25637_v50  ;;  %21029 = vmatprep.mubr.msk.f32.mxu0 %vm280_vm0, %v25931_v6  ;;  %v26015_v50 = vld [vmem:[#allocation2 + $0x589] sm:$0xff] }
 0x34c   : > { %20381 = vmatprep.mubr.msk.f32.mxu1 %vm280_vm0, %v25639_v59  ;;  %v26025_v59 = vld [vmem:[#allocation2 + $0x591] sm:$0xff] }
 0x34e   : > { %21030 = vmatmul.mubr.msk.f32.gmra.mrb[100].mxu0 %vm280_vm0, %v25941_v8 }
 0x34f   : > { %20382 = vmatmul.mubr.msk.f32.gmra.mrb[56].mxu1 %vm280_vm0, %v25649_v54  ;;  %21032 = vmatprep.mubr.msk.f32.mxu0 %vm280_vm0, %v25943_v12  ;;  %v26027_v54 = vld [vmem:[#allocation2 + $0x5a9] sm:$0xff] }
 0x350   : > { %20384 = vmatprep.mubr.msk.f32.mxu1 %vm280_vm0, %v25651_v36  ;;  %v26037_v36 = vld [vmem:[#allocation2 + $0x5b1] sm:$0xff] }
 0x352   : > { %21033 = vmatmul.mubr.msk.f32.gmra.mrb[102].mxu0 %vm280_vm0, %v25953_v16 }
 0x353   : > { %20385 = vmatmul.mubr.msk.f32.gmra.mrb[58].mxu1 %vm280_vm0, %v25661_v24  ;;  %21035 = vmatprep.mubr.msk.f32.mxu0 %vm280_vm0, %v25955_v13  ;;  %v26039_v24 = vld [vmem:[#allocation2 + $0x5b9] sm:$0xff] }
 0x354   : > { %20387 = vmatprep.mubr.msk.f32.mxu1 %vm280_vm0, %v25663_v38  ;;  %v26049_v38 = vld [vmem:[#allocation2 + $0x5c1] sm:$0xff] }
 0x356   : > { %21036 = vmatmul.mubr.msk.f32.gmra.mrb[104].mxu0 %vm280_vm0, %v25965_v43 }
 0x357   : > { %20388 = vmatmul.mubr.msk.f32.gmra.mrb[60].mxu1 %vm280_vm0, %v25673_v60  ;;  %21038 = vmatprep.mubr.msk.f32.mxu0 %vm280_vm0, %v25967_v49  ;;  %v26051_v60 = vld [vmem:[#allocation2 + $0x5d9] sm:$0xff] }
 0x358   : > { %20390 = vmatprep.mubr.msk.f32.mxu1 %vm280_vm0, %v25675_v58  ;;  %v26061_v58 = vld [vmem:[#allocation2 + $0x5e1] sm:$0xff] }
 0x35a   : > { %21039 = vmatmul.mubr.msk.f32.gmra.mrb[106].mxu0 %vm280_vm0, %v25977_v48 }
 0x35b   : > { %20391 = vmatmul.mubr.msk.f32.gmra.mrb[62].mxu1 %vm280_vm0, %v25685_v22  ;;  %21041 = vmatprep.mubr.msk.f32.mxu0 %vm280_vm0, %v25979_v1  ;;  %v26063_v22 = vld [vmem:[#allocation2 + $0x5e9] sm:$0xff] }
 0x35c   : > { %20393 = vmatprep.mubr.msk.f32.mxu1 %vm280_vm0, %v25687_v26  ;;  %v26073_v26 = vld [vmem:[#allocation2 + $0x5f1] sm:$0xff] }
 0x35e   : > { %21042 = vmatmul.mubr.msk.f32.gmra.mrb[108].mxu0 %vm280_vm0, %v25989_v30 }
 0x35f   : > { %20394 = vmatmul.mubr.msk.f32.gmra.mrb[64].mxu1 %vm280_vm0, %v25697_v37  ;;  %21044 = vmatprep.mubr.msk.f32.mxu0 %vm280_vm0, %v25991_v39  ;;  %v7360_v37 = vld [vmem:[#allocation2 + $0x609] sm:$0xff] }
 0x360   : > { %20396 = vmatprep.mubr.msk.f32.mxu1 %vm280_vm0, %v25699_v53  ;;  %v7361_v53 = vld [vmem:[#allocation2 + $0x611] sm:$0xff] }
 0x362   : > { %21045 = vmatmul.mubr.msk.f32.gmra.mrb[110].mxu0 %vm280_vm0, %v26001_v11 }
 0x363   : > { %20397 = vmatmul.mubr.msk.f32.gmra.mrb[66].mxu1 %vm280_vm0, %v25709_v61  ;;  %21047 = vmatprep.mubr.msk.f32.mxu0 %vm280_vm0, %v26003_v0  ;;  %v7362_v61 = vld [vmem:[#allocation2 + $0x619] sm:$0xff] }
 0x364   : > { %20399 = vmatprep.mubr.msk.f32.mxu1 %vm280_vm0, %v25711_v7  ;;  %v7363_v7 = vld [vmem:[#allocation2 + $0x621] sm:$0xff] }
 0x366   : > { %21048 = vmatmul.mubr.msk.f32.gmra.mrb[112].mxu0 %vm280_vm0, %v26013_v51 }
 0x367   : > { %20400 = vmatmul.mubr.msk.f32.gmra.mrb[68].mxu1 %vm280_vm0, %v25721_v46  ;;  %21050 = vmatprep.mubr.msk.f32.mxu0 %vm280_vm0, %v26015_v50  ;;  %v8587_v46 = vld [vmem:[#allocation2 + $0x67] sm:$0xff] }
 0x368   : > { %20402 = vmatprep.mubr.msk.f32.mxu1 %vm280_vm0, %v25725_v62  ;;  %v8588_v62 = vld [vmem:[#allocation2 + $0x6f] sm:$0xff] }
 0x36a   : > { %21051 = vmatmul.mubr.msk.f32.gmra.mrb[114].mxu0 %vm280_vm0, %v26025_v59 }
 0x36b   : > { %20403 = vmatmul.mubr.msk.f32.gmra.mrb[70].mxu1 %vm280_vm0, %v25737_v55  ;;  %21053 = vmatprep.mubr.msk.f32.mxu0 %vm280_vm0, %v26027_v54  ;;  %v8589_v55 = vld [vmem:[#allocation2 + $0x77] sm:$0xff] }
 0x36c   : > { %20405 = vmatprep.mubr.msk.f32.mxu1 %vm280_vm0, %v25739_v19  ;;  %v8590_v19 = vld [vmem:[#allocation2 + $0x7f] sm:$0xff] }
 0x36e   : > { %21054 = vmatmul.mubr.msk.f32.gmra.mrb[116].mxu0 %vm280_vm0, %v26037_v36 }
 0x36f   : > { %20406 = vmatmul.mubr.msk.f32.gmra.mrb[72].mxu1 %vm280_vm0, %v25749_v23  ;;  %21056 = vmatprep.mubr.msk.f32.mxu0 %vm280_vm0, %v26039_v24  ;;  %v8591_v23 = vld [vmem:[#allocation2 + $0x97] sm:$0xff] }
 0x370   : > { %20408 = vmatprep.mubr.msk.f32.mxu1 %vm280_vm0, %v25751_v40  ;;  %v8592_v40 = vld [vmem:[#allocation2 + $0x9f] sm:$0xff] }
 0x372   : > { %21057 = vmatmul.mubr.msk.f32.gmra.mrb[118].mxu0 %vm280_vm0, %v26049_v38 }
 0x373   : > { %20409 = vmatmul.mubr.msk.f32.gmra.mrb[74].mxu1 %vm280_vm0, %v25761_v27  ;;  %21059 = vmatprep.mubr.msk.f32.mxu0 %vm280_vm0, %v26051_v60  ;;  %v8593_v27 = vld [vmem:[#allocation2 + $0xa7] sm:$0xff] }
 0x374   : > { %20411 = vmatprep.mubr.msk.f32.mxu1 %vm280_vm0, %v25763_v31  ;;  %v8595_v31 = vld [vmem:[#allocation2 + $0xc7] sm:$0xff] }
 0x376   : > { %21060 = vmatmul.mubr.msk.f32.gmra.mrb[120].mxu0 %vm280_vm0, %v26061_v58 }
 0x377   : > { %20412 = vmatmul.mubr.msk.f32.gmra.mrb[76].mxu1 %vm280_vm0, %v25773_v32  ;;  %21062 = vmatprep.mubr.msk.f32.mxu0 %vm280_vm0, %v26063_v22  ;;  %v8596_v32 = vld [vmem:[#allocation2 + $0xcf] sm:$0xff] }
 0x378   : > { %20414 = vmatprep.mubr.msk.f32.mxu1 %vm280_vm0, %v25775_v45  ;;  %v8597_v45 = vld [vmem:[#allocation2 + $0xd7] sm:$0xff] }
 0x37a   : > { %21063 = vmatmul.mubr.msk.f32.gmra.mrb[122].mxu0 %vm280_vm0, %v26073_v26 }
 0x37b   : > { %20415 = vmatmul.mubr.msk.f32.gmra.mrb[78].mxu1 %vm280_vm0, %v25785_v4  ;;  %21065 = vmatprep.mubr.msk.f32.mxu0 %vm280_vm0, %v7360_v37  ;;  %v8598_v4 = vld [vmem:[#allocation2 + $0xdf] sm:$0xff]  ;;  %v8623_v37 = vld [vmem:[#allocation2 + $0x217] sm:$0xff] }
 0x37c   : > { %20417 = vmatprep.mubr.msk.f32.mxu1 %vm280_vm0, %v25787_v9  ;;  %v8599_v9 = vld [vmem:[#allocation2 + $0xf7] sm:$0xff] }
 0x37e   : > { %21066 = vmatmul.mubr.msk.f32.gmra.mrb[124].mxu0 %vm280_vm0, %v7361_v53 }
 0x37f   : > { %20418 = vmatmul.mubr.msk.f32.gmra.mrb[80].mxu1 %vm280_vm0, %v25797_v10  ;;  %21068 = vmatprep.mubr.msk.f32.mxu0 %vm280_vm0, %v7362_v61  ;;  %v8600_v10 = vld [vmem:[#allocation2 + $0xff] sm:$0xff]  ;;  %v8625_v61 = vld [vmem:[#allocation2 + $0x227] sm:$0xff] }
 0x380   : > { %20420 = vmatprep.mubr.msk.f32.mxu1 %vm280_vm0, %v25799_v14  ;;  %v8601_v14 = vld [vmem:[#allocation2 + $0x107] sm:$0xff] }
 0x382   : > { %21069 = vmatmul.mubr.msk.f32.gmra.mrb[126].mxu0 %vm280_vm0, %v7363_v7 }
 0x383   : > { %20421 = vmatmul.mubr.msk.f32.gmra.mrb[82].mxu1 %vm280_vm0, %v25809_v20  ;;  %21073 = vmatprep.mubr.msk.f32.mxu0 %vm280_vm0, %v8587_v46  ;;  %v8602_v20 = vld [vmem:[#allocation2 + $0x10f] sm:$0xff]  ;;  %v8627_v46 = vld [vmem:[#allocation2 + $0x247] sm:$0xff] }
 0x384   : > { %20423 = vmatprep.mubr.msk.f32.mxu1 %vm280_vm0, %v25811_v28  ;;  %v8603_v28 = vld [vmem:[#allocation2 + $0x127] sm:$0xff] }
 0x386   : > { %21074 = vmatmul.mubr.msk.f32.vlgmr.msra.gmra.mrb[0].mxu0 %vm280_vm0, %v8588_v62 }
 0x387   : > { %20424 = vmatmul.mubr.msk.f32.gmra.mrb[84].mxu1 %vm280_vm0, %v25821_v41  ;;  %21266 = vmatpush3.msk.msra.mxu0 %vm1385_vm1, %v25723_v47  ;;  %v8594_v47 = vld [vmem:[#allocation2 + $0xaf] sm:$0xff] }
 0x388   : > { %21076 = vmatprep.mubr.msk.f32.mxu0 %vm280_vm0, %v8589_v55  ;;  %20426 = vmatprep.mubr.msk.f32.mxu1 %vm280_vm0, %v25823_v44  ;;  %v8604_v41 = vld [vmem:[#allocation2 + $0x12f] sm:$0xff]  ;;  %v8605_v44 = vld [vmem:[#allocation2 + $0x137] sm:$0xff] }
 0x389   : > { %v8629_v55 = vld [vmem:[#allocation2 + $0x257] sm:$0xff] }
 0x38a   : > { %21077 = vmatmul.mubr.msk.f32.gmra.mrb[2].mxu0 %vm280_vm0, %v8590_v19 }
 0x38b   : > { %20427 = vmatmul.mubr.msk.f32.gmra.mrb[86].mxu1 %vm280_vm0, %v25833_v18  ;;  %21079 = vmatprep.mubr.msk.f32.mxu0 %vm280_vm0, %v8591_v23  ;;  %v8606_v18 = vld [vmem:[#allocation2 + $0x13f] sm:$0xff]  ;;  %v8631_v23 = vld [vmem:[#allocation2 + $0x277] sm:$0xff] }
 0x38c   : > { %20429 = vmatprep.mubr.msk.f32.mxu1 %vm280_vm0, %v25835_v5  ;;  %v8607_v5 = vld [vmem:[#allocation2 + $0x157] sm:$0xff] }
 0x38e   : > { %21080 = vmatmul.mubr.msk.f32.gmra.mrb[4].mxu0 %vm280_vm0, %v8592_v40  ;;  %v26262_v40 = vld [vmem:[#allocation2 + $0x3f7] sm:$0xff] }
 0x38f   : > { %20430 = vmatmul.mubr.msk.f32.gmra.mrb[88].mxu1 %vm280_vm0, %v25845_v3  ;;  %21082 = vmatprep.mubr.msk.f32.mxu0 %vm280_vm0, %v8593_v27  ;;  %v8608_v3 = vld [vmem:[#allocation2 + $0x15f] sm:$0xff] }
 0x390   : > { %20432 = vmatprep.mubr.msk.f32.mxu1 %vm280_vm0, %v25847_v42  ;;  %v8609_v42 = vld [vmem:[#allocation2 + $0x167] sm:$0xff] }
 0x392   : > { %21083 = vmatmul.mubr.msk.f32.gmra.mrb[6].mxu0 %vm280_vm0, %v8594_v47  ;;  %v8633_v47 = vld [vmem:[#allocation2 + $0x287] sm:$0xff] }
 0x393   : > { %20433 = vmatmul.mubr.msk.f32.gmra.mrb[90].mxu1 %vm280_vm0, %v25857_v52  ;;  %21085 = vmatprep.mubr.msk.f32.mxu0 %vm280_vm0, %v8595_v31  ;;  %v8610_v52 = vld [vmem:[#allocation2 + $0x16f] sm:$0xff]  ;;  %v26276_v31 = vld [vmem:[#allocation2 + $0x407] sm:$0xff] }
 0x394   : > { %20435 = vmatprep.mubr.msk.f32.mxu1 %vm280_vm0, %v25859_v34  ;;  %v8611_v34 = vld [vmem:[#allocation2 + $0x187] sm:$0xff] }
 0x396   : > { %21086 = vmatmul.mubr.msk.f32.gmra.mrb[8].mxu0 %vm280_vm0, %v8596_v32 }
 0x397   : > { %20436 = vmatmul.mubr.msk.f32.gmra.mrb[92].mxu1 %vm280_vm0, %v25869_v57  ;;  %21088 = vmatprep.mubr.msk.f32.mxu0 %vm280_vm0, %v8597_v45  ;;  %v8634_v45 = vld [vmem:[#allocation2 + $0x28f] sm:$0xff] }
 0x398   : > { %20438 = vmatprep.mubr.msk.f32.mxu1 %vm280_vm0, %v25871_v15 }
 0x39a   : > { %21089 = vmatmul.mubr.msk.f32.gmra.mrb[10].mxu0 %vm280_vm0, %v8598_v4  ;;  %v26288_v4 = vld [vmem:[#allocation2 + $0x40f] sm:$0xff] }
 0x39b   : > { %20439 = vmatmul.mubr.msk.f32.gmra.mrb[94].mxu1 %vm280_vm0, %v25881_v56  ;;  %21091 = vmatprep.mubr.msk.f32.mxu0 %vm280_vm0, %v8599_v9  ;;  %v8612_v56 = vld [vmem:[#allocation2 + $0x18f] sm:$0xff]  ;;  %v8635_v9 = vld [vmem:[#allocation2 + $0x2a7] sm:$0xff] }
 0x39c   : > { %20441 = vmatprep.mubr.msk.f32.mxu1 %vm280_vm0, %v25883_v63  ;;  %v8613_v63 = vld [vmem:[#allocation2 + $0x197] sm:$0xff] }
 0x39e   : > { %21092 = vmatmul.mubr.msk.f32.gmra.mrb[12].mxu0 %vm280_vm0, %v8600_v10  ;;  %v26290_v10 = vld [vmem:[#allocation2 + $0x427] sm:$0xff] }
 0x39f   : > { %20442 = vmatmul.mubr.msk.f32.gmra.mrb[96].mxu1 %vm280_vm0, %v25893_v17  ;;  %21094 = vmatprep.mubr.msk.f32.mxu0 %vm280_vm0, %v8601_v14 }
 0x3a0   : > { %20444 = vmatprep.mubr.msk.f32.mxu1 %vm280_vm0, %v25895_v21 }
 0x3a2   : > { %21095 = vmatmul.mubr.msk.f32.gmra.mrb[14].mxu0 %vm280_vm0, %v8602_v20 }
 0x3a3   : > { %20445 = vmatmul.mubr.msk.f32.gmra.mrb[98].mxu1 %vm280_vm0, %v25905_v25  ;;  %21097 = vmatprep.mubr.msk.f32.mxu0 %vm280_vm0, %v8603_v28  ;;  %v8614_v25 = vld [vmem:[#allocation2 + $0x19f] sm:$0xff]  ;;  %v8636_v28 = vld [vmem:[#allocation2 + $0x2af] sm:$0xff] }
 0x3a4   : > { %20447 = vmatprep.mubr.msk.f32.mxu1 %vm280_vm0, %v25907_v29  ;;  %v8615_v29 = vld [vmem:[#allocation2 + $0x1b7] sm:$0xff] }
 0x3a6   : > { %21098 = vmatmul.mubr.msk.f32.gmra.mrb[16].mxu0 %vm280_vm0, %v8604_v41  ;;  %v26302_v41 = vld [vmem:[#allocation2 + $0x42f] sm:$0xff] }
 0x3a7   : > { %20448 = vmatmul.mubr.msk.f32.gmra.mrb[100].mxu1 %vm280_vm0, %v25917_v33  ;;  %21100 = vmatprep.mubr.msk.f32.mxu0 %vm280_vm0, %v8605_v44  ;;  %v8637_v44 = vld [vmem:[#allocation2 + $0x2b7] sm:$0xff] }
 0x3a8   : > { %20450 = vmatprep.mubr.msk.f32.mxu1 %vm280_vm0, %v25919_v35 }
 0x3aa   : > { %21101 = vmatmul.mubr.msk.f32.gmra.mrb[18].mxu0 %vm280_vm0, %v8606_v18  ;;  %v26304_v18 = vld [vmem:[#allocation2 + $0x437] sm:$0xff] }
 0x3ab   : > { %20451 = vmatmul.mubr.msk.f32.gmra.mrb[102].mxu1 %vm280_vm0, %v25929_v2  ;;  %21103 = vmatprep.mubr.msk.f32.mxu0 %vm280_vm0, %v8607_v5  ;;  %v8616_v2 = vld [vmem:[#allocation2 + $0x1bf] sm:$0xff] }
 0x3ac   : > { %20453 = vmatprep.mubr.msk.f32.mxu1 %vm280_vm0, %v25931_v6  ;;  %v8617_v6 = vld [vmem:[#allocation2 + $0x1c7] sm:$0xff] }
 0x3ae   : > { %21104 = vmatmul.mubr.msk.f32.gmra.mrb[20].mxu0 %vm280_vm0, %v8608_v3 }
 0x3af   : > { %20454 = vmatmul.mubr.msk.f32.gmra.mrb[104].mxu1 %vm280_vm0, %v25941_v8  ;;  %21106 = vmatprep.mubr.msk.f32.mxu0 %vm280_vm0, %v8609_v42  ;;  %v8638_v42 = vld [vmem:[#allocation2 + $0x2bf] sm:$0xff] }
 0x3b0   : > { %20456 = vmatprep.mubr.msk.f32.mxu1 %vm280_vm0, %v25943_v12 }
 0x3b2   : > { %v26162_v57 = vpop.f32.mrb[0].mxu1  ;;  %21107 = vmatmul.mubr.msk.f32.gmra.mrb[22].mxu0 %vm280_vm0, %v8610_v52  ;;  %v26316_v52 = vld [vmem:[#allocation2 + $0x43f] sm:$0xff] }
 0x3b3   : > { %20457 = vmatmul.mubr.msk.f32.gmra.mrb[106].mxu1 %vm280_vm0, %v25953_v16  ;;  %v26167_v15 = vpop.f32.mrb[1].mxu1  ;;  %21109 = vmatprep.mubr.msk.f32.mxu0 %vm280_vm0, %v8611_v34  ;;  %v8618_v16 = vld [vmem:[#allocation2 + $0x1cf] sm:$0xff]  ;;  %v8639_v34 = vld [vmem:[#allocation2 + $0x2d7] sm:$0xff] }
 0x3b4   : > { %20459 = vmatprep.mubr.msk.f32.mxu1 %vm280_vm0, %v25955_v13  ;;  %v8619_v13 = vld [vmem:[#allocation2 + $0x1e7] sm:$0xff] }
 0x3b6   : > { %v26172_v17 = vpop.f32.mrb[2].mxu1  ;;  %21110 = vmatmul.mubr.msk.f32.gmra.mrb[24].mxu0 %vm280_vm0, %v8612_v56  ;;  %v26318_v56 = vld [vmem:[#allocation2 + $0x457] sm:$0xff] }
 0x3b7   : > { %20460 = vmatmul.mubr.msk.f32.gmra.mrb[108].mxu1 %vm280_vm0, %v25965_v43  ;;  %v26177_v21 = vpop.f32.mrb[3].mxu1  ;;  %21112 = vmatprep.mubr.msk.f32.mxu0 %vm280_vm0, %v8613_v63 }
 0x3b8   : > { %20462 = vmatprep.mubr.msk.f32.mxu1 %vm280_vm0, %v25967_v49 }
 0x3ba   : > { %v26182_v33 = vpop.f32.mrb[4].mxu1  ;;  %21113 = vmatmul.mubr.msk.f32.gmra.mrb[26].mxu0 %vm280_vm0, %v8614_v25 }
 0x3bb   : > { %20463 = vmatmul.mubr.msk.f32.gmra.mrb[110].mxu1 %vm280_vm0, %v25977_v48  ;;  %v26187_v35 = vpop.f32.mrb[5].mxu1  ;;  %21115 = vmatprep.mubr.msk.f32.mxu0 %vm280_vm0, %v8615_v29  ;;  %v8620_v48 = vld [vmem:[#allocation2 + $0x1ef] sm:$0xff]  ;;  %v8640_v29 = vld [vmem:[#allocation2 + $0x2df] sm:$0xff] }
 0x3bc   : > { %20465 = vmatprep.mubr.msk.f32.mxu1 %vm280_vm0, %v25979_v1  ;;  %v8621_v1 = vld [vmem:[#allocation2 + $0x1f7] sm:$0xff] }
 0x3be   : > { %v26192_v8 = vpop.f32.mrb[6].mxu1  ;;  %21116 = vmatmul.mubr.msk.f32.gmra.mrb[28].mxu0 %vm280_vm0, %v8616_v2  ;;  %v26330_v2 = vld [vmem:[#allocation2 + $0x45f] sm:$0xff] }
 0x3bf   : > { %20466 = vmatmul.mubr.msk.f32.gmra.mrb[112].mxu1 %vm280_vm0, %v25989_v30  ;;  %v26197_v12 = vpop.f32.mrb[7].mxu1  ;;  %21118 = vmatprep.mubr.msk.f32.mxu0 %vm280_vm0, %v8617_v6  ;;  %v8641_v6 = vld [vmem:[#allocation2 + $0x2e7] sm:$0xff] }
 0x3c0   : > { %20468 = vmatprep.mubr.msk.f32.mxu1 %vm280_vm0, %v25991_v39 }
 0x3c2   : > { %v26202_v43 = vpop.f32.mrb[8].mxu1  ;;  %21119 = vmatmul.mubr.msk.f32.gmra.mrb[30].mxu0 %vm280_vm0, %v8618_v16  ;;  %v26332_v16 = vld [vmem:[#allocation2 + $0x467] sm:$0xff] }
 0x3c3   : > { %20469 = vmatmul.mubr.msk.f32.gmra.mrb[114].mxu1 %vm280_vm0, %v26001_v11  ;;  %v26207_v49 = vpop.f32.mrb[9].mxu1  ;;  %21121 = vmatprep.mubr.msk.f32.mxu0 %vm280_vm0, %v8619_v13  ;;  %v8622_v11 = vld [vmem:[#allocation2 + $0x1ff] sm:$0xff] }
 0x3c4   : > { %20471 = vmatprep.mubr.msk.f32.mxu1 %vm280_vm0, %v26003_v0 }
 0x3c6   : > { %v26212_v30 = vpop.f32.mrb[10].mxu1  ;;  %21122 = vmatmul.mubr.msk.f32.gmra.mrb[32].mxu0 %vm280_vm0, %v8620_v48 }
 0x3c7   : > { %20472 = vmatmul.mubr.msk.f32.gmra.mrb[116].mxu1 %vm280_vm0, %v26013_v51  ;;  %v26217_v39 = vpop.f32.mrb[11].mxu1  ;;  %21124 = vmatprep.mubr.msk.f32.mxu0 %vm280_vm0, %v8621_v1  ;;  %v8624_v51 = vld [vmem:[#allocation2 + $0x21f] sm:$0xff]  ;;  %v8642_v1 = vld [vmem:[#allocation2 + $0x2ef] sm:$0xff] }
 0x3c8   : > { %20474 = vmatprep.mubr.msk.f32.mxu1 %vm280_vm0, %v26015_v50 }
 0x3ca   : > { %v26222_v53 = vpop.f32.mrb[12].mxu1  ;;  %21125 = vmatmul.mubr.msk.f32.gmra.mrb[34].mxu0 %vm280_vm0, %v8622_v11  ;;  %v26344_v11 = vld [vmem:[#allocation2 + $0x46f] sm:$0xff] }
 0x3cb   : > { %20475 = vmatmul.mubr.msk.f32.gmra.mrb[118].mxu1 %vm280_vm0, %v26025_v59  ;;  %v26227_v0 = vpop.f32.mrb[13].mxu1  ;;  %21127 = vmatprep.mubr.msk.f32.mxu0 %vm280_vm0, %v8623_v37  ;;  %v8626_v59 = vld [vmem:[#allocation2 + $0x22f] sm:$0xff]  ;;  %v8643_v37 = vld [vmem:[#allocation2 + $0x307] sm:$0xff] }
 0x3cc   : > { %20477 = vmatprep.mubr.msk.f32.mxu1 %vm280_vm0, %v26027_v54 }
 0x3ce   : > { %v26232_v7 = vpop.f32.mrb[14].mxu1  ;;  %21128 = vmatmul.mubr.msk.f32.gmra.mrb[36].mxu0 %vm280_vm0, %v8624_v51  ;;  %v26346_v51 = vld [vmem:[#allocation2 + $0x487] sm:$0xff] }
 0x3cf   : > { %20478 = vmatmul.mubr.msk.f32.gmra.mrb[120].mxu1 %vm280_vm0, %v26037_v36  ;;  %v26237_v50 = vpop.f32.mrb[15].mxu1  ;;  %21130 = vmatprep.mubr.msk.f32.mxu0 %vm280_vm0, %v8625_v61  ;;  %v8628_v36 = vld [vmem:[#allocation2 + $0x24f] sm:$0xff] }
 0x3d0   : > { %20480 = vmatprep.mubr.msk.f32.mxu1 %vm280_vm0, %v26039_v24 }
 0x3d2   : > { %v26242_v62 = vpop.f32.mrb[16].mxu1  ;;  %21131 = vmatmul.mubr.msk.f32.gmra.mrb[38].mxu0 %vm280_vm0, %v8626_v59 }
 0x3d3   : > { %20481 = vmatmul.mubr.msk.f32.gmra.mrb[122].mxu1 %vm280_vm0, %v26049_v38  ;;  %v26247_v54 = vpop.f32.mrb[17].mxu1  ;;  %21133 = vmatprep.mubr.msk.f32.mxu0 %vm280_vm0, %v8627_v46  ;;  %v8630_v38 = vld [vmem:[#allocation2 + $0x25f] sm:$0xff]  ;;  %v8644_v46 = vld [vmem:[#allocation2 + $0x30f] sm:$0xff] }
 0x3d4   : > { %20483 = vmatprep.mubr.msk.f32.mxu1 %vm280_vm0, %v26051_v60 }
 0x3d6   : > { %v26252_v19 = vpop.f32.mrb[18].mxu1  ;;  %21134 = vmatmul.mubr.msk.f32.gmra.mrb[40].mxu0 %vm280_vm0, %v8628_v36  ;;  %v26358_v36 = vld [vmem:[#allocation2 + $0x48f] sm:$0xff] }
 0x3d7   : > { %20484 = vmatmul.mubr.msk.f32.gmra.mrb[124].mxu1 %vm280_vm0, %v26061_v58  ;;  %v26257_v24 = vpop.f32.mrb[19].mxu1  ;;  %21136 = vmatprep.mubr.msk.f32.mxu0 %vm280_vm0, %v8629_v55  ;;  %v8632_v58 = vld [vmem:[#allocation2 + $0x27f] sm:$0xff]  ;;  %v8645_v55 = vld [vmem:[#allocation2 + $0x317] sm:$0xff] }
 0x3d8   : > { %20486 = vmatprep.mubr.msk.f32.mxu1 %vm280_vm0, %v26063_v22  ;;  %v26274_v22 = vld [vmem:[#allocation2 + $0x3ff] sm:$0xff] }
 0x3da   : > { %v26264_v60 = vpop.f32.mrb[20].mxu1  ;;  %21137 = vmatmul.mubr.msk.f32.gmra.mrb[42].mxu0 %vm280_vm0, %v8630_v38  ;;  %v26360_v38 = vld [vmem:[#allocation2 + $0x497] sm:$0xff] }
 0x3db   : > { %20487 = vmatmul.mubr.msk.f32.gmra.mrb[126].mxu1 %vm280_vm0, %v26073_v26  ;;  %v26269_v27 = vpop.f32.mrb[21].mxu1  ;;  %21139 = vmatprep.mubr.msk.f32.mxu0 %vm280_vm0, %v8631_v23 }
 0x3dc   : > { %20611 = vmatprep.mubr.msk.f32.mxu1 %vm280_vm0, %v26262_v40 }
 0x3de   : > { %v26278_v32 = vpop.f32.mrb[22].mxu1  ;;  %21140 = vmatmul.mubr.msk.f32.gmra.mrb[44].mxu0 %vm280_vm0, %v8632_v58 }
 0x3df   : > { %20612 = vmatmul.mubr.msk.f32.vlgmr.msra.gmra.mrb[80].mxu1 %vm280_vm0, %v26274_v22  ;;  %v26283_v26 = vpop.f32.mrb[23].mxu1  ;;  %21142 = vmatprep.mubr.msk.f32.mxu0 %vm280_vm0, %v8633_v47  ;;  %v8646_v47 = vld [vmem:[#allocation2 + $0x31f] sm:$0xff] }
 0x3e0   : > { %20614 = vmatprep.mubr.msk.f32.mxu1 %vm280_vm0, %v26276_v31 }
 0x3e2   : > { %v26292_v14 = vpop.f32.mrb[24].mxu1  ;;  %21143 = vmatmul.mubr.msk.f32.gmra.mrb[46].mxu0 %vm280_vm0, %v8634_v45  ;;  %v26372_v45 = vld [vmem:[#allocation2 + $0x49f] sm:$0xff] }
 0x3e3   : > { %28486 = vst [vmem:[#allocation16_spill] sm:$0xff] %v26292_v14  ;;  %20615 = vmatmul.mubr.msk.f32.gmra.mrb[82].mxu1 %vm280_vm0, %v26288_v4  ;;  %v26297_v20 = vpop.f32.mrb[25].mxu1  ;;  %21145 = vmatprep.mubr.msk.f32.mxu0 %vm280_vm0, %v8635_v9  ;;  %v8647_v9 = vld [vmem:[#allocation2 + $0x337] sm:$0xff] }
 0x3e4   : > { %28487 = vst [vmem:[#allocation17_spill] sm:$0xff] %v26297_v20  ;;  %20617 = vmatprep.mubr.msk.f32.mxu1 %vm280_vm0, %v26290_v10 }
 0x3e6   : > { %v26306_v5 = vpop.f32.mrb[26].mxu1  ;;  %21146 = vmatmul.mubr.msk.f32.gmra.mrb[48].mxu0 %vm280_vm0, %v8636_v28  ;;  %v26374_v28 = vld [vmem:[#allocation2 + $0x4b7] sm:$0xff] }
 0x3e7   : > { %28488 = vst [vmem:[#allocation18_spill] sm:$0xff] %v26306_v5  ;;  %20618 = vmatmul.mubr.msk.f32.gmra.mrb[84].mxu1 %vm280_vm0, %v26302_v41  ;;  %v26311_v3 = vpop.f32.mrb[27].mxu1  ;;  %21148 = vmatprep.mubr.msk.f32.mxu0 %vm280_vm0, %v8637_v44  ;;  %v26476_v5 = vld [vmem:[#allocation2 + $0x557] sm:$0xff] }
 0x3e8   : > { %28489 = vst [vmem:[#allocation19_spill] sm:$0xff] %v26311_v3  ;;  %20620 = vmatprep.mubr.msk.f32.mxu1 %vm280_vm0, %v26304_v18 }
 0x3ea   : > { %v26320_v63 = vpop.f32.mrb[28].mxu1  ;;  %21149 = vmatmul.mubr.msk.f32.gmra.mrb[50].mxu0 %vm280_vm0, %v8638_v42 }
 0x3eb   : > { %28490 = vst [vmem:[#allocation20_spill] sm:$0xff] %v26320_v63  ;;  %20621 = vmatmul.mubr.msk.f32.gmra.mrb[86].mxu1 %vm280_vm0, %v26316_v52  ;;  %v26325_v25 = vpop.f32.mrb[29].mxu1  ;;  %21151 = vmatprep.mubr.msk.f32.mxu0 %vm280_vm0, %v8639_v34  ;;  %v8648_v34 = vld [vmem:[#allocation2 + $0x33f] sm:$0xff]  ;;  %v26462_v63 = vld [vmem:[#allocation2 + $0x547] sm:$0xff] }
 0x3ec   : > { %28491 = vst [vmem:[#allocation21_spill] sm:$0xff] %v26325_v25  ;;  %20623 = vmatprep.mubr.msk.f32.mxu1 %vm280_vm0, %v26318_v56 }
 0x3ee   : > { %v26334_v13 = vpop.f32.mrb[30].mxu1  ;;  %21152 = vmatmul.mubr.msk.f32.gmra.mrb[52].mxu0 %vm280_vm0, %v8640_v29  ;;  %v26386_v29 = vld [vmem:[#allocation2 + $0x4bf] sm:$0xff] }
 0x3ef   : > { %28492 = vst [vmem:[#allocation22_spill] sm:$0xff] %v26334_v13  ;;  %20624 = vmatmul.mubr.msk.f32.gmra.mrb[88].mxu1 %vm280_vm0, %v26330_v2  ;;  %v26339_v48 = vpop.f32.mrb[31].mxu1  ;;  %21154 = vmatprep.mubr.msk.f32.mxu0 %vm280_vm0, %v8641_v6  ;;  %v8649_v6 = vld [vmem:[#allocation2 + $0x347] sm:$0xff] }
 0x3f0   : > { %28493 = vst [vmem:[#allocation23_spill] sm:$0xff] %v26339_v48  ;;  %20626 = vmatprep.mubr.msk.f32.mxu1 %vm280_vm0, %v26332_v16  ;;  %v26448_v13 = vld [vmem:[#allocation2 + $0x527] sm:$0xff] }
 0x3f2   : > { %v26348_v61 = vpop.f32.mrb[32].mxu1  ;;  %21155 = vmatmul.mubr.msk.f32.gmra.mrb[54].mxu0 %vm280_vm0, %v8642_v1  ;;  %v26388_v1 = vld [vmem:[#allocation2 + $0x4c7] sm:$0xff] }
 0x3f3   : > { %28494 = vst [vmem:[#allocation24_spill] sm:$0xff] %v26348_v61  ;;  %20627 = vmatmul.mubr.msk.f32.gmra.mrb[90].mxu1 %vm280_vm0, %v26344_v11  ;;  %v26353_v59 = vpop.f32.mrb[33].mxu1  ;;  %21157 = vmatprep.mubr.msk.f32.mxu0 %vm280_vm0, %v8643_v37  ;;  %v26434_v61 = vld [vmem:[#allocation2 + $0x517] sm:$0xff] }
 0x3f4   : > { %28495 = vst [vmem:[#allocation25_spill] sm:$0xff] %v26353_v59  ;;  %20629 = vmatprep.mubr.msk.f32.mxu1 %vm280_vm0, %v26346_v51  ;;  %v8655_v59 = vld [vmem:[#allocation2 + $0x397] sm:$0xff] }
 0x3f6   : > { %v26362_v23 = vpop.f32.mrb[34].mxu1  ;;  %21158 = vmatmul.mubr.msk.f32.gmra.mrb[56].mxu0 %vm280_vm0, %v8644_v46 }
 0x3f7   : > { %28496 = vst [vmem:[#allocation26_spill] sm:$0xff] %v26362_v23  ;;  %20630 = vmatmul.mubr.msk.f32.gmra.mrb[92].mxu1 %vm280_vm0, %v26358_v36  ;;  %v26367_v58 = vpop.f32.mrb[35].mxu1  ;;  %21160 = vmatprep.mubr.msk.f32.mxu0 %vm280_vm0, %v8645_v55  ;;  %v8650_v55 = vld [vmem:[#allocation2 + $0x34f] sm:$0xff]  ;;  %v26418_v23 = vld [vmem:[#allocation2 + $0x4f7] sm:$0xff] }
 0x3f8   : > { %28497 = vst [vmem:[#allocation27_spill] sm:$0xff] %v26367_v58  ;;  %20632 = vmatprep.mubr.msk.f32.mxu1 %vm280_vm0, %v26360_v38  ;;  %v8653_v58 = vld [vmem:[#allocation2 + $0x377] sm:$0xff] }
 0x3fa   : > { %v26376_v44 = vpop.f32.mrb[36].mxu1  ;;  %21161 = vmatmul.mubr.msk.f32.gmra.mrb[58].mxu0 %vm280_vm0, %v8646_v47  ;;  %v26400_v47 = vld [vmem:[#allocation2 + $0x4cf] sm:$0xff] }
 0x3fb   : > { %28498 = vst [vmem:[#allocation28_spill] sm:$0xff] %v26376_v44  ;;  %20633 = vmatmul.mubr.msk.f32.gmra.mrb[94].mxu1 %vm280_vm0, %v26372_v45  ;;  %v26381_v42 = vpop.f32.mrb[37].mxu1  ;;  %21163 = vmatprep.mubr.msk.f32.mxu0 %vm280_vm0, %v8647_v9  ;;  %v8651_v9 = vld [vmem:[#allocation2 + $0x367] sm:$0xff] }
 0x3fc   : > { %28499 = vst [vmem:[#allocation29_spill] sm:$0xff] %v26381_v42  ;;  %20635 = vmatprep.mubr.msk.f32.mxu1 %vm280_vm0, %v26374_v28  ;;  %v26402_v42 = vld [vmem:[#allocation2 + $0x4e7] sm:$0xff] }
 0x3fe   : > { %v26390_v37 = vpop.f32.mrb[38].mxu1  ;;  %21164 = vmatmul.mubr.msk.f32.gmra.mrb[60].mxu0 %vm280_vm0, %v8648_v34 }
 0x3ff   : > { %28500 = vst [vmem:[#allocation30_spill] sm:$0xff] %v26390_v37  ;;  %20636 = vmatmul.mubr.msk.f32.gmra.mrb[96].mxu1 %vm280_vm0, %v26386_v29  ;;  %v26395_v46 = vpop.f32.mrb[39].mxu1  ;;  %21166 = vmatprep.mubr.msk.f32.mxu0 %vm280_vm0, %v8649_v6  ;;  %v8652_v6 = vld [vmem:[#allocation2 + $0x36f] sm:$0xff]  ;;  %v26416_v37 = vld [vmem:[#allocation6 + $0x20] sm:$0x7] }
 0x400   : > { %28501 = vst [vmem:[#allocation31_spill] sm:$0xff] %v26395_v46  ;;  %20638 = vmatprep.mubr.msk.f32.mxu1 %vm280_vm0, %v26388_v1  ;;  %v26414_v46 = vld [vmem:[#allocation2 + $0x4ef] sm:$0xff]  ;;  %21459 = vmatprep.subr.msk.mxu0 %vm1385_vm1, %v26416_v37 }
 0x402   : > { %v26404_v44 = vpop.f32.mrb[40].mxu1  ;;  %21167 = vmatmul.mubr.msk.f32.gmra.mrb[62].mxu0 %vm280_vm0, %v8650_v55 }
 0x403   : > { %28502 = vst [vmem:[#allocation32_spill] sm:$0xff] %v26404_v44  ;;  %20639 = vmatmul.mubr.msk.f32.gmra.mrb[98].mxu1 %vm280_vm0, %v26400_v47  ;;  %v26409_v34 = vpop.f32.mrb[41].mxu1  ;;  %21169 = vmatprep.mubr.msk.f32.mxu0 %vm280_vm0, %v8651_v9  ;;  %v26432_v44 = vld [vmem:[#allocation2 + $0x4ff] sm:$0xff] }
 0x404   : > { %28503 = vst [vmem:[#allocation33_spill] sm:$0xff] %v26409_v34  ;;  %20641 = vmatprep.mubr.msk.f32.mxu1 %vm280_vm0, %v26402_v42  ;;  %v8654_v34 = vld [vmem:[#allocation2 + $0x37f] sm:$0xff] }
 0x406   : > { %v26422_v55 = vpop.f32.mrb[42].mxu1  ;;  %21170 = vmatmul.mubr.msk.f32.gmra.mrb[64].mxu0 %vm280_vm0, %v8652_v6 }
 0x407   : > { %28504 = vst [vmem:[#allocation34_spill] sm:$0xff] %v26422_v55  ;;  %20642 = vmatmul.mubr.msk.f32.gmra.mrb[100].mxu1 %vm280_vm0, %v26414_v46  ;;  %v26427_v9 = vpop.f32.mrb[43].mxu1  ;;  %21172 = vmatprep.mubr.msk.f32.mxu0 %vm280_vm0, %v8653_v58  ;;  %v8656_v58 = vld [vmem:[#allocation2 + $0x39f] sm:$0xff]  ;;  %v8657_v55 = vld [vmem:[#allocation2 + $0x3a7] sm:$0xff] }
 0x408   : > { %28505 = vst [vmem:[#allocation35_spill] sm:$0xff] %v26427_v9  ;;  %20644 = vmatprep.mubr.msk.f32.mxu1 %vm280_vm0, %v26418_v23  ;;  %v26446_v9 = vld [vmem:[#allocation2 + $0x51f] sm:$0xff] }
 0x40a   : > { %v26436_v48 = vpop.f32.mrb[44].mxu1  ;;  %21173 = vmatmul.mubr.msk.f32.gmra.mrb[66].mxu0 %vm280_vm0, %v8654_v34 }
 0x40b   : > { %28506 = vst [vmem:[#allocation36_spill] sm:$0xff] %v26436_v48  ;;  %20645 = vmatmul.mubr.msk.f32.gmra.mrb[102].mxu1 %vm280_vm0, %v26432_v44  ;;  %v26441_v6 = vpop.f32.mrb[45].mxu1  ;;  %21175 = vmatprep.mubr.msk.f32.mxu0 %vm280_vm0, %v8655_v59  ;;  %v8658_v59 = vld [vmem:[#allocation2 + $0x3af] sm:$0xff]  ;;  %v8659_v48 = vld [vmem:[#allocation2 + $0x3c7] sm:$0xff] }
 0x40c   : > { %28507 = vst [vmem:[#allocation37_spill] sm:$0xff] %v26441_v6  ;;  %20647 = vmatprep.mubr.msk.f32.mxu1 %vm280_vm0, %v26434_v61  ;;  %v26460_v6 = vld [vmem:[#allocation2 + $0x52f] sm:$0xff] }
 0x40e   : > { %v26450_v25 = vpop.f32.mrb[46].mxu1  ;;  %21176 = vmatmul.mubr.msk.f32.gmra.mrb[68].mxu0 %vm280_vm0, %v8656_v58 }
 0x40f   : > { %28508 = vst [vmem:[#allocation38_spill] sm:$0xff] %v26450_v25  ;;  %20648 = vmatmul.mubr.msk.f32.gmra.mrb[104].mxu1 %vm280_vm0, %v26446_v9  ;;  %v26455_v34 = vpop.f32.mrb[47].mxu1  ;;  %21178 = vmatprep.mubr.msk.f32.mxu0 %vm280_vm0, %v8657_v55  ;;  %v8660_v55 = vld [vmem:[#allocation2 + $0x3cf] sm:$0xff]  ;;  %v8661_v25 = vld [vmem:[#allocation2 + $0x3d7] sm:$0xff] }
 0x410   : > { %28509 = vst [vmem:[#allocation39_spill] sm:$0xff] %v26455_v34  ;;  %20650 = vmatprep.mubr.msk.f32.mxu1 %vm280_vm0, %v26448_v13  ;;  %v26474_v34 = vld [vmem:[#allocation2 + $0x54f] sm:$0xff] }
 0x412   : > { %v26464_v3 = vpop.f32.mrb[48].mxu1  ;;  %21179 = vmatmul.mubr.msk.f32.gmra.mrb[70].mxu0 %vm280_vm0, %v8658_v59 }
 0x413   : > { %28510 = vst [vmem:[#allocation40_spill] sm:$0xff] %v26464_v3  ;;  %20651 = vmatmul.mubr.msk.f32.gmra.mrb[106].mxu1 %vm280_vm0, %v26460_v6  ;;  %v26469_v58 = vpop.f32.mrb[49].mxu1  ;;  %21181 = vmatprep.mubr.msk.f32.mxu0 %vm280_vm0, %v8659_v48  ;;  %v8662_v48 = vld [vmem:[#allocation2 + $0x3df] sm:$0xff]  ;;  %v26490_v3 = vld [vmem:[#allocation2 + $0x577] sm:$0xff] }
 0x414   : > { %28511 = vst [vmem:[#allocation41_spill] sm:$0xff] %v26469_v58  ;;  %20653 = vmatprep.mubr.msk.f32.mxu1 %vm280_vm0, %v26462_v63  ;;  %v26488_v58 = vld [vmem:[#allocation2 + $0x55f] sm:$0xff] }
 0x416   : > { %v26478_v20 = vpop.f32.mrb[50].mxu1  ;;  %21182 = vmatmul.mubr.msk.f32.gmra.mrb[72].mxu0 %vm280_vm0, %v8660_v55 }
 0x417   : > { %28512 = vst [vmem:[#allocation42_spill] sm:$0xff] %v26478_v20  ;;  %20654 = vmatmul.mubr.msk.f32.gmra.mrb[108].mxu1 %vm280_vm0, %v26474_v34  ;;  %v26483_v59 = vpop.f32.mrb[51].mxu1  ;;  %21184 = vmatprep.mubr.msk.f32.mxu0 %vm280_vm0, %v8661_v25  ;;  %v26503_v25 = vld [vmem:[#allocation2 + $0x57f] sm:$0xff] }
 0x418   : > { %28513 = vst [vmem:[#allocation43_spill] sm:$0xff] %v26483_v59  ;;  %20656 = vmatprep.mubr.msk.f32.mxu1 %vm280_vm0, %v26476_v5  ;;  %v26505_v59 = vld [vmem:[#allocation2 + $0x587] sm:$0xff] }
 0x41a   : > { %v26492_v14 = vpop.f32.mrb[52].mxu1  ;;  %21185 = vmatmul.mubr.msk.f32.gmra.mrb[74].mxu0 %vm280_vm0, %v8662_v48 }
 0x41b   : > { %28514 = vst [vmem:[#allocation44_spill] sm:$0xff] %v26492_v14  ;;  %20657 = vmatmul.mubr.msk.f32.gmra.mrb[110].mxu1 %vm280_vm0, %v26488_v58  ;;  %v26497_v55 = vpop.f32.mrb[53].mxu1  ;;  %21187 = vmatprep.mubr.msk.f32.mxu0 %vm280_vm0, %v26262_v40  ;;  %v26519_v40 = vld [vmem:[#allocation2 + $0x58f] sm:$0xff] }
 0x41c   : > { %28515 = vst [vmem:[#allocation45_spill] sm:$0xff] %v26497_v55  ;;  %20659 = vmatprep.mubr.msk.f32.mxu1 %vm280_vm0, %v26490_v3  ;;  %v26521_v55 = vld [vmem:[#allocation2 + $0x5a7] sm:$0xff] }
 0x41e   : > { %v26507_v20 = vpop.f32.mrb[54].mxu1  ;;  %21188 = vmatmul.mubr.msk.f32.gmra.mrb[76].mxu0 %vm280_vm0, %v26274_v22 }
 0x41f   : > { %28516 = vst [vmem:[#allocation46_spill] sm:$0xff] %v26507_v20  ;;  %20660 = vmatmul.mubr.msk.f32.gmra.mrb[112].mxu1 %vm280_vm0, %v26503_v25  ;;  %v26513_v48 = vpop.f32.mrb[55].mxu1  ;;  %21190 = vmatprep.mubr.msk.f32.mxu0 %vm280_vm0, %v26276_v31  ;;  %v26535_v31 = vld [vmem:[#allocation2 + $0x5af] sm:$0xff] }
 0x420   : > { %28517 = vst [vmem:[#allocation47_spill] sm:$0xff] %v26513_v48  ;;  %20662 = vmatprep.mubr.msk.f32.mxu1 %vm280_vm0, %v26505_v59  ;;  %v26537_v48 = vld [vmem:[#allocation2 + $0x5b7] sm:$0xff] }
 0x422   : > { %v26523_v14 = vpop.f32.mrb[56].mxu1  ;;  %21191 = vmatmul.mubr.msk.f32.gmra.mrb[78].mxu0 %vm280_vm0, %v26288_v4 }
 0x423   : > { %28518 = vst [vmem:[#allocation48_spill] sm:$0xff] %v26523_v14  ;;  %20663 = vmatmul.mubr.msk.f32.gmra.mrb[114].mxu1 %vm280_vm0, %v26519_v40  ;;  %v26529_v22 = vpop.f32.mrb[57].mxu1  ;;  %21193 = vmatprep.mubr.msk.f32.mxu0 %vm280_vm0, %v26290_v10  ;;  %v26551_v10 = vld [vmem:[#allocation2 + $0x5bf] sm:$0xff] }
 0x424   : > { %28519 = vst [vmem:[#allocation49_spill] sm:$0xff] %v26529_v22  ;;  %20665 = vmatprep.mubr.msk.f32.mxu1 %vm280_vm0, %v26521_v55  ;;  %v26553_v22 = vld [vmem:[#allocation2 + $0x5d7] sm:$0xff] }
 0x426   : > { %v26539_v20 = vpop.f32.mrb[58].mxu1  ;;  %21194 = vmatmul.mubr.msk.f32.gmra.mrb[80].mxu0 %vm280_vm0, %v26302_v41 }
 0x427   : > { %28520 = vst [vmem:[#allocation50_spill] sm:$0xff] %v26539_v20  ;;  %20666 = vmatmul.mubr.msk.f32.gmra.mrb[116].mxu1 %vm280_vm0, %v26535_v31  ;;  %v26545_v4 = vpop.f32.mrb[59].mxu1  ;;  %21196 = vmatprep.mubr.msk.f32.mxu0 %vm280_vm0, %v26304_v18  ;;  %v26567_v18 = vld [vmem:[#allocation2 + $0x5df] sm:$0xff] }
 0x428   : > { %28521 = vst [vmem:[#allocation51_spill] sm:$0xff] %v26545_v4  ;;  %20668 = vmatprep.mubr.msk.f32.mxu1 %vm280_vm0, %v26537_v48  ;;  %v26569_v4 = vld [vmem:[#allocation2 + $0x5e7] sm:$0xff] }
 0x42a   : > { %v26555_v14 = vpop.f32.mrb[60].mxu1  ;;  %21197 = vmatmul.mubr.msk.f32.gmra.mrb[82].mxu0 %vm280_vm0, %v26316_v52 }
 0x42b   : > { %28522 = vst [vmem:[#allocation52_spill] sm:$0xff] %v26555_v14  ;;  %20669 = vmatmul.mubr.msk.f32.gmra.mrb[118].mxu1 %vm280_vm0, %v26551_v10  ;;  %v26561_v41 = vpop.f32.mrb[61].mxu1  ;;  %21199 = vmatprep.mubr.msk.f32.mxu0 %vm280_vm0, %v26318_v56  ;;  %v4659_v56 = vld [vmem:[#allocation2 + $0x5ef] sm:$0xff] }
 0x42c   : > { %28523 = vst [vmem:[#allocation53_spill] sm:$0xff] %v26561_v41  ;;  %20671 = vmatprep.mubr.msk.f32.mxu1 %vm280_vm0, %v26553_v22  ;;  %v4660_v41 = vld [vmem:[#allocation2 + $0x607] sm:$0xff] }
 0x42e   : > { %v26571_v20 = vpop.f32.mrb[62].mxu1  ;;  %21200 = vmatmul.mubr.msk.f32.gmra.mrb[84].mxu0 %vm280_vm0, %v26330_v2 }
 0x42f   : > { %28524 = vst [vmem:[#allocation54_spill] sm:$0xff] %v26571_v20  ;;  %20672 = vmatmul.mubr.msk.f32.gmra.mrb[120].mxu1 %vm280_vm0, %v26567_v18  ;;  %v26577_v52 = vpop.f32.mrb[63].mxu1  ;;  %21202 = vmatprep.mubr.msk.f32.mxu0 %vm280_vm0, %v26332_v16  ;;  %v4661_v16 = vld [vmem:[#allocation2 + $0x60f] sm:$0xff] }
 0x430   : > { %28525 = vst [vmem:[#allocation55_spill] sm:$0xff] %v26577_v52  ;;  %20674 = vmatprep.mubr.msk.f32.mxu1 %vm280_vm0, %v26569_v4  ;;  %v4662_v52 = vld [vmem:[#allocation2 + $0x617] sm:$0xff] }
 0x432   : > { %v26583_v14 = vpop.f32.mrb[64].mxu1  ;;  %21203 = vmatmul.mubr.msk.f32.gmra.mrb[86].mxu0 %vm280_vm0, %v26344_v11  ;;  %v4663_v11 = vld [vmem:[#allocation2 + $0x61f] sm:$0xff] }
 0x433   : > { %28526 = vst [vmem:[#allocation56_spill] sm:$0xff] %v26583_v14  ;;  %20675 = vmatmul.mubr.msk.f32.gmra.mrb[122].mxu1 %vm280_vm0, %v4659_v56  ;;  %v26588_v2 = vpop.f32.mrb[65].mxu1  ;;  %21205 = vmatprep.mubr.msk.f32.mxu0 %vm280_vm0, %v26346_v51 }
 0x434   : > { %20677 = vmatprep.mubr.msk.f32.mxu1 %vm280_vm0, %v4660_v41 }
 0x436   : > { %v26593_v20 = vpop.f32.mrb[66].mxu1  ;;  %21206 = vmatmul.mubr.msk.f32.gmra.mrb[88].mxu0 %vm280_vm0, %v26358_v36 }
 0x437   : > { %28527 = vst [vmem:[#allocation57_spill] sm:$0xff] %v26593_v20  ;;  %20678 = vmatmul.mubr.msk.f32.gmra.mrb[124].mxu1 %vm280_vm0, %v4661_v16  ;;  %v26598_v14 = vpop.f32.mrb[67].mxu1  ;;  %21208 = vmatprep.mubr.msk.f32.mxu0 %vm280_vm0, %v26360_v38 }
 0x438   : > { %20680 = vmatprep.mubr.msk.f32.mxu1 %vm280_vm0, %v4662_v52 }
 0x43a   : > { %v26603_v51 = vpop.f32.mrb[68].mxu1  ;;  %21209 = vmatmul.mubr.msk.f32.gmra.mrb[90].mxu0 %vm280_vm0, %v26372_v45 }
 0x43b   : > { %28528 = vst [vmem:[#allocation58_spill] sm:$0xff] %v26603_v51  ;;  %20681 = vmatmul.mubr.msk.f32.gmra.mrb[126].mxu1 %vm280_vm0, %v4663_v11  ;;  %v26608_v20 = vpop.f32.mrb[69].mxu1  ;;  %21211 = vmatprep.mubr.msk.f32.mxu0 %vm280_vm0, %v26374_v28 }
 0x43e   : > { %v26612_v36 = vpop.f32.mrb[70].mxu1  ;;  %21212 = vmatmul.mubr.msk.f32.gmra.mrb[92].mxu0 %vm280_vm0, %v26386_v29 }
 0x43f   : > { %v26616_v38 = vpop.f32.mrb[71].mxu1  ;;  %21214 = vmatprep.mubr.msk.f32.mxu0 %vm280_vm0, %v26388_v1 }
 0x442   : > { %v26620_v51 = vpop.f32.mrb[72].mxu1  ;;  %21215 = vmatmul.mubr.msk.f32.gmra.mrb[94].mxu0 %vm280_vm0, %v26400_v47 }
 0x443   : > { %v26624_v45 = vpop.f32.mrb[73].mxu1  ;;  %21217 = vmatprep.mubr.msk.f32.mxu0 %vm280_vm0, %v26402_v42 }
 0x446   : > { %v26628_v28 = vpop.f32.mrb[74].mxu1  ;;  %21218 = vmatmul.mubr.msk.f32.gmra.mrb[96].mxu0 %vm280_vm0, %v26414_v46 }
 0x447   : > { %v26632_v29 = vpop.f32.mrb[75].mxu1  ;;  %21220 = vmatprep.mubr.msk.f32.mxu0 %vm280_vm0, %v26418_v23  ;;  %v9938_v23 = vld [vmem:[#allocation2 + $0x70] sm:$0xff] }
 0x44a   : > { %v26636_v1 = vpop.f32.mrb[76].mxu1  ;;  %21221 = vmatmul.mubr.msk.f32.gmra.mrb[98].mxu0 %vm280_vm0, %v26432_v44  ;;  %v9939_v44 = vld [vmem:[#allocation2 + $0x78] sm:$0xff] }
 0x44b   : > { %v26640_v47 = vpop.f32.mrb[77].mxu1  ;;  %21223 = vmatprep.mubr.msk.f32.mxu0 %vm280_vm0, %v26434_v61  ;;  %v9937_v61 = vld [vmem:[#allocation2 + $0x68] sm:$0xff] }
 0x44e   : > { %v26644_v42 = vpop.f32.mrb[78].mxu1  ;;  %21224 = vmatmul.mubr.msk.f32.gmra.mrb[100].mxu0 %vm280_vm0, %v26446_v9  ;;  %v9940_v9 = vld [vmem:[#allocation2 + $0x80] sm:$0xff] }
 0x44f   : > { %v26648_v46 = vpop.f32.mrb[79].mxu1  ;;  %21226 = vmatprep.mubr.msk.f32.mxu0 %vm280_vm0, %v26448_v13  ;;  %v8714_v13 = vld [vmem:[#allocation2 + $0x64f] sm:$0xff] }
 0x452   : > { %21227 = vmatmul.mubr.msk.f32.gmra.mrb[102].mxu0 %vm280_vm0, %v26460_v6  ;;  %v9941_v6 = vld [vmem:[#allocation2 + $0x98] sm:$0xff] }
 0x453   : > { %21229 = vmatprep.mubr.msk.f32.mxu0 %vm280_vm0, %v26462_v63  ;;  %v8713_v63 = vld [vmem:[#allocation2 + $0x647] sm:$0xff] }
 0x456   : > { %21230 = vmatmul.mubr.msk.f32.gmra.mrb[104].mxu0 %vm280_vm0, %v26474_v34  ;;  %v9942_v34 = vld [vmem:[#allocation2 + $0xa0] sm:$0xff] }
 0x457   : > { %21232 = vmatprep.mubr.msk.f32.mxu0 %vm280_vm0, %v26476_v5  ;;  %v8711_v5 = vld [vmem:[#allocation2 + $0x637] sm:$0xff] }
 0x45a   : > { %21233 = vmatmul.mubr.msk.f32.gmra.mrb[106].mxu0 %vm280_vm0, %v26488_v58  ;;  %v9943_v58 = vld [vmem:[#allocation2 + $0xa8] sm:$0xff] }
 0x45b   : > { %21235 = vmatprep.mubr.msk.f32.mxu0 %vm280_vm0, %v26490_v3  ;;  %v8712_v3 = vld [vmem:[#allocation2 + $0x63f] sm:$0xff] }
 0x45e   : > { %21236 = vmatmul.mubr.msk.f32.gmra.mrb[108].mxu0 %vm280_vm0, %v26503_v25  ;;  %v9947_v25 = vld [vmem:[#allocation2 + $0xd8] sm:$0xff] }
 0x45f   : > { %21238 = vmatprep.mubr.msk.f32.mxu0 %vm280_vm0, %v26505_v59  ;;  %v9944_v59 = vld [vmem:[#allocation2 + $0xb0] sm:$0xff] }
 0x462   : > { %21239 = vmatmul.mubr.msk.f32.gmra.mrb[110].mxu0 %vm280_vm0, %v26519_v40  ;;  %v9949_v40 = vld [vmem:[#allocation2 + $0xf8] sm:$0xff] }
 0x463   : > { %21241 = vmatprep.mubr.msk.f32.mxu0 %vm280_vm0, %v26521_v55  ;;  %v9945_v55 = vld [vmem:[#allocation2 + $0xc8] sm:$0xff] }
 0x466   : > { %21242 = vmatmul.mubr.msk.f32.gmra.mrb[112].mxu0 %vm280_vm0, %v26535_v31  ;;  %v9951_v31 = vld [vmem:[#allocation2 + $0x108] sm:$0xff] }
 0x467   : > { %21244 = vmatprep.mubr.msk.f32.mxu0 %vm280_vm0, %v26537_v48  ;;  %v9948_v48 = vld [vmem:[#allocation2 + $0xe0] sm:$0xff] }
 0x46a   : > { %21245 = vmatmul.mubr.msk.f32.gmra.mrb[114].mxu0 %vm280_vm0, %v26551_v10  ;;  %v9953_v10 = vld [vmem:[#allocation2 + $0x128] sm:$0xff] }
 0x46b   : > { %21247 = vmatprep.mubr.msk.f32.mxu0 %vm280_vm0, %v26553_v22  ;;  %v9950_v22 = vld [vmem:[#allocation2 + $0x100] sm:$0xff] }
 0x46e   : > { %21248 = vmatmul.mubr.msk.f32.gmra.mrb[116].mxu0 %vm280_vm0, %v26567_v18  ;;  %v9955_v18 = vld [vmem:[#allocation2 + $0x138] sm:$0xff] }
 0x46f   : > { %21250 = vmatprep.mubr.msk.f32.mxu0 %vm280_vm0, %v26569_v4  ;;  %v9952_v4 = vld [vmem:[#allocation2 + $0x110] sm:$0xff] }
 0x472   : > { %21251 = vmatmul.mubr.msk.f32.gmra.mrb[118].mxu0 %vm280_vm0, %v4659_v56  ;;  %v9957_v56 = vld [vmem:[#allocation2 + $0x158] sm:$0xff] }
 0x473   : > { %21253 = vmatprep.mubr.msk.f32.mxu0 %vm280_vm0, %v4660_v41  ;;  %v9954_v41 = vld [vmem:[#allocation2 + $0x130] sm:$0xff] }
 0x476   : > { %21254 = vmatmul.mubr.msk.f32.gmra.mrb[120].mxu0 %vm280_vm0, %v4661_v16  ;;  %v9958_v16 = vld [vmem:[#allocation2 + $0x160] sm:$0xff] }
 0x477   : > { %21256 = vmatprep.mubr.msk.f32.mxu0 %vm280_vm0, %v4662_v52  ;;  %v9956_v52 = vld [vmem:[#allocation2 + $0x140] sm:$0xff] }
 0x47a   : > { %21257 = vmatmul.mubr.msk.f32.gmra.mrb[122].mxu0 %vm280_vm0, %v4663_v11  ;;  %v9959_v11 = vld [vmem:[#allocation2 + $0x168] sm:$0xff] }
 0x47b   : > { %21259 = vmatprep.mubr.msk.f32.mxu0 %vm280_vm0, %v8711_v5  ;;  %v9960_v5 = vld [vmem:[#allocation2 + $0x170] sm:$0xff] }
 0x47e   : > { %21260 = vmatmul.mubr.msk.f32.gmra.mrb[124].mxu0 %vm280_vm0, %v8712_v3  ;;  %v9961_v3 = vld [vmem:[#allocation2 + $0x188] sm:$0xff] }
 0x47f   : > { %21262 = vmatprep.mubr.msk.f32.mxu0 %vm280_vm0, %v8713_v63 }
 0x482   : > { %21263 = vmatmul.mubr.msk.f32.gmra.mrb[126].mxu0 %vm280_vm0, %v8714_v13 }
 0x483   : > { %21267 = vmatprep.mubr.msk.f32.mxu0 %vm280_vm0, %v9937_v61  ;;  %v9962_v61 = vld [vmem:[#allocation2 + $0x190] sm:$0xff] }
 0x486   : > { %21268 = vmatmul.mubr.msk.f32.vlgmr.msra.gmra.mrb[0].mxu0 %vm280_vm0, %v9938_v23  ;;  %v9963_v23 = vld [vmem:[#allocation2 + $0x198] sm:$0xff] }
 0x487   : > { %21460 = vmatpush3.msk.msra.mxu0 %vm1385_vm1, %v26416_v37  ;;  %21270 = vmatprep.mubr.msk.f32.mxu0 %vm280_vm0, %v9939_v44  ;;  %v9946_v37 = vld [vmem:[#allocation2 + $0xd0] sm:$0xff] }
 0x48a   : > { %21271 = vmatmul.mubr.msk.f32.gmra.mrb[2].mxu0 %vm280_vm0, %v9940_v9 }
 0x48b   : > { %21273 = vmatprep.mubr.msk.f32.mxu0 %vm280_vm0, %v9941_v6  ;;  %v9964_v6 = vld [vmem:[#allocation2 + $0x1a0] sm:$0xff] }
 0x48e   : > { %21274 = vmatmul.mubr.msk.f32.gmra.mrb[4].mxu0 %vm280_vm0, %v9942_v34  ;;  %v9965_v34 = vld [vmem:[#allocation2 + $0x1b8] sm:$0xff] }
 0x48f   : > { %21276 = vmatprep.mubr.msk.f32.mxu0 %vm280_vm0, %v9943_v58 }
 0x492   : > { %21277 = vmatmul.mubr.msk.f32.gmra.mrb[6].mxu0 %vm280_vm0, %v9944_v59 }
 0x493   : > { %21279 = vmatprep.mubr.msk.f32.mxu0 %vm280_vm0, %v9945_v55  ;;  %v9966_v55 = vld [vmem:[#allocation2 + $0x1c0] sm:$0xff] }
 0x496   : > { %21280 = vmatmul.mubr.msk.f32.gmra.mrb[8].mxu0 %vm280_vm0, %v9946_v37  ;;  %v9967_v37 = vld [vmem:[#allocation2 + $0x1c8] sm:$0xff] }
 0x497   : > { %21282 = vmatprep.mubr.msk.f32.mxu0 %vm280_vm0, %v9947_v25 }
 0x49a   : > { %21283 = vmatmul.mubr.msk.f32.gmra.mrb[10].mxu0 %vm280_vm0, %v9948_v48 }
 0x49b   : > { %21285 = vmatprep.mubr.msk.f32.mxu0 %vm280_vm0, %v9949_v40  ;;  %v9968_v40 = vld [vmem:[#allocation2 + $0x1d0] sm:$0xff] }
 0x49e   : > { %21286 = vmatmul.mubr.msk.f32.gmra.mrb[12].mxu0 %vm280_vm0, %v9950_v22  ;;  %v9969_v22 = vld [vmem:[#allocation2 + $0x1e8] sm:$0xff] }
 0x49f   : > { %21288 = vmatprep.mubr.msk.f32.mxu0 %vm280_vm0, %v9951_v31 }
 0x4a2   : > { %21289 = vmatmul.mubr.msk.f32.gmra.mrb[14].mxu0 %vm280_vm0, %v9952_v4 }
 0x4a3   : > { %21291 = vmatprep.mubr.msk.f32.mxu0 %vm280_vm0, %v9953_v10  ;;  %v9970_v10 = vld [vmem:[#allocation2 + $0x1f0] sm:$0xff] }
 0x4a6   : > { %21292 = vmatmul.mubr.msk.f32.gmra.mrb[16].mxu0 %vm280_vm0, %v9954_v41  ;;  %v9971_v41 = vld [vmem:[#allocation2 + $0x1f8] sm:$0xff] }
 0x4a7   : > { %21294 = vmatprep.mubr.msk.f32.mxu0 %vm280_vm0, %v9955_v18 }
 0x4aa   : > { %21295 = vmatmul.mubr.msk.f32.gmra.mrb[18].mxu0 %vm280_vm0, %v9956_v52 }
 0x4ab   : > { %21297 = vmatprep.mubr.msk.f32.mxu0 %vm280_vm0, %v9957_v56  ;;  %v9972_v56 = vld [vmem:[#allocation2 + $0x200] sm:$0xff] }
 0x4ae   : > { %21298 = vmatmul.mubr.msk.f32.gmra.mrb[20].mxu0 %vm280_vm0, %v9958_v16  ;;  %v9973_v16 = vld [vmem:[#allocation2 + $0x218] sm:$0xff] }
 0x4af   : > { %21300 = vmatprep.mubr.msk.f32.mxu0 %vm280_vm0, %v9959_v11 }
 0x4b2   : > { %v26718_v63 = vpop.f32.mrb[80].mxu1  ;;  %21301 = vmatmul.mubr.msk.f32.gmra.mrb[22].mxu0 %vm280_vm0, %v9960_v5 }
 0x4b3   : > { %v26721_v13 = vpop.f32.mrb[81].mxu1  ;;  %21303 = vmatprep.mubr.msk.f32.mxu0 %vm280_vm0, %v9961_v3  ;;  %v9974_v3 = vld [vmem:[#allocation2 + $0x220] sm:$0xff] }
 0x4b6   : > { %v26724_v44 = vpop.f32.mrb[82].mxu1  ;;  %21304 = vmatmul.mubr.msk.f32.gmra.mrb[24].mxu0 %vm280_vm0, %v9962_v61  ;;  %v9975_v61 = vld [vmem:[#allocation2 + $0x228] sm:$0xff] }
 0x4b7   : > { %v26727_v9 = vpop.f32.mrb[83].mxu1  ;;  %21306 = vmatprep.mubr.msk.f32.mxu0 %vm280_vm0, %v9963_v23 }
 0x4ba   : > { %v26730_v58 = vpop.f32.mrb[84].mxu1  ;;  %21307 = vmatmul.mubr.msk.f32.gmra.mrb[26].mxu0 %vm280_vm0, %v9964_v6 }
 0x4bb   : > { %v26733_v59 = vpop.f32.mrb[85].mxu1  ;;  %21309 = vmatprep.mubr.msk.f32.mxu0 %vm280_vm0, %v9965_v34  ;;  %v9976_v34 = vld [vmem:[#allocation2 + $0x230] sm:$0xff] }
 0x4be   : > { %v26736_v25 = vpop.f32.mrb[86].mxu1  ;;  %21310 = vmatmul.mubr.msk.f32.gmra.mrb[28].mxu0 %vm280_vm0, %v9966_v55  ;;  %v9977_v55 = vld [vmem:[#allocation2 + $0x248] sm:$0xff] }
 0x4bf   : > { %v26739_v48 = vpop.f32.mrb[87].mxu1  ;;  %21312 = vmatprep.mubr.msk.f32.mxu0 %vm280_vm0, %v9967_v37 }
 0x4c2   : > { %v26742_v31 = vpop.f32.mrb[88].mxu1  ;;  %21313 = vmatmul.mubr.msk.f32.gmra.mrb[30].mxu0 %vm280_vm0, %v9968_v40 }
 0x4c3   : > { %v26745_v4 = vpop.f32.mrb[89].mxu1  ;;  %21315 = vmatprep.mubr.msk.f32.mxu0 %vm280_vm0, %v9969_v22  ;;  %v9978_v22 = vld [vmem:[#allocation2 + $0x250] sm:$0xff] }
 0x4c6   : > { %v26748_v18 = vpop.f32.mrb[90].mxu1  ;;  %21316 = vmatmul.mubr.msk.f32.gmra.mrb[32].mxu0 %vm280_vm0, %v9970_v10  ;;  %v9979_v10 = vld [vmem:[#allocation2 + $0x258] sm:$0xff] }
 0x4c7   : > { %v26751_v52 = vpop.f32.mrb[91].mxu1  ;;  %21318 = vmatprep.mubr.msk.f32.mxu0 %vm280_vm0, %v9971_v41 }
 0x4c8   : > { %28529 = vst [vmem:[#allocation59_spill] sm:$0xff] %v26751_v52  ;;  %v11403_v52 = vld [vmem:[#allocation2 + $0x5d9] sm:$0xff] }
 0x4ca   : > { %v26754_v11 = vpop.f32.mrb[92].mxu1  ;;  %21319 = vmatmul.mubr.msk.f32.gmra.mrb[34].mxu0 %vm280_vm0, %v9972_v56 }
 0x4cb   : > { %28530 = vst [vmem:[#allocation60_spill] sm:$0xff] %v26754_v11  ;;  %v26757_v5 = vpop.f32.mrb[93].mxu1  ;;  %21321 = vmatprep.mubr.msk.f32.mxu0 %vm280_vm0, %v9973_v16  ;;  %v9980_v16 = vld [vmem:[#allocation2 + $0x260] sm:$0xff] }
 0x4cc   : > { %28531 = vst [vmem:[#allocation61_spill] sm:$0xff] %v26757_v5 }
 0x4ce   : > { %v26760_v23 = vpop.f32.mrb[94].mxu1  ;;  %21322 = vmatmul.mubr.msk.f32.gmra.mrb[36].mxu0 %vm280_vm0, %v9974_v3  ;;  %v9981_v3 = vld [vmem:[#allocation2 + $0x278] sm:$0xff] }
 0x4cf   : > { %28532 = vst [vmem:[#allocation62_spill] sm:$0xff] %v26760_v23  ;;  %v26763_v6 = vpop.f32.mrb[95].mxu1  ;;  %21324 = vmatprep.mubr.msk.f32.mxu0 %vm280_vm0, %v9975_v61 }
 0x4d0   : > { %28533 = vst [vmem:[#allocation63_spill] sm:$0xff] %v26763_v6 }
 0x4d2   : > { %v26766_v37 = vpop.f32.mrb[96].mxu1  ;;  %21325 = vmatmul.mubr.msk.f32.gmra.mrb[38].mxu0 %vm280_vm0, %v9976_v34 }
 0x4d3   : > { %28534 = vst [vmem:[#allocation64_spill] sm:$0xff] %v26766_v37  ;;  %v26769_v40 = vpop.f32.mrb[97].mxu1  ;;  %21327 = vmatprep.mubr.msk.f32.mxu0 %vm280_vm0, %v9977_v55  ;;  %v9982_v55 = vld [vmem:[#allocation2 + $0x280] sm:$0xff] }
 0x4d4   : > { %28535 = vst [vmem:[#allocation65_spill] sm:$0xff] %v26769_v40  ;;  %v9983_v40 = vld [vmem:[#allocation2 + $0x288] sm:$0xff] }
 0x4d6   : > { %v26772_v41 = vpop.f32.mrb[98].mxu1  ;;  %21328 = vmatmul.mubr.msk.f32.gmra.mrb[40].mxu0 %vm280_vm0, %v9978_v22 }
 0x4d7   : > { %28536 = vst [vmem:[#allocation66_spill] sm:$0xff] %v26772_v41  ;;  %v26775_v56 = vpop.f32.mrb[99].mxu1  ;;  %21330 = vmatprep.mubr.msk.f32.mxu0 %vm280_vm0, %v9979_v10  ;;  %v9984_v10 = vld [vmem:[#allocation2 + $0x290] sm:$0xff] }
 0x4d8   : > { %28537 = vst [vmem:[#allocation67_spill] sm:$0xff] %v26775_v56  ;;  %v9985_v56 = vld [vmem:[#allocation2 + $0x2a8] sm:$0xff] }
 0x4da   : > { %v26778_v61 = vpop.f32.mrb[100].mxu1  ;;  %21331 = vmatmul.mubr.msk.f32.gmra.mrb[42].mxu0 %vm280_vm0, %v9980_v16 }
 0x4db   : > { %28538 = vst [vmem:[#allocation68_spill] sm:$0xff] %v26778_v61  ;;  %v26781_v34 = vpop.f32.mrb[101].mxu1  ;;  %21333 = vmatprep.mubr.msk.f32.mxu0 %vm280_vm0, %v9981_v3  ;;  %v9986_v3 = vld [vmem:[#allocation2 + $0x2b0] sm:$0xff] }
 0x4dc   : > { %28539 = vst [vmem:[#allocation69_spill] sm:$0xff] %v26781_v34  ;;  %v9987_v34 = vld [vmem:[#allocation2 + $0x2b8] sm:$0xff] }
 0x4de   : > { %v26784_v37 = vpop.f32.mrb[102].mxu1  ;;  %21334 = vmatmul.mubr.msk.f32.gmra.mrb[44].mxu0 %vm280_vm0, %v9982_v55 }
 0x4df   : > { %28540 = vst [vmem:[#allocation70_spill] sm:$0xff] %v26784_v37  ;;  %v26787_v22 = vpop.f32.mrb[103].mxu1  ;;  %21336 = vmatprep.mubr.msk.f32.mxu0 %vm280_vm0, %v9983_v40  ;;  %v9988_v40 = vld [vmem:[#allocation2 + $0x2c0] sm:$0xff] }
 0x4e0   : > { %28541 = vst [vmem:[#allocation71_spill] sm:$0xff] %v26787_v22  ;;  %v9989_v22 = vld [vmem:[#allocation2 + $0x2d8] sm:$0xff] }
 0x4e2   : > { %v26790_v41 = vpop.f32.mrb[104].mxu1  ;;  %21337 = vmatmul.mubr.msk.f32.gmra.mrb[46].mxu0 %vm280_vm0, %v9984_v10 }
 0x4e3   : > { %28542 = vst [vmem:[#allocation72_spill] sm:$0xff] %v26790_v41  ;;  %v26793_v16 = vpop.f32.mrb[105].mxu1  ;;  %21339 = vmatprep.mubr.msk.f32.mxu0 %vm280_vm0, %v9985_v56  ;;  %v9990_v56 = vld [vmem:[#allocation2 + $0x2e0] sm:$0xff] }
 0x4e4   : > { %28543 = vst [vmem:[#allocation73_spill] sm:$0xff] %v26793_v16  ;;  %v9991_v16 = vld [vmem:[#allocation2 + $0x2e8] sm:$0xff] }
 0x4e6   : > { %v26796_v61 = vpop.f32.mrb[106].mxu1  ;;  %21340 = vmatmul.mubr.msk.f32.gmra.mrb[48].mxu0 %vm280_vm0, %v9986_v3 }
 0x4e7   : > { %28544 = vst [vmem:[#allocation74_spill] sm:$0xff] %v26796_v61  ;;  %v26799_v55 = vpop.f32.mrb[107].mxu1  ;;  %21342 = vmatprep.mubr.msk.f32.mxu0 %vm280_vm0, %v9987_v34  ;;  %v9992_v34 = vld [vmem:[#allocation2 + $0x2f0] sm:$0xff] }
 0x4e8   : > { %28545 = vst [vmem:[#allocation75_spill] sm:$0xff] %v26799_v55  ;;  %v9993_v55 = vld [vmem:[#allocation2 + $0x308] sm:$0xff] }
 0x4ea   : > { %v26802_v37 = vpop.f32.mrb[108].mxu1  ;;  %21343 = vmatmul.mubr.msk.f32.gmra.mrb[50].mxu0 %vm280_vm0, %v9988_v40 }
 0x4eb   : > { %28546 = vst [vmem:[#allocation76_spill] sm:$0xff] %v26802_v37  ;;  %v26805_v10 = vpop.f32.mrb[109].mxu1  ;;  %21345 = vmatprep.mubr.msk.f32.mxu0 %vm280_vm0, %v9989_v22  ;;  %v9994_v22 = vld [vmem:[#allocation2 + $0x310] sm:$0xff] }
 0x4ec   : > { %28547 = vst [vmem:[#allocation77_spill] sm:$0xff] %v26805_v10  ;;  %v9995_v10 = vld [vmem:[#allocation2 + $0x318] sm:$0xff] }
 0x4ee   : > { %v26808_v41 = vpop.f32.mrb[110].mxu1  ;;  %21346 = vmatmul.mubr.msk.f32.gmra.mrb[52].mxu0 %vm280_vm0, %v9990_v56 }
 0x4ef   : > { %28548 = vst [vmem:[#allocation78_spill] sm:$0xff] %v26808_v41  ;;  %v26811_v3 = vpop.f32.mrb[111].mxu1  ;;  %21348 = vmatprep.mubr.msk.f32.mxu0 %vm280_vm0, %v9991_v16  ;;  %v9996_v16 = vld [vmem:[#allocation2 + $0x320] sm:$0xff] }
 0x4f0   : > { %28549 = vst [vmem:[#allocation79_spill] sm:$0xff] %v26811_v3  ;;  %v9997_v3 = vld [vmem:[#allocation2 + $0x338] sm:$0xff] }
 0x4f2   : > { %v26814_v61 = vpop.f32.mrb[112].mxu1  ;;  %21349 = vmatmul.mubr.msk.f32.gmra.mrb[54].mxu0 %vm280_vm0, %v9992_v34 }
 0x4f3   : > { %28550 = vst [vmem:[#allocation80_spill] sm:$0xff] %v26814_v61  ;;  %v26817_v40 = vpop.f32.mrb[113].mxu1  ;;  %21351 = vmatprep.mubr.msk.f32.mxu0 %vm280_vm0, %v9993_v55  ;;  %v9998_v55 = vld [vmem:[#allocation2 + $0x340] sm:$0xff] }
 0x4f4   : > { %28551 = vst [vmem:[#allocation81_spill] sm:$0xff] %v26817_v40  ;;  %v9999_v40 = vld [vmem:[#allocation2 + $0x348] sm:$0xff] }
 0x4f6   : > { %v26820_v37 = vpop.f32.mrb[114].mxu1  ;;  %21352 = vmatmul.mubr.msk.f32.gmra.mrb[56].mxu0 %vm280_vm0, %v9994_v22 }
 0x4f7   : > { %28552 = vst [vmem:[#allocation82_spill] sm:$0xff] %v26820_v37  ;;  %v26823_v56 = vpop.f32.mrb[115].mxu1  ;;  %21354 = vmatprep.mubr.msk.f32.mxu0 %vm280_vm0, %v9995_v10  ;;  %v10000_v10 = vld [vmem:[#allocation2 + $0x350] sm:$0xff] }
 0x4f8   : > { %28553 = vst [vmem:[#allocation83_spill] sm:$0xff] %v26823_v56  ;;  %v10001_v56 = vld [vmem:[#allocation2 + $0x368] sm:$0xff] }
 0x4fa   : > { %v26826_v41 = vpop.f32.mrb[116].mxu1  ;;  %21355 = vmatmul.mubr.msk.f32.gmra.mrb[58].mxu0 %vm280_vm0, %v9996_v16 }
 0x4fb   : > { %28554 = vst [vmem:[#allocation84_spill] sm:$0xff] %v26826_v41  ;;  %v26829_v34 = vpop.f32.mrb[117].mxu1  ;;  %21357 = vmatprep.mubr.msk.f32.mxu0 %vm280_vm0, %v9997_v3  ;;  %v10002_v3 = vld [vmem:[#allocation2 + $0x370] sm:$0xff] }
 0x4fc   : > { %28555 = vst [vmem:[#allocation85_spill] sm:$0xff] %v26829_v34  ;;  %v10003_v34 = vld [vmem:[#allocation2 + $0x378] sm:$0xff] }
 0x4fe   : > { %v26832_v61 = vpop.f32.mrb[118].mxu1  ;;  %21358 = vmatmul.mubr.msk.f32.gmra.mrb[60].mxu0 %vm280_vm0, %v9998_v55 }
 0x4ff   : > { %28556 = vst [vmem:[#allocation86_spill] sm:$0xff] %v26832_v61  ;;  %v26835_v22 = vpop.f32.mrb[119].mxu1  ;;  %21360 = vmatprep.mubr.msk.f32.mxu0 %vm280_vm0, %v9999_v40  ;;  %v10004_v40 = vld [vmem:[#allocation2 + $0x380] sm:$0xff] }
 0x500   : > { %28557 = vst [vmem:[#allocation87_spill] sm:$0xff] %v26835_v22  ;;  %v10005_v22 = vld [vmem:[#allocation2 + $0x398] sm:$0xff] }
 0x502   : > { %v26838_v37 = vpop.f32.mrb[120].mxu1  ;;  %21361 = vmatmul.mubr.msk.f32.gmra.mrb[62].mxu0 %vm280_vm0, %v10000_v10 }
 0x503   : > { %28558 = vst [vmem:[#allocation88_spill] sm:$0xff] %v26838_v37  ;;  %v26841_v16 = vpop.f32.mrb[121].mxu1  ;;  %21363 = vmatprep.mubr.msk.f32.mxu0 %vm280_vm0, %v10001_v56  ;;  %v10006_v56 = vld [vmem:[#allocation2 + $0x3a0] sm:$0xff] }
 0x504   : > { %28559 = vst [vmem:[#allocation89_spill] sm:$0xff] %v26841_v16  ;;  %v10007_v16 = vld [vmem:[#allocation2 + $0x3a8] sm:$0xff] }
 0x506   : > { %v26844_v41 = vpop.f32.mrb[122].mxu1  ;;  %21364 = vmatmul.mubr.msk.f32.gmra.mrb[64].mxu0 %vm280_vm0, %v10002_v3 }
 0x507   : > { %28560 = vst [vmem:[#allocation90_spill] sm:$0xff] %v26844_v41  ;;  %v26847_v55 = vpop.f32.mrb[123].mxu1  ;;  %21366 = vmatprep.mubr.msk.f32.mxu0 %vm280_vm0, %v10003_v34  ;;  %v10008_v34 = vld [vmem:[#allocation2 + $0x3b0] sm:$0xff]  ;;  %v11347_v41 = vld [vmem:[#allocation2 + $0x339] sm:$0xff] }
 0x508   : > { %28561 = vst [vmem:[#allocation91_spill] sm:$0xff] %v26847_v55  ;;  %v10009_v55 = vld [vmem:[#allocation2 + $0x3c8] sm:$0xff] }
 0x50a   : > { %v26850_v61 = vpop.f32.mrb[124].mxu1  ;;  %21367 = vmatmul.mubr.msk.f32.gmra.mrb[66].mxu0 %vm280_vm0, %v10004_v40  ;;  %v10010_v40 = vld [vmem:[#allocation2 + $0x3d0] sm:$0xff] }
 0x50b   : > { %28562 = vst [vmem:[#allocation92_spill] sm:$0xff] %v26850_v61  ;;  %v26853_v10 = vpop.f32.mrb[125].mxu1  ;;  %21369 = vmatprep.mubr.msk.f32.mxu0 %vm280_vm0, %v10005_v22  ;;  %v10012_v22 = vld [vmem:[#allocation2 + $0x3e0] sm:$0xff] }
 0x50c   : > { %28563 = vst [vmem:[#allocation93_spill] sm:$0xff] %v26853_v10  ;;  %v10011_v10 = vld [vmem:[#allocation2 + $0x3d8] sm:$0xff] }
 0x50d   : > { %v13361_v61 = vld [vmem:[#allocation10 + $0x18] sm:$0xff] }
 0x50e   : > { %v26856_v37 = vpop.f32.mrb[126].mxu1  ;;  %21370 = vmatmul.mubr.msk.f32.gmra.mrb[68].mxu0 %vm280_vm0, %v10006_v56  ;;  %v10014_v56 = vld [vmem:[#allocation2 + $0x400] sm:$0xff] }
 0x50f   : > { %28564 = vst [vmem:[#allocation94_spill] sm:$0xff] %v26856_v37  ;;  %v26859_v3 = vpop.f32.mrb[127].mxu1  ;;  %21372 = vmatprep.mubr.msk.f32.mxu0 %vm280_vm0, %v10007_v16  ;;  %v10013_v37 = vld [vmem:[#allocation2 + $0x3f8] sm:$0xff]  ;;  %v10015_v16 = vld [vmem:[#allocation2 + $0x408] sm:$0xff] }
 0x510   : > { %28565 = vst [vmem:[#allocation95_spill] sm:$0xff] %v26859_v3  ;;  %v13360_v3 = vld [vmem:[#allocation10 + $0x10] sm:$0xff] }
 0x512   : > { %21373 = vmatmul.mubr.msk.f32.gmra.mrb[70].mxu0 %vm280_vm0, %v10008_v34  ;;  %v10016_v34 = vld [vmem:[#allocation2 + $0x410] sm:$0xff] }
 0x513   : > { %21375 = vmatprep.mubr.msk.f32.mxu0 %vm280_vm0, %v10009_v55  ;;  %v10017_v55 = vld [vmem:[#allocation2 + $0x428] sm:$0xff] }
 0x516   : > { %21376 = vmatmul.mubr.msk.f32.gmra.mrb[72].mxu0 %vm280_vm0, %v10010_v40  ;;  %v10018_v40 = vld [vmem:[#allocation2 + $0x430] sm:$0xff] }
 0x517   : > { %21378 = vmatprep.mubr.msk.f32.mxu0 %vm280_vm0, %v10011_v10  ;;  %v10019_v10 = vld [vmem:[#allocation2 + $0x438] sm:$0xff] }
 0x51a   : > { %21379 = vmatmul.mubr.msk.f32.gmra.mrb[74].mxu0 %vm280_vm0, %v10012_v22  ;;  %v10020_v22 = vld [vmem:[#allocation2 + $0x440] sm:$0xff] }
 0x51b   : > { %21381 = vmatprep.mubr.msk.f32.mxu0 %vm280_vm0, %v10013_v37  ;;  %v10021_v37 = vld [vmem:[#allocation2 + $0x458] sm:$0xff] }
 0x51e   : > { %21382 = vmatmul.mubr.msk.f32.gmra.mrb[76].mxu0 %vm280_vm0, %v10014_v56  ;;  %v10022_v56 = vld [vmem:[#allocation2 + $0x460] sm:$0xff] }
 0x51f   : > { %21384 = vmatprep.mubr.msk.f32.mxu0 %vm280_vm0, %v10015_v16  ;;  %v10023_v16 = vld [vmem:[#allocation2 + $0x468] sm:$0xff] }
 0x522   : > { %21385 = vmatmul.mubr.msk.f32.gmra.mrb[78].mxu0 %vm280_vm0, %v10016_v34  ;;  %v10024_v34 = vld [vmem:[#allocation2 + $0x470] sm:$0xff] }
 0x523   : > { %21387 = vmatprep.mubr.msk.f32.mxu0 %vm280_vm0, %v10017_v55  ;;  %v10025_v55 = vld [vmem:[#allocation2 + $0x488] sm:$0xff] }
 0x526   : > { %21388 = vmatmul.mubr.msk.f32.gmra.mrb[80].mxu0 %vm280_vm0, %v10018_v40  ;;  %v10026_v40 = vld [vmem:[#allocation2 + $0x490] sm:$0xff] }
 0x527   : > { %21390 = vmatprep.mubr.msk.f32.mxu0 %vm280_vm0, %v10019_v10  ;;  %v10027_v10 = vld [vmem:[#allocation2 + $0x498] sm:$0xff] }
 0x52a   : > { %21391 = vmatmul.mubr.msk.f32.gmra.mrb[82].mxu0 %vm280_vm0, %v10020_v22  ;;  %v10028_v22 = vld [vmem:[#allocation2 + $0x4a0] sm:$0xff] }
 0x52b   : > { %21393 = vmatprep.mubr.msk.f32.mxu0 %vm280_vm0, %v10021_v37  ;;  %v10029_v37 = vld [vmem:[#allocation2 + $0x4b8] sm:$0xff] }
 0x52e   : > { %21394 = vmatmul.mubr.msk.f32.gmra.mrb[84].mxu0 %vm280_vm0, %v10022_v56  ;;  %v10030_v56 = vld [vmem:[#allocation2 + $0x4c0] sm:$0xff] }
 0x52f   : > { %21396 = vmatprep.mubr.msk.f32.mxu0 %vm280_vm0, %v10023_v16  ;;  %v10031_v16 = vld [vmem:[#allocation2 + $0x4c8] sm:$0xff] }
 0x532   : > { %21397 = vmatmul.mubr.msk.f32.gmra.mrb[86].mxu0 %vm280_vm0, %v10024_v34  ;;  %v10032_v34 = vld [vmem:[#allocation2 + $0x4d0] sm:$0xff] }
 0x533   : > { %21399 = vmatprep.mubr.msk.f32.mxu0 %vm280_vm0, %v10025_v55  ;;  %v10033_v55 = vld [vmem:[#allocation2 + $0x4e8] sm:$0xff] }
 0x536   : > { %21400 = vmatmul.mubr.msk.f32.gmra.mrb[88].mxu0 %vm280_vm0, %v10026_v40  ;;  %v10034_v40 = vld [vmem:[#allocation2 + $0x4f0] sm:$0xff] }
 0x537   : > { %21402 = vmatprep.mubr.msk.f32.mxu0 %vm280_vm0, %v10027_v10  ;;  %v10035_v10 = vld [vmem:[#allocation2 + $0x4f8] sm:$0xff] }
 0x53a   : > { %21403 = vmatmul.mubr.msk.f32.gmra.mrb[90].mxu0 %vm280_vm0, %v10028_v22  ;;  %v10036_v22 = vld [vmem:[#allocation2 + $0x500] sm:$0xff] }
 0x53b   : > { %21405 = vmatprep.mubr.msk.f32.mxu0 %vm280_vm0, %v10029_v37  ;;  %v10037_v37 = vld [vmem:[#allocation2 + $0x518] sm:$0xff] }
 0x53e   : > { %21406 = vmatmul.mubr.msk.f32.gmra.mrb[92].mxu0 %vm280_vm0, %v10030_v56  ;;  %v10038_v56 = vld [vmem:[#allocation2 + $0x520] sm:$0xff] }
 0x53f   : > { %21408 = vmatprep.mubr.msk.f32.mxu0 %vm280_vm0, %v10031_v16  ;;  %v10039_v16 = vld [vmem:[#allocation2 + $0x528] sm:$0xff] }
 0x542   : > { %21409 = vmatmul.mubr.msk.f32.gmra.mrb[94].mxu0 %vm280_vm0, %v10032_v34  ;;  %v10040_v34 = vld [vmem:[#allocation2 + $0x530] sm:$0xff] }
 0x543   : > { %21411 = vmatprep.mubr.msk.f32.mxu0 %vm280_vm0, %v10033_v55  ;;  %v10041_v55 = vld [vmem:[#allocation2 + $0x548] sm:$0xff] }
 0x546   : > { %21412 = vmatmul.mubr.msk.f32.gmra.mrb[96].mxu0 %vm280_vm0, %v10034_v40  ;;  %v10042_v40 = vld [vmem:[#allocation2 + $0x550] sm:$0xff] }
 0x547   : > { %21414 = vmatprep.mubr.msk.f32.mxu0 %vm280_vm0, %v10035_v10  ;;  %v10043_v10 = vld [vmem:[#allocation2 + $0x558] sm:$0xff] }
 0x54a   : > { %21415 = vmatmul.mubr.msk.f32.gmra.mrb[98].mxu0 %vm280_vm0, %v10036_v22  ;;  %v10044_v22 = vld [vmem:[#allocation2 + $0x560] sm:$0xff] }
 0x54b   : > { %21417 = vmatprep.mubr.msk.f32.mxu0 %vm280_vm0, %v10037_v37  ;;  %v10045_v37 = vld [vmem:[#allocation2 + $0x578] sm:$0xff] }
 0x54e   : > { %21418 = vmatmul.mubr.msk.f32.gmra.mrb[100].mxu0 %vm280_vm0, %v10038_v56  ;;  %v10046_v56 = vld [vmem:[#allocation2 + $0x580] sm:$0xff] }
 0x54f   : > { %21420 = vmatprep.mubr.msk.f32.mxu0 %vm280_vm0, %v10039_v16  ;;  %v10047_v16 = vld [vmem:[#allocation2 + $0x588] sm:$0xff] }
 0x552   : > { %21421 = vmatmul.mubr.msk.f32.gmra.mrb[102].mxu0 %vm280_vm0, %v10040_v34  ;;  %v10048_v34 = vld [vmem:[#allocation2 + $0x590] sm:$0xff] }
 0x553   : > { %21423 = vmatprep.mubr.msk.f32.mxu0 %vm280_vm0, %v10041_v55  ;;  %v10049_v55 = vld [vmem:[#allocation2 + $0x5a8] sm:$0xff] }
 0x556   : > { %21424 = vmatmul.mubr.msk.f32.gmra.mrb[104].mxu0 %vm280_vm0, %v10042_v40  ;;  %v10050_v40 = vld [vmem:[#allocation2 + $0x5b0] sm:$0xff] }
 0x557   : > { %21426 = vmatprep.mubr.msk.f32.mxu0 %vm280_vm0, %v10043_v10  ;;  %v10051_v10 = vld [vmem:[#allocation2 + $0x5b8] sm:$0xff] }
 0x55a   : > { %21427 = vmatmul.mubr.msk.f32.gmra.mrb[106].mxu0 %vm280_vm0, %v10044_v22  ;;  %v10052_v22 = vld [vmem:[#allocation2 + $0x5c0] sm:$0xff] }
 0x55b   : > { %21429 = vmatprep.mubr.msk.f32.mxu0 %vm280_vm0, %v10045_v37  ;;  %v10053_v37 = vld [vmem:[#allocation2 + $0x5d8] sm:$0xff] }
 0x55e   : > { %21430 = vmatmul.mubr.msk.f32.gmra.mrb[108].mxu0 %vm280_vm0, %v10046_v56  ;;  %v10054_v56 = vld [vmem:[#allocation2 + $0x5e0] sm:$0xff] }
 0x55f   : > { %21432 = vmatprep.mubr.msk.f32.mxu0 %vm280_vm0, %v10047_v16  ;;  %v10055_v16 = vld [vmem:[#allocation2 + $0x5e8] sm:$0xff] }
 0x562   : > { %21433 = vmatmul.mubr.msk.f32.gmra.mrb[110].mxu0 %vm280_vm0, %v10048_v34  ;;  %v10056_v34 = vld [vmem:[#allocation2 + $0x5f0] sm:$0xff] }
 0x563   : > { %21435 = vmatprep.mubr.msk.f32.mxu0 %vm280_vm0, %v10049_v55  ;;  %v10057_v55 = vld [vmem:[#allocation2 + $0x608] sm:$0xff] }
 0x566   : > { %21436 = vmatmul.mubr.msk.f32.gmra.mrb[112].mxu0 %vm280_vm0, %v10050_v40  ;;  %v10058_v40 = vld [vmem:[#allocation2 + $0x610] sm:$0xff] }
 0x567   : > { %21438 = vmatprep.mubr.msk.f32.mxu0 %vm280_vm0, %v10051_v10  ;;  %v10059_v10 = vld [vmem:[#allocation2 + $0x618] sm:$0xff] }
 0x56a   : > { %21439 = vmatmul.mubr.msk.f32.gmra.mrb[114].mxu0 %vm280_vm0, %v10052_v22  ;;  %v10060_v22 = vld [vmem:[#allocation2 + $0x620] sm:$0xff] }
 0x56b   : > { %21441 = vmatprep.mubr.msk.f32.mxu0 %vm280_vm0, %v10053_v37  ;;  %v10061_v37 = vld [vmem:[#allocation2 + $0x638] sm:$0xff] }
 0x56e   : > { %21442 = vmatmul.mubr.msk.f32.gmra.mrb[116].mxu0 %vm280_vm0, %v10054_v56  ;;  %v10062_v56 = vld [vmem:[#allocation2 + $0x640] sm:$0xff] }
 0x56f   : > { %21444 = vmatprep.mubr.msk.f32.mxu0 %vm280_vm0, %v10055_v16  ;;  %v10063_v16 = vld [vmem:[#allocation2 + $0x648] sm:$0xff] }
 0x572   : > { %21445 = vmatmul.mubr.msk.f32.gmra.mrb[118].mxu0 %vm280_vm0, %v10056_v34  ;;  %v10064_v34 = vld [vmem:[#allocation2 + $0x650] sm:$0xff] }
 0x573   : > { %21447 = vmatprep.mubr.msk.f32.mxu0 %vm280_vm0, %v10057_v55  ;;  %v11287_v55 = vld [vmem:[#allocation2 + $0x69] sm:$0xff] }
 0x576   : > { %21448 = vmatmul.mubr.msk.f32.gmra.mrb[120].mxu0 %vm280_vm0, %v10058_v40  ;;  %v11288_v40 = vld [vmem:[#allocation2 + $0x71] sm:$0xff] }
 0x577   : > { %21450 = vmatprep.mubr.msk.f32.mxu0 %vm280_vm0, %v10059_v10  ;;  %v11289_v10 = vld [vmem:[#allocation2 + $0x79] sm:$0xff] }
 0x57a   : > { %21451 = vmatmul.mubr.msk.f32.gmra.mrb[122].mxu0 %vm280_vm0, %v10060_v22  ;;  %v11290_v22 = vld [vmem:[#allocation2 + $0x81] sm:$0xff] }
 0x57b   : > { %21453 = vmatprep.mubr.msk.f32.mxu0 %vm280_vm0, %v10061_v37  ;;  %v11291_v37 = vld [vmem:[#allocation2 + $0x99] sm:$0xff] }
 0x57e   : > { %21454 = vmatmul.mubr.msk.f32.gmra.mrb[124].mxu0 %vm280_vm0, %v10062_v56  ;;  %v11292_v56 = vld [vmem:[#allocation2 + $0xa1] sm:$0xff] }
 0x57f   : > { %21456 = vmatprep.mubr.msk.f32.mxu0 %vm280_vm0, %v10063_v16  ;;  %v11293_v16 = vld [vmem:[#allocation2 + $0xa9] sm:$0xff] }
 0x582   : > { %21457 = vmatmul.mubr.msk.f32.gmra.mrb[126].mxu0 %vm280_vm0, %v10064_v34  ;;  %v11294_v34 = vld [vmem:[#allocation2 + $0xb1] sm:$0xff] }
 0x583   : > { %21461 = vmatprep.mubr.msk.f32.mxu0 %vm280_vm0, %v11287_v55  ;;  %v11295_v55 = vld [vmem:[#allocation2 + $0xc9] sm:$0xff] }
 0x586   : > { %21462 = vmatmul.mubr.msk.f32.vlgmr.msra.gmra.mrb[0].mxu0 %vm280_vm0, %v11288_v40  ;;  %v11296_v40 = vld [vmem:[#allocation2 + $0xd1] sm:$0xff] }
 0x587   : > { %21464 = vmatprep.mubr.msk.f32.mxu0 %vm280_vm0, %v11289_v10  ;;  %v11297_v10 = vld [vmem:[#allocation2 + $0xd9] sm:$0xff] }
 0x58a   : > { %21465 = vmatmul.mubr.msk.f32.gmra.mrb[2].mxu0 %vm280_vm0, %v11290_v22  ;;  %v11298_v22 = vld [vmem:[#allocation2 + $0xe1] sm:$0xff] }
 0x58b   : > { %21467 = vmatprep.mubr.msk.f32.mxu0 %vm280_vm0, %v11291_v37  ;;  %v11299_v37 = vld [vmem:[#allocation2 + $0xf9] sm:$0xff] }
 0x58e   : > { %21468 = vmatmul.mubr.msk.f32.gmra.mrb[4].mxu0 %vm280_vm0, %v11292_v56  ;;  %v11300_v56 = vld [vmem:[#allocation2 + $0x101] sm:$0xff] }
 0x58f   : > { %21470 = vmatprep.mubr.msk.f32.mxu0 %vm280_vm0, %v11293_v16  ;;  %v11301_v16 = vld [vmem:[#allocation2 + $0x109] sm:$0xff] }
 0x592   : > { %21471 = vmatmul.mubr.msk.f32.gmra.mrb[6].mxu0 %vm280_vm0, %v11294_v34  ;;  %v11302_v34 = vld [vmem:[#allocation2 + $0x111] sm:$0xff] }
 0x593   : > { %21473 = vmatprep.mubr.msk.f32.mxu0 %vm280_vm0, %v11295_v55  ;;  %v11303_v55 = vld [vmem:[#allocation2 + $0x129] sm:$0xff] }
 0x596   : > { %21474 = vmatmul.mubr.msk.f32.gmra.mrb[8].mxu0 %vm280_vm0, %v11296_v40  ;;  %v11304_v40 = vld [vmem:[#allocation2 + $0x131] sm:$0xff] }
 0x597   : > { %21476 = vmatprep.mubr.msk.f32.mxu0 %vm280_vm0, %v11297_v10  ;;  %v11305_v10 = vld [vmem:[#allocation2 + $0x139] sm:$0xff] }
 0x59a   : > { %21477 = vmatmul.mubr.msk.f32.gmra.mrb[10].mxu0 %vm280_vm0, %v11298_v22  ;;  %v11306_v22 = vld [vmem:[#allocation2 + $0x141] sm:$0xff] }
 0x59b   : > { %21479 = vmatprep.mubr.msk.f32.mxu0 %vm280_vm0, %v11299_v37  ;;  %v11307_v37 = vld [vmem:[#allocation2 + $0x159] sm:$0xff] }
 0x59e   : > { %21480 = vmatmul.mubr.msk.f32.gmra.mrb[12].mxu0 %vm280_vm0, %v11300_v56  ;;  %v11308_v56 = vld [vmem:[#allocation2 + $0x161] sm:$0xff] }
 0x59f   : > { %21482 = vmatprep.mubr.msk.f32.mxu0 %vm280_vm0, %v11301_v16  ;;  %v11309_v16 = vld [vmem:[#allocation2 + $0x169] sm:$0xff] }
 0x5a2   : > { %21483 = vmatmul.mubr.msk.f32.gmra.mrb[14].mxu0 %vm280_vm0, %v11302_v34  ;;  %v11310_v34 = vld [vmem:[#allocation2 + $0x171] sm:$0xff] }
 0x5a3   : > { %21485 = vmatprep.mubr.msk.f32.mxu0 %vm280_vm0, %v11303_v55  ;;  %v11311_v55 = vld [vmem:[#allocation2 + $0x189] sm:$0xff] }
 0x5a6   : > { %21486 = vmatmul.mubr.msk.f32.gmra.mrb[16].mxu0 %vm280_vm0, %v11304_v40  ;;  %v11312_v40 = vld [vmem:[#allocation2 + $0x191] sm:$0xff] }
 0x5a7   : > { %21488 = vmatprep.mubr.msk.f32.mxu0 %vm280_vm0, %v11305_v10  ;;  %v11313_v10 = vld [vmem:[#allocation2 + $0x199] sm:$0xff] }
 0x5aa   : > { %21489 = vmatmul.mubr.msk.f32.gmra.mrb[18].mxu0 %vm280_vm0, %v11306_v22  ;;  %v11314_v22 = vld [vmem:[#allocation2 + $0x1a1] sm:$0xff] }
 0x5ab   : > { %21491 = vmatprep.mubr.msk.f32.mxu0 %vm280_vm0, %v11307_v37  ;;  %v11315_v37 = vld [vmem:[#allocation2 + $0x1b9] sm:$0xff] }
 0x5ae   : > { %21492 = vmatmul.mubr.msk.f32.gmra.mrb[20].mxu0 %vm280_vm0, %v11308_v56  ;;  %v11316_v56 = vld [vmem:[#allocation2 + $0x1c1] sm:$0xff] }
 0x5af   : > { %21494 = vmatprep.mubr.msk.f32.mxu0 %vm280_vm0, %v11309_v16  ;;  %v11317_v16 = vld [vmem:[#allocation2 + $0x1c9] sm:$0xff] }
 0x5b2   : > { %21495 = vmatmul.mubr.msk.f32.gmra.mrb[22].mxu0 %vm280_vm0, %v11310_v34  ;;  %v11318_v34 = vld [vmem:[#allocation2 + $0x1d1] sm:$0xff] }
 0x5b3   : > { %21497 = vmatprep.mubr.msk.f32.mxu0 %vm280_vm0, %v11311_v55  ;;  %v11319_v55 = vld [vmem:[#allocation2 + $0x1e9] sm:$0xff] }
 0x5b6   : > { %21498 = vmatmul.mubr.msk.f32.gmra.mrb[24].mxu0 %vm280_vm0, %v11312_v40  ;;  %v11320_v40 = vld [vmem:[#allocation2 + $0x1f1] sm:$0xff] }
 0x5b7   : > { %21500 = vmatprep.mubr.msk.f32.mxu0 %vm280_vm0, %v11313_v10  ;;  %v11321_v10 = vld [vmem:[#allocation2 + $0x1f9] sm:$0xff] }
 0x5ba   : > { %21501 = vmatmul.mubr.msk.f32.gmra.mrb[26].mxu0 %vm280_vm0, %v11314_v22  ;;  %v11322_v22 = vld [vmem:[#allocation2 + $0x201] sm:$0xff] }
 0x5bb   : > { %21503 = vmatprep.mubr.msk.f32.mxu0 %vm280_vm0, %v11315_v37  ;;  %v11323_v37 = vld [vmem:[#allocation2 + $0x219] sm:$0xff] }
 0x5be   : > { %21504 = vmatmul.mubr.msk.f32.gmra.mrb[28].mxu0 %vm280_vm0, %v11316_v56  ;;  %v11324_v56 = vld [vmem:[#allocation2 + $0x221] sm:$0xff] }
 0x5bf   : > { %21506 = vmatprep.mubr.msk.f32.mxu0 %vm280_vm0, %v11317_v16  ;;  %v11325_v16 = vld [vmem:[#allocation2 + $0x229] sm:$0xff] }
 0x5c2   : > { %21507 = vmatmul.mubr.msk.f32.gmra.mrb[30].mxu0 %vm280_vm0, %v11318_v34  ;;  %v11326_v34 = vld [vmem:[#allocation2 + $0x231] sm:$0xff] }
 0x5c3   : > { %21509 = vmatprep.mubr.msk.f32.mxu0 %vm280_vm0, %v11319_v55  ;;  %v11327_v55 = vld [vmem:[#allocation2 + $0x249] sm:$0xff] }
 0x5c6   : > { %21510 = vmatmul.mubr.msk.f32.gmra.mrb[32].mxu0 %vm280_vm0, %v11320_v40  ;;  %v11328_v40 = vld [vmem:[#allocation2 + $0x251] sm:$0xff] }
 0x5c7   : > { %21512 = vmatprep.mubr.msk.f32.mxu0 %vm280_vm0, %v11321_v10  ;;  %v11329_v10 = vld [vmem:[#allocation2 + $0x259] sm:$0xff] }
 0x5ca   : > { %21513 = vmatmul.mubr.msk.f32.gmra.mrb[34].mxu0 %vm280_vm0, %v11322_v22  ;;  %v11330_v22 = vld [vmem:[#allocation2 + $0x261] sm:$0xff] }
 0x5cb   : > { %21515 = vmatprep.mubr.msk.f32.mxu0 %vm280_vm0, %v11323_v37  ;;  %v11331_v37 = vld [vmem:[#allocation2 + $0x279] sm:$0xff] }
 0x5ce   : > { %21516 = vmatmul.mubr.msk.f32.gmra.mrb[36].mxu0 %vm280_vm0, %v11324_v56  ;;  %v11332_v56 = vld [vmem:[#allocation2 + $0x281] sm:$0xff] }
 0x5cf   : > { %21518 = vmatprep.mubr.msk.f32.mxu0 %vm280_vm0, %v11325_v16  ;;  %v11333_v16 = vld [vmem:[#allocation2 + $0x289] sm:$0xff] }
 0x5d2   : > { %21519 = vmatmul.mubr.msk.f32.gmra.mrb[38].mxu0 %vm280_vm0, %v11326_v34  ;;  %v11334_v34 = vld [vmem:[#allocation2 + $0x291] sm:$0xff] }
 0x5d3   : > { %21521 = vmatprep.mubr.msk.f32.mxu0 %vm280_vm0, %v11327_v55  ;;  %v11335_v55 = vld [vmem:[#allocation2 + $0x2a9] sm:$0xff] }
 0x5d6   : > { %21522 = vmatmul.mubr.msk.f32.gmra.mrb[40].mxu0 %vm280_vm0, %v11328_v40  ;;  %v11336_v40 = vld [vmem:[#allocation2 + $0x2b1] sm:$0xff] }
 0x5d7   : > { %21524 = vmatprep.mubr.msk.f32.mxu0 %vm280_vm0, %v11329_v10  ;;  %v11337_v10 = vld [vmem:[#allocation2 + $0x2b9] sm:$0xff] }
 0x5da   : > { %21525 = vmatmul.mubr.msk.f32.gmra.mrb[42].mxu0 %vm280_vm0, %v11330_v22  ;;  %v26970_v22 = vld [vmem:[#allocation2 + $0x2c1] sm:$0xff] }
 0x5db   : > { %21527 = vmatprep.mubr.msk.f32.mxu0 %vm280_vm0, %v11331_v37  ;;  %v26972_v37 = vld [vmem:[#allocation2 + $0x2d9] sm:$0xff] }
 0x5de   : > { %21528 = vmatmul.mubr.msk.f32.gmra.mrb[44].mxu0 %vm280_vm0, %v11332_v56  ;;  %v28566_v56 = vmov 0.0  }
 0x5df   : > { %21530 = vmatprep.mubr.msk.f32.mxu0 %vm280_vm0, %v11333_v16  ;;  %13188 = vst.msk [vmem:[#allocation3] sm:$0xff] %vm12964_vm2, %v28566_v56  ;;  %13189 = vst.msk [vmem:[#allocation3 + $0x8] sm:$0xff] %vm12964_vm2, %v28566_v56  ;;  %v11340_v16 = vld [vmem:[#allocation2 + $0x2e1] sm:$0xff] }
 0x5e0   : > { %13190 = vst.msk [vmem:[#allocation3 + $0x10] sm:$0xff] %vm12964_vm2, %v28566_v56  ;;  %13191 = vst.msk [vmem:[#allocation3 + $0x18] sm:$0xff] %vm12964_vm2, %v28566_v56 }
 0x5e1   : > { %13192 = vst.msk [vmem:[#allocation3 + $0x20] sm:$0xff] %vm12964_vm2, %v28566_v56  ;;  %13193 = vst.msk [vmem:[#allocation3 + $0x28] sm:$0xff] %vm12964_vm2, %v28566_v56 }
 0x5e2   : > { %21531 = vmatmul.mubr.msk.f32.gmra.mrb[46].mxu0 %vm280_vm0, %v11334_v34  ;;  %13194 = vst.msk [vmem:[#allocation3 + $0x30] sm:$0xff] %vm12964_vm2, %v28566_v56  ;;  %13195 = vst.msk [vmem:[#allocation3 + $0x38] sm:$0xff] %vm12964_vm2, %v28566_v56  ;;  %v11341_v34 = vld [vmem:[#allocation2 + $0x2e9] sm:$0xff] }
 0x5e3   : > { %21533 = vmatprep.mubr.msk.f32.mxu0 %vm280_vm0, %v11335_v55  ;;  %13196 = vst.msk [vmem:[#allocation3 + $0x40] sm:$0xff] %vm12964_vm2, %v28566_v56  ;;  %13197 = vst.msk [vmem:[#allocation3 + $0x48] sm:$0xff] %vm12964_vm2, %v28566_v56  ;;  %v11342_v55 = vld [vmem:[#allocation2 + $0x2f1] sm:$0xff] }
 0x5e4   : > { %13198 = vst.msk [vmem:[#allocation3 + $0x50] sm:$0xff] %vm12964_vm2, %v28566_v56  ;;  %13199 = vst.msk [vmem:[#allocation3 + $0x58] sm:$0xff] %vm12964_vm2, %v28566_v56 }
 0x5e5   : > { %13200 = vst.msk [vmem:[#allocation3 + $0x60] sm:$0xff] %vm12964_vm2, %v28566_v56  ;;  %13201 = vst.msk [vmem:[#allocation3 + $0x68] sm:$0xff] %vm12964_vm2, %v28566_v56 }
 0x5e6   : > { %21534 = vmatmul.mubr.msk.f32.gmra.mrb[48].mxu0 %vm280_vm0, %v11336_v40  ;;  %13202 = vst.msk [vmem:[#allocation3 + $0x70] sm:$0xff] %vm12964_vm2, %v28566_v56  ;;  %13203 = vst.msk [vmem:[#allocation3 + $0x78] sm:$0xff] %vm12964_vm2, %v28566_v56  ;;  %v11343_v40 = vld [vmem:[#allocation2 + $0x309] sm:$0xff] }
 0x5e7   : > { %21536 = vmatprep.mubr.msk.f32.mxu0 %vm280_vm0, %v11337_v10  ;;  %13204 = vst.msk [vmem:[#allocation3 + $0x80] sm:$0xff] %vm12964_vm2, %v28566_v56  ;;  %13205 = vst.msk [vmem:[#allocation3 + $0x88] sm:$0xff] %vm12964_vm2, %v28566_v56  ;;  %v11344_v10 = vld [vmem:[#allocation2 + $0x311] sm:$0xff] }
 0x5e8   : > { %13206 = vst.msk [vmem:[#allocation3 + $0x90] sm:$0xff] %vm12964_vm2, %v28566_v56  ;;  %13207 = vst.msk [vmem:[#allocation3 + $0x98] sm:$0xff] %vm12964_vm2, %v28566_v56 }
 0x5e9   : > { %13208 = vst.msk [vmem:[#allocation3 + $0xa0] sm:$0xff] %vm12964_vm2, %v28566_v56  ;;  %13209 = vst.msk [vmem:[#allocation3 + $0xa8] sm:$0xff] %vm12964_vm2, %v28566_v56 }
 0x5ea   : > { %13210 = vst.msk [vmem:[#allocation3 + $0xb0] sm:$0xff] %vm12964_vm2, %v28566_v56  ;;  %13211 = vst.msk [vmem:[#allocation3 + $0xb8] sm:$0xff] %vm12964_vm2, %v28566_v56  ;;  %21537 = vmatmul.mubr.msk.f32.gmra.mrb[50].mxu0 %vm280_vm0, %v26970_v22  ;;  %v22121_v22 = vpack.c.bf16 %v13361_v61, %v13360_v3  ;;  %v11350_v61 = vld [vmem:[#allocation2 + $0x351] sm:$0xff]  ;;  %v11351_v3 = vld [vmem:[#allocation2 + $0x369] sm:$0xff] }
 0x5eb   : > { %13212 = vst.msk [vmem:[#allocation3 + $0xc0] sm:$0xff] %vm12964_vm2, %v28566_v56  ;;  %13213 = vst.msk [vmem:[#allocation3 + $0xc8] sm:$0xff] %vm12964_vm2, %v28566_v56  ;;  %21539 = vmatprep.mubr.msk.f32.mxu0 %vm280_vm0, %v26972_v37  ;;  %v11346_v37 = vld [vmem:[#allocation2 + $0x321] sm:$0xff] }
 0x5ec   : > { %13214 = vst.msk [vmem:[#allocation3 + $0xd0] sm:$0xff] %vm12964_vm2, %v28566_v56  ;;  %13215 = vst.msk [vmem:[#allocation3 + $0xd8] sm:$0xff] %vm12964_vm2, %v28566_v56  ;;  %22122 = vmatprep.subr.bf16.mxu1 %v22121_v22 }
 0x5ed   : > { %13216 = vst.msk [vmem:[#allocation3 + $0xe0] sm:$0xff] %vm12964_vm2, %v28566_v56  ;;  %13217 = vst.msk [vmem:[#allocation3 + $0xe8] sm:$0xff] %vm12964_vm2, %v28566_v56  ;;  %22124 = vmatpush3.bf16.msra.mxu1 %v22121_v22  ;;  %v11355_v22 = vld [vmem:[#allocation2 + $0x399] sm:$0xff] }
 0x5ee   : > { %13218 = vst.msk [vmem:[#allocation3 + $0xf0] sm:$0xff] %vm12964_vm2, %v28566_v56  ;;  %13219 = vst.msk [vmem:[#allocation3 + $0xf8] sm:$0xff] %vm12964_vm2, %v28566_v56  ;;  %21540 = vmatmul.mubr.msk.f32.gmra.mrb[52].mxu0 %vm280_vm0, %v11340_v16  ;;  %v13327_v16 = vld [vmem:[#allocation3 + $0x8] sm:$0xff] }
 0x5ef   : > { %13220 = vst.msk [vmem:[#allocation3 + $0x100] sm:$0xff] %vm12964_vm2, %v28566_v56  ;;  %13221 = vst.msk [vmem:[#allocation3 + $0x108] sm:$0xff] %vm12964_vm2, %v28566_v56  ;;  %21542 = vmatprep.mubr.msk.f32.mxu0 %vm280_vm0, %v11341_v34  ;;  %v11348_v34 = vld [vmem:[#allocation2 + $0x341] sm:$0xff]  ;;  %21657 = vmatprep.mubr.msk.f32.mxu1 %vm12964_vm2, %v13327_v16  ;;  %v11357_v16 = vld [vmem:[#allocation2 + $0x3a9] sm:$0xff] }
 0x5f0   : > { %13222 = vst.msk [vmem:[#allocation3 + $0x110] sm:$0xff] %vm12964_vm2, %v28566_v56  ;;  %13223 = vst.msk [vmem:[#allocation3 + $0x118] sm:$0xff] %vm12964_vm2, %v28566_v56 }
 0x5f1   : > { %13224 = vst.msk [vmem:[#allocation3 + $0x120] sm:$0xff] %vm12964_vm2, %v28566_v56  ;;  %13225 = vst.msk [vmem:[#allocation3 + $0x128] sm:$0xff] %vm12964_vm2, %v28566_v56 }
 0x5f2   : > { %13226 = vst.msk [vmem:[#allocation3 + $0x130] sm:$0xff] %vm12964_vm2, %v28566_v56  ;;  %13227 = vst.msk [vmem:[#allocation3 + $0x138] sm:$0xff] %vm12964_vm2, %v28566_v56  ;;  %21543 = vmatmul.mubr.msk.f32.gmra.mrb[54].mxu0 %vm280_vm0, %v11342_v55  ;;  %v13328_v55 = vld [vmem:[#allocation3 + $0x10] sm:$0xff] }
 0x5f3   : > { %13228 = vst.msk [vmem:[#allocation3 + $0x140] sm:$0xff] %vm12964_vm2, %v28566_v56  ;;  %13229 = vst.msk [vmem:[#allocation3 + $0x148] sm:$0xff] %vm12964_vm2, %v28566_v56  ;;  %21545 = vmatprep.mubr.msk.f32.mxu0 %vm280_vm0, %v11343_v40  ;;  %v11349_v40 = vld [vmem:[#allocation2 + $0x349] sm:$0xff]  ;;  %21658 = vmatmul.mubr.msk.f32.vlgmr.msra.gmra.mrb[128].mxu1 %vm12964_vm2, %v13328_v55 }
 0x5f4   : > { %13230 = vst.msk [vmem:[#allocation3 + $0x150] sm:$0xff] %vm12964_vm2, %v28566_v56  ;;  %13231 = vst.msk [vmem:[#allocation3 + $0x158] sm:$0xff] %vm12964_vm2, %v28566_v56  ;;  %v11359_v55 = vld [vmem:[#allocation2 + $0x3c9] sm:$0xff] }
 0x5f5   : > { %13232 = vst.msk [vmem:[#allocation3 + $0x160] sm:$0xff] %vm12964_vm2, %v28566_v56  ;;  %13233 = vst.msk [vmem:[#allocation3 + $0x168] sm:$0xff] %vm12964_vm2, %v28566_v56 }
 0x5f6   : > { %13234 = vst.msk [vmem:[#allocation3 + $0x170] sm:$0xff] %vm12964_vm2, %v28566_v56  ;;  %13235 = vst.msk [vmem:[#allocation3 + $0x178] sm:$0xff] %vm12964_vm2, %v28566_v56  ;;  %21546 = vmatmul.mubr.msk.f32.gmra.mrb[56].mxu0 %vm280_vm0, %v11344_v10  ;;  %v11352_v10 = vld [vmem:[#allocation2 + $0x371] sm:$0xff] }
 0x5f7   : > { %13236 = vst.msk [vmem:[#allocation3 + $0x180] sm:$0xff] %vm12964_vm2, %v28566_v56  ;;  %13237 = vst.msk [vmem:[#allocation3 + $0x188] sm:$0xff] %vm12964_vm2, %v28566_v56 }
 0x5f8   : > { %13238 = vst.msk [vmem:[#allocation3 + $0x190] sm:$0xff] %vm12964_vm2, %v28566_v56  ;;  %13239 = vst.msk [vmem:[#allocation3 + $0x198] sm:$0xff] %vm12964_vm2, %v28566_v56 }
 0x5f9   : > { %13240 = vst.msk [vmem:[#allocation3 + $0x1a0] sm:$0xff] %vm12964_vm2, %v28566_v56  ;;  %13241 = vst.msk [vmem:[#allocation3 + $0x1a8] sm:$0xff] %vm12964_vm2, %v28566_v56 }
 0x5fa   : > { %13242 = vst.msk [vmem:[#allocation3 + $0x1b0] sm:$0xff] %vm12964_vm2, %v28566_v56  ;;  %13243 = vst.msk [vmem:[#allocation3 + $0x1b8] sm:$0xff] %vm12964_vm2, %v28566_v56 }
 0x5fb   : > { %13244 = vst.msk [vmem:[#allocation3 + $0x1c0] sm:$0xff] %vm12964_vm2, %v28566_v56  ;;  %13245 = vst.msk [vmem:[#allocation3 + $0x1c8] sm:$0xff] %vm12964_vm2, %v28566_v56 }
 0x5fc   : > { %13246 = vst.msk [vmem:[#allocation3 + $0x1d0] sm:$0xff] %vm12964_vm2, %v28566_v56  ;;  %13247 = vst.msk [vmem:[#allocation3 + $0x1d8] sm:$0xff] %vm12964_vm2, %v28566_v56 }
 0x5fd   : > { %13248 = vst.msk [vmem:[#allocation3 + $0x1e0] sm:$0xff] %vm12964_vm2, %v28566_v56  ;;  %13249 = vst.msk [vmem:[#allocation3 + $0x1e8] sm:$0xff] %vm12964_vm2, %v28566_v56 }
 0x5fe   : > { %13250 = vst.msk [vmem:[#allocation3 + $0x1f0] sm:$0xff] %vm12964_vm2, %v28566_v56  ;;  %13251 = vst.msk [vmem:[#allocation3 + $0x1f8] sm:$0xff] %vm12964_vm2, %v28566_v56 }
 0x5ff   : > { %13252 = vst.msk [vmem:[#allocation3 + $0x200] sm:$0xff] %vm12964_vm2, %v28566_v56  ;;  %13253 = vst.msk [vmem:[#allocation3 + $0x208] sm:$0xff] %vm12964_vm2, %v28566_v56 }
 0x600   : > { %13254 = vst.msk [vmem:[#allocation3 + $0x210] sm:$0xff] %vm12964_vm2, %v28566_v56  ;;  %13255 = vst.msk [vmem:[#allocation3 + $0x218] sm:$0xff] %vm12964_vm2, %v28566_v56 }
 0x601   : > { %13256 = vst.msk [vmem:[#allocation3 + $0x220] sm:$0xff] %vm12964_vm2, %v28566_v56  ;;  %13257 = vst.msk [vmem:[#allocation3 + $0x228] sm:$0xff] %vm12964_vm2, %v28566_v56 }
 0x602   : > { %13258 = vst.msk [vmem:[#allocation3 + $0x230] sm:$0xff] %vm12964_vm2, %v28566_v56  ;;  %13259 = vst.msk [vmem:[#allocation3 + $0x238] sm:$0xff] %vm12964_vm2, %v28566_v56  ;;  %v11345_v56 = vld [vmem:[#allocation2 + $0x319] sm:$0xff] }
 0x603   : > { %21548 = vmatprep.mubr.msk.f32.mxu0 %vm280_vm0, %v11345_v56  ;;  %v11353_v56 = vld [vmem:[#allocation2 + $0x379] sm:$0xff] }
 0x604   : > { %21549 = vmatmul.mubr.msk.f32.gmra.mrb[58].mxu0 %vm280_vm0, %v11346_v37  ;;  %v11356_v37 = vld [vmem:[#allocation2 + $0x3a1] sm:$0xff] }
 0x605   : > { %21551 = vmatprep.mubr.msk.f32.mxu0 %vm280_vm0, %v11347_v41  ;;  %v11354_v41 = vld [vmem:[#allocation2 + $0x381] sm:$0xff] }
 0x608   : > { %21552 = vmatmul.mubr.msk.f32.gmra.mrb[60].mxu0 %vm280_vm0, %v11348_v34  ;;  %v11358_v34 = vld [vmem:[#allocation2 + $0x3b1] sm:$0xff] }
 0x609   : > { %21554 = vmatprep.mubr.msk.f32.mxu0 %vm280_vm0, %v11349_v40  ;;  %v11360_v40 = vld [vmem:[#allocation2 + $0x3d1] sm:$0xff] }
 0x60c   : > { %21555 = vmatmul.mubr.msk.f32.gmra.mrb[62].mxu0 %vm280_vm0, %v11350_v61  ;;  %v11361_v61 = vld [vmem:[#allocation2 + $0x3d9] sm:$0xff] }
 0x60d   : > { %21557 = vmatprep.mubr.msk.f32.mxu0 %vm280_vm0, %v11351_v3  ;;  %v11362_v3 = vld [vmem:[#allocation2 + $0x3e1] sm:$0xff] }
 0x610   : > { %21558 = vmatmul.mubr.msk.f32.gmra.mrb[64].mxu0 %vm280_vm0, %v11352_v10  ;;  %v11363_v10 = vld [vmem:[#allocation2 + $0x3f9] sm:$0xff] }
 0x611   : > { %21560 = vmatprep.mubr.msk.f32.mxu0 %vm280_vm0, %v11353_v56  ;;  %v11364_v56 = vld [vmem:[#allocation2 + $0x401] sm:$0xff] }
 0x614   : > { %21561 = vmatmul.mubr.msk.f32.gmra.mrb[66].mxu0 %vm280_vm0, %v11354_v41  ;;  %v11365_v41 = vld [vmem:[#allocation2 + $0x409] sm:$0xff] }
 0x615   : > { %21563 = vmatprep.mubr.msk.f32.mxu0 %vm280_vm0, %v11355_v22  ;;  %v11366_v22 = vld [vmem:[#allocation2 + $0x411] sm:$0xff] }
 0x618   : > { %21564 = vmatmul.mubr.msk.f32.gmra.mrb[68].mxu0 %vm280_vm0, %v11356_v37  ;;  %v11367_v37 = vld [vmem:[#allocation2 + $0x429] sm:$0xff] }
 0x619   : > { %21566 = vmatprep.mubr.msk.f32.mxu0 %vm280_vm0, %v11357_v16  ;;  %v11368_v16 = vld [vmem:[#allocation2 + $0x431] sm:$0xff] }
 0x61c   : > { %21567 = vmatmul.mubr.msk.f32.gmra.mrb[70].mxu0 %vm280_vm0, %v11358_v34  ;;  %v11369_v34 = vld [vmem:[#allocation2 + $0x439] sm:$0xff] }
 0x61d   : > { %21569 = vmatprep.mubr.msk.f32.mxu0 %vm280_vm0, %v11359_v55  ;;  %v11370_v55 = vld [vmem:[#allocation2 + $0x441] sm:$0xff] }
 0x620   : > { %21570 = vmatmul.mubr.msk.f32.gmra.mrb[72].mxu0 %vm280_vm0, %v11360_v40  ;;  %v11371_v40 = vld [vmem:[#allocation2 + $0x459] sm:$0xff] }
 0x621   : > { %21572 = vmatprep.mubr.msk.f32.mxu0 %vm280_vm0, %v11361_v61  ;;  %v11372_v61 = vld [vmem:[#allocation2 + $0x461] sm:$0xff] }
 0x624   : > { %21573 = vmatmul.mubr.msk.f32.gmra.mrb[74].mxu0 %vm280_vm0, %v11362_v3  ;;  %v11373_v3 = vld [vmem:[#allocation2 + $0x469] sm:$0xff] }
 0x625   : > { %21575 = vmatprep.mubr.msk.f32.mxu0 %vm280_vm0, %v11363_v10  ;;  %v11374_v10 = vld [vmem:[#allocation2 + $0x471] sm:$0xff] }
 0x628   : > { %21576 = vmatmul.mubr.msk.f32.gmra.mrb[76].mxu0 %vm280_vm0, %v11364_v56  ;;  %v11375_v56 = vld [vmem:[#allocation2 + $0x489] sm:$0xff] }
 0x629   : > { %21578 = vmatprep.mubr.msk.f32.mxu0 %vm280_vm0, %v11365_v41  ;;  %v11376_v41 = vld [vmem:[#allocation2 + $0x491] sm:$0xff] }
 0x62c   : > { %21579 = vmatmul.mubr.msk.f32.gmra.mrb[78].mxu0 %vm280_vm0, %v11366_v22  ;;  %v11377_v22 = vld [vmem:[#allocation2 + $0x499] sm:$0xff] }
 0x62d   : > { %21581 = vmatprep.mubr.msk.f32.mxu0 %vm280_vm0, %v11367_v37  ;;  %v11378_v37 = vld [vmem:[#allocation2 + $0x4a1] sm:$0xff] }
 0x630   : > { %21582 = vmatmul.mubr.msk.f32.gmra.mrb[80].mxu0 %vm280_vm0, %v11368_v16  ;;  %v11379_v16 = vld [vmem:[#allocation2 + $0x4b9] sm:$0xff] }
 0x631   : > { %21584 = vmatprep.mubr.msk.f32.mxu0 %vm280_vm0, %v11369_v34  ;;  %v11380_v34 = vld [vmem:[#allocation2 + $0x4c1] sm:$0xff] }
 0x634   : > { %21585 = vmatmul.mubr.msk.f32.gmra.mrb[82].mxu0 %vm280_vm0, %v11370_v55  ;;  %v11381_v55 = vld [vmem:[#allocation2 + $0x4c9] sm:$0xff] }
 0x635   : > { %21587 = vmatprep.mubr.msk.f32.mxu0 %vm280_vm0, %v11371_v40  ;;  %v11382_v40 = vld [vmem:[#allocation2 + $0x4d1] sm:$0xff] }
 0x638   : > { %21588 = vmatmul.mubr.msk.f32.gmra.mrb[84].mxu0 %vm280_vm0, %v11372_v61  ;;  %v11383_v61 = vld [vmem:[#allocation2 + $0x4e9] sm:$0xff] }
 0x639   : > { %21590 = vmatprep.mubr.msk.f32.mxu0 %vm280_vm0, %v11373_v3  ;;  %v11384_v3 = vld [vmem:[#allocation2 + $0x4f1] sm:$0xff] }
 0x63c   : > { %21591 = vmatmul.mubr.msk.f32.gmra.mrb[86].mxu0 %vm280_vm0, %v11374_v10  ;;  %v11385_v10 = vld [vmem:[#allocation2 + $0x4f9] sm:$0xff] }
 0x63d   : > { %21593 = vmatprep.mubr.msk.f32.mxu0 %vm280_vm0, %v11375_v56  ;;  %v11386_v56 = vld [vmem:[#allocation2 + $0x501] sm:$0xff] }
 0x640   : > { %21594 = vmatmul.mubr.msk.f32.gmra.mrb[88].mxu0 %vm280_vm0, %v11376_v41  ;;  %v11387_v41 = vld [vmem:[#allocation2 + $0x519] sm:$0xff] }
 0x641   : > { %21596 = vmatprep.mubr.msk.f32.mxu0 %vm280_vm0, %v11377_v22  ;;  %v11388_v22 = vld [vmem:[#allocation2 + $0x521] sm:$0xff] }
 0x644   : > { %21597 = vmatmul.mubr.msk.f32.gmra.mrb[90].mxu0 %vm280_vm0, %v11378_v37  ;;  %v11389_v37 = vld [vmem:[#allocation2 + $0x529] sm:$0xff] }
 0x645   : > { %21599 = vmatprep.mubr.msk.f32.mxu0 %vm280_vm0, %v11379_v16  ;;  %v11390_v16 = vld [vmem:[#allocation2 + $0x531] sm:$0xff] }
 0x648   : > { %21600 = vmatmul.mubr.msk.f32.gmra.mrb[92].mxu0 %vm280_vm0, %v11380_v34  ;;  %v11391_v34 = vld [vmem:[#allocation2 + $0x549] sm:$0xff] }
 0x649   : > { %21602 = vmatprep.mubr.msk.f32.mxu0 %vm280_vm0, %v11381_v55  ;;  %v11392_v55 = vld [vmem:[#allocation2 + $0x551] sm:$0xff] }
 0x64c   : > { %21603 = vmatmul.mubr.msk.f32.gmra.mrb[94].mxu0 %vm280_vm0, %v11382_v40  ;;  %v11393_v40 = vld [vmem:[#allocation2 + $0x559] sm:$0xff] }
 0x64d   : > { %21605 = vmatprep.mubr.msk.f32.mxu0 %vm280_vm0, %v11383_v61  ;;  %v11394_v61 = vld [vmem:[#allocation2 + $0x561] sm:$0xff] }
 0x650   : > { %21606 = vmatmul.mubr.msk.f32.gmra.mrb[96].mxu0 %vm280_vm0, %v11384_v3  ;;  %v11395_v3 = vld [vmem:[#allocation2 + $0x579] sm:$0xff] }
 0x651   : > { %21608 = vmatprep.mubr.msk.f32.mxu0 %vm280_vm0, %v11385_v10 }
 0x654   : > { %21609 = vmatmul.mubr.msk.f32.gmra.mrb[98].mxu0 %vm280_vm0, %v11386_v56 }
 0x655   : > { %21611 = vmatprep.mubr.msk.f32.mxu0 %vm280_vm0, %v11387_v41 }
 0x658   : > { %21612 = vmatmul.mubr.msk.f32.gmra.mrb[100].mxu0 %vm280_vm0, %v11388_v22 }
 0x659   : > { %21614 = vmatprep.mubr.msk.f32.mxu0 %vm280_vm0, %v11389_v37  ;;  %v21463_v10 = vpop.f32.mrb[0].mxu0  ;;  %v11396_v37 = vld [vmem:[#allocation2 + $0x581] sm:$0xff] }
 0x65a   : > { %v22159_v56 = vadd.f32 %v21463_v10, %v26162_v57  ;;  %v11870_v41 = vpop.f32.mrb[1].mxu0  ;;  %v11398_v57 = vld [vmem:[#allocation2 + $0x591] sm:$0xff] }
 0x65b   : > { %v22160_v22 = vadd.f32 %v11870_v41, %v26167_v15 }
 0x65c   : > { %21615 = vmatmul.mubr.msk.f32.gmra.mrb[102].mxu0 %vm280_vm0, %v11390_v16  ;;  %v11397_v16 = vld [vmem:[#allocation2 + $0x589] sm:$0xff] }
 0x65d   : > { %21617 = vmatprep.mubr.msk.f32.mxu0 %vm280_vm0, %v11391_v34  ;;  %v21466_v34 = vpop.f32.mrb[2].mxu0 }
 0x65e   : > { %v22161_v6 = vadd.f32 %v21466_v34, %v26172_v17  ;;  %v11400_v34 = vld [vmem:[#allocation2 + $0x5b1] sm:$0xff] }
 0x660   : > { %21618 = vmatmul.mubr.msk.f32.gmra.mrb[104].mxu0 %vm280_vm0, %v11392_v55  ;;  %v11880_v55 = vpop.f32.mrb[3].mxu0 }
 0x661   : > { %21620 = vmatprep.mubr.msk.f32.mxu0 %vm280_vm0, %v11393_v40  ;;  %v27184_v40 = vld [vmem:[#allocation8] ss:$0 sm:$0xff]  ;;  %v22162_v23 = vadd.f32 %v11880_v55, %v26177_v21  ;;  %v21469_v10 = vpop.f32.mrb[4].mxu0 }
 0x662   : > { %v12645_v15 = vadd.f32 %v22159_v56, %v27184_v40  ;;  %v11890_v41 = vpop.f32.mrb[5].mxu0  ;;  %v12644_v17 = vadd.f32 %v22160_v22, %v27184_v40  ;;  %v12647_v56 = vadd.f32 %v22161_v6, %v27184_v40 }
 0x664   : > { %21621 = vmatmul.mubr.msk.f32.gmra.mrb[106].mxu0 %vm280_vm0, %v11394_v61  ;;  %v11399_v61 = vld [vmem:[#allocation2 + $0x5a9] sm:$0xff]  ;;  %v12773_v11 = vmax.f32 %v12645_v15, 0.0  ;;  %v12772_v22 = vmax.f32 %v12644_v17, 0.0 }
 0x665   : > { %21623 = vmatprep.mubr.msk.f32.mxu0 %vm280_vm0, %v11395_v3  ;;  %v22163_v3 = vadd.f32 %v21469_v10, %v26182_v33  ;;  %v21472_v5 = vpop.f32.mrb[6].mxu0 }
 0x666   : > { %v22165_v10 = vadd.f32 %v21472_v5, %v26192_v8  ;;  %v12775_v5 = vmax.f32 %v12647_v56, 0.0 }
 0x667   : > { %v12649_v21 = vadd.f32 %v22163_v3, %v27184_v40  ;;  %v11402_v3 = vld [vmem:[#allocation2 + $0x5c1] sm:$0xff] }
 0x668   : > { %21624 = vmatmul.mubr.msk.f32.gmra.mrb[108].mxu0 %vm280_vm0, %v11396_v37  ;;  %v22164_v37 = vadd.f32 %v11890_v41, %v26187_v35  ;;  %v12646_v35 = vadd.f32 %v22162_v23, %v27184_v40  ;;  %v12651_v15 = vadd.f32 %v22165_v10, %v27184_v40  ;;  %v11405_v10 = vld [vmem:[#allocation2 + $0x5e9] sm:$0xff] }
 0x669   : > { %21626 = vmatprep.mubr.msk.f32.mxu0 %vm280_vm0, %v11397_v16  ;;  %v11401_v16 = vld [vmem:[#allocation2 + $0x5b9] sm:$0xff]  ;;  %v12777_v33 = vmax.f32 %v12649_v21, 0.0 }
 0x66a   : > { %v12648_v55 = vadd.f32 %v22164_v37, %v27184_v40  ;;  %v12779_v17 = vmax.f32 %v12651_v15, 0.0 }
 0x66b   : > { %v12901_v37 = vmax.f32 %v12773_v11, %v12777_v33 }
 0x66c   : > { %21627 = vmatmul.mubr.msk.f32.gmra.mrb[110].mxu0 %vm280_vm0, %v11398_v57  ;;  %v11900_v57 = vpop.f32.mrb[7].mxu0  ;;  %v12903_v33 = vmax.f32 %v12775_v5, %v12779_v17  ;;  %v11409_v17 = vld [vmem:[#allocation2 + $0x619] sm:$0xff] }
 0x66d   : > { %21629 = vmatprep.mubr.msk.f32.mxu0 %vm280_vm0, %v11399_v61  ;;  %v12776_v61 = vmax.f32 %v12648_v55, 0.0  ;;  %v22166_v41 = vadd.f32 %v11900_v57, %v26197_v12  ;;  %v21475_v8 = vpop.f32.mrb[8].mxu0  ;;  %12966 = vst.msk [vmem:[#allocation4 + $0x8] sm:$0xff] %vm12964_vm2, %v12901_v37  ;;  %v12774_v12 = vmax.f32 %v12646_v35, 0.0  ;;  %v11404_v55 = vld [vmem:[#allocation2 + $0x5e1] sm:$0xff] }
 0x66e   : > { %v22167_v23 = vadd.f32 %v21475_v8, %v26202_v43  ;;  %12968 = vst.msk [vmem:[#allocation4 + $0x18] sm:$0xff] %vm12964_vm2, %v12903_v33 }
 0x66f   : > { %v12900_v6 = vmax.f32 %v12772_v22, %v12776_v61  ;;  %v12650_v21 = vadd.f32 %v22166_v41, %v27184_v40 }
 0x670   : > { %21630 = vmatmul.mubr.msk.f32.gmra.mrb[112].mxu0 %vm280_vm0, %v11400_v34  ;;  %v11910_v34 = vpop.f32.mrb[9].mxu0  ;;  %v12653_v61 = vadd.f32 %v22167_v23, %v27184_v40 }
 0x671   : > { %21632 = vmatprep.mubr.msk.f32.mxu0 %vm280_vm0, %v11401_v16  ;;  %12965 = vst.msk [vmem:[#allocation4] sm:$0xff] %vm12964_vm2, %v12900_v6  ;;  %v12778_v11 = vmax.f32 %v12650_v21, 0.0  ;;  %v22168_v16 = vadd.f32 %v11910_v34, %v26207_v49  ;;  %v21478_v57 = vpop.f32.mrb[10].mxu0  ;;  %v11406_v49 = vld [vmem:[#allocation2 + $0x5f1] sm:$0xff] }
 0x672   : > { %v22169_v43 = vadd.f32 %v21478_v57, %v26212_v30  ;;  %v11920_v22 = vpop.f32.mrb[11].mxu0  ;;  %v12781_v23 = vmax.f32 %v12653_v61, 0.0 }
 0x673   : > { %v12902_v56 = vmax.f32 %v12774_v12, %v12778_v11  ;;  %v22170_v35 = vadd.f32 %v11920_v22, %v26217_v39  ;;  %v12652_v41 = vadd.f32 %v22168_v16, %v27184_v40  ;;  %v11408_v39 = vld [vmem:[#allocation2 + $0x611] sm:$0xff] }
 0x674   : > { %21633 = vmatmul.mubr.msk.f32.gmra.mrb[114].mxu0 %vm280_vm0, %v11402_v3  ;;  %v21481_v3 = vpop.f32.mrb[12].mxu0 }
 0x675   : > { %21635 = vmatprep.mubr.msk.f32.mxu0 %vm280_vm0, %v11403_v52  ;;  %12967 = vst.msk [vmem:[#allocation4 + $0x10] sm:$0xff] %vm12964_vm2, %v12902_v56  ;;  %v11407_v52 = vld [vmem:[#allocation2 + $0x609] sm:$0xff]  ;;  %v22171_v30 = vadd.f32 %v21481_v3, %v26222_v53  ;;  %v11930_v6 = vpop.f32.mrb[13].mxu0  ;;  %v12780_v34 = vmax.f32 %v12652_v41, 0.0  ;;  %v12654_v57 = vadd.f32 %v22170_v35, %v27184_v40  ;;  %v11411_v3 = vld [vmem:[#allocation2 + $0x639] sm:$0xff] }
 0x676   : > { %v22172_v8 = vadd.f32 %v11930_v6, %v26227_v0  ;;  %v21484_v11 = vpop.f32.mrb[14].mxu0 }
 0x677   : > { %v12657_v5 = vadd.f32 %v22171_v30, %v27184_v40  ;;  %v22173_v0 = vadd.f32 %v21484_v11, %v26232_v7  ;;  %v12782_v6 = vmax.f32 %v12654_v57, 0.0 }
 0x678   : > { %21636 = vmatmul.mubr.msk.f32.gmra.mrb[116].mxu0 %vm280_vm0, %v11404_v55  ;;  %v13029_v37 = vld [vmem:[#allocation4] ss:$2 sm:$0xff]  ;;  %v13093_v15 = vld [vmem:[#allocation4 + $0x1] ss:$2 sm:$0xff]  ;;  %v12656_v12 = vadd.f32 %v22172_v8, %v27184_v40  ;;  %v12655_v55 = vadd.f32 %v22169_v43, %v27184_v40 }
 0x679   : > { %21638 = vmatprep.mubr.msk.f32.mxu0 %vm280_vm0, %v11405_v10  ;;  %v13156_v21 = vmax.f32 %v13029_v37, %v13093_v15  ;;  %v12785_v33 = vmax.f32 %v12657_v5, 0.0  ;;  %v11940_v10 = vpop.f32.mrb[15].mxu0  ;;  %v12659_v41 = vadd.f32 %v22173_v0, %v27184_v40 }
 0x67a   : > { %v12784_v22 = vmax.f32 %v12656_v12, 0.0  ;;  %v21487_v37 = vpop.f32.mrb[16].mxu0  ;;  %v12783_v15 = vmax.f32 %v12655_v55, 0.0 }
 0x67b   : > { %13261 = vst.msk [vmem:[#allocation3 + $0x28] sm:$0xff] %vm12964_vm2, %v13156_v21  ;;  %v12905_v61 = vmax.f32 %v12781_v23, %v12785_v33  ;;  %v12787_v35 = vmax.f32 %v12659_v41, 0.0  ;;  %v22175_v30 = vadd.f32 %v21487_v37, %v26242_v62  ;;  %v11413_v23 = vld [vmem:[#allocation2 + $0x649] sm:$0xff] }
 0x67c   : > { %21639 = vmatmul.mubr.msk.f32.gmra.mrb[118].mxu0 %vm280_vm0, %v11406_v49  ;;  %v13031_v53 = vld [vmem:[#allocation4 + $0x10] ss:$2 sm:$0xff]  ;;  %v13095_v16 = vld [vmem:[#allocation4 + $0x11] ss:$2 sm:$0xff]  ;;  %v22174_v49 = vadd.f32 %v11940_v10, %v26237_v50  ;;  %v12904_v43 = vmax.f32 %v12780_v34, %v12784_v22  ;;  %v11950_v50 = vpop.f32.mrb[17].mxu0 }
 0x67d   : > { %21641 = vmatprep.mubr.msk.f32.mxu0 %vm280_vm0, %v11407_v52  ;;  %v13157_v56 = vmax.f32 %v13031_v53, %v13095_v16  ;;  %v11410_v52 = vld [vmem:[#allocation2 + $0x621] sm:$0xff]  ;;  %12970 = vst.msk [vmem:[#allocation4 + $0x28] sm:$0xff] %vm12964_vm2, %v12905_v61  ;;  %v22176_v8 = vadd.f32 %v11950_v50, %v26247_v54  ;;  %v12907_v5 = vmax.f32 %v12783_v15, %v12787_v35  ;;  %v21490_v12 = vpop.f32.mrb[18].mxu0  ;;  %v11414_v53 = vld [vmem:[#allocation2 + $0x651] sm:$0xff] }
 0x67e   : > { %v12658_v7 = vadd.f32 %v22174_v49, %v27184_v40  ;;  %12969 = vst.msk [vmem:[#allocation4 + $0x20] sm:$0xff] %vm12964_vm2, %v12904_v43  ;;  %v22177_v62 = vadd.f32 %v21490_v12, %v26252_v19  ;;  %v11960_v11 = vpop.f32.mrb[19].mxu0  ;;  %v12661_v55 = vadd.f32 %v22175_v30, %v27184_v40 }
 0x67f   : > { %13262 = vst.msk [vmem:[#allocation3 + $0x30] sm:$0xff] %vm12964_vm2, %v13157_v56  ;;  %12972 = vst.msk [vmem:[#allocation4 + $0x38] sm:$0xff] %vm12964_vm2, %v12907_v5  ;;  %v22178_v54 = vadd.f32 %v11960_v11, %v26257_v24  ;;  %v12660_v33 = vadd.f32 %v22176_v8, %v27184_v40 }
 0x680   : > { %21642 = vmatmul.mubr.msk.f32.gmra.mrb[120].mxu0 %vm280_vm0, %v11408_v39  ;;  %v12786_v21 = vmax.f32 %v12658_v7, 0.0  ;;  %v11412_v39 = vld [vmem:[#allocation2 + $0x641] sm:$0xff]  ;;  %v12663_v37 = vadd.f32 %v22177_v62, %v27184_v40 }
 0x681   : > { %21644 = vmatprep.mubr.msk.f32.mxu0 %vm280_vm0, %v11409_v17  ;;  %v21493_v0 = vpop.f32.mrb[20].mxu0  ;;  %v12788_v61 = vmax.f32 %v12660_v33, 0.0 }
 0x682   : > { %v13329_v17 = vld [vmem:[#allocation3 + $0x28] sm:$0xff]  ;;  %v12906_v34 = vmax.f32 %v12782_v6, %v12786_v21  ;;  %v22179_v56 = vadd.f32 %v21493_v0, %v26264_v60  ;;  %v11970_v57 = vpop.f32.mrb[21].mxu0 }
 0x683   : > { %21660 = vmatprep.mubr.msk.f32.mxu1 %vm12964_vm2, %v13329_v17  ;;  %v22180_v24 = vadd.f32 %v11970_v57, %v26269_v27  ;;  %v12662_v27 = vadd.f32 %v22178_v54, %v27184_v40  ;;  %v28568_v54 = vld [vmem:[#allocation17_spill] sm:$0xff]  ;;  %v28570_v57 = vld [vmem:[#allocation19_spill] sm:$0xff] }
 0x684   : > { %21645 = vmatmul.mubr.msk.f32.gmra.mrb[122].mxu0 %vm280_vm0, %v11410_v52  ;;  %12971 = vst.msk [vmem:[#allocation4 + $0x30] sm:$0xff] %vm12964_vm2, %v12906_v34  ;;  %v12665_v49 = vadd.f32 %v22179_v56, %v27184_v40  ;;  %v12789_v52 = vmax.f32 %v12661_v55, 0.0  ;;  %v28567_v34 = vld [vmem:[#allocation16_spill] sm:$0xff] }
 0x685   : > { %21647 = vmatprep.mubr.msk.f32.mxu0 %vm280_vm0, %v11411_v3  ;;  %v13033_v10 = vld [vmem:[#allocation4 + $0x20] ss:$2 sm:$0xff]  ;;  %v13097_v19 = vld [vmem:[#allocation4 + $0x21] ss:$2 sm:$0xff]  ;;  %v12664_v41 = vadd.f32 %v22180_v24, %v27184_v40  ;;  %v21496_v3 = vpop.f32.mrb[22].mxu0  ;;  %v12790_v11 = vmax.f32 %v12662_v27, 0.0 }
 0x686   : > { %v13330_v16 = vld [vmem:[#allocation3 + $0x30] sm:$0xff]  ;;  %v13158_v22 = vmax.f32 %v13033_v10, %v13097_v19  ;;  %v12793_v60 = vmax.f32 %v12665_v49, 0.0  ;;  %v22181_v15 = vadd.f32 %v21496_v3, %v26278_v32  ;;  %v11980_v35 = vpop.f32.mrb[23].mxu0  ;;  %v28569_v10 = vld [vmem:[#allocation18_spill] sm:$0xff] }
 0x687   : > { %21661 = vmatmul.mubr.msk.f32.gmra.mrb[130].mxu1 %vm12964_vm2, %v13330_v16  ;;  %v12792_v50 = vmax.f32 %v12664_v41, 0.0  ;;  %v22182_v6 = vadd.f32 %v11980_v35, %v26283_v26 }
 0x688   : > { %21648 = vmatmul.mubr.msk.f32.gmra.mrb[124].mxu0 %vm280_vm0, %v11412_v39  ;;  %13263 = vst.msk [vmem:[#allocation3 + $0x48] sm:$0xff] %vm12964_vm2, %v13158_v22  ;;  %v12909_v21 = vmax.f32 %v12789_v52, %v12793_v60  ;;  %v12667_v8 = vadd.f32 %v22181_v15, %v27184_v40  ;;  %v28572_v15 = vld [vmem:[#allocation21_spill] sm:$0xff] }
 0x689   : > { %21650 = vmatprep.mubr.msk.f32.mxu0 %vm280_vm0, %v11413_v23  ;;  %v12908_v39 = vmax.f32 %v12788_v61, %v12792_v50  ;;  %v12666_v5 = vadd.f32 %v22182_v6, %v27184_v40  ;;  %v21499_v17 = vpop.f32.mrb[24].mxu0  ;;  %v12791_v23 = vmax.f32 %v12663_v37, 0.0 }
 0x68a   : > { %12974 = vst.msk [vmem:[#allocation4 + $0x48] sm:$0xff] %vm12964_vm2, %v12909_v21  ;;  %v12795_v32 = vmax.f32 %v12667_v8, 0.0  ;;  %v22183_v12 = vadd.f32 %v21499_v17, %v28567_v34  ;;  %v11990_v62 = vpop.f32.mrb[25].mxu0 }
 0x68b   : > { %v13035_v43 = vld [vmem:[#allocation4 + $0x30] ss:$2 sm:$0xff]  ;;  %v13099_v7 = vld [vmem:[#allocation4 + $0x31] ss:$2 sm:$0xff]  ;;  %12973 = vst.msk [vmem:[#allocation4 + $0x40] sm:$0xff] %vm12964_vm2, %v12908_v39  ;;  %v12794_v26 = vmax.f32 %v12666_v5, 0.0 }
 0x68c   : > { %21651 = vmatmul.mubr.msk.f32.gmra.mrb[126].mxu0 %vm280_vm0, %v11414_v53  ;;  %v13159_v30 = vmax.f32 %v13035_v43, %v13099_v7  ;;  %v22184_v53 = vadd.f32 %v11990_v62, %v28568_v54  ;;  %v12911_v16 = vmax.f32 %v12791_v23, %v12795_v32  ;;  %v12669_v49 = vadd.f32 %v22183_v12, %v27184_v40  ;;  %v28571_v43 = vld [vmem:[#allocation20_spill] sm:$0xff]  ;;  %v28573_v23 = vld [vmem:[#allocation22_spill] sm:$0xff] }
 0x68d   : > { %v12910_v33 = vmax.f32 %v12790_v11, %v12794_v26  ;;  %v21502_v0 = vpop.f32.mrb[26].mxu0  ;;  %v28574_v26 = vld [vmem:[#allocation23_spill] sm:$0xff] }
 0x68e   : > { %13264 = vst.msk [vmem:[#allocation3 + $0x50] sm:$0xff] %vm12964_vm2, %v13159_v30  ;;  %12976 = vst.msk [vmem:[#allocation4 + $0x58] sm:$0xff] %vm12964_vm2, %v12911_v16  ;;  %v22185_v19 = vadd.f32 %v21502_v0, %v28569_v10  ;;  %v12000_v56 = vpop.f32.mrb[27].mxu0  ;;  %v12668_v52 = vadd.f32 %v22184_v53, %v27184_v40  ;;  %v12797_v27 = vmax.f32 %v12669_v49, 0.0 }
 0x68f   : > { %v13331_v55 = vld [vmem:[#allocation3 + $0x48] sm:$0xff]  ;;  %12975 = vst.msk [vmem:[#allocation4 + $0x50] sm:$0xff] %vm12964_vm2, %v12910_v33  ;;  %v22186_v22 = vadd.f32 %v12000_v56, %v28570_v57  ;;  %v28575_v56 = vld [vmem:[#allocation24_spill] sm:$0xff] }
 0x690   : > { %21663 = vmatprep.mubr.msk.f32.mxu1 %vm12964_vm2, %v13331_v55  ;;  %v12796_v50 = vmax.f32 %v12668_v52, 0.0  ;;  %v12671_v5 = vadd.f32 %v22185_v19, %v27184_v40  ;;  %v28576_v52 = vld [vmem:[#allocation25_spill] sm:$0xff] }
 0x691   : > { %v21505_v61 = vpop.f32.mrb[28].mxu0  ;;  %v12670_v62 = vadd.f32 %v22186_v22, %v27184_v40 }
 0x692   : > { %v13037_v41 = vld [vmem:[#allocation4 + $0x40] ss:$2 sm:$0xff]  ;;  %v13101_v3 = vld [vmem:[#allocation4 + $0x41] ss:$2 sm:$0xff]  ;;  %v22187_v7 = vadd.f32 %v21505_v61, %v28571_v43  ;;  %v12010_v37 = vpop.f32.mrb[29].mxu0  ;;  %v12799_v10 = vmax.f32 %v12671_v5, 0.0 }
 0x693   : > { %v13160_v60 = vmax.f32 %v13037_v41, %v13101_v3  ;;  %v22188_v35 = vadd.f32 %v12010_v37, %v28572_v15  ;;  %v12798_v22 = vmax.f32 %v12670_v62, 0.0  ;;  %v28577_v37 = vld [vmem:[#allocation26_spill] sm:$0xff]  ;;  %v28579_v5 = vld [vmem:[#allocation28_spill] sm:$0xff] }
 0x694   : > { %v12673_v30 = vadd.f32 %v22187_v7, %v27184_v40 }
 0x695   : > { %v13332_v24 = vld [vmem:[#allocation3 + $0x50] sm:$0xff]  ;;  %13265 = vst.msk [vmem:[#allocation3 + $0x68] sm:$0xff] %vm12964_vm2, %v13160_v60  ;;  %v12672_v6 = vadd.f32 %v22188_v35, %v27184_v40  ;;  %v21508_v21 = vpop.f32.mrb[30].mxu0 }
 0x696   : > { %21664 = vmatmul.mubr.msk.f32.gmra.mrb[132].mxu1 %vm12964_vm2, %v13332_v24  ;;  %v13039_v8 = vld [vmem:[#allocation4 + $0x50] ss:$2 sm:$0xff]  ;;  %v13103_v39 = vld [vmem:[#allocation4 + $0x51] ss:$2 sm:$0xff]  ;;  %v12801_v17 = vmax.f32 %v12673_v30, 0.0  ;;  %v22189_v32 = vadd.f32 %v21508_v21, %v28573_v23  ;;  %v12020_v34 = vpop.f32.mrb[31].mxu0 }
 0x697   : > { %v13161_v12 = vmax.f32 %v13039_v8, %v13103_v39  ;;  %v12800_v11 = vmax.f32 %v12672_v6, 0.0  ;;  %v22190_v54 = vadd.f32 %v12020_v34, %v28574_v26  ;;  %v28578_v35 = vld [vmem:[#allocation27_spill] sm:$0xff]  ;;  %v28580_v34 = vld [vmem:[#allocation29_spill] sm:$0xff] }
 0x698   : > { %v12913_v53 = vmax.f32 %v12797_v27, %v12801_v17  ;;  %v12675_v16 = vadd.f32 %v22189_v32, %v27184_v40 }
 0x699   : > { %13266 = vst.msk [vmem:[#allocation3 + $0x70] sm:$0xff] %vm12964_vm2, %v13161_v12  ;;  %v12912_v55 = vmax.f32 %v12796_v50, %v12800_v11  ;;  %v12674_v33 = vadd.f32 %v22190_v54, %v27184_v40  ;;  %v21511_v0 = vpop.f32.mrb[32].mxu0 }
 0x69a   : > { %12978 = vst.msk [vmem:[#allocation4 + $0x68] sm:$0xff] %vm12964_vm2, %v12913_v53  ;;  %v12803_v19 = vmax.f32 %v12675_v16, 0.0  ;;  %v22191_v57 = vadd.f32 %v21511_v0, %v28575_v56  ;;  %v12030_v24 = vpop.f32.mrb[33].mxu0 }
 0x69b   : > { %12977 = vst.msk [vmem:[#allocation4 + $0x60] sm:$0xff] %vm12964_vm2, %v12912_v55  ;;  %v12802_v49 = vmax.f32 %v12674_v33, 0.0  ;;  %v22192_v61 = vadd.f32 %v12030_v24, %v28576_v52 }
 0x69c   : > { %v12915_v41 = vmax.f32 %v12799_v10, %v12803_v19  ;;  %v13333_v3 = vld [vmem:[#allocation3 + $0x68] sm:$0xff]  ;;  %v12677_v50 = vadd.f32 %v22191_v57, %v27184_v40 }
 0x69d   : > { %v12914_v43 = vmax.f32 %v12798_v22, %v12802_v49  ;;  %v21514_v7 = vpop.f32.mrb[34].mxu0  ;;  %21666 = vmatprep.mubr.msk.f32.mxu1 %vm12964_vm2, %v13333_v3  ;;  %v12676_v6 = vadd.f32 %v22192_v61, %v27184_v40  ;;  %v28581_v10 = vld [vmem:[#allocation30_spill] sm:$0xff]  ;;  %v28582_v49 = vld [vmem:[#allocation31_spill] sm:$0xff] }
 0x69e   : > { %12980 = vst.msk [vmem:[#allocation4 + $0x78] sm:$0xff] %vm12964_vm2, %v12915_v41  ;;  %v22193_v60 = vadd.f32 %v21514_v7, %v28577_v37  ;;  %v12040_v15 = vpop.f32.mrb[35].mxu0  ;;  %v12805_v11 = vmax.f32 %v12677_v50, 0.0 }
 0x69f   : > { %12979 = vst.msk [vmem:[#allocation4 + $0x70] sm:$0xff] %vm12964_vm2, %v12914_v43  ;;  %v22194_v30 = vadd.f32 %v12040_v15, %v28578_v35  ;;  %v12804_v26 = vmax.f32 %v12676_v6, 0.0  ;;  %v28583_v15 = vld [vmem:[#allocation32_spill] sm:$0xff]  ;;  %v28584_v6 = vld [vmem:[#allocation33_spill] sm:$0xff] }
 0x6a0   : > { %v13334_v27 = vld [vmem:[#allocation3 + $0x70] sm:$0xff]  ;;  %v12679_v33 = vadd.f32 %v22193_v60, %v27184_v40 }
 0x6a1   : > { %v21517_v21 = vpop.f32.mrb[36].mxu0  ;;  %21667 = vmatmul.mubr.msk.f32.gmra.mrb[134].mxu1 %vm12964_vm2, %v13334_v27  ;;  %v12678_v24 = vadd.f32 %v22194_v30, %v27184_v40 }
 0x6a2   : > { %v13041_v8 = vld [vmem:[#allocation4 + $0x60] ss:$2 sm:$0xff]  ;;  %v13105_v39 = vld [vmem:[#allocation4 + $0x61] ss:$2 sm:$0xff]  ;;  %v22195_v17 = vadd.f32 %v21517_v21, %v28579_v5  ;;  %v12050_v23 = vpop.f32.mrb[37].mxu0  ;;  %v12807_v37 = vmax.f32 %v12679_v33, 0.0 }
 0x6a3   : > { %v13162_v32 = vmax.f32 %v13041_v8, %v13105_v39  ;;  %v22196_v12 = vadd.f32 %v12050_v23, %v28580_v34  ;;  %v12806_v30 = vmax.f32 %v12678_v24, 0.0  ;;  %v28585_v23 = vld [vmem:[#allocation34_spill] sm:$0xff]  ;;  %v28587_v33 = vld [vmem:[#allocation36_spill] sm:$0xff] }
 0x6a4   : > { %v12681_v62 = vadd.f32 %v22195_v17, %v27184_v40 }
 0x6a5   : > { %13267 = vst.msk [vmem:[#allocation3 + $0x88] sm:$0xff] %vm12964_vm2, %v13162_v32  ;;  %v12680_v54 = vadd.f32 %v22196_v12, %v27184_v40  ;;  %v21520_v53 = vpop.f32.mrb[38].mxu0  ;;  %v28586_v12 = vld [vmem:[#allocation35_spill] sm:$0xff] }
 0x6a6   : > { %v13043_v16 = vld [vmem:[#allocation4 + $0x70] ss:$2 sm:$0xff]  ;;  %v13107_v55 = vld [vmem:[#allocation4 + $0x71] ss:$2 sm:$0xff]  ;;  %v12809_v0 = vmax.f32 %v12681_v62, 0.0  ;;  %v22197_v19 = vadd.f32 %v21520_v53, %v28581_v10  ;;  %v12060_v56 = vpop.f32.mrb[39].mxu0 }
 0x6a7   : > { %v13163_v57 = vmax.f32 %v13043_v16, %v13107_v55  ;;  %v12808_v22 = vmax.f32 %v12680_v54, 0.0  ;;  %v22198_v52 = vadd.f32 %v12060_v56, %v28582_v49  ;;  %v28588_v56 = vld [vmem:[#allocation37_spill] sm:$0xff] }
 0x6a8   : > { %v12917_v61 = vmax.f32 %v12805_v11, %v12809_v0  ;;  %v12683_v41 = vadd.f32 %v22197_v19, %v27184_v40 }
 0x6a9   : > { %13268 = vst.msk [vmem:[#allocation3 + $0x90] sm:$0xff] %vm12964_vm2, %v13163_v57  ;;  %v12916_v3 = vmax.f32 %v12804_v26, %v12808_v22  ;;  %v12682_v43 = vadd.f32 %v22198_v52, %v27184_v40  ;;  %v21523_v7 = vpop.f32.mrb[40].mxu0 }
 0x6aa   : > { %12982 = vst.msk [vmem:[#allocation4 + $0x88] sm:$0xff] %vm12964_vm2, %v12917_v61  ;;  %v12811_v60 = vmax.f32 %v12683_v41, 0.0  ;;  %v22199_v35 = vadd.f32 %v21523_v7, %v28583_v15  ;;  %v12070_v27 = vpop.f32.mrb[41].mxu0  ;;  %v13325_v41 = vld [vmem:[#allocation10] sm:$0xff] }
 0x6ab   : > { %12981 = vst.msk [vmem:[#allocation4 + $0x80] sm:$0xff] %vm12964_vm2, %v12916_v3  ;;  %v12810_v50 = vmax.f32 %v12682_v43, 0.0  ;;  %v22200_v21 = vadd.f32 %v12070_v27, %v28584_v6  ;;  %v13326_v3 = vld [vmem:[#allocation10 + $0x8] sm:$0xff] }
 0x6ac   : > { %v12919_v8 = vmax.f32 %v12807_v37, %v12811_v60  ;;  %v13335_v39 = vld [vmem:[#allocation3 + $0x88] sm:$0xff]  ;;  %v12685_v26 = vadd.f32 %v22199_v35, %v27184_v40 }
 0x6ad   : > { %v12918_v5 = vmax.f32 %v12806_v30, %v12810_v50  ;;  %v21526_v17 = vpop.f32.mrb[42].mxu0  ;;  %21669 = vmatprep.mubr.msk.f32.mxu1 %vm12964_vm2, %v13335_v39  ;;  %v12684_v54 = vadd.f32 %v22200_v21, %v27184_v40  ;;  %v28589_v15 = vld [vmem:[#allocation38_spill] sm:$0xff]  ;;  %v22125_v30 = vpack.c.bf16 %v13326_v3, %v13325_v41 }
 0x6ae   : > { %12984 = vst.msk [vmem:[#allocation4 + $0x98] sm:$0xff] %vm12964_vm2, %v12919_v8  ;;  %v22201_v32 = vadd.f32 %v21526_v17, %v28585_v23  ;;  %v12080_v34 = vpop.f32.mrb[43].mxu0  ;;  %v12813_v22 = vmax.f32 %v12685_v26, 0.0  ;;  %v28590_v8 = vld [vmem:[#allocation39_spill] sm:$0xff]  ;;  %v28591_v26 = vld [vmem:[#allocation40_spill] sm:$0xff] }
 0x6af   : > { %12983 = vst.msk [vmem:[#allocation4 + $0x90] sm:$0xff] %vm12964_vm2, %v12918_v5  ;;  %v22202_v62 = vadd.f32 %v12080_v34, %v28586_v12  ;;  %v12812_v49 = vmax.f32 %v12684_v54, 0.0  ;;  %22126 = vmatprep.subr.bf16.mxu1 %v22125_v30 }
 0x6b0   : > { %v13336_v11 = vld [vmem:[#allocation3 + $0x90] sm:$0xff]  ;;  %v12687_v37 = vadd.f32 %v22201_v32, %v27184_v40  ;;  %22128 = vmatpush3.bf16.msra.mxu1 %v22125_v30  ;;  %v28596_v30 = vld [vmem:[#allocation45_spill] sm:$0xff] }
 0x6b1   : > { %v21529_v53 = vpop.f32.mrb[44].mxu0  ;;  %21670 = vmatmul.mubr.msk.f32.gmra.mrb[136].mxu1 %vm12964_vm2, %v13336_v11  ;;  %v12686_v6 = vadd.f32 %v22202_v62, %v27184_v40 }
 0x6b2   : > { %v13045_v16 = vld [vmem:[#allocation4 + $0x80] ss:$2 sm:$0xff]  ;;  %v13109_v55 = vld [vmem:[#allocation4 + $0x81] ss:$2 sm:$0xff]  ;;  %v22203_v0 = vadd.f32 %v21529_v53, %v28587_v33  ;;  %v12090_v10 = vpop.f32.mrb[45].mxu0  ;;  %v12815_v12 = vmax.f32 %v12687_v37, 0.0 }
 0x6b3   : > { %v13164_v19 = vmax.f32 %v13045_v16, %v13109_v55  ;;  %v22204_v57 = vadd.f32 %v12090_v10, %v28588_v56  ;;  %v12814_v53 = vmax.f32 %v12686_v6, 0.0  ;;  %v28592_v55 = vld [vmem:[#allocation41_spill] sm:$0xff] }
 0x6b4   : > { %v12689_v24 = vadd.f32 %v22203_v0, %v27184_v40 }
 0x6b5   : > { %13269 = vst.msk [vmem:[#allocation3 + $0xa8] sm:$0xff] %vm12964_vm2, %v13164_v19  ;;  %v12688_v52 = vadd.f32 %v22204_v57, %v27184_v40  ;;  %v21532_v61 = vpop.f32.mrb[46].mxu0  ;;  %v28593_v57 = vld [vmem:[#allocation42_spill] sm:$0xff] }
 0x6b6   : > { %v13047_v43 = vld [vmem:[#allocation4 + $0x90] ss:$2 sm:$0xff]  ;;  %v13111_v7 = vld [vmem:[#allocation4 + $0x91] ss:$2 sm:$0xff]  ;;  %v12817_v60 = vmax.f32 %v12689_v24, 0.0  ;;  %v22205_v35 = vadd.f32 %v21532_v61, %v28589_v15  ;;  %v12100_v27 = vpop.f32.mrb[47].mxu0 }
 0x6b7   : > { %v13165_v50 = vmax.f32 %v13047_v43, %v13111_v7  ;;  %v12816_v21 = vmax.f32 %v12688_v52, 0.0  ;;  %v22206_v39 = vadd.f32 %v12100_v27, %v28590_v8 }
 0x6b8   : > { %v12921_v5 = vmax.f32 %v12813_v22, %v12817_v60  ;;  %v12691_v17 = vadd.f32 %v22205_v35, %v27184_v40  ;;  %v28595_v60 = vld [vmem:[#allocation44_spill] sm:$0xff] }
 0x6b9   : > { %13270 = vst.msk [vmem:[#allocation3 + $0xb0] sm:$0xff] %vm12964_vm2, %v13165_v50  ;;  %v12920_v23 = vmax.f32 %v12812_v49, %v12816_v21  ;;  %v12690_v32 = vadd.f32 %v22206_v39, %v27184_v40  ;;  %v21535_v34 = vpop.f32.mrb[48].mxu0  ;;  %v28594_v49 = vld [vmem:[#allocation43_spill] sm:$0xff] }
 0x6ba   : > { %12986 = vst.msk [vmem:[#allocation4 + $0xa8] sm:$0xff] %vm12964_vm2, %v12921_v5  ;;  %v12819_v11 = vmax.f32 %v12691_v17, 0.0  ;;  %v22207_v62 = vadd.f32 %v21535_v34, %v28591_v26  ;;  %v12110_v54 = vpop.f32.mrb[49].mxu0 }
 0x6bb   : > { %12985 = vst.msk [vmem:[#allocation4 + $0xa0] sm:$0xff] %vm12964_vm2, %v12920_v23  ;;  %v12818_v16 = vmax.f32 %v12690_v32, 0.0  ;;  %v22208_v33 = vadd.f32 %v12110_v54, %v28592_v55 }
 0x6bc   : > { %v12923_v0 = vmax.f32 %v12815_v12, %v12819_v11  ;;  %v13337_v10 = vld [vmem:[#allocation3 + $0xa8] sm:$0xff]  ;;  %v12693_v41 = vadd.f32 %v22207_v62, %v27184_v40 }
 0x6bd   : > { %v12922_v19 = vmax.f32 %v12814_v53, %v12818_v16  ;;  %v21538_v56 = vpop.f32.mrb[50].mxu0  ;;  %21672 = vmatprep.mubr.msk.f32.mxu1 %vm12964_vm2, %v13337_v10  ;;  %v12692_v3 = vadd.f32 %v22208_v33, %v27184_v40  ;;  %v28597_v12 = vld [vmem:[#allocation46_spill] sm:$0xff]  ;;  %v28598_v16 = vld [vmem:[#allocation47_spill] sm:$0xff] }
 0x6be   : > { %12988 = vst.msk [vmem:[#allocation4 + $0xb8] sm:$0xff] %vm12964_vm2, %v12923_v0  ;;  %v22209_v24 = vadd.f32 %v21538_v56, %v28593_v57  ;;  %v12120_v22 = vpop.f32.mrb[51].mxu0  ;;  %v12821_v21 = vmax.f32 %v12693_v41, 0.0 }
 0x6bf   : > { %12987 = vst.msk [vmem:[#allocation4 + $0xb0] sm:$0xff] %vm12964_vm2, %v12922_v19  ;;  %v22210_v52 = vadd.f32 %v12120_v22, %v28594_v49  ;;  %v12820_v8 = vmax.f32 %v12692_v3, 0.0  ;;  %v28599_v22 = vld [vmem:[#allocation48_spill] sm:$0xff]  ;;  %v28600_v3 = vld [vmem:[#allocation49_spill] sm:$0xff] }
 0x6c0   : > { %v13338_v61 = vld [vmem:[#allocation3 + $0xb0] sm:$0xff]  ;;  %v12695_v32 = vadd.f32 %v22209_v24, %v27184_v40 }
 0x6c1   : > { %v21541_v43 = vpop.f32.mrb[52].mxu0  ;;  %21673 = vmatmul.mubr.msk.f32.gmra.mrb[138].mxu1 %vm12964_vm2, %v13338_v61  ;;  %v12694_v54 = vadd.f32 %v22210_v52, %v27184_v40 }
 0x6c2   : > { %v13049_v7 = vld [vmem:[#allocation4 + $0xa0] ss:$2 sm:$0xff]  ;;  %v13113_v37 = vld [vmem:[#allocation4 + $0xa1] ss:$2 sm:$0xff]  ;;  %v22211_v15 = vadd.f32 %v21541_v43, %v28595_v60  ;;  %v12130_v35 = vpop.f32.mrb[53].mxu0  ;;  %v12823_v57 = vmax.f32 %v12695_v32, 0.0 }
 0x6c3   : > { %v13166_v27 = vmax.f32 %v13049_v7, %v13113_v37  ;;  %v22212_v50 = vadd.f32 %v12130_v35, %v28596_v30  ;;  %v12822_v52 = vmax.f32 %v12694_v54, 0.0  ;;  %v28601_v35 = vld [vmem:[#allocation50_spill] sm:$0xff]  ;;  %v28603_v32 = vld [vmem:[#allocation52_spill] sm:$0xff] }
 0x6c4   : > { %v12697_v6 = vadd.f32 %v22211_v15, %v27184_v40 }
 0x6c5   : > { %13271 = vst.msk [vmem:[#allocation3 + $0xc8] sm:$0xff] %vm12964_vm2, %v13166_v27  ;;  %v12696_v39 = vadd.f32 %v22212_v50, %v27184_v40  ;;  %v21544_v5 = vpop.f32.mrb[54].mxu0  ;;  %v28602_v50 = vld [vmem:[#allocation51_spill] sm:$0xff] }
 0x6c6   : > { %v13051_v17 = vld [vmem:[#allocation4 + $0xb0] ss:$2 sm:$0xff]  ;;  %v13115_v23 = vld [vmem:[#allocation4 + $0xb1] ss:$2 sm:$0xff]  ;;  %v12825_v34 = vmax.f32 %v12697_v6, 0.0  ;;  %v22213_v11 = vadd.f32 %v21544_v5, %v28597_v12  ;;  %v12140_v26 = vpop.f32.mrb[55].mxu0 }
 0x6c7   : > { %v13167_v62 = vmax.f32 %v13051_v17, %v13115_v23  ;;  %v12824_v53 = vmax.f32 %v12696_v39, 0.0  ;;  %v22214_v55 = vadd.f32 %v12140_v26, %v28598_v16  ;;  %v28604_v26 = vld [vmem:[#allocation53_spill] sm:$0xff] }
 0x6c8   : > { %v12925_v33 = vmax.f32 %v12821_v21, %v12825_v34  ;;  %v12699_v0 = vadd.f32 %v22213_v11, %v27184_v40 }
 0x6c9   : > { %13272 = vst.msk [vmem:[#allocation3 + $0xd0] sm:$0xff] %vm12964_vm2, %v13167_v62  ;;  %v12924_v10 = vmax.f32 %v12820_v8, %v12824_v53  ;;  %v12698_v19 = vadd.f32 %v22214_v55, %v27184_v40  ;;  %v21547_v56 = vpop.f32.mrb[56].mxu0 }
 0x6ca   : > { %12990 = vst.msk [vmem:[#allocation4 + $0xc8] sm:$0xff] %vm12964_vm2, %v12925_v33  ;;  %v12827_v24 = vmax.f32 %v12699_v0, 0.0  ;;  %v22215_v49 = vadd.f32 %v21547_v56, %v28599_v22  ;;  %v12150_v61 = vpop.f32.mrb[57].mxu0 }
 0x6cb   : > { %12989 = vst.msk [vmem:[#allocation4 + $0xc0] sm:$0xff] %vm12964_vm2, %v12924_v10  ;;  %v12826_v41 = vmax.f32 %v12698_v19, 0.0  ;;  %v22216_v43 = vadd.f32 %v12150_v61, %v28600_v3 }
 0x6cc   : > { %v12927_v7 = vmax.f32 %v12823_v57, %v12827_v24  ;;  %v13339_v37 = vld [vmem:[#allocation3 + $0xc8] sm:$0xff]  ;;  %v12701_v8 = vadd.f32 %v22215_v49, %v27184_v40 }
 0x6cd   : > { %v12926_v60 = vmax.f32 %v12822_v52, %v12826_v41  ;;  %21675 = vmatprep.mubr.msk.f32.mxu1 %vm12964_vm2, %v13339_v37  ;;  %v12700_v39 = vadd.f32 %v22216_v43, %v27184_v40  ;;  %v28605_v57 = vld [vmem:[#allocation54_spill] sm:$0xff]  ;;  %v28606_v41 = vld [vmem:[#allocation55_spill] sm:$0xff] }
 0x6ce   : > { %12992 = vst.msk [vmem:[#allocation4 + $0xd8] sm:$0xff] %vm12964_vm2, %v12927_v7  ;;  %v12829_v53 = vmax.f32 %v12701_v8, 0.0 }
 0x6cf   : > { %12991 = vst.msk [vmem:[#allocation4 + $0xd0] sm:$0xff] %vm12964_vm2, %v12926_v60  ;;  %v12828_v16 = vmax.f32 %v12700_v39, 0.0 }
 0x6d0   : > { %v13340_v21 = vld [vmem:[#allocation3 + $0xd0] sm:$0xff] }
 0x6d1   : > { %21676 = vmatmul.mubr.msk.f32.gmra.mrb[140].mxu1 %vm12964_vm2, %v13340_v21 }
 0x6d2   : > { %v13053_v17 = vld [vmem:[#allocation4 + $0xc0] ss:$2 sm:$0xff]  ;;  %v13117_v23 = vld [vmem:[#allocation4 + $0xc1] ss:$2 sm:$0xff] }
 0x6d3   : > { %v13168_v11 = vmax.f32 %v13053_v17, %v13117_v23 }
 0x6d5   : > { %13273 = vst.msk [vmem:[#allocation3 + $0xe8] sm:$0xff] %vm12964_vm2, %v13168_v11 }
 0x6d6   : > { %v13055_v0 = vld [vmem:[#allocation4 + $0xd0] ss:$2 sm:$0xff]  ;;  %v13119_v10 = vld [vmem:[#allocation4 + $0xd1] ss:$2 sm:$0xff] }
 0x6d7   : > { %v21550_v15 = vpop.f32.mrb[58].mxu0  ;;  %v13169_v49 = vmax.f32 %v13055_v0, %v13119_v10 }
 0x6d8   : > { %v22217_v27 = vadd.f32 %v21550_v15, %v28601_v35  ;;  %v12160_v30 = vpop.f32.mrb[59].mxu0 }
 0x6d9   : > { %v22218_v6 = vadd.f32 %v12160_v30, %v28602_v50  ;;  %13274 = vst.msk [vmem:[#allocation3 + $0xf0] sm:$0xff] %vm12964_vm2, %v13169_v49  ;;  %v28607_v30 = vld [vmem:[#allocation56_spill] sm:$0xff] }
 0x6da   : > { %v12703_v19 = vadd.f32 %v22217_v27, %v27184_v40 }
 0x6db   : > { %v21553_v5 = vpop.f32.mrb[60].mxu0  ;;  %v12702_v61 = vadd.f32 %v22218_v6, %v27184_v40 }
 0x6dc   : > { %v22219_v34 = vadd.f32 %v21553_v5, %v28603_v32  ;;  %v12170_v12 = vpop.f32.mrb[61].mxu0  ;;  %v12831_v35 = vmax.f32 %v12703_v19, 0.0  ;;  %v13341_v17 = vld [vmem:[#allocation3 + $0xe8] sm:$0xff] }
 0x6dd   : > { %v22220_v62 = vadd.f32 %v12170_v12, %v28604_v26  ;;  %v12830_v6 = vmax.f32 %v12702_v61, 0.0  ;;  %21678 = vmatprep.mubr.msk.f32.mxu1 %vm12964_vm2, %v13341_v17 }
 0x6de   : > { %v12705_v54 = vadd.f32 %v22219_v34, %v27184_v40  ;;  %v28608_v34 = vld [vmem:[#allocation57_spill] sm:$0xff] }
 0x6df   : > { %v12704_v55 = vadd.f32 %v22220_v62, %v27184_v40  ;;  %v21556_v33 = vpop.f32.mrb[62].mxu0 }
 0x6e0   : > { %v12833_v56 = vmax.f32 %v12705_v54, 0.0  ;;  %v22221_v24 = vadd.f32 %v21556_v33, %v28605_v57  ;;  %v12180_v22 = vpop.f32.mrb[63].mxu0  ;;  %v13342_v62 = vld [vmem:[#allocation3 + $0xf0] sm:$0xff]  ;;  %v28609_v33 = vld [vmem:[#allocation58_spill] sm:$0xff] }
 0x6e1   : > { %v12832_v52 = vmax.f32 %v12704_v55, 0.0  ;;  %v22222_v3 = vadd.f32 %v12180_v22, %v28606_v41  ;;  %21679 = vmatmul.mubr.msk.f32.gmra.mrb[142].mxu1 %vm12964_vm2, %v13342_v62 }
 0x6e2   : > { %v12929_v43 = vmax.f32 %v12829_v53, %v12833_v56  ;;  %v12707_v7 = vadd.f32 %v22221_v24, %v27184_v40 }
 0x6e3   : > { %v12928_v37 = vmax.f32 %v12828_v16, %v12832_v52  ;;  %v12706_v60 = vadd.f32 %v22222_v3, %v27184_v40  ;;  %v21559_v15 = vpop.f32.mrb[64].mxu0 }
 0x6e4   : > { %12994 = vst.msk [vmem:[#allocation4 + $0xe8] sm:$0xff] %vm12964_vm2, %v12929_v43  ;;  %v12835_v27 = vmax.f32 %v12707_v7, 0.0  ;;  %v22223_v50 = vadd.f32 %v21559_v15, %v28607_v30  ;;  %v12190_v21 = vpop.f32.mrb[65].mxu0 }
 0x6e5   : > { %12993 = vst.msk [vmem:[#allocation4 + $0xe0] sm:$0xff] %vm12964_vm2, %v12928_v37  ;;  %v12834_v8 = vmax.f32 %v12706_v60, 0.0  ;;  %v22224_v39 = vadd.f32 %v12190_v21, %v26588_v2 }
 0x6e6   : > { %v12931_v5 = vmax.f32 %v12831_v35, %v12835_v27  ;;  %v12709_v54 = vadd.f32 %v22223_v50, %v27184_v40 }
 0x6e7   : > { %v12930_v23 = vmax.f32 %v12830_v6, %v12834_v8  ;;  %v21562_v32 = vpop.f32.mrb[66].mxu0  ;;  %v12708_v2 = vadd.f32 %v22224_v39, %v27184_v40  ;;  %v14037_v6 = vld [vmem:[#allocation10 + $0x20] sm:$0xff]  ;;  %v14038_v8 = vld [vmem:[#allocation10 + $0x28] sm:$0xff] }
 0x6e8   : > { %12996 = vst.msk [vmem:[#allocation4 + $0xf8] sm:$0xff] %vm12964_vm2, %v12931_v5  ;;  %v22225_v12 = vadd.f32 %v21562_v32, %v28608_v34  ;;  %v12200_v11 = vpop.f32.mrb[67].mxu0 }
 0x6e9   : > { %12995 = vst.msk [vmem:[#allocation4 + $0xf0] sm:$0xff] %vm12964_vm2, %v12930_v23  ;;  %v22226_v26 = vadd.f32 %v12200_v11, %v26598_v14  ;;  %v12837_v14 = vmax.f32 %v12709_v54, 0.0  ;;  %v12836_v24 = vmax.f32 %v12708_v2, 0.0  ;;  %v27409_v23 = vpack.c.bf16 %v14038_v8, %v14037_v6 }
 0x6ea   : > { %v12711_v41 = vadd.f32 %v22225_v12, %v27184_v40 }
 0x6eb   : > { %v21565_v53 = vpop.f32.mrb[68].mxu0  ;;  %22130 = vmatprep.subr.bf16.mxu1 %v27409_v23 }
 0x6ec   : > { %v13057_v16 = vld [vmem:[#allocation4 + $0xe0] ss:$2 sm:$0xff]  ;;  %v13121_v55 = vld [vmem:[#allocation4 + $0xe1] ss:$2 sm:$0xff]  ;;  %v22227_v0 = vadd.f32 %v21565_v53, %v28609_v33  ;;  %v12210_v10 = vpop.f32.mrb[69].mxu0  ;;  %v12839_v39 = vmax.f32 %v12711_v41, 0.0 }
 0x6ed   : > { %v13170_v19 = vmax.f32 %v13057_v16, %v13121_v55  ;;  %v22228_v56 = vadd.f32 %v12210_v10, %v26608_v20  ;;  %v12710_v20 = vadd.f32 %v22226_v26, %v27184_v40 }
 0x6ee   : > { %v12713_v57 = vadd.f32 %v22227_v0, %v27184_v40 }
 0x6ef   : > { %13275 = vst.msk [vmem:[#allocation3 + $0x108] sm:$0xff] %vm12964_vm2, %v13170_v19  ;;  %v12712_v22 = vadd.f32 %v22228_v56, %v27184_v40  ;;  %v21568_v49 = vpop.f32.mrb[70].mxu0 }
 0x6f0   : > { %v13059_v61 = vld [vmem:[#allocation4 + $0xf0] ss:$2 sm:$0xff]  ;;  %v13123_v52 = vld [vmem:[#allocation4 + $0xf1] ss:$2 sm:$0xff]  ;;  %v12841_v3 = vmax.f32 %v12713_v57, 0.0  ;;  %v22229_v43 = vadd.f32 %v21568_v49, %v26612_v36  ;;  %v12220_v7 = vpop.f32.mrb[71].mxu0 }
 0x6f1   : > { %v13171_v37 = vmax.f32 %v13059_v61, %v13123_v52  ;;  %v12840_v60 = vmax.f32 %v12712_v22, 0.0  ;;  %v22230_v15 = vadd.f32 %v12220_v7, %v26616_v38  ;;  %v12838_v38 = vmax.f32 %v12710_v20, 0.0 }
 0x6f2   : > { %v12933_v35 = vmax.f32 %v12837_v14, %v12841_v3  ;;  %v12715_v27 = vadd.f32 %v22229_v43, %v27184_v40 }
 0x6f3   : > { %13276 = vst.msk [vmem:[#allocation3 + $0x110] sm:$0xff] %vm12964_vm2, %v13171_v37  ;;  %v12932_v30 = vmax.f32 %v12836_v24, %v12840_v60  ;;  %v12714_v50 = vadd.f32 %v22230_v15, %v27184_v40  ;;  %v21571_v21 = vpop.f32.mrb[72].mxu0  ;;  %v27426_v24 = vld [vmem:[#allocation8] ss:$0 sm:$0xff] }
 0x6f4   : > { %12998 = vst.msk [vmem:[#allocation4 + $0x108] sm:$0xff] %vm12964_vm2, %v12933_v35  ;;  %v12843_v36 = vmax.f32 %v12715_v27, 0.0  ;;  %v22231_v5 = vadd.f32 %v21571_v21, %v26620_v51  ;;  %v12230_v17 = vpop.f32.mrb[73].mxu0 }
 0x6f5   : > { %12997 = vst.msk [vmem:[#allocation4 + $0x100] sm:$0xff] %vm12964_vm2, %v12932_v30  ;;  %v12842_v32 = vmax.f32 %v12714_v50, 0.0  ;;  %v22232_v34 = vadd.f32 %v12230_v17, %v26624_v45 }
 0x6f6   : > { %v12935_v12 = vmax.f32 %v12839_v39, %v12843_v36  ;;  %v13343_v11 = vld [vmem:[#allocation3 + $0x108] sm:$0xff]  ;;  %v12717_v45 = vadd.f32 %v22231_v5, %v27184_v40 }
 0x6f7   : > { %v12934_v26 = vmax.f32 %v12838_v38, %v12842_v32  ;;  %v21574_v62 = vpop.f32.mrb[74].mxu0  ;;  %21681 = vmatprep.mubr.msk.f32.mxu1 %vm12964_vm2, %v13343_v11  ;;  %v12716_v16 = vadd.f32 %v22232_v34, %v27184_v40 }
 0x6f8   : > { %13000 = vst.msk [vmem:[#allocation4 + $0x118] sm:$0xff] %vm12964_vm2, %v12935_v12  ;;  %v22233_v51 = vadd.f32 %v21574_v62, %v26628_v28  ;;  %v12240_v54 = vpop.f32.mrb[75].mxu0 }
 0x6f9   : > { %12999 = vst.msk [vmem:[#allocation4 + $0x110] sm:$0xff] %vm12964_vm2, %v12934_v26  ;;  %v22234_v2 = vadd.f32 %v12240_v54, %v26632_v29  ;;  %v12845_v29 = vmax.f32 %v12717_v45, 0.0  ;;  %v12844_v14 = vmax.f32 %v12716_v16, 0.0 }
 0x6fa   : > { %v13344_v53 = vld [vmem:[#allocation3 + $0x110] sm:$0xff]  ;;  %v12719_v41 = vadd.f32 %v27426_v24, %v22233_v51 }
 0x6fb   : > { %v21577_v55 = vpop.f32.mrb[76].mxu0  ;;  %21682 = vmatmul.mubr.msk.f32.gmra.mrb[144].mxu1 %vm12964_vm2, %v13344_v53 }
 0x6fc   : > { %v13061_v33 = vld [vmem:[#allocation4 + $0x100] ss:$2 sm:$0xff]  ;;  %v13125_v0 = vld [vmem:[#allocation4 + $0x101] ss:$2 sm:$0xff]  ;;  %v22235_v10 = vadd.f32 %v21577_v55, %v26636_v1  ;;  %v12250_v19 = vpop.f32.mrb[77].mxu0  ;;  %v12847_v30 = vmax.f32 %v12719_v41, 0.0 }
 0x6fd   : > { %v13172_v56 = vmax.f32 %v13061_v33, %v13125_v0  ;;  %v22236_v28 = vadd.f32 %v12250_v19, %v26640_v47 }
 0x6fe   : > { %v12721_v57 = vadd.f32 %v22235_v10, %v27184_v40  ;;  %v12718_v40 = vadd.f32 %v27426_v24, %v22234_v2 }
 0x6ff   : > { %13277 = vst.msk [vmem:[#allocation3 + $0x128] sm:$0xff] %vm12964_vm2, %v13172_v56  ;;  %v12720_v22 = vadd.f32 %v27426_v24, %v22236_v28  ;;  %v21580_v49 = vpop.f32.mrb[78].mxu0 }
 0x700   : > { %v13063_v61 = vld [vmem:[#allocation4 + $0x110] ss:$2 sm:$0xff]  ;;  %v13127_v52 = vld [vmem:[#allocation4 + $0x111] ss:$2 sm:$0xff]  ;;  %v12849_v1 = vmax.f32 %v12721_v57, 0.0  ;;  %v22237_v3 = vadd.f32 %v21580_v49, %v26644_v42  ;;  %v12260_v43 = vpop.f32.mrb[79].mxu0 }
 0x701   : > { %v13173_v47 = vmax.f32 %v13063_v61, %v13127_v52  ;;  %v12848_v7 = vmax.f32 %v12720_v22, 0.0  ;;  %v22238_v37 = vadd.f32 %v12260_v43, %v26648_v46  ;;  %v12846_v6 = vmax.f32 %v12718_v40, 0.0 }
 0x702   : > { %v12937_v20 = vmax.f32 %v12845_v29, %v12849_v1  ;;  %v12723_v60 = vadd.f32 %v27426_v24, %v22237_v3 }
 0x703   : > { %13278 = vst.msk [vmem:[#allocation3 + $0x130] sm:$0xff] %vm12964_vm2, %v13173_v47  ;;  %v12936_v15 = vmax.f32 %v12844_v14, %v12848_v7  ;;  %v12722_v35 = vadd.f32 %v27426_v24, %v22238_v37  ;;  %v21583_v27 = vpop.f32.mrb[80].mxu0 }
 0x704   : > { %13002 = vst.msk [vmem:[#allocation4 + $0x128] sm:$0xff] %vm12964_vm2, %v12937_v20  ;;  %v12851_v42 = vmax.f32 %v12723_v60, 0.0  ;;  %v22239_v50 = vadd.f32 %v21583_v27, %v26718_v63  ;;  %v12270_v21 = vpop.f32.mrb[81].mxu0 }
 0x705   : > { %13001 = vst.msk [vmem:[#allocation4 + $0x120] sm:$0xff] %vm12964_vm2, %v12936_v15  ;;  %v12850_v46 = vmax.f32 %v12722_v35, 0.0  ;;  %v22240_v8 = vadd.f32 %v12270_v21, %v26721_v13  ;;  %v28610_v15 = vld [vmem:[#allocation59_spill] sm:$0xff] }
 0x706   : > { %v12939_v39 = vmax.f32 %v12847_v30, %v12851_v42  ;;  %v13345_v36 = vld [vmem:[#allocation3 + $0x128] sm:$0xff]  ;;  %v12725_v12 = vadd.f32 %v27426_v24, %v22239_v50 }
 0x707   : > { %v12938_v5 = vmax.f32 %v12846_v6, %v12850_v46  ;;  %v21586_v17 = vpop.f32.mrb[82].mxu0  ;;  %21684 = vmatprep.mubr.msk.f32.mxu1 %vm12964_vm2, %v13345_v36  ;;  %v12724_v13 = vadd.f32 %v27426_v24, %v22240_v8  ;;  %v28611_v6 = vld [vmem:[#allocation60_spill] sm:$0xff] }
 0x708   : > { %13004 = vst.msk [vmem:[#allocation4 + $0x138] sm:$0xff] %vm12964_vm2, %v12939_v39  ;;  %v22241_v38 = vadd.f32 %v21586_v17, %v26724_v44  ;;  %v12280_v32 = vpop.f32.mrb[83].mxu0  ;;  %v28612_v39 = vld [vmem:[#allocation61_spill] sm:$0xff] }
 0x709   : > { %13003 = vst.msk [vmem:[#allocation4 + $0x130] sm:$0xff] %vm12964_vm2, %v12938_v5  ;;  %v22242_v63 = vadd.f32 %v12280_v32, %v26727_v9  ;;  %v12853_v9 = vmax.f32 %v12725_v12, 0.0  ;;  %v12852_v45 = vmax.f32 %v12724_v13, 0.0 }
 0x70a   : > { %v13346_v34 = vld [vmem:[#allocation3 + $0x130] sm:$0xff]  ;;  %v12727_v10 = vadd.f32 %v27426_v24, %v22241_v38 }
 0x70b   : > { %v21589_v11 = vpop.f32.mrb[84].mxu0  ;;  %21685 = vmatmul.mubr.msk.f32.gmra.mrb[146].mxu1 %vm12964_vm2, %v13346_v34 }
 0x70c   : > { %v13065_v26 = vld [vmem:[#allocation4 + $0x120] ss:$2 sm:$0xff]  ;;  %v13129_v62 = vld [vmem:[#allocation4 + $0x121] ss:$2 sm:$0xff]  ;;  %v22243_v51 = vadd.f32 %v21589_v11, %v26730_v58  ;;  %v12290_v54 = vpop.f32.mrb[85].mxu0  ;;  %v12855_v41 = vmax.f32 %v12727_v10, 0.0 }
 0x70d   : > { %v13174_v2 = vmax.f32 %v13065_v26, %v13129_v62  ;;  %v22244_v44 = vadd.f32 %v12290_v54, %v26733_v59  ;;  %v12726_v59 = vadd.f32 %v27426_v24, %v22242_v63  ;;  %v28613_v26 = vld [vmem:[#allocation62_spill] sm:$0xff] }
 0x70e   : > { %v12729_v53 = vadd.f32 %v27426_v24, %v22243_v51 }
 0x70f   : > { %13279 = vst.msk [vmem:[#allocation3 + $0x148] sm:$0xff] %vm12964_vm2, %v13174_v2  ;;  %v12728_v16 = vadd.f32 %v27426_v24, %v22244_v44  ;;  %v21592_v55 = vpop.f32.mrb[86].mxu0  ;;  %v12854_v43 = vmax.f32 %v12726_v59, 0.0 }
 0x710   : > { %v13067_v33 = vld [vmem:[#allocation4 + $0x130] ss:$2 sm:$0xff]  ;;  %v13131_v0 = vld [vmem:[#allocation4 + $0x131] ss:$2 sm:$0xff]  ;;  %v12857_v19 = vmax.f32 %v12729_v53, 0.0  ;;  %v22245_v58 = vadd.f32 %v21592_v55, %v26736_v25  ;;  %v12300_v56 = vpop.f32.mrb[87].mxu0 }
 0x711   : > { %v13175_v28 = vmax.f32 %v13067_v33, %v13131_v0  ;;  %v12856_v57 = vmax.f32 %v12728_v16, 0.0  ;;  %v22246_v29 = vadd.f32 %v12300_v56, %v26739_v48  ;;  %v28614_v53 = vld [vmem:[#allocation63_spill] sm:$0xff] }
 0x712   : > { %v12941_v14 = vmax.f32 %v12853_v9, %v12857_v19  ;;  %v12731_v22 = vadd.f32 %v27426_v24, %v22245_v58  ;;  %v28615_v58 = vld [vmem:[#allocation64_spill] sm:$0xff] }
 0x713   : > { %13280 = vst.msk [vmem:[#allocation3 + $0x150] sm:$0xff] %vm12964_vm2, %v13175_v28  ;;  %v12940_v49 = vmax.f32 %v12852_v45, %v12856_v57  ;;  %v12730_v61 = vadd.f32 %v27426_v24, %v22246_v29  ;;  %v21595_v52 = vpop.f32.mrb[88].mxu0  ;;  %v28616_v29 = vld [vmem:[#allocation65_spill] sm:$0xff] }
 0x714   : > { %13006 = vst.msk [vmem:[#allocation4 + $0x148] sm:$0xff] %vm12964_vm2, %v12941_v14  ;;  %v12859_v25 = vmax.f32 %v12731_v22, 0.0  ;;  %v22247_v1 = vadd.f32 %v21595_v52, %v26742_v31  ;;  %v12310_v3 = vpop.f32.mrb[89].mxu0 }
 0x715   : > { %13005 = vst.msk [vmem:[#allocation4 + $0x140] sm:$0xff] %vm12964_vm2, %v12940_v49  ;;  %v12858_v48 = vmax.f32 %v12730_v61, 0.0  ;;  %v22248_v47 = vadd.f32 %v12310_v3, %v26745_v4  ;;  %v28618_v3 = vld [vmem:[#allocation67_spill] sm:$0xff] }
 0x716   : > { %v12943_v40 = vmax.f32 %v12855_v41, %v12859_v25  ;;  %v27464_v7 = vld [vmem:[#allocation3 + $0x148] sm:$0xff]  ;;  %v12733_v4 = vadd.f32 %v27426_v24, %v22247_v1 }
 0x717   : > { %v12942_v37 = vmax.f32 %v12854_v43, %v12858_v48  ;;  %v21598_v20 = vpop.f32.mrb[90].mxu0  ;;  %21687 = vmatprep.mubr.msk.f32.mxu1 %vm12964_vm2, %v27464_v7  ;;  %v12732_v30 = vadd.f32 %v27426_v24, %v22248_v47  ;;  %v28617_v41 = vld [vmem:[#allocation66_spill] sm:$0xff] }
 0x718   : > { %13008 = vst.msk [vmem:[#allocation4 + $0x158] sm:$0xff] %vm12964_vm2, %v12943_v40  ;;  %v22249_v60 = vadd.f32 %v21598_v20, %v26748_v18  ;;  %v12320_v31 = vpop.f32.mrb[91].mxu0  ;;  %v12861_v17 = vmax.f32 %v12733_v4, 0.0 }
 0x719   : > { %13007 = vst.msk [vmem:[#allocation4 + $0x150] sm:$0xff] %vm12964_vm2, %v12942_v37  ;;  %v22250_v35 = vadd.f32 %v12320_v31, %v28610_v15  ;;  %v12860_v38 = vmax.f32 %v12732_v30, 0.0  ;;  %v28619_v31 = vld [vmem:[#allocation68_spill] sm:$0xff]  ;;  %v28620_v30 = vld [vmem:[#allocation69_spill] sm:$0xff] }
 0x71a   : > { %v27472_v27 = vld [vmem:[#allocation3 + $0x150] sm:$0xff]  ;;  %v12735_v13 = vadd.f32 %v27426_v24, %v22249_v60 }
 0x71b   : > { %v21601_v42 = vpop.f32.mrb[92].mxu0  ;;  %21688 = vmatmul.mubr.msk.f32.gmra.mrb[148].mxu1 %vm12964_vm2, %v27472_v27  ;;  %v12734_v2 = vadd.f32 %v27426_v24, %v22250_v35 }
 0x71c   : > { %v13069_v50 = vld [vmem:[#allocation4 + $0x140] ss:$2 sm:$0xff]  ;;  %v13133_v21 = vld [vmem:[#allocation4 + $0x141] ss:$2 sm:$0xff]  ;;  %v22251_v46 = vadd.f32 %v21601_v42, %v28611_v6  ;;  %v12330_v18 = vpop.f32.mrb[93].mxu0  ;;  %v12863_v10 = vmax.f32 %v12735_v13, 0.0 }
 0x71d   : > { %v13176_v8 = vmax.f32 %v13069_v50, %v13133_v21  ;;  %v22252_v36 = vadd.f32 %v12330_v18, %v28612_v39  ;;  %v12862_v59 = vmax.f32 %v12734_v2, 0.0  ;;  %v28622_v13 = vld [vmem:[#allocation71_spill] sm:$0xff] }
 0x71e   : > { %v12737_v5 = vadd.f32 %v27426_v24, %v22251_v46 }
 0x71f   : > { %13281 = vst.msk [vmem:[#allocation3 + $0x168] sm:$0xff] %vm12964_vm2, %v13176_v8  ;;  %v12736_v32 = vadd.f32 %v27426_v24, %v22252_v36  ;;  %v21604_v63 = vpop.f32.mrb[94].mxu0 }
 0x720   : > { %v13071_v34 = vld [vmem:[#allocation4 + $0x150] ss:$2 sm:$0xff]  ;;  %v13135_v12 = vld [vmem:[#allocation4 + $0x151] ss:$2 sm:$0xff]  ;;  %v12865_v11 = vmax.f32 %v12737_v5, 0.0  ;;  %v22253_v62 = vadd.f32 %v21604_v63, %v28613_v26  ;;  %v12340_v51 = vpop.f32.mrb[95].mxu0 }
 0x721   : > { %v13177_v54 = vmax.f32 %v13071_v34, %v13135_v12  ;;  %v12864_v44 = vmax.f32 %v12736_v32, 0.0  ;;  %v22254_v9 = vadd.f32 %v12340_v51, %v28614_v53 }
 0x722   : > { %v12945_v45 = vmax.f32 %v12861_v17, %v12865_v11  ;;  %v12739_v16 = vadd.f32 %v27426_v24, %v22253_v62  ;;  %v28621_v17 = vld [vmem:[#allocation70_spill] sm:$0xff] }
 0x723   : > { %13282 = vst.msk [vmem:[#allocation3 + $0x170] sm:$0xff] %vm12964_vm2, %v13177_v54  ;;  %v12944_v55 = vmax.f32 %v12860_v38, %v12864_v44  ;;  %v12738_v33 = vadd.f32 %v27426_v24, %v22254_v9  ;;  %v21607_v0 = vpop.f32.mrb[96].mxu0  ;;  %v28623_v9 = vld [vmem:[#allocation72_spill] sm:$0xff] }
 0x724   : > { %13010 = vst.msk [vmem:[#allocation4 + $0x168] sm:$0xff] %vm12964_vm2, %v12945_v45  ;;  %v12867_v19 = vmax.f32 %v12739_v16, 0.0  ;;  %v22255_v56 = vadd.f32 %v21607_v0, %v28615_v58  ;;  %v12350_v28 = vpop.f32.mrb[97].mxu0  ;;  %v28624_v0 = vld [vmem:[#allocation73_spill] sm:$0xff] }
 0x725   : > { %13009 = vst.msk [vmem:[#allocation4 + $0x160] sm:$0xff] %vm12964_vm2, %v12944_v55  ;;  %v12866_v57 = vmax.f32 %v12738_v33, 0.0  ;;  %v22256_v14 = vadd.f32 %v12350_v28, %v28616_v29 }
 0x726   : > { %v12947_v22 = vmax.f32 %v12863_v10, %v12867_v19  ;;  %v27494_v49 = vld [vmem:[#allocation3 + $0x168] sm:$0xff]  ;;  %v12741_v47 = vadd.f32 %v27426_v24, %v22255_v56 }
 0x727   : > { %v12946_v61 = vmax.f32 %v12862_v59, %v12866_v57  ;;  %v21610_v52 = vpop.f32.mrb[98].mxu0  ;;  %21690 = vmatprep.mubr.msk.f32.mxu1 %vm12964_vm2, %v27494_v49  ;;  %v12740_v40 = vadd.f32 %v27426_v24, %v22256_v14  ;;  %v28625_v59 = vld [vmem:[#allocation74_spill] sm:$0xff]  ;;  %v28626_v14 = vld [vmem:[#allocation75_spill] sm:$0xff] }
 0x728   : > { %13012 = vst.msk [vmem:[#allocation4 + $0x178] sm:$0xff] %vm12964_vm2, %v12947_v22  ;;  %v22257_v25 = vadd.f32 %v21610_v52, %v28617_v41  ;;  %v12360_v1 = vpop.f32.mrb[99].mxu0  ;;  %v12869_v21 = vmax.f32 %v12741_v47, 0.0 }
 0x729   : > { %13011 = vst.msk [vmem:[#allocation4 + $0x170] sm:$0xff] %vm12964_vm2, %v12946_v61  ;;  %v22258_v43 = vadd.f32 %v12360_v1, %v28618_v3  ;;  %v12868_v6 = vmax.f32 %v12740_v40, 0.0 }
 0x72a   : > { %v27502_v48 = vld [vmem:[#allocation3 + $0x170] sm:$0xff]  ;;  %v12743_v36 = vadd.f32 %v27426_v24, %v22257_v25 }
 0x72b   : > { %v21613_v37 = vpop.f32.mrb[100].mxu0  ;;  %21691 = vmatmul.mubr.msk.f32.gmra.mrb[150].mxu1 %vm12964_vm2, %v27502_v48  ;;  %v12742_v34 = vadd.f32 %v27426_v24, %v22258_v43  ;;  %v28627_v43 = vld [vmem:[#allocation76_spill] sm:$0xff] }
 0x72c   : > { %v13073_v20 = vld [vmem:[#allocation4 + $0x160] ss:$2 sm:$0xff]  ;;  %v13137_v60 = vld [vmem:[#allocation4 + $0x161] ss:$2 sm:$0xff]  ;;  %v22259_v15 = vadd.f32 %v21613_v37, %v28619_v31  ;;  %v12370_v35 = vpop.f32.mrb[101].mxu0  ;;  %v12871_v44 = vmax.f32 %v12743_v36, 0.0 }
 0x72d   : > { %v13178_v4 = vmax.f32 %v13073_v20, %v13137_v60  ;;  %v22260_v42 = vadd.f32 %v12370_v35, %v28620_v30  ;;  %v12870_v55 = vmax.f32 %v12742_v34, 0.0  ;;  %v28628_v20 = vld [vmem:[#allocation77_spill] sm:$0xff] }
 0x72e   : > { %v12745_v50 = vadd.f32 %v27426_v24, %v22259_v15 }
 0x72f   : > { %13283 = vst.msk [vmem:[#allocation3 + $0x188] sm:$0xff] %vm12964_vm2, %v13178_v4  ;;  %v12744_v46 = vadd.f32 %v27426_v24, %v22260_v42  ;;  %v21616_v18 = vpop.f32.mrb[102].mxu0 }
 0x730   : > { %v13075_v8 = vld [vmem:[#allocation4 + $0x170] ss:$2 sm:$0xff]  ;;  %v13139_v39 = vld [vmem:[#allocation4 + $0x171] ss:$2 sm:$0xff]  ;;  %v12873_v5 = vmax.f32 %v12745_v50, 0.0  ;;  %v22261_v38 = vadd.f32 %v21616_v18, %v28621_v17  ;;  %v12380_v32 = vpop.f32.mrb[103].mxu0 }
 0x731   : > { %v13179_v63 = vmax.f32 %v13075_v8, %v13139_v39  ;;  %v12872_v12 = vmax.f32 %v12744_v46, 0.0  ;;  %v22262_v11 = vadd.f32 %v12380_v32, %v28622_v13  ;;  %v28629_v46 = vld [vmem:[#allocation78_spill] sm:$0xff]  ;;  %v28630_v17 = vld [vmem:[#allocation79_spill] sm:$0xff] }
 0x732   : > { %v12949_v26 = vmax.f32 %v12869_v21, %v12873_v5  ;;  %v12747_v62 = vadd.f32 %v27426_v24, %v22261_v38 }
 0x733   : > { %13284 = vst.msk [vmem:[#allocation3 + $0x190] sm:$0xff] %vm12964_vm2, %v13179_v63  ;;  %v12948_v51 = vmax.f32 %v12868_v6, %v12872_v12  ;;  %v12746_v54 = vadd.f32 %v27426_v24, %v22262_v11  ;;  %v21619_v2 = vpop.f32.mrb[104].mxu0 }
 0x734   : > { %13014 = vst.msk [vmem:[#allocation4 + $0x188] sm:$0xff] %vm12964_vm2, %v12949_v26  ;;  %v12875_v53 = vmax.f32 %v12747_v62, 0.0  ;;  %v22263_v45 = vadd.f32 %v21619_v2, %v28623_v9  ;;  %v12390_v16 = vpop.f32.mrb[105].mxu0  ;;  %v28631_v62 = vld [vmem:[#allocation80_spill] sm:$0xff] }
 0x735   : > { %13013 = vst.msk [vmem:[#allocation4 + $0x180] sm:$0xff] %vm12964_vm2, %v12948_v51  ;;  %v12874_v33 = vmax.f32 %v12746_v54, 0.0  ;;  %v22264_v10 = vadd.f32 %v12390_v16, %v28624_v0  ;;  %v28633_v0 = vld [vmem:[#allocation82_spill] sm:$0xff] }
 0x736   : > { %v12951_v19 = vmax.f32 %v12871_v44, %v12875_v53  ;;  %v27524_v58 = vld [vmem:[#allocation3 + $0x188] sm:$0xff]  ;;  %v12749_v52 = vadd.f32 %v27426_v24, %v22263_v45  ;;  %v28632_v53 = vld [vmem:[#allocation81_spill] sm:$0xff] }
 0x737   : > { %v12950_v56 = vmax.f32 %v12870_v55, %v12874_v33  ;;  %v21622_v28 = vpop.f32.mrb[106].mxu0  ;;  %21693 = vmatprep.mubr.msk.f32.mxu1 %vm12964_vm2, %v27524_v58  ;;  %v12748_v41 = vadd.f32 %v27426_v24, %v22264_v10 }
 0x738   : > { %13016 = vst.msk [vmem:[#allocation4 + $0x198] sm:$0xff] %vm12964_vm2, %v12951_v19  ;;  %v22265_v57 = vadd.f32 %v21622_v28, %v28625_v59  ;;  %v12400_v29 = vpop.f32.mrb[107].mxu0  ;;  %v12877_v15 = vmax.f32 %v12749_v52, 0.0 }
 0x739   : > { %13015 = vst.msk [vmem:[#allocation4 + $0x190] sm:$0xff] %vm12964_vm2, %v12950_v56  ;;  %v22266_v22 = vadd.f32 %v12400_v29, %v28626_v14  ;;  %v12876_v35 = vmax.f32 %v12748_v41, 0.0  ;;  %v28634_v56 = vld [vmem:[#allocation83_spill] sm:$0xff]  ;;  %v28635_v41 = vld [vmem:[#allocation84_spill] sm:$0xff] }
 0x73a   : > { %v27532_v61 = vld [vmem:[#allocation3 + $0x190] sm:$0xff]  ;;  %v12751_v21 = vadd.f32 %v27426_v24, %v22265_v57 }
 0x73b   : > { %v21625_v25 = vpop.f32.mrb[108].mxu0  ;;  %21694 = vmatmul.mubr.msk.f32.gmra.mrb[152].mxu1 %vm12964_vm2, %v27532_v61  ;;  %v12750_v36 = vadd.f32 %v27426_v24, %v22266_v22 }
 0x73c   : > { %v13077_v1 = vld [vmem:[#allocation4 + $0x180] ss:$2 sm:$0xff]  ;;  %v13141_v3 = vld [vmem:[#allocation4 + $0x181] ss:$2 sm:$0xff]  ;;  %v22267_v47 = vadd.f32 %v21625_v25, %v28627_v43  ;;  %v12410_v40 = vpop.f32.mrb[109].mxu0  ;;  %v12879_v11 = vmax.f32 %v12751_v21, 0.0 }
 0x73d   : > { %v13180_v37 = vmax.f32 %v13077_v1, %v13141_v3  ;;  %v22268_v60 = vadd.f32 %v12410_v40, %v28628_v20  ;;  %v12878_v2 = vmax.f32 %v12750_v36, 0.0  ;;  %v28636_v43 = vld [vmem:[#allocation85_spill] sm:$0xff] }
 0x73e   : > { %v12753_v31 = vadd.f32 %v27426_v24, %v22267_v47 }
 0x73f   : > { %13285 = vst.msk [vmem:[#allocation3 + $0x1a8] sm:$0xff] %vm12964_vm2, %v13180_v37  ;;  %v12752_v4 = vadd.f32 %v27426_v24, %v22268_v60  ;;  %v21628_v30 = vpop.f32.mrb[110].mxu0 }
 0x740   : > { %v13079_v42 = vld [vmem:[#allocation4 + $0x190] ss:$2 sm:$0xff]  ;;  %v13143_v50 = vld [vmem:[#allocation4 + $0x191] ss:$2 sm:$0xff]  ;;  %v12881_v6 = vmax.f32 %v12753_v31, 0.0  ;;  %v22269_v18 = vadd.f32 %v21628_v30, %v28629_v46  ;;  %v12420_v8 = vpop.f32.mrb[111].mxu0 }
 0x741   : > { %v13181_v39 = vmax.f32 %v13079_v42, %v13143_v50  ;;  %v12880_v5 = vmax.f32 %v12752_v4, 0.0  ;;  %v22270_v38 = vadd.f32 %v12420_v8, %v28630_v17  ;;  %v28637_v42 = vld [vmem:[#allocation86_spill] sm:$0xff]  ;;  %v28638_v8 = vld [vmem:[#allocation87_spill] sm:$0xff] }
 0x742   : > { %v12953_v32 = vmax.f32 %v12877_v15, %v12881_v6  ;;  %v12755_v63 = vadd.f32 %v27426_v24, %v22269_v18 }
 0x743   : > { %13286 = vst.msk [vmem:[#allocation3 + $0x1b0] sm:$0xff] %vm12964_vm2, %v13181_v39  ;;  %v12952_v34 = vmax.f32 %v12876_v35, %v12880_v5  ;;  %v12754_v12 = vadd.f32 %v27426_v24, %v22270_v38  ;;  %v21631_v13 = vpop.f32.mrb[112].mxu0 }
 0x744   : > { %13018 = vst.msk [vmem:[#allocation4 + $0x1a8] sm:$0xff] %vm12964_vm2, %v12953_v32  ;;  %v12883_v26 = vmax.f32 %v12755_v63, 0.0  ;;  %v22271_v51 = vadd.f32 %v21631_v13, %v28631_v62  ;;  %v12430_v54 = vpop.f32.mrb[113].mxu0 }
 0x745   : > { %13017 = vst.msk [vmem:[#allocation4 + $0x1a0] sm:$0xff] %vm12964_vm2, %v12952_v34  ;;  %v12882_v44 = vmax.f32 %v12754_v12, 0.0  ;;  %v22272_v9 = vadd.f32 %v12430_v54, %v28632_v53  ;;  %v28639_v12 = vld [vmem:[#allocation88_spill] sm:$0xff] }
 0x746   : > { %v12955_v45 = vmax.f32 %v12879_v11, %v12883_v26  ;;  %v27554_v16 = vld [vmem:[#allocation3 + $0x1a8] sm:$0xff]  ;;  %v12757_v57 = vadd.f32 %v27426_v24, %v22271_v51  ;;  %v28640_v51 = vld [vmem:[#allocation89_spill] sm:$0xff] }
 0x747   : > { %v12954_v55 = vmax.f32 %v12878_v2, %v12882_v44  ;;  %v21634_v33 = vpop.f32.mrb[114].mxu0  ;;  %21696 = vmatprep.mubr.msk.f32.mxu1 %vm12964_vm2, %v27554_v16  ;;  %v12756_v29 = vadd.f32 %v27426_v24, %v22272_v9 }
 0x748   : > { %13020 = vst.msk [vmem:[#allocation4 + $0x1b8] sm:$0xff] %vm12964_vm2, %v12955_v45  ;;  %v22273_v10 = vadd.f32 %v21634_v33, %v28633_v0  ;;  %v12440_v19 = vpop.f32.mrb[115].mxu0  ;;  %v12885_v37 = vmax.f32 %v12757_v57, 0.0  ;;  %v28641_v45 = vld [vmem:[#allocation90_spill] sm:$0xff]  ;;  %v28642_v0 = vld [vmem:[#allocation91_spill] sm:$0xff] }
 0x749   : > { %13019 = vst.msk [vmem:[#allocation4 + $0x1b0] sm:$0xff] %vm12964_vm2, %v12954_v55  ;;  %v22274_v28 = vadd.f32 %v12440_v19, %v28634_v56  ;;  %v12884_v20 = vmax.f32 %v12756_v29, 0.0 }
 0x74a   : > { %v27562_v59 = vld [vmem:[#allocation3 + $0x1b0] sm:$0xff]  ;;  %v12759_v4 = vadd.f32 %v27426_v24, %v22273_v10 }
 0x74b   : > { %v21637_v14 = vpop.f32.mrb[116].mxu0  ;;  %21697 = vmatmul.mubr.msk.f32.gmra.mrb[154].mxu1 %vm12964_vm2, %v27562_v59  ;;  %v12758_v46 = vadd.f32 %v27426_v24, %v22274_v28 }
 0x74c   : > { %v13081_v22 = vld [vmem:[#allocation4 + $0x1a0] ss:$2 sm:$0xff]  ;;  %v13145_v52 = vld [vmem:[#allocation4 + $0x1a1] ss:$2 sm:$0xff]  ;;  %v22275_v25 = vadd.f32 %v21637_v14, %v28635_v41  ;;  %v12450_v1 = vpop.f32.mrb[117].mxu0  ;;  %v12887_v63 = vmax.f32 %v12759_v4, 0.0 }
 0x74d   : > { %v13182_v3 = vmax.f32 %v13081_v22, %v13145_v52  ;;  %v22276_v47 = vadd.f32 %v12450_v1, %v28636_v43  ;;  %v12886_v26 = vmax.f32 %v12758_v46, 0.0  ;;  %v28643_v22 = vld [vmem:[#allocation92_spill] sm:$0xff]  ;;  %v28644_v1 = vld [vmem:[#allocation93_spill] sm:$0xff]  ;;  %v28645_v4 = vld [vmem:[#allocation94_spill] sm:$0xff] }
 0x74e   : > { %v12761_v40 = vadd.f32 %v27426_v24, %v22275_v25  ;;  %v28646_v46 = vld [vmem:[#allocation95_spill] sm:$0xff] }
 0x74f   : > { %13287 = vst.msk [vmem:[#allocation3 + $0x1c8] sm:$0xff] %vm12964_vm2, %v13182_v3  ;;  %v12760_v60 = vadd.f32 %v27426_v24, %v22276_v47  ;;  %v21640_v31 = vpop.f32.mrb[118].mxu0 }
 0x750   : > { %v13083_v15 = vld [vmem:[#allocation4 + $0x1b0] ss:$2 sm:$0xff]  ;;  %v13147_v35 = vld [vmem:[#allocation4 + $0x1b1] ss:$2 sm:$0xff]  ;;  %v12889_v30 = vmax.f32 %v12761_v40, 0.0  ;;  %v22277_v50 = vadd.f32 %v21640_v31, %v28637_v42  ;;  %v12460_v21 = vpop.f32.mrb[119].mxu0 }
 0x751   : > { %v13183_v6 = vmax.f32 %v13083_v15, %v13147_v35  ;;  %v12888_v18 = vmax.f32 %v12760_v60, 0.0  ;;  %v22278_v39 = vadd.f32 %v12460_v21, %v28638_v8 }
 0x752   : > { %v12957_v36 = vmax.f32 %v12885_v37, %v12889_v30  ;;  %v12763_v5 = vadd.f32 %v27426_v24, %v22277_v50 }
 0x753   : > { %13288 = vst.msk [vmem:[#allocation3 + $0x1d0] sm:$0xff] %vm12964_vm2, %v13183_v6  ;;  %v12956_v17 = vmax.f32 %v12884_v20, %v12888_v18  ;;  %v12762_v38 = vadd.f32 %v27426_v24, %v22278_v39  ;;  %v21643_v32 = vpop.f32.mrb[120].mxu0 }
 0x754   : > { %13022 = vst.msk [vmem:[#allocation4 + $0x1c8] sm:$0xff] %vm12964_vm2, %v12957_v36  ;;  %v12891_v34 = vmax.f32 %v12763_v5, 0.0  ;;  %v22279_v13 = vadd.f32 %v21643_v32, %v28639_v12  ;;  %v12470_v11 = vpop.f32.mrb[121].mxu0 }
 0x755   : > { %13021 = vst.msk [vmem:[#allocation4 + $0x1c0] sm:$0xff] %vm12964_vm2, %v12956_v17  ;;  %v12890_v62 = vmax.f32 %v12762_v38, 0.0  ;;  %v22280_v54 = vadd.f32 %v12470_v11, %v28640_v51 }
 0x756   : > { %v12959_v2 = vmax.f32 %v12887_v63, %v12891_v34  ;;  %v27584_v44 = vld [vmem:[#allocation3 + $0x1c8] sm:$0xff]  ;;  %v12765_v56 = vadd.f32 %v27426_v24, %v22279_v13 }
 0x757   : > { %v12958_v53 = vmax.f32 %v12886_v26, %v12890_v62  ;;  %v21646_v9 = vpop.f32.mrb[122].mxu0  ;;  %21699 = vmatprep.mubr.msk.f32.mxu1 %vm12964_vm2, %v27584_v44  ;;  %v12764_v28 = vadd.f32 %v27426_v24, %v22280_v54  ;;  %v14425_v26 = vld [vmem:[#allocation10 + $0x30] sm:$0xff]  ;;  %v14426_v62 = vld [vmem:[#allocation10 + $0x38] sm:$0xff] }
 0x758   : > { %13024 = vst.msk [vmem:[#allocation4 + $0x1d8] sm:$0xff] %vm12964_vm2, %v12959_v2  ;;  %v22281_v55 = vadd.f32 %v21646_v9, %v28641_v45  ;;  %v12480_v33 = vpop.f32.mrb[123].mxu0  ;;  %v12893_v47 = vmax.f32 %v12765_v56, 0.0  ;;  %v13294_v2 = vld [vmem:[#allocation3 + $0xf] sm:$0xff]  ;;  %v27623_v9 = vpack.c.bf16 %v14426_v62, %v14425_v26  ;;  %v27627_v45 = vld [vmem:[#allocation3 + $0x27] sm:$0xff] }
 0x759   : > { %13023 = vst.msk [vmem:[#allocation4 + $0x1d0] sm:$0xff] %vm12964_vm2, %v12958_v53  ;;  %v22282_v10 = vadd.f32 %v12480_v33, %v28642_v0  ;;  %v12892_v40 = vmax.f32 %v12764_v28, 0.0  ;;  %v27638_v56 = vld [vmem:[#allocation3 + $0x47] sm:$0xff]  ;;  %v27642_v28 = vld [vmem:[#allocation3 + $0x4f] sm:$0xff] }
 0x75a   : > { %v27592_v19 = vld [vmem:[#allocation3 + $0x1d0] sm:$0xff]  ;;  %v12767_v15 = vadd.f32 %v27426_v24, %v22281_v55 }
 0x75b   : > { %v21649_v57 = vpop.f32.mrb[124].mxu0  ;;  %21700 = vmatmul.mubr.msk.f32.gmra.mrb[156].mxu1 %vm12964_vm2, %v27592_v19  ;;  %v12766_v21 = vadd.f32 %v27426_v24, %v22282_v10  ;;  %v27633_v10 = vld [vmem:[#allocation3 + $0x2f] sm:$0xff] }
 0x75c   : > { %v13085_v29 = vld [vmem:[#allocation4 + $0x1c0] ss:$2 sm:$0xff]  ;;  %v13149_v14 = vld [vmem:[#allocation4 + $0x1c1] ss:$2 sm:$0xff]  ;;  %v22283_v52 = vadd.f32 %v21649_v57, %v28643_v22  ;;  %v12490_v41 = vpop.f32.mrb[125].mxu0  ;;  %v12895_v17 = vmax.f32 %v12767_v15, 0.0 }
 0x75d   : > { %v13184_v25 = vmax.f32 %v13085_v29, %v13149_v14  ;;  %v22284_v3 = vadd.f32 %v12490_v41, %v28644_v1  ;;  %v12894_v32 = vmax.f32 %v12766_v21, 0.0  ;;  %v27650_v57 = vld [vmem:[#allocation3 + $0x6f] sm:$0xff]  ;;  %v27654_v29 = vld [vmem:[#allocation3 + $0x87] sm:$0xff] }
 0x75e   : > { %v12769_v43 = vadd.f32 %v27426_v24, %v22283_v52  ;;  %v27658_v14 = vld [vmem:[#allocation3 + $0x8f] sm:$0xff]  ;;  %v27662_v22 = vld [vmem:[#allocation3 + $0xa7] sm:$0xff] }
 0x75f   : > { %13289 = vst.msk [vmem:[#allocation3 + $0x1e8] sm:$0xff] %vm12964_vm2, %v13184_v25  ;;  %v12768_v37 = vadd.f32 %v27426_v24, %v22284_v3  ;;  %v21652_v20 = vpop.f32.mrb[126].mxu0  ;;  %v27666_v52 = vld [vmem:[#allocation3 + $0xaf] sm:$0xff]  ;;  %v27670_v41 = vld [vmem:[#allocation3 + $0xc7] sm:$0xff] }
 0x760   : > { %v13087_v60 = vld [vmem:[#allocation4 + $0x1d0] ss:$2 sm:$0xff]  ;;  %v13151_v31 = vld [vmem:[#allocation4 + $0x1d1] ss:$2 sm:$0xff]  ;;  %v12897_v35 = vmax.f32 %v12769_v43, 0.0  ;;  %v22285_v30 = vadd.f32 %v21652_v20, %v28645_v4  ;;  %v12500_v42 = vpop.f32.mrb[127].mxu0 }
 0x761   : > { %v13185_v50 = vmax.f32 %v13087_v60, %v13151_v31  ;;  %v12896_v6 = vmax.f32 %v12768_v37, 0.0  ;;  %v22286_v18 = vadd.f32 %v12500_v42, %v28646_v46  ;;  %v27674_v25 = vld [vmem:[#allocation3 + $0xcf] sm:$0xff]  ;;  %v27678_v1 = vld [vmem:[#allocation3 + $0xe7] sm:$0xff] }
 0x762   : > { %v12961_v8 = vmax.f32 %v12893_v47, %v12897_v35  ;;  %v12771_v39 = vadd.f32 %v27426_v24, %v22285_v30  ;;  %v27682_v3 = vld [vmem:[#allocation3 + $0xef] sm:$0xff]  ;;  %v27686_v43 = vld [vmem:[#allocation3 + $0x107] sm:$0xff] }
 0x763   : > { %13290 = vst.msk [vmem:[#allocation3 + $0x1f0] sm:$0xff] %vm12964_vm2, %v13185_v50  ;;  %v12960_v36 = vmax.f32 %v12892_v40, %v12896_v6  ;;  %v12770_v5 = vadd.f32 %v27426_v24, %v22286_v18  ;;  %v13293_v24 = vld [vmem:[#allocation3 + $0x7] sm:$0xff]  ;;  %v27690_v47 = vld [vmem:[#allocation3 + $0x10f] sm:$0xff] }
 0x764   : > { %13026 = vst.msk [vmem:[#allocation4 + $0x1e8] sm:$0xff] %vm12964_vm2, %v12961_v8  ;;  %v12899_v38 = vmax.f32 %v12771_v39, 0.0  ;;  %v27694_v40 = vld [vmem:[#allocation3 + $0x127] sm:$0xff]  ;;  %v27698_v37 = vld [vmem:[#allocation3 + $0x12f] sm:$0xff] }
 0x765   : > { %13025 = vst.msk [vmem:[#allocation4 + $0x1e0] sm:$0xff] %vm12964_vm2, %v12960_v36  ;;  %v12898_v63 = vmax.f32 %v12770_v5, 0.0  ;;  %v27702_v20 = vld [vmem:[#allocation3 + $0x147] sm:$0xff]  ;;  %v27706_v60 = vld [vmem:[#allocation3 + $0x14f] sm:$0xff] }
 0x766   : > { %v12963_v34 = vmax.f32 %v12895_v17, %v12899_v38  ;;  %v27612_v12 = vld [vmem:[#allocation3 + $0x1e8] sm:$0xff]  ;;  %v14005_v36 = vld [vmem:[#allocation3 + $0x11] sm:$0xff] }
 0x767   : > { %v12962_v13 = vmax.f32 %v12894_v32, %v12898_v63  ;;  %21702 = vmatprep.mubr.msk.f32.mxu1 %vm12964_vm2, %v27612_v12  ;;  %v27710_v31 = vld [vmem:[#allocation3 + $0x167] sm:$0xff]  ;;  %v27714_v15 = vld [vmem:[#allocation3 + $0x16f] sm:$0xff] }
 0x768   : > { %13028 = vst.msk [vmem:[#allocation4 + $0x1f8] sm:$0xff] %vm12964_vm2, %v12963_v34  ;;  %v27718_v35 = vld [vmem:[#allocation3 + $0x187] sm:$0xff]  ;;  %v27722_v4 = vld [vmem:[#allocation3 + $0x18f] sm:$0xff] }
 0x769   : > { %13027 = vst.msk [vmem:[#allocation4 + $0x1f0] sm:$0xff] %vm12964_vm2, %v12962_v13  ;;  %v27726_v30 = vld [vmem:[#allocation3 + $0x1a7] sm:$0xff]  ;;  %v27730_v42 = vld [vmem:[#allocation3 + $0x1af] sm:$0xff] }
 0x76a   : > { %v27618_v11 = vld [vmem:[#allocation3 + $0x1f0] sm:$0xff]  ;;  %v27734_v50 = vld [vmem:[#allocation3 + $0x1c7] sm:$0xff] }
 0x76b   : > { %21703 = vmatmul.mubr.msk.f32.gmra.mrb[158].mxu1 %vm12964_vm2, %v27618_v11  ;;  %v27738_v21 = vld [vmem:[#allocation3 + $0x1cf] sm:$0xff]  ;;  %v27742_v6 = vld [vmem:[#allocation3 + $0x1e7] sm:$0xff] }
 0x76c   : > { %v13089_v51 = vld [vmem:[#allocation4 + $0x1e0] ss:$2 sm:$0xff]  ;;  %v13153_v54 = vld [vmem:[#allocation4 + $0x1e1] ss:$2 sm:$0xff]  ;;  %21709 = vmatprep.mubr.msk.f32.mxu1 %vm12964_vm2, %v13293_v24  ;;  %28647 = vst [vmem:[#allocation16_spill] sm:$0xff] %v27738_v21  ;;  %28648 = vst [vmem:[#allocation17_spill] sm:$0xff] %v27742_v6 }
 0x76d   : > { %v13186_v53 = vmax.f32 %v13089_v51, %v13153_v54  ;;  %v14004_v46 = vld [vmem:[#allocation3 + $0x9] sm:$0xff]  ;;  %v27760_v38 = vld [vmem:[#allocation3 + $0x31] sm:$0xff] }
 0x76e   : > { %v27746_v18 = vld [vmem:[#allocation3 + $0x1ef] sm:$0xff]  ;;  %v14813_v8 = vld [vmem:[#allocation10 + $0x40] sm:$0xff] }
 0x76f   : > { %13291 = vst.msk [vmem:[#allocation3 + $0x208] sm:$0xff] %vm12964_vm2, %v13186_v53  ;;  %21710 = vmatmul.mubr.msk.f32.vlgmr.msra.gmra.mrb[128].mxu1 %vm12964_vm2, %v13294_v2  ;;  %28649 = vst [vmem:[#allocation18_spill] sm:$0xff] %v27746_v18  ;;  %v14814_v39 = vld [vmem:[#allocation10 + $0x48] sm:$0xff] }
 0x770   : > { %v13091_v55 = vld [vmem:[#allocation4 + $0x1f0] ss:$2 sm:$0xff]  ;;  %v13155_v33 = vld [vmem:[#allocation4 + $0x1f1] ss:$2 sm:$0xff]  ;;  %22132 = vmatpush3.bf16.msra.mxu1 %v27409_v23  ;;  %21712 = vmatprep.mubr.msk.f32.mxu1 %vm12964_vm2, %v27627_v45  ;;  %v27646_v23 = vld [vmem:[#allocation3 + $0x67] sm:$0xff]  ;;  %v27751_v5 = vpack.c.bf16 %v14814_v39, %v14813_v8 }
 0x771   : > { %v13187_v0 = vmax.f32 %v13091_v55, %v13155_v33  ;;  %22134 = vmatprep.subr.bf16.mxu1 %v27623_v9  ;;  %v27754_v17 = vld [vmem:[#allocation3 + $0x29] sm:$0xff]  ;;  %v27768_v63 = vld [vmem:[#allocation3 + $0x51] sm:$0xff] }
 0x772   : > { %v27764_v32 = vld [vmem:[#allocation3 + $0x49] sm:$0xff]  ;;  %v27776_v13 = vld [vmem:[#allocation3 + $0x71] sm:$0xff] }
 0x773   : > { %13292 = vst.msk [vmem:[#allocation3 + $0x210] sm:$0xff] %vm12964_vm2, %v13187_v0  ;;  %21713 = vmatmul.mubr.msk.f32.gmra.mrb[130].mxu1 %vm12964_vm2, %v27633_v10  ;;  %v27772_v34 = vld [vmem:[#allocation3 + $0x69] sm:$0xff]  ;;  %v27784_v26 = vld [vmem:[#allocation3 + $0x91] sm:$0xff] }
 0x774   : > { %21715 = vmatprep.mubr.msk.f32.mxu1 %vm12964_vm2, %v27638_v56  ;;  %v27780_v24 = vld [vmem:[#allocation3 + $0x89] sm:$0xff]  ;;  %v27792_v51 = vld [vmem:[#allocation3 + $0xb1] sm:$0xff] }
 0x775   : > { %v27788_v62 = vld [vmem:[#allocation3 + $0xa9] sm:$0xff]  ;;  %v27800_v2 = vld [vmem:[#allocation3 + $0xd1] sm:$0xff] }
 0x776   : > { %v27796_v54 = vld [vmem:[#allocation3 + $0xc9] sm:$0xff]  ;;  %v27816_v33 = vld [vmem:[#allocation3 + $0x111] sm:$0xff] }
 0x777   : > { %21716 = vmatmul.mubr.msk.f32.gmra.mrb[132].mxu1 %vm12964_vm2, %v27642_v28  ;;  %v27804_v53 = vld [vmem:[#allocation3 + $0xe9] sm:$0xff]  ;;  %28651 = vst [vmem:[#allocation20_spill] sm:$0xff] %v27816_v33  ;;  %v27832_v39 = vld [vmem:[#allocation3 + $0x151] sm:$0xff] }
 0x778   : > { %21718 = vmatprep.mubr.msk.f32.mxu1 %vm12964_vm2, %v27646_v23  ;;  %v27812_v55 = vld [vmem:[#allocation3 + $0x109] sm:$0xff]  ;;  %28655 = vst [vmem:[#allocation24_spill] sm:$0xff] %v27832_v39 }
 0x779   : > { %28650 = vst [vmem:[#allocation19_spill] sm:$0xff] %v27812_v55  ;;  %v27820_v0 = vld [vmem:[#allocation3 + $0x129] sm:$0xff] }
 0x77a   : > { %28652 = vst [vmem:[#allocation21_spill] sm:$0xff] %v27820_v0  ;;  %v27828_v8 = vld [vmem:[#allocation3 + $0x149] sm:$0xff] }
 0x77b   : > { %21719 = vmatmul.mubr.msk.f32.gmra.mrb[134].mxu1 %vm12964_vm2, %v27650_v57  ;;  %28654 = vst [vmem:[#allocation23_spill] sm:$0xff] %v27828_v8 }
 0x77c   : > { %21721 = vmatprep.mubr.msk.f32.mxu1 %vm12964_vm2, %v27654_v29 }
 0x77f   : > { %21722 = vmatmul.mubr.msk.f32.gmra.mrb[136].mxu1 %vm12964_vm2, %v27658_v14 }
 0x780   : > { %21724 = vmatprep.mubr.msk.f32.mxu1 %vm12964_vm2, %v27662_v22 }
 0x783   : > { %21725 = vmatmul.mubr.msk.f32.gmra.mrb[138].mxu1 %vm12964_vm2, %v27666_v52 }
 0x784   : > { %21727 = vmatprep.mubr.msk.f32.mxu1 %vm12964_vm2, %v27670_v41 }
 0x787   : > { %21728 = vmatmul.mubr.msk.f32.gmra.mrb[140].mxu1 %vm12964_vm2, %v27674_v25 }
 0x788   : > { %21730 = vmatprep.mubr.msk.f32.mxu1 %vm12964_vm2, %v27678_v1 }
 0x78b   : > { %21731 = vmatmul.mubr.msk.f32.gmra.mrb[142].mxu1 %vm12964_vm2, %v27682_v3 }
 0x78c   : > { %21733 = vmatprep.mubr.msk.f32.mxu1 %vm12964_vm2, %v27686_v43 }
 0x78f   : > { %21734 = vmatmul.mubr.msk.f32.gmra.mrb[144].mxu1 %vm12964_vm2, %v27690_v47 }
 0x790   : > { %21736 = vmatprep.mubr.msk.f32.mxu1 %vm12964_vm2, %v27694_v40 }
 0x793   : > { %21737 = vmatmul.mubr.msk.f32.gmra.mrb[146].mxu1 %vm12964_vm2, %v27698_v37 }
 0x794   : > { %21739 = vmatprep.mubr.msk.f32.mxu1 %vm12964_vm2, %v27702_v20 }
 0x797   : > { %21740 = vmatmul.mubr.msk.f32.gmra.mrb[148].mxu1 %vm12964_vm2, %v27706_v60 }
 0x798   : > { %21742 = vmatprep.mubr.msk.f32.mxu1 %vm12964_vm2, %v27710_v31 }
 0x79b   : > { %21743 = vmatmul.mubr.msk.f32.gmra.mrb[150].mxu1 %vm12964_vm2, %v27714_v15 }
 0x79c   : > { %21745 = vmatprep.mubr.msk.f32.mxu1 %vm12964_vm2, %v27718_v35 }
 0x79f   : > { %21746 = vmatmul.mubr.msk.f32.gmra.mrb[152].mxu1 %vm12964_vm2, %v27722_v4 }
 0x7a0   : > { %21748 = vmatprep.mubr.msk.f32.mxu1 %vm12964_vm2, %v27726_v30 }
 0x7a3   : > { %21749 = vmatmul.mubr.msk.f32.gmra.mrb[154].mxu1 %vm12964_vm2, %v27730_v42 }
 0x7a4   : > { %21751 = vmatprep.mubr.msk.f32.mxu1 %vm12964_vm2, %v27734_v50 }
 0x7a7   : > { %21752 = vmatmul.mubr.msk.f32.gmra.mrb[156].mxu1 %vm12964_vm2, %v27738_v21 }
 0x7a8   : > { %21754 = vmatprep.mubr.msk.f32.mxu1 %vm12964_vm2, %v27742_v6 }
 0x7ab   : > { %21755 = vmatmul.mubr.msk.f32.gmra.mrb[158].mxu1 %vm12964_vm2, %v27746_v18 }
 0x7ac   : > { %21761 = vmatprep.mubr.msk.f32.mxu1 %vm12964_vm2, %v14004_v46  ;;  %v27824_v46 = vld [vmem:[#allocation3 + $0x131] sm:$0xff] }
 0x7ad   : > { %28653 = vst [vmem:[#allocation22_spill] sm:$0xff] %v27824_v46 }
 0x7af   : > { %21762 = vmatmul.mubr.msk.f32.vlgmr.msra.gmra.mrb[128].mxu1 %vm12964_vm2, %v14005_v36  ;;  %v27836_v36 = vld [vmem:[#allocation3 + $0x169] sm:$0xff] }
 0x7b0   : > { %22136 = vmatpush3.bf16.msra.mxu1 %v27623_v9  ;;  %21764 = vmatprep.mubr.msk.f32.mxu1 %vm12964_vm2, %v27754_v17  ;;  %v27808_v9 = vld [vmem:[#allocation3 + $0xf1] sm:$0xff]  ;;  %28656 = vst [vmem:[#allocation25_spill] sm:$0xff] %v27836_v36 }
 0x7b1   : > { %22138 = vmatprep.subr.bf16.mxu1 %v27751_v5 }
 0x7b3   : > { %21765 = vmatmul.mubr.msk.f32.gmra.mrb[130].mxu1 %vm12964_vm2, %v27760_v38 }
 0x7b4   : > { %21767 = vmatprep.mubr.msk.f32.mxu1 %vm12964_vm2, %v27764_v32 }
 0x7b7   : > { %21768 = vmatmul.mubr.msk.f32.gmra.mrb[132].mxu1 %vm12964_vm2, %v27768_v63 }
 0x7b8   : > { %21770 = vmatprep.mubr.msk.f32.mxu1 %vm12964_vm2, %v27772_v34 }
 0x7bb   : > { %21771 = vmatmul.mubr.msk.f32.gmra.mrb[134].mxu1 %vm12964_vm2, %v27776_v13 }
 0x7bc   : > { %21773 = vmatprep.mubr.msk.f32.mxu1 %vm12964_vm2, %v27780_v24 }
 0x7bf   : > { %21774 = vmatmul.mubr.msk.f32.gmra.mrb[136].mxu1 %vm12964_vm2, %v27784_v26 }
 0x7c0   : > { %21776 = vmatprep.mubr.msk.f32.mxu1 %vm12964_vm2, %v27788_v62 }
 0x7c3   : > { %21777 = vmatmul.mubr.msk.f32.gmra.mrb[138].mxu1 %vm12964_vm2, %v27792_v51 }
 0x7c4   : > { %21779 = vmatprep.mubr.msk.f32.mxu1 %vm12964_vm2, %v27796_v54 }
 0x7c7   : > { %21780 = vmatmul.mubr.msk.f32.gmra.mrb[140].mxu1 %vm12964_vm2, %v27800_v2 }
 0x7c8   : > { %21782 = vmatprep.mubr.msk.f32.mxu1 %vm12964_vm2, %v27804_v53 }
 0x7cb   : > { %21783 = vmatmul.mubr.msk.f32.gmra.mrb[142].mxu1 %vm12964_vm2, %v27808_v9 }
 0x7cc   : > { %21785 = vmatprep.mubr.msk.f32.mxu1 %vm12964_vm2, %v27812_v55  ;;  %v15202_v55 = vld [vmem:[#allocation10 + $0x58] sm:$0xff] }
 0x7cf   : > { %21786 = vmatmul.mubr.msk.f32.gmra.mrb[144].mxu1 %vm12964_vm2, %v27816_v33  ;;  %v15201_v33 = vld [vmem:[#allocation10 + $0x50] sm:$0xff] }
 0x7d0   : > { %21788 = vmatprep.mubr.msk.f32.mxu1 %vm12964_vm2, %v27820_v0  ;;  %v27840_v0 = vld [vmem:[#allocation3 + $0x171] sm:$0xff] }
 0x7d1   : > { %28657 = vst [vmem:[#allocation26_spill] sm:$0xff] %v27840_v0 }
 0x7d3   : > { %21789 = vmatmul.mubr.msk.f32.gmra.mrb[146].mxu1 %vm12964_vm2, %v27824_v46  ;;  %v27844_v46 = vld [vmem:[#allocation3 + $0x189] sm:$0xff] }
 0x7d4   : > { %21791 = vmatprep.mubr.msk.f32.mxu1 %vm12964_vm2, %v27828_v8  ;;  %28658 = vst [vmem:[#allocation27_spill] sm:$0xff] %v27844_v46  ;;  %v27848_v8 = vld [vmem:[#allocation3 + $0x191] sm:$0xff] }
 0x7d5   : > { %28659 = vst [vmem:[#allocation28_spill] sm:$0xff] %v27848_v8 }
 0x7d7   : > { %21792 = vmatmul.mubr.msk.f32.gmra.mrb[148].mxu1 %vm12964_vm2, %v27832_v39  ;;  %v27852_v39 = vld [vmem:[#allocation3 + $0x1a9] sm:$0xff] }
 0x7d8   : > { %21794 = vmatprep.mubr.msk.f32.mxu1 %vm12964_vm2, %v27836_v36  ;;  %28660 = vst [vmem:[#allocation29_spill] sm:$0xff] %v27852_v39  ;;  %v27856_v36 = vld [vmem:[#allocation3 + $0x1b1] sm:$0xff] }
 0x7d9   : > { %28661 = vst [vmem:[#allocation30_spill] sm:$0xff] %v27856_v36 }
 0x7db   : > { %21795 = vmatmul.mubr.msk.f32.gmra.mrb[150].mxu1 %vm12964_vm2, %v27840_v0  ;;  %v27860_v0 = vld [vmem:[#allocation3 + $0x1c9] sm:$0xff] }
 0x7dc   : > { %21797 = vmatprep.mubr.msk.f32.mxu1 %vm12964_vm2, %v27844_v46  ;;  %28662 = vst [vmem:[#allocation31_spill] sm:$0xff] %v27860_v0  ;;  %v27864_v46 = vld [vmem:[#allocation3 + $0x1d1] sm:$0xff] }
 0x7dd   : > { %28663 = vst [vmem:[#allocation32_spill] sm:$0xff] %v27864_v46 }
 0x7df   : > { %21798 = vmatmul.mubr.msk.f32.gmra.mrb[152].mxu1 %vm12964_vm2, %v27848_v8  ;;  %v27868_v8 = vld [vmem:[#allocation3 + $0x1e9] sm:$0xff] }
 0x7e0   : > { %21800 = vmatprep.mubr.msk.f32.mxu1 %vm12964_vm2, %v27852_v39  ;;  %v27872_v39 = vld [vmem:[#allocation3 + $0x1f1] sm:$0xff] }
 0x7e3   : > { %21801 = vmatmul.mubr.msk.f32.gmra.mrb[154].mxu1 %vm12964_vm2, %v27856_v36 }
 0x7e4   : > { %21803 = vmatprep.mubr.msk.f32.mxu1 %vm12964_vm2, %v27860_v0  ;;  %v22141_v0 = vpack.c.bf16 %v15202_v55, %v15201_v33  ;;  %v15591_v55 = vld [vmem:[#allocation10 + $0x68] sm:$0xff] }
 0x7e5   : > { %v14780_v33 = vld [vmem:[#allocation3 + $0x28] sm:$0xff] }
 0x7e7   : > { %21804 = vmatmul.mubr.msk.f32.gmra.mrb[156].mxu1 %vm12964_vm2, %v27864_v46 }
 0x7e8   : > { %21806 = vmatprep.mubr.msk.f32.mxu1 %vm12964_vm2, %v27868_v8 }
 0x7eb   : > { %21807 = vmatmul.mubr.msk.f32.gmra.mrb[158].mxu1 %vm12964_vm2, %v27872_v39 }
 0x7ec   : > { %21813 = vmatprep.mubr.msk.f32.mxu1 %vm12964_vm2, %v27627_v45  ;;  %v27937_v45 = vld [vmem:[#allocation3 + $0x207] sm:$0xff] }
 0x7ed   : > { %28664 = vst [vmem:[#allocation33_spill] sm:$0xff] %v27937_v45 }
 0x7ef   : > { %21814 = vmatmul.mubr.msk.f32.vlgmr.msra.gmra.mrb[128].mxu1 %vm12964_vm2, %v27633_v10  ;;  %v27941_v10 = vld [vmem:[#allocation3 + $0x20f] sm:$0xff] }
 0x7f0   : > { %22140 = vmatpush3.bf16.msra.mxu1 %v27751_v5  ;;  %21816 = vmatprep.mubr.msk.f32.mxu1 %vm12964_vm2, %v27638_v56  ;;  %28665 = vst [vmem:[#allocation34_spill] sm:$0xff] %v27941_v10  ;;  %v15590_v5 = vld [vmem:[#allocation10 + $0x60] sm:$0xff] }
 0x7f1   : > { %22142 = vmatprep.subr.bf16.mxu1 %v22141_v0 }
 0x7f3   : > { %21817 = vmatmul.mubr.msk.f32.gmra.mrb[130].mxu1 %vm12964_vm2, %v27642_v28 }
 0x7f4   : > { %21819 = vmatprep.mubr.msk.f32.mxu1 %vm12964_vm2, %v27646_v23 }
 0x7f7   : > { %21820 = vmatmul.mubr.msk.f32.gmra.mrb[132].mxu1 %vm12964_vm2, %v27650_v57 }
 0x7f8   : > { %21822 = vmatprep.mubr.msk.f32.mxu1 %vm12964_vm2, %v27654_v29 }
 0x7fb   : > { %21823 = vmatmul.mubr.msk.f32.gmra.mrb[134].mxu1 %vm12964_vm2, %v27658_v14 }
 0x7fc   : > { %21825 = vmatprep.mubr.msk.f32.mxu1 %vm12964_vm2, %v27662_v22 }
 0x7ff   : > { %21826 = vmatmul.mubr.msk.f32.gmra.mrb[136].mxu1 %vm12964_vm2, %v27666_v52 }
 0x800   : > { %21828 = vmatprep.mubr.msk.f32.mxu1 %vm12964_vm2, %v27670_v41 }
 0x803   : > { %21829 = vmatmul.mubr.msk.f32.gmra.mrb[138].mxu1 %vm12964_vm2, %v27674_v25 }
 0x804   : > { %21831 = vmatprep.mubr.msk.f32.mxu1 %vm12964_vm2, %v27678_v1 }
 0x807   : > { %21832 = vmatmul.mubr.msk.f32.gmra.mrb[140].mxu1 %vm12964_vm2, %v27682_v3 }
 0x808   : > { %21834 = vmatprep.mubr.msk.f32.mxu1 %vm12964_vm2, %v27686_v43 }
 0x80b   : > { %21835 = vmatmul.mubr.msk.f32.gmra.mrb[142].mxu1 %vm12964_vm2, %v27690_v47 }
 0x80c   : > { %21837 = vmatprep.mubr.msk.f32.mxu1 %vm12964_vm2, %v27694_v40 }
 0x80f   : > { %21838 = vmatmul.mubr.msk.f32.gmra.mrb[144].mxu1 %vm12964_vm2, %v27698_v37 }
 0x810   : > { %21840 = vmatprep.mubr.msk.f32.mxu1 %vm12964_vm2, %v27702_v20 }
 0x813   : > { %21841 = vmatmul.mubr.msk.f32.gmra.mrb[146].mxu1 %vm12964_vm2, %v27706_v60 }
 0x814   : > { %21843 = vmatprep.mubr.msk.f32.mxu1 %vm12964_vm2, %v27710_v31 }
 0x817   : > { %21844 = vmatmul.mubr.msk.f32.gmra.mrb[148].mxu1 %vm12964_vm2, %v27714_v15 }
 0x818   : > { %21846 = vmatprep.mubr.msk.f32.mxu1 %vm12964_vm2, %v27718_v35 }
 0x81b   : > { %21847 = vmatmul.mubr.msk.f32.gmra.mrb[150].mxu1 %vm12964_vm2, %v27722_v4 }
 0x81c   : > { %21849 = vmatprep.mubr.msk.f32.mxu1 %vm12964_vm2, %v27726_v30 }
 0x81f   : > { %21850 = vmatmul.mubr.msk.f32.gmra.mrb[152].mxu1 %vm12964_vm2, %v27730_v42 }
 0x820   : > { %21852 = vmatprep.mubr.msk.f32.mxu1 %vm12964_vm2, %v27734_v50 }
 0x823   : > { %21853 = vmatmul.mubr.msk.f32.gmra.mrb[154].mxu1 %vm12964_vm2, %v27738_v21  ;;  %v22145_v21 = vpack.c.bf16 %v15591_v55, %v15590_v5  ;;  %v27959_v5 = vld [vmem:[#allocation3 + $0x70] sm:$0xff]  ;;  %v27971_v55 = vld [vmem:[#allocation3 + $0xa8] sm:$0xff] }
 0x824   : > { %21855 = vmatprep.mubr.msk.f32.mxu1 %vm12964_vm2, %v27742_v6  ;;  %v14781_v6 = vld [vmem:[#allocation3 + $0x30] sm:$0xff]  ;;  %28666 = vst [vmem:[#allocation35_spill] sm:$0xff] %v27959_v5  ;;  %28669 = vst [vmem:[#allocation38_spill] sm:$0xff] %v27971_v55 }
 0x827   : > { %21856 = vmatmul.mubr.msk.f32.gmra.mrb[156].mxu1 %vm12964_vm2, %v27746_v18  ;;  %v27947_v18 = vld [vmem:[#allocation3 + $0x48] sm:$0xff] }
 0x828   : > { %21858 = vmatprep.mubr.msk.f32.mxu1 %vm12964_vm2, %v27937_v45  ;;  %v27951_v45 = vld [vmem:[#allocation3 + $0x50] sm:$0xff] }
 0x82b   : > { %21859 = vmatmul.mubr.msk.f32.gmra.mrb[158].mxu1 %vm12964_vm2, %v27941_v10  ;;  %v27955_v10 = vld [vmem:[#allocation3 + $0x68] sm:$0xff] }
 0x82c   : > { %21865 = vmatprep.mubr.msk.f32.mxu1 %vm12964_vm2, %v14780_v33  ;;  %v27975_v33 = vld [vmem:[#allocation3 + $0xb0] sm:$0xff] }
 0x82d   : > { %28670 = vst [vmem:[#allocation39_spill] sm:$0xff] %v27975_v33 }
 0x82f   : > { %21866 = vmatmul.mubr.msk.f32.vlgmr.msra.gmra.mrb[128].mxu1 %vm12964_vm2, %v14781_v6  ;;  %v27963_v6 = vld [vmem:[#allocation3 + $0x88] sm:$0xff] }
 0x830   : > { %22144 = vmatpush3.bf16.msra.mxu1 %v22141_v0  ;;  %21868 = vmatprep.mubr.msk.f32.mxu1 %vm12964_vm2, %v27947_v18  ;;  %28667 = vst [vmem:[#allocation36_spill] sm:$0xff] %v27963_v6  ;;  %v27967_v0 = vld [vmem:[#allocation3 + $0x90] sm:$0xff] }
 0x831   : > { %22146 = vmatprep.subr.bf16.mxu1 %v22145_v21  ;;  %28668 = vst [vmem:[#allocation37_spill] sm:$0xff] %v27967_v0 }
 0x833   : > { %21869 = vmatmul.mubr.msk.f32.gmra.mrb[130].mxu1 %vm12964_vm2, %v27951_v45 }
 0x834   : > { %21871 = vmatprep.mubr.msk.f32.mxu1 %vm12964_vm2, %v27955_v10 }
 0x837   : > { %21872 = vmatmul.mubr.msk.f32.gmra.mrb[132].mxu1 %vm12964_vm2, %v27959_v5  ;;  %v27979_v5 = vld [vmem:[#allocation3 + $0xc8] sm:$0xff] }
 0x838   : > { %21874 = vmatprep.mubr.msk.f32.mxu1 %vm12964_vm2, %v27963_v6  ;;  %28671 = vst [vmem:[#allocation40_spill] sm:$0xff] %v27979_v5  ;;  %v27983_v6 = vld [vmem:[#allocation3 + $0xd0] sm:$0xff] }
 0x839   : > { %28672 = vst [vmem:[#allocation41_spill] sm:$0xff] %v27983_v6 }
 0x83b   : > { %21875 = vmatmul.mubr.msk.f32.gmra.mrb[134].mxu1 %vm12964_vm2, %v27967_v0  ;;  %v27987_v0 = vld [vmem:[#allocation3 + $0xe8] sm:$0xff] }
 0x83c   : > { %21877 = vmatprep.mubr.msk.f32.mxu1 %vm12964_vm2, %v27971_v55  ;;  %28673 = vst [vmem:[#allocation42_spill] sm:$0xff] %v27987_v0  ;;  %v27991_v55 = vld [vmem:[#allocation3 + $0xf0] sm:$0xff] }
 0x83f   : > { %21878 = vmatmul.mubr.msk.f32.gmra.mrb[136].mxu1 %vm12964_vm2, %v27975_v33  ;;  %v27995_v33 = vld [vmem:[#allocation3 + $0x108] sm:$0xff] }
 0x840   : > { %21880 = vmatprep.mubr.msk.f32.mxu1 %vm12964_vm2, %v27979_v5  ;;  %v27999_v5 = vld [vmem:[#allocation3 + $0x110] sm:$0xff] }
 0x843   : > { %21881 = vmatmul.mubr.msk.f32.gmra.mrb[138].mxu1 %vm12964_vm2, %v27983_v6  ;;  %v28003_v6 = vld [vmem:[#allocation3 + $0x128] sm:$0xff] }
 0x844   : > { %21883 = vmatprep.mubr.msk.f32.mxu1 %vm12964_vm2, %v27987_v0  ;;  %v28007_v0 = vld [vmem:[#allocation3 + $0x130] sm:$0xff] }
 0x847   : > { %21884 = vmatmul.mubr.msk.f32.gmra.mrb[140].mxu1 %vm12964_vm2, %v27991_v55 }
 0x848   : > { %21886 = vmatprep.mubr.msk.f32.mxu1 %vm12964_vm2, %v27995_v33 }
 0x84b   : > { %21887 = vmatmul.mubr.msk.f32.gmra.mrb[142].mxu1 %vm12964_vm2, %v27999_v5 }
 0x84c   : > { %21889 = vmatprep.mubr.msk.f32.mxu1 %vm12964_vm2, %v28003_v6 }
 0x84f   : > { %21890 = vmatmul.mubr.msk.f32.gmra.mrb[144].mxu1 %vm12964_vm2, %v28007_v0 }
 0x850   : > { %21892 = vmatprep.mubr.msk.f32.mxu1 %vm12964_vm2, %v27464_v7  ;;  %v28035_v7 = vld [vmem:[#allocation3 + $0x208] sm:$0xff] }
 0x853   : > { %21893 = vmatmul.mubr.msk.f32.gmra.mrb[146].mxu1 %vm12964_vm2, %v27472_v27  ;;  %v28039_v27 = vld [vmem:[#allocation3 + $0x210] sm:$0xff] }
 0x854   : > { %21895 = vmatprep.mubr.msk.f32.mxu1 %vm12964_vm2, %v27494_v49  ;;  %v15978_v49 = vld [vmem:[#allocation10 + $0x70] sm:$0xff] }
 0x857   : > { %21896 = vmatmul.mubr.msk.f32.gmra.mrb[148].mxu1 %vm12964_vm2, %v27502_v48  ;;  %v15979_v48 = vld [vmem:[#allocation10 + $0x78] sm:$0xff] }
 0x858   : > { %21898 = vmatprep.mubr.msk.f32.mxu1 %vm12964_vm2, %v27524_v58  ;;  %v22149_v58 = vpack.c.bf16 %v15979_v48, %v15978_v49  ;;  %v28680_v49 = vld [vmem:[#allocation25_spill] sm:$0xff]  ;;  %v28681_v48 = vld [vmem:[#allocation26_spill] sm:$0xff] }
 0x85b   : > { %21899 = vmatmul.mubr.msk.f32.gmra.mrb[150].mxu1 %vm12964_vm2, %v27532_v61  ;;  %v28674_v61 = vld [vmem:[#allocation19_spill] sm:$0xff] }
 0x85c   : > { %21901 = vmatprep.mubr.msk.f32.mxu1 %vm12964_vm2, %v27554_v16  ;;  %v28675_v16 = vld [vmem:[#allocation20_spill] sm:$0xff] }
 0x85f   : > { %21902 = vmatmul.mubr.msk.f32.gmra.mrb[152].mxu1 %vm12964_vm2, %v27562_v59  ;;  %v28676_v59 = vld [vmem:[#allocation21_spill] sm:$0xff] }
 0x860   : > { %21904 = vmatprep.mubr.msk.f32.mxu1 %vm12964_vm2, %v27584_v44 }
 0x863   : > { %21905 = vmatmul.mubr.msk.f32.gmra.mrb[154].mxu1 %vm12964_vm2, %v27592_v19 }
 0x864   : > { %21907 = vmatprep.mubr.msk.f32.mxu1 %vm12964_vm2, %v27612_v12 }
 0x867   : > { %21908 = vmatmul.mubr.msk.f32.gmra.mrb[156].mxu1 %vm12964_vm2, %v27618_v11 }
 0x868   : > { %21910 = vmatprep.mubr.msk.f32.mxu1 %vm12964_vm2, %v28035_v7 }
 0x86b   : > { %21911 = vmatmul.mubr.msk.f32.gmra.mrb[158].mxu1 %vm12964_vm2, %v28039_v27 }
 0x86c   : > { %21917 = vmatprep.mubr.msk.f32.mxu1 %vm12964_vm2, %v27754_v17  ;;  %v28678_v17 = vld [vmem:[#allocation23_spill] sm:$0xff] }
 0x86f   : > { %21918 = vmatmul.mubr.msk.f32.vlgmr.msra.gmra.mrb[128].mxu1 %vm12964_vm2, %v27760_v38  ;;  %v28679_v38 = vld [vmem:[#allocation24_spill] sm:$0xff] }
 0x870   : > { %22148 = vmatpush3.bf16.msra.mxu1 %v22145_v21  ;;  %21920 = vmatprep.mubr.msk.f32.mxu1 %vm12964_vm2, %v27764_v32  ;;  %v28677_v21 = vld [vmem:[#allocation22_spill] sm:$0xff] }
 0x871   : > { %22150 = vmatprep.subr.bf16.mxu1 %v22149_v58 }
 0x873   : > { %21921 = vmatmul.mubr.msk.f32.gmra.mrb[130].mxu1 %vm12964_vm2, %v27768_v63 }
 0x874   : > { %21923 = vmatprep.mubr.msk.f32.mxu1 %vm12964_vm2, %v27772_v34 }
 0x877   : > { %21924 = vmatmul.mubr.msk.f32.gmra.mrb[132].mxu1 %vm12964_vm2, %v27776_v13 }
 0x878   : > { %21926 = vmatprep.mubr.msk.f32.mxu1 %vm12964_vm2, %v27780_v24 }
 0x87b   : > { %21927 = vmatmul.mubr.msk.f32.gmra.mrb[134].mxu1 %vm12964_vm2, %v27784_v26 }
 0x87c   : > { %21929 = vmatprep.mubr.msk.f32.mxu1 %vm12964_vm2, %v27788_v62 }
 0x87f   : > { %21930 = vmatmul.mubr.msk.f32.gmra.mrb[136].mxu1 %vm12964_vm2, %v27792_v51 }
 0x880   : > { %21932 = vmatprep.mubr.msk.f32.mxu1 %vm12964_vm2, %v27796_v54 }
 0x883   : > { %21933 = vmatmul.mubr.msk.f32.gmra.mrb[138].mxu1 %vm12964_vm2, %v27800_v2 }
 0x884   : > { %21935 = vmatprep.mubr.msk.f32.mxu1 %vm12964_vm2, %v27804_v53 }
 0x887   : > { %21936 = vmatmul.mubr.msk.f32.gmra.mrb[140].mxu1 %vm12964_vm2, %v27808_v9 }
 0x888   : > { %21938 = vmatprep.mubr.msk.f32.mxu1 %vm12964_vm2, %v28674_v61  ;;  %v28682_v61 = vld [vmem:[#allocation27_spill] sm:$0xff] }
 0x88b   : > { %21939 = vmatmul.mubr.msk.f32.gmra.mrb[142].mxu1 %vm12964_vm2, %v28675_v16  ;;  %v28683_v16 = vld [vmem:[#allocation28_spill] sm:$0xff] }
 0x88c   : > { %21941 = vmatprep.mubr.msk.f32.mxu1 %vm12964_vm2, %v28676_v59  ;;  %v28684_v59 = vld [vmem:[#allocation29_spill] sm:$0xff] }
 0x88f   : > { %21942 = vmatmul.mubr.msk.f32.gmra.mrb[144].mxu1 %vm12964_vm2, %v28677_v21 }
 0x890   : > { %21944 = vmatprep.mubr.msk.f32.mxu1 %vm12964_vm2, %v28678_v17  ;;  %v28685_v17 = vld [vmem:[#allocation31_spill] sm:$0xff] }
 0x893   : > { %21945 = vmatmul.mubr.msk.f32.gmra.mrb[146].mxu1 %vm12964_vm2, %v28679_v38 }
 0x894   : > { %21947 = vmatprep.mubr.msk.f32.mxu1 %vm12964_vm2, %v28680_v49 }
 0x897   : > { %21948 = vmatmul.mubr.msk.f32.gmra.mrb[148].mxu1 %vm12964_vm2, %v28681_v48 }
 0x898   : > { %21950 = vmatprep.mubr.msk.f32.mxu1 %vm12964_vm2, %v28682_v61  ;;  %v28103_v61 = vld [vmem:[#allocation3 + $0x209] sm:$0xff] }
 0x89b   : > { %21951 = vmatmul.mubr.msk.f32.gmra.mrb[150].mxu1 %vm12964_vm2, %v28683_v16  ;;  %v16367_v16 = vld [vmem:[#allocation10 + $0x88] sm:$0xff] }
 0x89c   : > { %21953 = vmatprep.mubr.msk.f32.mxu1 %vm12964_vm2, %v28684_v59  ;;  %v28107_v59 = vld [vmem:[#allocation3 + $0x211] sm:$0xff] }
 0x89f   : > { %21954 = vmatmul.mubr.msk.f32.gmra.mrb[152].mxu1 %vm12964_vm2, %v27856_v36  ;;  %v16366_v36 = vld [vmem:[#allocation10 + $0x80] sm:$0xff] }
 0x8a0   : > { %21956 = vmatprep.mubr.msk.f32.mxu1 %vm12964_vm2, %v28685_v17 }
 0x8a3   : > { %21957 = vmatmul.mubr.msk.f32.gmra.mrb[154].mxu1 %vm12964_vm2, %v27864_v46  ;;  %v22153_v46 = vpack.c.bf16 %v16367_v16, %v16366_v36 }
 0x8a4   : > { %21959 = vmatprep.mubr.msk.f32.mxu1 %vm12964_vm2, %v27868_v8 }
 0x8a7   : > { %21960 = vmatmul.mubr.msk.f32.gmra.mrb[156].mxu1 %vm12964_vm2, %v27872_v39 }
 0x8a8   : > { %21962 = vmatprep.mubr.msk.f32.mxu1 %vm12964_vm2, %v28103_v61 }
 0x8ab   : > { %21963 = vmatmul.mubr.msk.f32.gmra.mrb[158].mxu1 %vm12964_vm2, %v28107_v59 }
 0x8ac   : > { %21969 = vmatprep.mubr.msk.f32.mxu1 %vm12964_vm2, %v27638_v56  ;;  %v28686_v56 = vld [vmem:[#allocation16_spill] sm:$0xff] }
 0x8af   : > { %21970 = vmatmul.mubr.msk.f32.vlgmr.msra.gmra.mrb[128].mxu1 %vm12964_vm2, %v27642_v28  ;;  %v28687_v28 = vld [vmem:[#allocation17_spill] sm:$0xff] }
 0x8b0   : > { %22152 = vmatpush3.bf16.msra.mxu1 %v22149_v58  ;;  %21972 = vmatprep.mubr.msk.f32.mxu1 %vm12964_vm2, %v27646_v23  ;;  %v28688_v23 = vld [vmem:[#allocation18_spill] sm:$0xff] }
 0x8b1   : > { %22154 = vmatprep.subr.bf16.mxu1 %v22153_v46 }
 0x8b3   : > { %21973 = vmatmul.mubr.msk.f32.gmra.mrb[130].mxu1 %vm12964_vm2, %v27650_v57  ;;  %v28689_v57 = vld [vmem:[#allocation33_spill] sm:$0xff] }
 0x8b4   : > { %21975 = vmatprep.mubr.msk.f32.mxu1 %vm12964_vm2, %v27654_v29  ;;  %v15587_v29 = vld [vmem:[#allocation3 + $0x227] sm:$0xff] }
 0x8b7   : > { %21976 = vmatmul.mubr.msk.f32.gmra.mrb[132].mxu1 %vm12964_vm2, %v27658_v14  ;;  %v28690_v14 = vld [vmem:[#allocation34_spill] sm:$0xff] }
 0x8b8   : > { %21978 = vmatprep.mubr.msk.f32.mxu1 %vm12964_vm2, %v27662_v22  ;;  %v15588_v22 = vld [vmem:[#allocation3 + $0x22f] sm:$0xff] }
 0x8bb   : > { %21979 = vmatmul.mubr.msk.f32.gmra.mrb[134].mxu1 %vm12964_vm2, %v27666_v52  ;;  %v28691_v52 = vld [vmem:[#allocation35_spill] sm:$0xff] }
 0x8bc   : > { %21981 = vmatprep.mubr.msk.f32.mxu1 %vm12964_vm2, %v27670_v41  ;;  %v28692_v41 = vld [vmem:[#allocation36_spill] sm:$0xff] }
 0x8bf   : > { %21982 = vmatmul.mubr.msk.f32.gmra.mrb[136].mxu1 %vm12964_vm2, %v27674_v25  ;;  %v28693_v25 = vld [vmem:[#allocation37_spill] sm:$0xff] }
 0x8c0   : > { %21984 = vmatprep.mubr.msk.f32.mxu1 %vm12964_vm2, %v27678_v1  ;;  %v28694_v1 = vld [vmem:[#allocation38_spill] sm:$0xff] }
 0x8c3   : > { %21985 = vmatmul.mubr.msk.f32.gmra.mrb[138].mxu1 %vm12964_vm2, %v27682_v3  ;;  %v28695_v3 = vld [vmem:[#allocation39_spill] sm:$0xff] }
 0x8c4   : > { %21987 = vmatprep.mubr.msk.f32.mxu1 %vm12964_vm2, %v27686_v43  ;;  %v28696_v43 = vld [vmem:[#allocation40_spill] sm:$0xff] }
 0x8c7   : > { %21988 = vmatmul.mubr.msk.f32.gmra.mrb[140].mxu1 %vm12964_vm2, %v27690_v47  ;;  %v28697_v47 = vld [vmem:[#allocation41_spill] sm:$0xff] }
 0x8c8   : > { %21990 = vmatprep.mubr.msk.f32.mxu1 %vm12964_vm2, %v27694_v40  ;;  %v28698_v40 = vld [vmem:[#allocation42_spill] sm:$0xff] }
 0x8cb   : > { %21991 = vmatmul.mubr.msk.f32.gmra.mrb[142].mxu1 %vm12964_vm2, %v27698_v37  ;;  %v15961_v37 = vld [vmem:[#allocation3 + $0x148] sm:$0xff] }
 0x8cc   : > { %21993 = vmatprep.mubr.msk.f32.mxu1 %vm12964_vm2, %v27702_v20  ;;  %v15962_v20 = vld [vmem:[#allocation3 + $0x150] sm:$0xff] }
 0x8cf   : > { %21994 = vmatmul.mubr.msk.f32.gmra.mrb[144].mxu1 %vm12964_vm2, %v27706_v60  ;;  %v15963_v60 = vld [vmem:[#allocation3 + $0x168] sm:$0xff] }
 0x8d0   : > { %21996 = vmatprep.mubr.msk.f32.mxu1 %vm12964_vm2, %v27710_v31  ;;  %v15964_v31 = vld [vmem:[#allocation3 + $0x170] sm:$0xff] }
 0x8d3   : > { %21997 = vmatmul.mubr.msk.f32.gmra.mrb[146].mxu1 %vm12964_vm2, %v27714_v15  ;;  %v15965_v15 = vld [vmem:[#allocation3 + $0x188] sm:$0xff] }
 0x8d4   : > { %21999 = vmatprep.mubr.msk.f32.mxu1 %vm12964_vm2, %v27718_v35  ;;  %v15966_v35 = vld [vmem:[#allocation3 + $0x190] sm:$0xff] }
 0x8d7   : > { %22000 = vmatmul.mubr.msk.f32.gmra.mrb[148].mxu1 %vm12964_vm2, %v27722_v4  ;;  %v15967_v4 = vld [vmem:[#allocation3 + $0x1a8] sm:$0xff] }
 0x8d8   : > { %22002 = vmatprep.mubr.msk.f32.mxu1 %vm12964_vm2, %v27726_v30  ;;  %v15968_v30 = vld [vmem:[#allocation3 + $0x1b0] sm:$0xff] }
 0x8db   : > { %22003 = vmatmul.mubr.msk.f32.gmra.mrb[150].mxu1 %vm12964_vm2, %v27730_v42  ;;  %v15975_v42 = vld [vmem:[#allocation3 + $0x228] sm:$0xff] }
 0x8dc   : > { %22005 = vmatprep.mubr.msk.f32.mxu1 %vm12964_vm2, %v27734_v50  ;;  %v15976_v50 = vld [vmem:[#allocation3 + $0x230] sm:$0xff] }
 0x8df   : > { %22006 = vmatmul.mubr.msk.f32.gmra.mrb[152].mxu1 %vm12964_vm2, %v28686_v56 }
 0x8e0   : > { %22008 = vmatprep.mubr.msk.f32.mxu1 %vm12964_vm2, %v28687_v28 }
 0x8e3   : > { %22009 = vmatmul.mubr.msk.f32.gmra.mrb[154].mxu1 %vm12964_vm2, %v28688_v23 }
 0x8e4   : > { %22011 = vmatprep.mubr.msk.f32.mxu1 %vm12964_vm2, %v28689_v57 }
 0x8e7   : > { %22012 = vmatmul.mubr.msk.f32.gmra.mrb[156].mxu1 %vm12964_vm2, %v28690_v14 }
 0x8e8   : > { %22014 = vmatprep.mubr.msk.f32.mxu1 %vm12964_vm2, %v15587_v29 }
 0x8eb   : > { %22015 = vmatmul.mubr.msk.f32.gmra.mrb[158].mxu1 %vm12964_vm2, %v15588_v22 }
 0x8ec   : > { %22021 = vmatprep.mubr.msk.f32.mxu1 %vm12964_vm2, %v27947_v18  ;;  %v28703_v18 = vld [vmem:[#allocation27_spill] sm:$0xff] }
 0x8ef   : > { %22022 = vmatmul.mubr.msk.f32.vlgmr.msra.gmra.mrb[128].mxu1 %vm12964_vm2, %v27951_v45 }
 0x8f0   : > { %22156 = vmatpush3.bf16.msra.mxu1 %v22153_v46  ;;  %22024 = vmatprep.mubr.msk.f32.mxu1 %vm12964_vm2, %v27955_v10 }
 0x8f3   : > { %22025 = vmatmul.mubr.msk.f32.gmra.mrb[130].mxu1 %vm12964_vm2, %v28691_v52 }
 0x8f4   : > { %22027 = vmatprep.mubr.msk.f32.mxu1 %vm12964_vm2, %v28692_v41 }
 0x8f7   : > { %22028 = vmatmul.mubr.msk.f32.gmra.mrb[132].mxu1 %vm12964_vm2, %v28693_v25 }
 0x8f8   : > { %22030 = vmatprep.mubr.msk.f32.mxu1 %vm12964_vm2, %v28694_v1 }
 0x8fb   : > { %22031 = vmatmul.mubr.msk.f32.gmra.mrb[134].mxu1 %vm12964_vm2, %v28695_v3 }
 0x8fc   : > { %22033 = vmatprep.mubr.msk.f32.mxu1 %vm12964_vm2, %v28696_v43 }
 0x8ff   : > { %22034 = vmatmul.mubr.msk.f32.gmra.mrb[136].mxu1 %vm12964_vm2, %v28697_v47 }
 0x900   : > { %22036 = vmatprep.mubr.msk.f32.mxu1 %vm12964_vm2, %v28698_v40 }
 0x903   : > { %22037 = vmatmul.mubr.msk.f32.gmra.mrb[138].mxu1 %vm12964_vm2, %v27991_v55 }
 0x904   : > { %22039 = vmatprep.mubr.msk.f32.mxu1 %vm12964_vm2, %v27995_v33 }
 0x907   : > { %22040 = vmatmul.mubr.msk.f32.gmra.mrb[140].mxu1 %vm12964_vm2, %v27999_v5 }
 0x908   : > { %22042 = vmatprep.mubr.msk.f32.mxu1 %vm12964_vm2, %v28003_v6 }
 0x90b   : > { %22043 = vmatmul.mubr.msk.f32.gmra.mrb[142].mxu1 %vm12964_vm2, %v28007_v0 }
 0x90c   : > { %22045 = vmatprep.mubr.msk.f32.mxu1 %vm12964_vm2, %v15961_v37 }
 0x90f   : > { %22046 = vmatmul.mubr.msk.f32.gmra.mrb[144].mxu1 %vm12964_vm2, %v15962_v20 }
 0x910   : > { %22048 = vmatprep.mubr.msk.f32.mxu1 %vm12964_vm2, %v15963_v60 }
 0x913   : > { %22049 = vmatmul.mubr.msk.f32.gmra.mrb[146].mxu1 %vm12964_vm2, %v15964_v31 }
 0x914   : > { %22051 = vmatprep.mubr.msk.f32.mxu1 %vm12964_vm2, %v15965_v15 }
 0x917   : > { %22052 = vmatmul.mubr.msk.f32.gmra.mrb[148].mxu1 %vm12964_vm2, %v15966_v35 }
 0x918   : > { %22054 = vmatprep.mubr.msk.f32.mxu1 %vm12964_vm2, %v15967_v4 }
 0x91b   : > { %22055 = vmatmul.mubr.msk.f32.gmra.mrb[150].mxu1 %vm12964_vm2, %v15968_v30 }
 0x91c   : > { %22057 = vmatprep.mubr.msk.f32.mxu1 %vm12964_vm2, %v27584_v44  ;;  %v28699_v44 = vld [vmem:[#allocation19_spill] sm:$0xff] }
 0x91f   : > { %22058 = vmatmul.mubr.msk.f32.gmra.mrb[152].mxu1 %vm12964_vm2, %v27592_v19  ;;  %v28700_v19 = vld [vmem:[#allocation20_spill] sm:$0xff] }
 0x920   : > { %22060 = vmatprep.mubr.msk.f32.mxu1 %vm12964_vm2, %v27612_v12  ;;  %v28701_v12 = vld [vmem:[#allocation21_spill] sm:$0xff] }
 0x923   : > { %22061 = vmatmul.mubr.msk.f32.gmra.mrb[154].mxu1 %vm12964_vm2, %v27618_v11  ;;  %v28702_v11 = vld [vmem:[#allocation23_spill] sm:$0xff] }
 0x924   : > { %22063 = vmatprep.mubr.msk.f32.mxu1 %vm12964_vm2, %v28035_v7 }
 0x927   : > { %22064 = vmatmul.mubr.msk.f32.gmra.mrb[156].mxu1 %vm12964_vm2, %v28039_v27 }
 0x928   : > { %22066 = vmatprep.mubr.msk.f32.mxu1 %vm12964_vm2, %v15975_v42 }
 0x92b   : > { %22067 = vmatmul.mubr.msk.f32.gmra.mrb[158].mxu1 %vm12964_vm2, %v15976_v50 }
 0x92c   : > { %22073 = vmatprep.mubr.msk.f32.mxu1 %vm12964_vm2, %v27764_v32  ;;  %v28704_v32 = vld [vmem:[#allocation28_spill] sm:$0xff] }
 0x92f   : > { %22074 = vmatmul.mubr.msk.f32.vlgmr.msra.gmra.mrb[128].mxu1 %vm12964_vm2, %v27768_v63  ;;  %v28705_v63 = vld [vmem:[#allocation29_spill] sm:$0xff] }
 0x930   : > { %22076 = vmatprep.mubr.msk.f32.mxu1 %vm12964_vm2, %v27772_v34  ;;  %v28706_v34 = vld [vmem:[#allocation30_spill] sm:$0xff] }
 0x933   : > { %22077 = vmatmul.mubr.msk.f32.gmra.mrb[130].mxu1 %vm12964_vm2, %v27776_v13  ;;  %v28707_v13 = vld [vmem:[#allocation32_spill] sm:$0xff] }
 0x934   : > { %22079 = vmatprep.mubr.msk.f32.mxu1 %vm12964_vm2, %v27780_v24  ;;  %v16363_v24 = vld [vmem:[#allocation3 + $0x229] sm:$0xff] }
 0x937   : > { %22080 = vmatmul.mubr.msk.f32.gmra.mrb[132].mxu1 %vm12964_vm2, %v27784_v26  ;;  %v16364_v26 = vld [vmem:[#allocation3 + $0x231] sm:$0xff] }
 0x938   : > { %22082 = vmatprep.mubr.msk.f32.mxu1 %vm12964_vm2, %v27788_v62 }
 0x93b   : > { %22083 = vmatmul.mubr.msk.f32.gmra.mrb[134].mxu1 %vm12964_vm2, %v27792_v51  ;;  %v28289_v51 = vld [vmem:[#allocation11] ss:$0 sm:$0xff] }
 0x93c   : > { %22085 = vmatprep.mubr.msk.f32.mxu1 %vm12964_vm2, %v27796_v54 }
 0x93f   : > { %22086 = vmatmul.mubr.msk.f32.gmra.mrb[136].mxu1 %vm12964_vm2, %v27800_v2 }
 0x940   : > { %22088 = vmatprep.mubr.msk.f32.mxu1 %vm12964_vm2, %v27804_v53 }
 0x943   : > { %22089 = vmatmul.mubr.msk.f32.gmra.mrb[138].mxu1 %vm12964_vm2, %v27808_v9 }
 0x944   : > { %22091 = vmatprep.mubr.msk.f32.mxu1 %vm12964_vm2, %v28699_v44 }
 0x947   : > { %22092 = vmatmul.mubr.msk.f32.gmra.mrb[140].mxu1 %vm12964_vm2, %v28700_v19 }
 0x948   : > { %22094 = vmatprep.mubr.msk.f32.mxu1 %vm12964_vm2, %v28701_v12 }
 0x94b   : > { %22095 = vmatmul.mubr.msk.f32.gmra.mrb[142].mxu1 %vm12964_vm2, %v28677_v21 }
 0x94c   : > { %22097 = vmatprep.mubr.msk.f32.mxu1 %vm12964_vm2, %v28702_v11 }
 0x94f   : > { %22098 = vmatmul.mubr.msk.f32.gmra.mrb[144].mxu1 %vm12964_vm2, %v28679_v38 }
 0x950   : > { %22100 = vmatprep.mubr.msk.f32.mxu1 %vm12964_vm2, %v28680_v49 }
 0x953   : > { %22101 = vmatmul.mubr.msk.f32.gmra.mrb[146].mxu1 %vm12964_vm2, %v28681_v48 }
 0x954   : > { %22103 = vmatprep.mubr.msk.f32.mxu1 %vm12964_vm2, %v28703_v18 }
 0x957   : > { %22104 = vmatmul.mubr.msk.f32.gmra.mrb[148].mxu1 %vm12964_vm2, %v28704_v32 }
 0x958   : > { %22106 = vmatprep.mubr.msk.f32.mxu1 %vm12964_vm2, %v28705_v63 }
 0x95b   : > { %22107 = vmatmul.mubr.msk.f32.gmra.mrb[150].mxu1 %vm12964_vm2, %v28706_v34 }
 0x95c   : > { %22109 = vmatprep.mubr.msk.f32.mxu1 %vm12964_vm2, %v28685_v17 }
 0x95f   : > { %22110 = vmatmul.mubr.msk.f32.gmra.mrb[152].mxu1 %vm12964_vm2, %v28707_v13 }
 0x960   : > { %22112 = vmatprep.mubr.msk.f32.mxu1 %vm12964_vm2, %v27868_v8 }
 0x963   : > { %22113 = vmatmul.mubr.msk.f32.gmra.mrb[154].mxu1 %vm12964_vm2, %v27872_v39 }
 0x964   : > { %22115 = vmatprep.mubr.msk.f32.mxu1 %vm12964_vm2, %v28103_v61 }
 0x967   : > { %22116 = vmatmul.mubr.msk.f32.gmra.mrb[156].mxu1 %vm12964_vm2, %v28107_v59 }
 0x968   : > { %22118 = vmatprep.mubr.msk.f32.mxu1 %vm12964_vm2, %v16363_v24 }
 0x96b   : > { %22119 = vmatmul.mubr.msk.f32.gmra.mrb[158].mxu1 %vm12964_vm2, %v16364_v26 }
 0xa02   : > { %v22075_v62 = vpop.f32.mrb[128].mxu1 }
 0xa03   : > { %v16530_v54 = vpop.f32.mrb[129].mxu1  ;;  %v16729_v2 = vadd.f32 %v22075_v62, %v28289_v51 }
 0xa04   : > { %v16728_v53 = vadd.f32 %v28289_v51, %v16530_v54 }
 0xa05   : > { %v16761_v36 = vmax.f32 %v16729_v2, 0.0 }
 0xa06   : > { %v22078_v9 = vpop.f32.mrb[130].mxu1  ;;  %v16760_v10 = vmax.f32 %v16728_v53, 0.0 }
 0xa07   : > { %v16731_v46 = vadd.f32 %v22078_v9, %v28289_v51  ;;  %v16540_v8 = vpop.f32.mrb[131].mxu1 }
 0xa08   : > { %v16730_v39 = vadd.f32 %v28289_v51, %v16540_v8 }
 0xa09   : > { %v16763_v45 = vmax.f32 %v16731_v46, 0.0 }
 0xa0a   : > { %v16762_v5 = vmax.f32 %v16730_v39, 0.0  ;;  %v22081_v6 = vpop.f32.mrb[132].mxu1 }
 0xa0b   : > { %v16793_v0 = vmax.f32 %v16761_v36, %v16763_v45  ;;  %v16550_v55 = vpop.f32.mrb[133].mxu1  ;;  %v16733_v7 = vadd.f32 %v22081_v6, %v28289_v51 }
 0xa0c   : > { %v16792_v33 = vmax.f32 %v16760_v10, %v16762_v5  ;;  %v16732_v27 = vadd.f32 %v28289_v51, %v16550_v55 }
 0xa0d   : > { %16810 = vst.msk [vmem:[#allocation5 + $0x8] sm:$0xff] %vm16808_vm3, %v16793_v0  ;;  %v16765_v21 = vmax.f32 %v16733_v7, 0.0 }
 0xa0e   : > { %16809 = vst.msk [vmem:[#allocation5] sm:$0xff] %vm16808_vm3, %v16792_v33  ;;  %v22084_v58 = vpop.f32.mrb[134].mxu1  ;;  %v16764_v38 = vmax.f32 %v16732_v27, 0.0 }
 0xa0f   : > { %v16735_v61 = vadd.f32 %v22084_v58, %v28289_v51  ;;  %v16560_v16 = vpop.f32.mrb[135].mxu1 }
 0xa10   : > { %v16734_v59 = vadd.f32 %v28289_v51, %v16560_v16 }
 0xa11   : > { %v16767_v17 = vmax.f32 %v16735_v61, 0.0 }
 0xa12   : > { %v16766_v49 = vmax.f32 %v16734_v59, 0.0  ;;  %v22087_v48 = vpop.f32.mrb[136].mxu1 }
 0xa13   : > { %v16795_v56 = vmax.f32 %v16765_v21, %v16767_v17  ;;  %v16570_v28 = vpop.f32.mrb[137].mxu1  ;;  %v16737_v14 = vadd.f32 %v22087_v48, %v28289_v51 }
 0xa14   : > { %v16794_v23 = vmax.f32 %v16764_v38, %v16766_v49  ;;  %v16736_v52 = vadd.f32 %v28289_v51, %v16570_v28 }
 0xa15   : > { %v16825_v57 = vld [vmem:[#allocation5] ss:$2 sm:$0xff]  ;;  %v16841_v29 = vld [vmem:[#allocation5 + $0x1] ss:$2 sm:$0xff]  ;;  %16812 = vst.msk [vmem:[#allocation5 + $0x18] sm:$0xff] %vm16808_vm3, %v16795_v56  ;;  %v16769_v43 = vmax.f32 %v16737_v14, 0.0 }
 0xa16   : > { %v16856_v22 = vmax.f32 %v16825_v57, %v16841_v29  ;;  %16811 = vst.msk [vmem:[#allocation5 + $0x10] sm:$0xff] %vm16808_vm3, %v16794_v23  ;;  %v22090_v41 = vpop.f32.mrb[138].mxu1  ;;  %v16768_v40 = vmax.f32 %v16736_v52, 0.0 }
 0xa17   : > { %v16739_v25 = vadd.f32 %v22090_v41, %v28289_v51  ;;  %v16580_v1 = vpop.f32.mrb[139].mxu1 }
 0xa18   : > { %16864 = vst.msk [vmem:[%s28305_s17] sm:$0xff] %vm16808_vm3, %v16856_v22  ;;  %v16738_v3 = vadd.f32 %v28289_v51, %v16580_v1 }
 0xa19   : > { %v16771_v47 = vmax.f32 %v16739_v25, 0.0 }
 0xa1a   : > { %v16770_v37 = vmax.f32 %v16738_v3, 0.0  ;;  %v22093_v20 = vpop.f32.mrb[140].mxu1 }
 0xa1b   : > { %v16797_v60 = vmax.f32 %v16769_v43, %v16771_v47  ;;  %v16590_v31 = vpop.f32.mrb[141].mxu1  ;;  %v16741_v30 = vadd.f32 %v22093_v20, %v28289_v51 }
 0xa1c   : > { %v16796_v15 = vmax.f32 %v16768_v40, %v16770_v37  ;;  %v16740_v50 = vadd.f32 %v28289_v51, %v16590_v31 }
 0xa1d   : > { %v16827_v35 = vld [vmem:[#allocation5 + $0x10] ss:$2 sm:$0xff]  ;;  %v16843_v4 = vld [vmem:[#allocation5 + $0x11] ss:$2 sm:$0xff]  ;;  %16814 = vst.msk [vmem:[#allocation5 + $0x28] sm:$0xff] %vm16808_vm3, %v16797_v60  ;;  %v16773_v18 = vmax.f32 %v16741_v30, 0.0 }
 0xa1e   : > { %v16857_v42 = vmax.f32 %v16827_v35, %v16843_v4  ;;  %16813 = vst.msk [vmem:[#allocation5 + $0x20] sm:$0xff] %vm16808_vm3, %v16796_v15  ;;  %v22096_v44 = vpop.f32.mrb[142].mxu1  ;;  %v16772_v63 = vmax.f32 %v16740_v50, 0.0 }
 0xa1f   : > { %v16743_v19 = vadd.f32 %v22096_v44, %v28289_v51  ;;  %v16600_v12 = vpop.f32.mrb[143].mxu1 }
 0xa20   : > { %16865 = vst.msk [vmem:[%s28305_s17 + $0x8] sm:$0xff] %vm16808_vm3, %v16857_v42  ;;  %v16742_v11 = vadd.f32 %v28289_v51, %v16600_v12 }
 0xa21   : > { %v16775_v32 = vmax.f32 %v16743_v19, 0.0 }
 0xa22   : > { %v16774_v34 = vmax.f32 %v16742_v11, 0.0  ;;  %v22099_v13 = vpop.f32.mrb[144].mxu1 }
 0xa23   : > { %v16799_v24 = vmax.f32 %v16773_v18, %v16775_v32  ;;  %v16610_v26 = vpop.f32.mrb[145].mxu1  ;;  %v16745_v53 = vadd.f32 %v22099_v13, %v28289_v51 }
 0xa24   : > { %v16798_v62 = vmax.f32 %v16772_v63, %v16774_v34  ;;  %v16744_v46 = vadd.f32 %v28289_v51, %v16610_v26 }
 0xa25   : > { %v16829_v54 = vld [vmem:[#allocation5 + $0x20] ss:$2 sm:$0xff]  ;;  %v16845_v2 = vld [vmem:[#allocation5 + $0x21] ss:$2 sm:$0xff]  ;;  %16816 = vst.msk [vmem:[#allocation5 + $0x38] sm:$0xff] %vm16808_vm3, %v16799_v24  ;;  %v16777_v10 = vmax.f32 %v16745_v53, 0.0 }
 0xa26   : > { %v16858_v9 = vmax.f32 %v16829_v54, %v16845_v2  ;;  %16815 = vst.msk [vmem:[#allocation5 + $0x30] sm:$0xff] %vm16808_vm3, %v16798_v62  ;;  %v22102_v8 = vpop.f32.mrb[146].mxu1  ;;  %v16776_v6 = vmax.f32 %v16744_v46, 0.0 }
 0xa27   : > { %v16747_v39 = vadd.f32 %v22102_v8, %v28289_v51  ;;  %v16620_v36 = vpop.f32.mrb[147].mxu1 }
 0xa28   : > { %16866 = vst.msk [vmem:[%s28305_s17 + $0x10] sm:$0xff] %vm16808_vm3, %v16858_v9  ;;  %v16746_v45 = vadd.f32 %v28289_v51, %v16620_v36 }
 0xa29   : > { %v16779_v5 = vmax.f32 %v16747_v39, 0.0 }
 0xa2a   : > { %v16778_v0 = vmax.f32 %v16746_v45, 0.0  ;;  %v22105_v55 = vpop.f32.mrb[148].mxu1 }
 0xa2b   : > { %v16801_v33 = vmax.f32 %v16777_v10, %v16779_v5  ;;  %v16630_v7 = vpop.f32.mrb[149].mxu1  ;;  %v16749_v16 = vadd.f32 %v22105_v55, %v28289_v51 }
 0xa2c   : > { %v16800_v27 = vmax.f32 %v16776_v6, %v16778_v0  ;;  %v16748_v21 = vadd.f32 %v28289_v51, %v16630_v7 }
 0xa2d   : > { %v16831_v58 = vld [vmem:[#allocation5 + $0x30] ss:$2 sm:$0xff]  ;;  %v16847_v61 = vld [vmem:[#allocation5 + $0x31] ss:$2 sm:$0xff]  ;;  %16818 = vst.msk [vmem:[#allocation5 + $0x48] sm:$0xff] %vm16808_vm3, %v16801_v33  ;;  %v16781_v56 = vmax.f32 %v16749_v16, 0.0 }
 0xa2e   : > { %v16859_v59 = vmax.f32 %v16831_v58, %v16847_v61  ;;  %16817 = vst.msk [vmem:[#allocation5 + $0x40] sm:$0xff] %vm16808_vm3, %v16800_v27  ;;  %v22108_v17 = vpop.f32.mrb[150].mxu1  ;;  %v16780_v23 = vmax.f32 %v16748_v21, 0.0 }
 0xa2f   : > { %v16751_v38 = vadd.f32 %v22108_v17, %v28289_v51  ;;  %v16640_v49 = vpop.f32.mrb[151].mxu1 }
 0xa30   : > { %16867 = vst.msk [vmem:[%s28305_s17 + $0x18] sm:$0xff] %vm16808_vm3, %v16859_v59  ;;  %v16750_v48 = vadd.f32 %v28289_v51, %v16640_v49 }
 0xa31   : > { %v16783_v28 = vmax.f32 %v16751_v38, 0.0 }
 0xa32   : > { %v16782_v57 = vmax.f32 %v16750_v48, 0.0  ;;  %v22111_v29 = vpop.f32.mrb[152].mxu1 }
 0xa33   : > { %v16803_v14 = vmax.f32 %v16781_v56, %v16783_v28  ;;  %v16650_v22 = vpop.f32.mrb[153].mxu1  ;;  %v16753_v1 = vadd.f32 %v22111_v29, %v28289_v51 }
 0xa34   : > { %v16802_v52 = vmax.f32 %v16780_v23, %v16782_v57  ;;  %v16752_v43 = vadd.f32 %v28289_v51, %v16650_v22 }
 0xa35   : > { %v16833_v41 = vld [vmem:[#allocation5 + $0x40] ss:$2 sm:$0xff]  ;;  %v16849_v25 = vld [vmem:[#allocation5 + $0x41] ss:$2 sm:$0xff]  ;;  %16820 = vst.msk [vmem:[#allocation5 + $0x58] sm:$0xff] %vm16808_vm3, %v16803_v14  ;;  %v16785_v60 = vmax.f32 %v16753_v1, 0.0 }
 0xa36   : > { %v16860_v3 = vmax.f32 %v16833_v41, %v16849_v25  ;;  %16819 = vst.msk [vmem:[#allocation5 + $0x50] sm:$0xff] %vm16808_vm3, %v16802_v52  ;;  %v22114_v47 = vpop.f32.mrb[154].mxu1  ;;  %v16784_v15 = vmax.f32 %v16752_v43, 0.0 }
 0xa37   : > { %v16755_v40 = vadd.f32 %v22114_v47, %v28289_v51  ;;  %v16660_v37 = vpop.f32.mrb[155].mxu1 }
 0xa38   : > { %16868 = vst.msk [vmem:[%s28305_s17 + $0x20] sm:$0xff] %vm16808_vm3, %v16860_v3  ;;  %v16754_v20 = vadd.f32 %v28289_v51, %v16660_v37 }
 0xa39   : > { %v16787_v31 = vmax.f32 %v16755_v40, 0.0 }
 0xa3a   : > { %v16786_v35 = vmax.f32 %v16754_v20, 0.0  ;;  %v22117_v4 = vpop.f32.mrb[156].mxu1 }
 0xa3b   : > { %v16805_v30 = vmax.f32 %v16785_v60, %v16787_v31  ;;  %v16670_v42 = vpop.f32.mrb[157].mxu1  ;;  %v16757_v12 = vadd.f32 %v22117_v4, %v28289_v51 }
 0xa3c   : > { %v16804_v50 = vmax.f32 %v16784_v15, %v16786_v35  ;;  %v16756_v18 = vadd.f32 %v28289_v51, %v16670_v42 }
 0xa3d   : > { %v16835_v44 = vld [vmem:[#allocation5 + $0x50] ss:$2 sm:$0xff]  ;;  %v16851_v19 = vld [vmem:[#allocation5 + $0x51] ss:$2 sm:$0xff]  ;;  %16822 = vst.msk [vmem:[#allocation5 + $0x68] sm:$0xff] %vm16808_vm3, %v16805_v30  ;;  %v16789_v24 = vmax.f32 %v16757_v12, 0.0 }
 0xa3e   : > { %v16861_v11 = vmax.f32 %v16835_v44, %v16851_v19  ;;  %16821 = vst.msk [vmem:[#allocation5 + $0x60] sm:$0xff] %vm16808_vm3, %v16804_v50  ;;  %v22120_v32 = vpop.f32.mrb[158].mxu1  ;;  %v16788_v62 = vmax.f32 %v16756_v18, 0.0 }
 0xa3f   : > { %v16759_v63 = vadd.f32 %v22120_v32, %v28289_v51  ;;  %v16680_v34 = vpop.f32.mrb[159].mxu1 }
 0xa40   : > { %16869 = vst.msk [vmem:[%s28305_s17 + $0x28] sm:$0xff] %vm16808_vm3, %v16861_v11  ;;  %v16758_v13 = vadd.f32 %v28289_v51, %v16680_v34 }
 0xa41   : > { %v16791_v26 = vmax.f32 %v16759_v63, 0.0 }
 0xa42   : > { %v16790_v54 = vmax.f32 %v16758_v13, 0.0 }
 0xa43   : > { %v16807_v2 = vmax.f32 %v16789_v24, %v16791_v26 }
 0xa44   : > { %v16806_v53 = vmax.f32 %v16788_v62, %v16790_v54 }
 0xa45   : > { %v16837_v9 = vld [vmem:[#allocation5 + $0x60] ss:$2 sm:$0xff]  ;;  %v16853_v46 = vld [vmem:[#allocation5 + $0x61] ss:$2 sm:$0xff]  ;;  %16824 = vst.msk [vmem:[#allocation5 + $0x78] sm:$0xff] %vm16808_vm3, %v16807_v2 }
 0xa46   : > { %v16862_v8 = vmax.f32 %v16837_v9, %v16853_v46  ;;  %16823 = vst.msk [vmem:[#allocation5 + $0x70] sm:$0xff] %vm16808_vm3, %v16806_v53 }
 0xa48   : > { %16870 = vst.msk [vmem:[%s28305_s17 + $0x30] sm:$0xff] %vm16808_vm3, %v16862_v8 }
 0xa4d   : > { %v16839_v39 = vld [vmem:[#allocation5 + $0x70] ss:$2 sm:$0xff]  ;;  %v16855_v36 = vld [vmem:[#allocation5 + $0x71] ss:$2 sm:$0xff] }
 0xa4e   : > { %v16863_v45 = vmax.f32 %v16839_v39, %v16855_v36 }
 0xa50   : > { %16871 = vst.msk [vmem:[%s28305_s17 + $0x38] sm:$0xff] %vm16808_vm3, %v16863_v45 }
 0xa51 PF: > { %s18_s18 = sadd.s32 1, %s23637_s18  }
 0xa52   : > { %p15_p11 = scmp.ge.s32.totalorder %s18_s18, 4  }
 0xa54   :  { %17 = sbr.rel (!%p15_p11) target bundleno = 3 (0x3), region = 185 }
 0xa5b   :  { %16893 = vsyncpa [#allocation7], 1 }
 0xa5c   :  { %16895 = vsyncpa [#allocation7 + $0x1], 1 }
 0xa5d   :  { %16896 = vsyncpa [#allocation9], 1 }
 0xa5e   :  { %16897 = vsyncpa [#allocation12], 1 }

</bundles_post_ra>
